<compile_context>
chip_gen: v7x
topology: tpu7x:2x2x1
jax: 0.10.0
libtpu: 0.0.40
codegen_flags: <defaults>
</compile_context>

<pallas_src>
import functools

import jax
import jax.numpy as jnp
from jax.experimental import pallas as pl
from jax.experimental.pallas import tpu as pltpu  # noqa: F401  (TPU backend)

# ---------------- configuration (small, consistent with the module) ----------
B = 2            # batch
L = 8            # maxlen / seq length
H = 32           # hidden_units
HEADS = 2        # num_heads
HS = H // HEADS  # head_size
NUM_BLOCKS = 2
ITEM_NUM = 10
N_ITEMS = ITEM_NUM + 1   # embedding rows (padding idx 0)
TIME_SPAN = 16
DIS_SPAN = 16
GEO_WEIGHT = 0.5

NEG_INF = float(-2 ** 32 + 1)                   # matches PyTorch paddings value
INV_SQRT_HS = 1.0 / (HS ** 0.5)
REL_W = (TIME_SPAN + 1) + (DIS_SPAN + 1)        # combined one-hot width (34)


# ============================ kernel helpers =================================

def _ln(x, g, b, eps=1e-8):
    # nn.LayerNorm(hidden, eps=1e-08) over the last axis (biased variance).
    mu = jnp.mean(x, axis=-1, keepdims=True)
    var = jnp.mean((x - mu) * (x - mu), axis=-1, keepdims=True)
    return (x - mu) * jax.lax.rsqrt(var + eps) * g + b


def _softplus(z):
    # nn.Softplus(beta=1) with the default threshold=20 linearization.
    soft = jnp.log(1.0 + jnp.exp(jnp.minimum(z, 20.0)))
    return jnp.where(z > 20.0, z, soft)


# ============================ fused Pallas kernel ============================

def _depoi_fused_kernel(
    tran_ref, geo_ref, wt_ref, wg_ref,
    log_ref, pos_ref, neg_ref, tmat_ref, dmat_ref,
    rel_tab_ref, apk_ref, apv_ref,
    ln1g_ref, ln1b_ref, wqkv_ref, bqkv_ref,
    ln2g_ref, ln2b_ref, w1_ref, b1_ref, w2_ref, b2_ref,
    lnfg_ref, lnfb_ref,
    cit_out, bit_out, con_out, cb_out, logits3_out, fin_out, finb_out,
):
    f32 = jnp.float32
    TB = 2 * B                 # causal pass rows then bias pass rows
    BBL = TB * L
    BL = B * L

    # ---------------- item-embedding prologue --------------------------------
    tran = tran_ref[...]                                  # (N, H)
    geo = geo_ref[...]
    # TODO(synk): DeGCN stand-in (causal = table, bias = 0.5 * table).
    ct, cg = tran, geo
    bt, bg = 0.5 * tran, 0.5 * geo

    tran_pool = jnp.dot(jnp.mean(ct, axis=0, keepdims=True), wt_ref[...],
                        preferred_element_type=f32)        # (1, H)
    geo_pool = jnp.dot(jnp.mean(cg, axis=0, keepdims=True), wg_ref[...],
                       preferred_element_type=f32)

    # Contrastive_BPR(x, pos, neg) = softplus((x*neg).sum(-1) - (x*pos).sum(-1))
    z1 = (jnp.sum(ct * geo_pool, axis=-1, keepdims=True)
          - jnp.sum(ct * tran_pool, axis=-1, keepdims=True))
    z2 = (jnp.sum(cg * tran_pool, axis=-1, keepdims=True)
          - jnp.sum(cg * geo_pool, axis=-1, keepdims=True))
    con_out[...] = _softplus(z1) + _softplus(z2)           # (N, 1)

    cit = ct + GEO_WEIGHT * cg
    bit = bt + GEO_WEIGHT * bg
    cit_out[...] = cit
    bit_out[...] = bit

    cpool = jnp.mean(cit, axis=0, keepdims=True)
    bpool = jnp.mean(bit, axis=0, keepdims=True)
    nc = jnp.sum((cit - cpool) ** 2, axis=-1, keepdims=True)
    nb = jnp.sum((cit - bpool) ** 2, axis=-1, keepdims=True)
    # reference adds the 1e-6 epsilon per item before summing
    cb_out[...] = jnp.sum((nc - nb) ** 2 + 1e-6, axis=0, keepdims=True)  # (1, 1)

    # ---------------- in-kernel gathers (one-hot matmuls) --------------------
    def item_onehot(idx_ref):                               # (B, L) int32 -> (BL, N)
        io = jax.lax.broadcasted_iota(jnp.int32, (B, L, N_ITEMS), 2)
        return (io == idx_ref[...][:, :, None]).astype(f32).reshape(BL, N_ITEMS)

    oh_log = item_onehot(log_ref)
    oh_pos = item_onehot(pos_ref)
    oh_neg = item_onehot(neg_ref)

    # sequence embeddings for both passes from ONE matmul against [cit | bit]
    seq_cb = jnp.dot(oh_log, jnp.concatenate([cit, bit], axis=1),
                     preferred_element_type=f32)            # (BL, 2H)
    keep1 = 1.0 - oh_log[:, 0:1]                            # 1.0 where item != 0
    keep = jnp.concatenate([keep1, keep1], axis=0)          # (BBL, 1)
    x = (jnp.concatenate([seq_cb[:, :H], seq_cb[:, H:]], axis=0)
         * (H ** 0.5)) * keep                               # (BBL, H) scaled + masked

    # combined (time_K+dis_K | time_V+dis_V) relative rows from ONE matmul
    tmat = tmat_ref[...].reshape(BL, L)                     # (B,L,L) -> (BL, L)
    dmat = dmat_ref[...].reshape(BL, L) + (TIME_SPAN + 1)   # offset into table
    io_r = jax.lax.broadcasted_iota(jnp.int32, (BL, L, REL_W), 2)
    oh_rel = ((io_r == tmat[:, :, None]).astype(f32)
              + (io_r == dmat[:, :, None]).astype(f32)).reshape(BL * L, REL_W)
    rel = jnp.dot(oh_rel, rel_tab_ref[...],
                  preferred_element_type=f32)               # (BL*L, 2H)
    relK = rel[:, :H].reshape(BL, L, H)
    relV = rel[:, H:].reshape(BL, L, H)
    relKt = jnp.concatenate([relK, relK], axis=0)           # (BBL, L, H) both passes
    relVt = jnp.concatenate([relV, relV], axis=0)

    # ---------------- hoisted per-head constants & additive mask -------------
    apk = apk_ref[...]                                      # (L, H)
    apv = apv_ref[...]
    relk_h = [relKt[:, :, h * HS:(h + 1) * HS] for h in range(HEADS)]
    relv_h = [relVt[:, :, h * HS:(h + 1) * HS] for h in range(HEADS)]
    apk_h = [apk[:, h * HS:(h + 1) * HS] for h in range(HEADS)]
    apv_h = [apv[:, h * HS:(h + 1) * HS] for h in range(HEADS)]

    rowp = jax.lax.broadcasted_iota(jnp.int32, (TB, L, L), 1)
    colp = jax.lax.broadcasted_iota(jnp.int32, (TB, L, L), 2)
    bad = (colp > rowp).astype(f32).reshape(BBL, L) + (1.0 - keep)
    addmask = jnp.where(bad > 0.0, NEG_INF, 0.0)            # (BBL, L) additive

    # ---------------- transformer blocks (causal + bias stacked) -------------
    for blk in range(NUM_BLOCKS):
        q_in = _ln(x, ln1g_ref[blk], ln1b_ref[blk])                        # (BBL, H)
        # single stacked MXU issue: [LN(x); x] @ [Wq | Wk | Wv]
        proj = jnp.dot(jnp.concatenate([q_in, x], axis=0), wqkv_ref[blk],
                       preferred_element_type=f32)                         # (2BBL, 3H)
        bqkv = bqkv_ref[blk]                                               # (1, 3H)

        head_outs = []
        for h in range(HEADS):
            q_sl = slice(h * HS, (h + 1) * HS)
            k_sl = slice(H + h * HS, H + (h + 1) * HS)
            v_sl = slice(2 * H + h * HS, 2 * H + (h + 1) * HS)
            qh = proj[:BBL, q_sl] + bqkv[:, q_sl]                          # (BBL, HS)
            kh = (proj[BBL:, k_sl] + bqkv[:, k_sl]).reshape(TB, L, HS) + apk_h[h][None]
            vh = (proj[BBL:, v_sl] + bqkv[:, v_sl]).reshape(TB, L, HS) + apv_h[h][None]

            # Q (K + abs_pos_K)^T  +  (time_K + dis_K) . Q
            attn = jnp.einsum('bqd,bkd->bqk', qh.reshape(TB, L, HS), kh,
                              preferred_element_type=f32).reshape(BBL, L)
            attn = attn + jnp.sum(relk_h[h] * qh[:, None, :], axis=-1)
            attn = attn * INV_SQRT_HS + addmask
            attn = attn - jnp.max(attn, axis=-1, keepdims=True)
            e = jnp.exp(attn)
            p = e / jnp.sum(e, axis=-1, keepdims=True)

            # P (V + abs_pos_V)  +  P . (time_V + dis_V)
            outh = jnp.einsum('bqk,bkd->bqd', p.reshape(TB, L, L), vh,
                              preferred_element_type=f32).reshape(BBL, HS)
            outh = outh + jnp.sum(p[:, :, None] * relv_h[h], axis=1)
            head_outs.append(outh)

        mha = jnp.concatenate(head_outs, axis=-1)                          # (BBL, H)
        x = q_in + mha
        x = _ln(x, ln2g_ref[blk], ln2b_ref[blk])
        hmid = jnp.maximum(
            jnp.dot(x, w1_ref[blk], preferred_element_type=f32) + b1_ref[blk], 0.0)
        x = jnp.dot(hmid, w2_ref[blk], preferred_element_type=f32) + b2_ref[blk] + x
        x = x * keep                                                       # re-mask pads

    # ---------------- logits epilogue ----------------------------------------
    feats = _ln(x, lnfg_ref[...], lnfb_ref[...])                           # (BBL, H)
    feats_c = feats[:BL]
    feats_b = feats[BL:]
    fin_c = jnp.einsum('nh,mh->nm', feats_c, cit, preferred_element_type=f32)
    fin_b = jnp.einsum('nh,mh->nm', feats_b, bit, preferred_element_type=f32)
    fin_out[...] = fin_c
    finb_out[...] = fin_b
    # pos/neg/pos_bias logits = one-hot row selection from fin logits
    pos_l = jnp.sum(fin_c * oh_pos, axis=-1, keepdims=True)
    neg_l = jnp.sum(fin_c * oh_neg, axis=-1, keepdims=True)
    posb_l = jnp.sum(fin_b * oh_pos, axis=-1, keepdims=True)
    logits3_out[...] = jnp.concatenate([pos_l, neg_l, posb_l], axis=-1)    # (BL, 3)


# ============================ forward (JAX glue) =============================

def depoi_forward(params, user_ids, log_seqs, time_matrices, dis_matrices,
                  pos_seqs, neg_seqs, anchor_idx):
    del user_ids, anchor_idx  # unused by the computation reproduced here
    b, l = log_seqs.shape
    n = params["tran_item_emb"].shape[0]

    outs = pl.pallas_call(
        _depoi_fused_kernel,
        out_shape=(
            jax.ShapeDtypeStruct((n, H), jnp.float32),        # causal item embs
            jax.ShapeDtypeStruct((n, H), jnp.float32),        # bias item embs
            jax.ShapeDtypeStruct((n, 1), jnp.float32),        # con_loss per item
            jax.ShapeDtypeStruct((1, 1), jnp.float32),        # cb_con_loss
            jax.ShapeDtypeStruct((b * l, 3), jnp.float32),    # [pos, neg, pos_bias]
            jax.ShapeDtypeStruct((b * l, n), jnp.float32),    # fin_logits
            jax.ShapeDtypeStruct((b * l, n), jnp.float32),    # fin_logits_bias
        ),
    )(params["tran_item_emb"], params["geo_item_emb"],
      params["tran_proj_w"], params["geo_proj_w"],
      log_seqs.astype(jnp.int32), pos_seqs.astype(jnp.int32),
      neg_seqs.astype(jnp.int32),
      time_matrices.astype(jnp.int32), dis_matrices.astype(jnp.int32),
      params["rel_tab"], params["abs_pos_K"], params["abs_pos_V"],
      params["ln1_g"], params["ln1_b"], params["Wqkv"], params["bqkv"],
      params["ln2_g"], params["ln2_b"], params["W1"], params["b1"],
      params["W2"], params["b2"], params["ln_last_g"], params["ln_last_b"])

    cit, bit, con, cb, logits3, fin_logits, fin_logits_bias = outs
    pos_logits = logits3[:, 0].reshape(b, l)
    neg_logits = logits3[:, 1].reshape(b, l)
    pos_logits_bias = logits3[:, 2].reshape(b, l)
    con_loss = con[:, 0]
    cb_con_loss = cb[0, 0]
    tran_support_loss = jnp.float32(0.0)   # TODO(synk): DeGCN support losses
    geo_support_loss = jnp.float32(0.0)

    return (pos_logits, neg_logits, fin_logits, cit[0],
            tran_support_loss, geo_support_loss, cit, bit,
            pos_logits_bias, fin_logits_bias, con_loss, cb_con_loss)


# ============================ parameter init =================================

def init_params(key):
    keys = iter(jax.random.split(key, 64))

    def nrm(shape, scale=0.02):
        return (jax.random.normal(next(keys), shape) * scale).astype(jnp.float32)

    # relative-position tables, stored pre-fused as [time_K|dis_K ; time_V|dis_V]
    time_K, dis_K = nrm((TIME_SPAN + 1, H)), nrm((DIS_SPAN + 1, H))
    time_V, dis_V = nrm((TIME_SPAN + 1, H)), nrm((DIS_SPAN + 1, H))
    rel_tab = jnp.concatenate(
        [jnp.concatenate([time_K, dis_K], axis=0),
         jnp.concatenate([time_V, dis_V], axis=0)], axis=1)       # (REL_W, 2H)

    # per-block attention projections, stored pre-stacked as [Wq | Wk | Wv]
    wqkv = jnp.stack([jnp.concatenate([nrm((H, H)), nrm((H, H)), nrm((H, H))],
                                      axis=1) for _ in range(NUM_BLOCKS)])
    bqkv = jnp.stack([nrm((1, 3 * H)) for _ in range(NUM_BLOCKS)])

    params = {
        "tran_item_emb": nrm((N_ITEMS, H)).at[0].set(0.0),   # padding_idx=0
        "geo_item_emb": nrm((N_ITEMS, H)).at[0].set(0.0),
        "tran_proj_w": nrm((H, H)),
        "geo_proj_w": nrm((H, H)),
        "abs_pos_K": nrm((L, H)),
        "abs_pos_V": nrm((L, H)),
        "rel_tab": rel_tab,
        "ln_last_g": jnp.ones((1, H), jnp.float32),
        "ln_last_b": jnp.zeros((1, H), jnp.float32),
        # per-block weights stacked on a leading NUM_BLOCKS axis for static
        # indexing inside the fused kernel's block loop.
        "ln1_g": jnp.ones((NUM_BLOCKS, 1, H), jnp.float32),
        "ln1_b": jnp.zeros((NUM_BLOCKS, 1, H), jnp.float32),
        "Wqkv": wqkv,                                        # (NB, H, 3H)
        "bqkv": bqkv,                                        # (NB, 1, 3H)
        "ln2_g": jnp.ones((NUM_BLOCKS, 1, H), jnp.float32),
        "ln2_b": jnp.zeros((NUM_BLOCKS, 1, H), jnp.float32),
        "W1": nrm((NUM_BLOCKS, H, H)),
        "b1": nrm((NUM_BLOCKS, 1, H)),
        "W2": nrm((NUM_BLOCKS, H, H)),
        "b2": nrm((NUM_BLOCKS, 1, H)),
    }
    return params


# ============================ main ===========================================

if __name__ == "__main__":
    params = init_params(jax.random.PRNGKey(0))

    kd = jax.random.split(jax.random.PRNGKey(0), 8)
    user_ids = jnp.arange(B, dtype=jnp.int32)
    log_seqs = jax.random.randint(kd[1], (B, L), 0, ITEM_NUM + 1, dtype=jnp.int32)
    time_matrices = jax.random.randint(kd[2], (B, L, L), 0, TIME_SPAN + 1, dtype=jnp.int32)
    dis_matrices = jax.random.randint(kd[3], (B, L, L), 0, DIS_SPAN + 1, dtype=jnp.int32)
    pos_seqs = jax.random.randint(kd[4], (B, L), 1, ITEM_NUM + 1, dtype=jnp.int32)
    neg_seqs = jax.random.randint(kd[5], (B, L), 1, ITEM_NUM + 1, dtype=jnp.int32)
    anchor_idx = jnp.arange(4, dtype=jnp.int32)

    fwd = jax.jit(functools.partial(depoi_forward, params))
    outs = fwd(user_ids, log_seqs, time_matrices, dis_matrices,
               pos_seqs, neg_seqs, anchor_idx)
    jax.block_until_ready(outs)
    print("KERNEL_OK")
</pallas_src>

<mosaic_0001>
module attributes {stable_mosaic.version = 11 : i64} {
  func.func @_depoi_fused_kernel(%arg0: memref<11x32xf32, #tpu.memory_space<vmem>>, %arg1: memref<11x32xf32, #tpu.memory_space<vmem>>, %arg2: memref<32x32xf32, #tpu.memory_space<vmem>>, %arg3: memref<32x32xf32, #tpu.memory_space<vmem>>, %arg4: memref<2x8xi32, #tpu.memory_space<vmem>>, %arg5: memref<2x8xi32, #tpu.memory_space<vmem>>, %arg6: memref<2x8xi32, #tpu.memory_space<vmem>>, %arg7: memref<2x8x8xi32, #tpu.memory_space<vmem>>, %arg8: memref<2x8x8xi32, #tpu.memory_space<vmem>>, %arg9: memref<34x64xf32, #tpu.memory_space<vmem>>, %arg10: memref<8x32xf32, #tpu.memory_space<vmem>>, %arg11: memref<8x32xf32, #tpu.memory_space<vmem>>, %arg12: memref<2x1x32xf32, #tpu.memory_space<vmem>>, %arg13: memref<2x1x32xf32, #tpu.memory_space<vmem>>, %arg14: memref<2x32x96xf32, #tpu.memory_space<vmem>>, %arg15: memref<2x1x96xf32, #tpu.memory_space<vmem>>, %arg16: memref<2x1x32xf32, #tpu.memory_space<vmem>>, %arg17: memref<2x1x32xf32, #tpu.memory_space<vmem>>, %arg18: memref<2x32x32xf32, #tpu.memory_space<vmem>>, %arg19: memref<2x1x32xf32, #tpu.memory_space<vmem>>, %arg20: memref<2x32x32xf32, #tpu.memory_space<vmem>>, %arg21: memref<2x1x32xf32, #tpu.memory_space<vmem>>, %arg22: memref<1x32xf32, #tpu.memory_space<vmem>>, %arg23: memref<1x32xf32, #tpu.memory_space<vmem>>, %arg24: memref<11x32xf32, #tpu.memory_space<vmem>>, %arg25: memref<11x32xf32, #tpu.memory_space<vmem>>, %arg26: memref<11x1xf32, #tpu.memory_space<vmem>>, %arg27: memref<1x1xf32, #tpu.memory_space<vmem>>, %arg28: memref<16x3xf32, #tpu.memory_space<vmem>>, %arg29: memref<16x11xf32, #tpu.memory_space<vmem>>, %arg30: memref<16x11xf32, #tpu.memory_space<vmem>>) attributes {dimension_semantics = [], scalar_prefetch = 0 : i64, scratch_operands = 0 : i64, tpu.core_type = #tpu.core_type<tc>} {
    %c0 = arith.constant 0 : index
    %c0_0 = arith.constant 0 : index
    %0 = vector.load %arg0[%c0, %c0_0] : memref<11x32xf32, #tpu.memory_space<vmem>>, vector<11x32xf32>
    %c0_1 = arith.constant 0 : index
    %c0_2 = arith.constant 0 : index
    %1 = vector.load %arg1[%c0_1, %c0_2] : memref<11x32xf32, #tpu.memory_space<vmem>>, vector<11x32xf32>
    %cst = arith.constant 5.000000e-01 : f32
    %2 = vector.broadcast %cst : f32 to vector<11x32xf32>
    %3 = arith.mulf %2, %0 : vector<11x32xf32>
    %cst_3 = arith.constant 5.000000e-01 : f32
    %4 = vector.broadcast %cst_3 : f32 to vector<11x32xf32>
    %5 = arith.mulf %4, %1 : vector<11x32xf32>
    %cst_4 = arith.constant dense<0.000000e+00> : vector<32xf32>
    %6 = vector.multi_reduction <add>, %0, %cst_4 [0] : vector<11x32xf32> to vector<32xf32>
    %7 = vector.shape_cast %6 : vector<32xf32> to vector<1x32xf32>
    %cst_5 = arith.constant 1.100000e+01 : f32
    %8 = vector.broadcast %cst_5 : f32 to vector<1x32xf32>
    %9 = arith.divf %7, %8 : vector<1x32xf32>
    %c0_6 = arith.constant 0 : index
    %c0_7 = arith.constant 0 : index
    %10 = vector.load %arg2[%c0_6, %c0_7] : memref<32x32xf32, #tpu.memory_space<vmem>>, vector<32x32xf32>
    %cst_8 = arith.constant dense<0.000000e+00> : vector<1x32xf32>
    %11 = tpu.matmul %9, %10, %cst_8 {dimension_numbers = #tpu.dot_dimension_numbers<[1], [0], [0], [1], [0, 0, 1, 1], [], []>} : vector<1x32xf32>, vector<32x32xf32>, vector<1x32xf32> -> vector<1x32xf32>
    %cst_9 = arith.constant dense<0.000000e+00> : vector<32xf32>
    %12 = vector.multi_reduction <add>, %1, %cst_9 [0] : vector<11x32xf32> to vector<32xf32>
    %13 = vector.shape_cast %12 : vector<32xf32> to vector<1x32xf32>
    %cst_10 = arith.constant 1.100000e+01 : f32
    %14 = vector.broadcast %cst_10 : f32 to vector<1x32xf32>
    %15 = arith.divf %13, %14 : vector<1x32xf32>
    %c0_11 = arith.constant 0 : index
    %c0_12 = arith.constant 0 : index
    %16 = vector.load %arg3[%c0_11, %c0_12] : memref<32x32xf32, #tpu.memory_space<vmem>>, vector<32x32xf32>
    %cst_13 = arith.constant dense<0.000000e+00> : vector<1x32xf32>
    %17 = tpu.matmul %15, %16, %cst_13 {dimension_numbers = #tpu.dot_dimension_numbers<[1], [0], [0], [1], [0, 0, 1, 1], [], []>} : vector<1x32xf32>, vector<32x32xf32>, vector<1x32xf32> -> vector<1x32xf32>
    %18 = vector.broadcast %17 : vector<1x32xf32> to vector<11x32xf32>
    %19 = arith.mulf %0, %18 : vector<11x32xf32>
    %cst_14 = arith.constant dense<0.000000e+00> : vector<11xf32>
    %20 = vector.multi_reduction <add>, %19, %cst_14 [1] : vector<11x32xf32> to vector<11xf32>
    %21 = vector.shape_cast %20 : vector<11xf32> to vector<11x1xf32>
    %22 = vector.broadcast %11 : vector<1x32xf32> to vector<11x32xf32>
    %23 = arith.mulf %0, %22 : vector<11x32xf32>
    %cst_15 = arith.constant dense<0.000000e+00> : vector<11xf32>
    %24 = vector.multi_reduction <add>, %23, %cst_15 [1] : vector<11x32xf32> to vector<11xf32>
    %25 = vector.shape_cast %24 : vector<11xf32> to vector<11x1xf32>
    %26 = arith.subf %21, %25 : vector<11x1xf32>
    %27 = vector.broadcast %11 : vector<1x32xf32> to vector<11x32xf32>
    %28 = arith.mulf %1, %27 : vector<11x32xf32>
    %cst_16 = arith.constant dense<0.000000e+00> : vector<11xf32>
    %29 = vector.multi_reduction <add>, %28, %cst_16 [1] : vector<11x32xf32> to vector<11xf32>
    %30 = vector.shape_cast %29 : vector<11xf32> to vector<11x1xf32>
    %31 = vector.broadcast %17 : vector<1x32xf32> to vector<11x32xf32>
    %32 = arith.mulf %1, %31 : vector<11x32xf32>
    %cst_17 = arith.constant dense<0.000000e+00> : vector<11xf32>
    %33 = vector.multi_reduction <add>, %32, %cst_17 [1] : vector<11x32xf32> to vector<11xf32>
    %34 = vector.shape_cast %33 : vector<11xf32> to vector<11x1xf32>
    %35 = arith.subf %30, %34 : vector<11x1xf32>
    %cst_18 = arith.constant 2.000000e+01 : f32
    %36 = vector.broadcast %cst_18 : f32 to vector<11x1xf32>
    %37 = arith.minimumf %26, %36 : vector<11x1xf32>
    %38 = math.exp %37 : vector<11x1xf32>
    %cst_19 = arith.constant 1.000000e+00 : f32
    %39 = vector.broadcast %cst_19 : f32 to vector<11x1xf32>
    %40 = arith.addf %39, %38 : vector<11x1xf32>
    %41 = math.log %40 : vector<11x1xf32>
    %cst_20 = arith.constant 2.000000e+01 : f32
    %42 = vector.broadcast %cst_20 : f32 to vector<11x1xf32>
    %43 = arith.cmpf ogt, %26, %42 : vector<11x1xf32>
    %44 = arith.select %43, %26, %41 : vector<11x1xi1>, vector<11x1xf32>
    %cst_21 = arith.constant 2.000000e+01 : f32
    %45 = vector.broadcast %cst_21 : f32 to vector<11x1xf32>
    %46 = arith.minimumf %35, %45 : vector<11x1xf32>
    %47 = math.exp %46 : vector<11x1xf32>
    %cst_22 = arith.constant 1.000000e+00 : f32
    %48 = vector.broadcast %cst_22 : f32 to vector<11x1xf32>
    %49 = arith.addf %48, %47 : vector<11x1xf32>
    %50 = math.log %49 : vector<11x1xf32>
    %cst_23 = arith.constant 2.000000e+01 : f32
    %51 = vector.broadcast %cst_23 : f32 to vector<11x1xf32>
    %52 = arith.cmpf ogt, %35, %51 : vector<11x1xf32>
    %53 = arith.select %52, %35, %50 : vector<11x1xi1>, vector<11x1xf32>
    %54 = arith.addf %44, %53 : vector<11x1xf32>
    %c0_24 = arith.constant 0 : index
    %c0_25 = arith.constant 0 : index
    %55 = vector.load %arg26[%c0_24, %c0_25] : memref<11x1xf32, #tpu.memory_space<vmem>>, vector<11x1xf32>
    tpu.vector_store %arg26[%c0_24, %c0_25], %54 {strides = array<i32>} : memref<11x1xf32, #tpu.memory_space<vmem>>, vector<11x1xf32>,
    %cst_26 = arith.constant 5.000000e-01 : f32
    %56 = vector.broadcast %cst_26 : f32 to vector<11x32xf32>
    %57 = arith.mulf %56, %1 : vector<11x32xf32>
    %58 = arith.addf %0, %57 : vector<11x32xf32>
    %cst_27 = arith.constant 5.000000e-01 : f32
    %59 = vector.broadcast %cst_27 : f32 to vector<11x32xf32>
    %60 = arith.mulf %59, %5 : vector<11x32xf32>
    %61 = arith.addf %3, %60 : vector<11x32xf32>
    %c0_28 = arith.constant 0 : index
    %c0_29 = arith.constant 0 : index
    %62 = vector.load %arg24[%c0_28, %c0_29] : memref<11x32xf32, #tpu.memory_space<vmem>>, vector<11x32xf32>
    tpu.vector_store %arg24[%c0_28, %c0_29], %58 {strides = array<i32>} : memref<11x32xf32, #tpu.memory_space<vmem>>, vector<11x32xf32>,
    %c0_30 = arith.constant 0 : index
    %c0_31 = arith.constant 0 : index
    %63 = vector.load %arg25[%c0_30, %c0_31] : memref<11x32xf32, #tpu.memory_space<vmem>>, vector<11x32xf32>
    tpu.vector_store %arg25[%c0_30, %c0_31], %61 {strides = array<i32>} : memref<11x32xf32, #tpu.memory_space<vmem>>, vector<11x32xf32>,
    %cst_32 = arith.constant dense<0.000000e+00> : vector<32xf32>
    %64 = vector.multi_reduction <add>, %58, %cst_32 [0] : vector<11x32xf32> to vector<32xf32>
    %65 = vector.shape_cast %64 : vector<32xf32> to vector<1x32xf32>
    %cst_33 = arith.constant 1.100000e+01 : f32
    %66 = vector.broadcast %cst_33 : f32 to vector<1x32xf32>
    %67 = arith.divf %65, %66 : vector<1x32xf32>
    %cst_34 = arith.constant dense<0.000000e+00> : vector<32xf32>
    %68 = vector.multi_reduction <add>, %61, %cst_34 [0] : vector<11x32xf32> to vector<32xf32>
    %69 = vector.shape_cast %68 : vector<32xf32> to vector<1x32xf32>
    %cst_35 = arith.constant 1.100000e+01 : f32
    %70 = vector.broadcast %cst_35 : f32 to vector<1x32xf32>
    %71 = arith.divf %69, %70 : vector<1x32xf32>
    %72 = vector.broadcast %67 : vector<1x32xf32> to vector<11x32xf32>
    %73 = arith.subf %58, %72 : vector<11x32xf32>
    %74 = arith.mulf %73, %73 : vector<11x32xf32>
    %cst_36 = arith.constant dense<0.000000e+00> : vector<11xf32>
    %75 = vector.multi_reduction <add>, %74, %cst_36 [1] : vector<11x32xf32> to vector<11xf32>
    %76 = vector.shape_cast %75 : vector<11xf32> to vector<11x1xf32>
    %77 = vector.broadcast %71 : vector<1x32xf32> to vector<11x32xf32>
    %78 = arith.subf %58, %77 : vector<11x32xf32>
    %79 = arith.mulf %78, %78 : vector<11x32xf32>
    %cst_37 = arith.constant dense<0.000000e+00> : vector<11xf32>
    %80 = vector.multi_reduction <add>, %79, %cst_37 [1] : vector<11x32xf32> to vector<11xf32>
    %81 = vector.shape_cast %80 : vector<11xf32> to vector<11x1xf32>
    %82 = arith.subf %76, %81 : vector<11x1xf32>
    %83 = arith.mulf %82, %82 : vector<11x1xf32>
    %cst_38 = arith.constant 9.99999997E-7 : f32
    %84 = vector.broadcast %cst_38 : f32 to vector<11x1xf32>
    %85 = arith.addf %83, %84 : vector<11x1xf32>
    %cst_39 = arith.constant dense<0.000000e+00> : vector<1xf32>
    %86 = vector.multi_reduction <add>, %85, %cst_39 [0] : vector<11x1xf32> to vector<1xf32>
    %87 = vector.shape_cast %86 : vector<1xf32> to vector<1x1xf32>
    %c0_40 = arith.constant 0 : index
    %c0_41 = arith.constant 0 : index
    %88 = vector.load %arg27[%c0_40, %c0_41] : memref<1x1xf32, #tpu.memory_space<vmem>>, vector<1x1xf32>
    tpu.vector_store %arg27[%c0_40, %c0_41], %87 {strides = array<i32>} : memref<1x1xf32, #tpu.memory_space<vmem>>, vector<1x1xf32>,
    %89 = tpu.iota {dimensions = array<i32: 2>} : vector<2x8x11xi32>
    %c0_42 = arith.constant 0 : index
    %c0_43 = arith.constant 0 : index
    %90 = vector.load %arg4[%c0_42, %c0_43] : memref<2x8xi32, #tpu.memory_space<vmem>>, vector<2x8xi32>
    %91 = vector.shape_cast %90 : vector<2x8xi32> to vector<2x8x1xi32>
    %92 = vector.broadcast %91 : vector<2x8x1xi32> to vector<2x8x11xi32>
    %93 = arith.cmpi eq, %89, %92 : vector<2x8x11xi32>
    %94 = arith.extui %93 : vector<2x8x11xi1> to vector<2x8x11xi32>
    %95 = arith.sitofp %94 : vector<2x8x11xi32> to vector<2x8x11xf32>
    %96 = vector.shape_cast %95 : vector<2x8x11xf32> to vector<16x11xf32>
    %97 = tpu.iota {dimensions = array<i32: 2>} : vector<2x8x11xi32>
    %c0_44 = arith.constant 0 : index
    %c0_45 = arith.constant 0 : index
    %98 = vector.load %arg5[%c0_44, %c0_45] : memref<2x8xi32, #tpu.memory_space<vmem>>, vector<2x8xi32>
    %99 = vector.shape_cast %98 : vector<2x8xi32> to vector<2x8x1xi32>
    %100 = vector.broadcast %99 : vector<2x8x1xi32> to vector<2x8x11xi32>
    %101 = arith.cmpi eq, %97, %100 : vector<2x8x11xi32>
    %102 = arith.extui %101 : vector<2x8x11xi1> to vector<2x8x11xi32>
    %103 = arith.sitofp %102 : vector<2x8x11xi32> to vector<2x8x11xf32>
    %104 = vector.shape_cast %103 : vector<2x8x11xf32> to vector<16x11xf32>
    %105 = tpu.iota {dimensions = array<i32: 2>} : vector<2x8x11xi32>
    %c0_46 = arith.constant 0 : index
    %c0_47 = arith.constant 0 : index
    %106 = vector.load %arg6[%c0_46, %c0_47] : memref<2x8xi32, #tpu.memory_space<vmem>>, vector<2x8xi32>
    %107 = vector.shape_cast %106 : vector<2x8xi32> to vector<2x8x1xi32>
    %108 = vector.broadcast %107 : vector<2x8x1xi32> to vector<2x8x11xi32>
    %109 = arith.cmpi eq, %105, %108 : vector<2x8x11xi32>
    %110 = arith.extui %109 : vector<2x8x11xi1> to vector<2x8x11xi32>
    %111 = arith.sitofp %110 : vector<2x8x11xi32> to vector<2x8x11xf32>
    %112 = vector.shape_cast %111 : vector<2x8x11xf32> to vector<16x11xf32>
    %113 = tpu.concatenate %58, %61 in 1 : vector<11x32xf32>, vector<11x32xf32> -> vector<11x64xf32>
    %cst_48 = arith.constant dense<0.000000e+00> : vector<16x64xf32>
    %114 = tpu.matmul %96, %113, %cst_48 {dimension_numbers = #tpu.dot_dimension_numbers<[1], [0], [0], [1], [0, 0, 1, 1], [], []>} : vector<16x11xf32>, vector<11x64xf32>, vector<16x64xf32> -> vector<16x64xf32>
    %115 = vector.extract_strided_slice %96 {offsets = [0, 0], sizes = [16, 1], strides = [1, 1]} : vector<16x11xf32> to vector<16x1xf32>
    %cst_49 = arith.constant 1.000000e+00 : f32
    %116 = vector.broadcast %cst_49 : f32 to vector<16x1xf32>
    %117 = arith.subf %116, %115 : vector<16x1xf32>
    %118 = tpu.concatenate %117, %117 in 0 : vector<16x1xf32>, vector<16x1xf32> -> vector<32x1xf32>
    %119 = vector.extract_strided_slice %114 {offsets = [0, 0], sizes = [16, 32], strides = [1, 1]} : vector<16x64xf32> to vector<16x32xf32>
    %120 = vector.extract_strided_slice %114 {offsets = [0, 32], sizes = [16, 32], strides = [1, 1]} : vector<16x64xf32> to vector<16x32xf32>
    %121 = tpu.concatenate %119, %120 in 0 : vector<16x32xf32>, vector<16x32xf32> -> vector<32x32xf32>
    %cst_50 = arith.constant 5.65685415 : f32
    %122 = vector.broadcast %cst_50 : f32 to vector<32x32xf32>
    %123 = arith.mulf %121, %122 : vector<32x32xf32>
    %124 = vector.broadcast %118 : vector<32x1xf32> to vector<32x32xf32>
    %125 = arith.mulf %123, %124 : vector<32x32xf32>
    %c0_51 = arith.constant 0 : index
    %c0_52 = arith.constant 0 : index
    %c0_53 = arith.constant 0 : index
    %126 = vector.load %arg7[%c0_51, %c0_52, %c0_53] : memref<2x8x8xi32, #tpu.memory_space<vmem>>, vector<2x8x8xi32>
    %127 = vector.shape_cast %126 : vector<2x8x8xi32> to vector<16x8xi32>
    %c0_54 = arith.constant 0 : index
    %c0_55 = arith.constant 0 : index
    %c0_56 = arith.constant 0 : index
    %128 = vector.load %arg8[%c0_54, %c0_55, %c0_56] : memref<2x8x8xi32, #tpu.memory_space<vmem>>, vector<2x8x8xi32>
    %129 = vector.shape_cast %128 : vector<2x8x8xi32> to vector<16x8xi32>
    %c17_i32 = arith.constant 17 : i32
    %130 = vector.broadcast %c17_i32 : i32 to vector<16x8xi32>
    %131 = arith.addi %129, %130 : vector<16x8xi32>
    %132 = tpu.iota {dimensions = array<i32: 2>} : vector<16x8x34xi32>
    %133 = vector.shape_cast %127 : vector<16x8xi32> to vector<16x8x1xi32>
    %134 = vector.broadcast %133 : vector<16x8x1xi32> to vector<16x8x34xi32>
    %135 = arith.cmpi eq, %132, %134 : vector<16x8x34xi32>
    %136 = arith.extui %135 : vector<16x8x34xi1> to vector<16x8x34xi32>
    %137 = arith.sitofp %136 : vector<16x8x34xi32> to vector<16x8x34xf32>
    %138 = vector.shape_cast %131 : vector<16x8xi32> to vector<16x8x1xi32>
    %139 = vector.broadcast %138 : vector<16x8x1xi32> to vector<16x8x34xi32>
    %140 = arith.cmpi eq, %132, %139 : vector<16x8x34xi32>
    %141 = arith.extui %140 : vector<16x8x34xi1> to vector<16x8x34xi32>
    %142 = arith.sitofp %141 : vector<16x8x34xi32> to vector<16x8x34xf32>
    %143 = arith.addf %137, %142 : vector<16x8x34xf32>
    %144 = vector.shape_cast %143 : vector<16x8x34xf32> to vector<128x34xf32>
    %c0_57 = arith.constant 0 : index
    %c0_58 = arith.constant 0 : index
    %145 = vector.load %arg9[%c0_57, %c0_58] : memref<34x64xf32, #tpu.memory_space<vmem>>, vector<34x64xf32>
    %cst_59 = arith.constant dense<0.000000e+00> : vector<128x64xf32>
    %146 = tpu.matmul %144, %145, %cst_59 {dimension_numbers = #tpu.dot_dimension_numbers<[1], [0], [0], [1], [0, 0, 1, 1], [], []>} : vector<128x34xf32>, vector<34x64xf32>, vector<128x64xf32> -> vector<128x64xf32>
    %147 = vector.extract_strided_slice %146 {offsets = [0, 0], sizes = [128, 32], strides = [1, 1]} : vector<128x64xf32> to vector<128x32xf32>
    %148 = vector.shape_cast %147 : vector<128x32xf32> to vector<16x8x32xf32>
    %149 = vector.extract_strided_slice %146 {offsets = [0, 32], sizes = [128, 32], strides = [1, 1]} : vector<128x64xf32> to vector<128x32xf32>
    %150 = vector.shape_cast %149 : vector<128x32xf32> to vector<16x8x32xf32>
    %151 = tpu.concatenate %148, %148 in 0 : vector<16x8x32xf32>, vector<16x8x32xf32> -> vector<32x8x32xf32>
    %152 = tpu.concatenate %150, %150 in 0 : vector<16x8x32xf32>, vector<16x8x32xf32> -> vector<32x8x32xf32>
    %c0_60 = arith.constant 0 : index
    %c0_61 = arith.constant 0 : index
    %153 = vector.load %arg10[%c0_60, %c0_61] : memref<8x32xf32, #tpu.memory_space<vmem>>, vector<8x32xf32>
    %c0_62 = arith.constant 0 : index
    %c0_63 = arith.constant 0 : index
    %154 = vector.load %arg11[%c0_62, %c0_63] : memref<8x32xf32, #tpu.memory_space<vmem>>, vector<8x32xf32>
    %155 = vector.extract_strided_slice %151 {offsets = [0, 0, 0], sizes = [32, 8, 16], strides = [1, 1, 1]} : vector<32x8x32xf32> to vector<32x8x16xf32>
    %156 = vector.extract_strided_slice %151 {offsets = [0, 0, 16], sizes = [32, 8, 16], strides = [1, 1, 1]} : vector<32x8x32xf32> to vector<32x8x16xf32>
    %157 = vector.extract_strided_slice %152 {offsets = [0, 0, 0], sizes = [32, 8, 16], strides = [1, 1, 1]} : vector<32x8x32xf32> to vector<32x8x16xf32>
    %158 = vector.extract_strided_slice %152 {offsets = [0, 0, 16], sizes = [32, 8, 16], strides = [1, 1, 1]} : vector<32x8x32xf32> to vector<32x8x16xf32>
    %159 = vector.extract_strided_slice %153 {offsets = [0, 0], sizes = [8, 16], strides = [1, 1]} : vector<8x32xf32> to vector<8x16xf32>
    %160 = vector.extract_strided_slice %153 {offsets = [0, 16], sizes = [8, 16], strides = [1, 1]} : vector<8x32xf32> to vector<8x16xf32>
    %161 = vector.extract_strided_slice %154 {offsets = [0, 0], sizes = [8, 16], strides = [1, 1]} : vector<8x32xf32> to vector<8x16xf32>
    %162 = vector.extract_strided_slice %154 {offsets = [0, 16], sizes = [8, 16], strides = [1, 1]} : vector<8x32xf32> to vector<8x16xf32>
    %163 = tpu.iota {dimensions = array<i32: 1>} : vector<4x8x8xi32>
    %164 = tpu.iota {dimensions = array<i32: 2>} : vector<4x8x8xi32>
    %165 = arith.cmpi sgt, %164, %163 : vector<4x8x8xi32>
    %166 = arith.extui %165 : vector<4x8x8xi1> to vector<4x8x8xi32>
    %167 = arith.sitofp %166 : vector<4x8x8xi32> to vector<4x8x8xf32>
    %168 = vector.shape_cast %167 : vector<4x8x8xf32> to vector<32x8xf32>
    %cst_64 = arith.constant 1.000000e+00 : f32
    %169 = vector.broadcast %cst_64 : f32 to vector<32x1xf32>
    %170 = arith.subf %169, %118 : vector<32x1xf32>
    %171 = vector.broadcast %170 : vector<32x1xf32> to vector<32x8xf32>
    %172 = arith.addf %168, %171 : vector<32x8xf32>
    %cst_65 = arith.constant 0.000000e+00 : f32
    %173 = vector.broadcast %cst_65 : f32 to vector<32x8xf32>
    %174 = arith.cmpf ogt, %172, %173 : vector<32x8xf32>
    %cst_66 = arith.constant -4.2949673E+9 : f32
    %cst_67 = arith.constant 0.000000e+00 : f32
    %175 = vector.broadcast %cst_66 : f32 to vector<32x8xf32>
    %176 = vector.broadcast %cst_67 : f32 to vector<32x8xf32>
    %177 = arith.select %174, %175, %176 : vector<32x8xi1>, vector<32x8xf32>
    %c0_68 = arith.constant 0 : index
    %c0_69 = arith.constant 0 : index
    %c0_70 = arith.constant 0 : index
    %178 = vector.load %arg12[%c0_68, %c0_69, %c0_70] : memref<2x1x32xf32, #tpu.memory_space<vmem>>, vector<1x1x32xf32>
    %179 = vector.shape_cast %178 : vector<1x1x32xf32> to vector<1x32xf32>
    %c0_71 = arith.constant 0 : index
    %c0_72 = arith.constant 0 : index
    %c0_73 = arith.constant 0 : index
    %180 = vector.load %arg13[%c0_71, %c0_72, %c0_73] : memref<2x1x32xf32, #tpu.memory_space<vmem>>, vector<1x1x32xf32>
    %181 = vector.shape_cast %180 : vector<1x1x32xf32> to vector<1x32xf32>
    %cst_74 = arith.constant dense<0.000000e+00> : vector<32xf32>
    %182 = vector.multi_reduction <add>, %125, %cst_74 [1] : vector<32x32xf32> to vector<32xf32>
    %183 = vector.shape_cast %182 : vector<32xf32> to vector<32x1xf32>
    %cst_75 = arith.constant 3.200000e+01 : f32
    %184 = vector.broadcast %cst_75 : f32 to vector<32x1xf32>
    %185 = arith.divf %183, %184 : vector<32x1xf32>
    %186 = vector.broadcast %185 : vector<32x1xf32> to vector<32x32xf32>
    %187 = arith.subf %125, %186 : vector<32x32xf32>
    %188 = vector.broadcast %185 : vector<32x1xf32> to vector<32x32xf32>
    %189 = arith.subf %125, %188 : vector<32x32xf32>
    %190 = arith.mulf %187, %189 : vector<32x32xf32>
    %cst_76 = arith.constant dense<0.000000e+00> : vector<32xf32>
    %191 = vector.multi_reduction <add>, %190, %cst_76 [1] : vector<32x32xf32> to vector<32xf32>
    %192 = vector.shape_cast %191 : vector<32xf32> to vector<32x1xf32>
    %cst_77 = arith.constant 3.200000e+01 : f32
    %193 = vector.broadcast %cst_77 : f32 to vector<32x1xf32>
    %194 = arith.divf %192, %193 : vector<32x1xf32>
    %195 = vector.broadcast %185 : vector<32x1xf32> to vector<32x32xf32>
    %196 = arith.subf %125, %195 : vector<32x32xf32>
    %cst_78 = arith.constant 9.99999993E-9 : f32
    %197 = vector.broadcast %cst_78 : f32 to vector<32x1xf32>
    %198 = arith.addf %194, %197 : vector<32x1xf32>
    %199 = math.rsqrt %198 : vector<32x1xf32>
    %200 = vector.broadcast %199 : vector<32x1xf32> to vector<32x32xf32>
    %201 = arith.mulf %196, %200 : vector<32x32xf32>
    %202 = vector.broadcast %179 : vector<1x32xf32> to vector<32x32xf32>
    %203 = arith.mulf %201, %202 : vector<32x32xf32>
    %204 = vector.broadcast %181 : vector<1x32xf32> to vector<32x32xf32>
    %205 = arith.addf %203, %204 : vector<32x32xf32>
    %206 = tpu.concatenate %205, %125 in 0 : vector<32x32xf32>, vector<32x32xf32> -> vector<64x32xf32>
    %c0_79 = arith.constant 0 : index
    %c0_80 = arith.constant 0 : index
    %c0_81 = arith.constant 0 : index
    %207 = vector.load %arg14[%c0_79, %c0_80, %c0_81] : memref<2x32x96xf32, #tpu.memory_space<vmem>>, vector<1x32x96xf32>
    %208 = vector.shape_cast %207 : vector<1x32x96xf32> to vector<32x96xf32>
    %cst_82 = arith.constant dense<0.000000e+00> : vector<64x96xf32>
    %209 = tpu.matmul %206, %208, %cst_82 {dimension_numbers = #tpu.dot_dimension_numbers<[1], [0], [0], [1], [0, 0, 1, 1], [], []>} : vector<64x32xf32>, vector<32x96xf32>, vector<64x96xf32> -> vector<64x96xf32>
    %c0_83 = arith.constant 0 : index
    %c0_84 = arith.constant 0 : index
    %c0_85 = arith.constant 0 : index
    %210 = vector.load %arg15[%c0_83, %c0_84, %c0_85] : memref<2x1x96xf32, #tpu.memory_space<vmem>>, vector<1x1x96xf32>
    %211 = vector.shape_cast %210 : vector<1x1x96xf32> to vector<1x96xf32>
    %212 = vector.extract_strided_slice %209 {offsets = [0, 0], sizes = [32, 16], strides = [1, 1]} : vector<64x96xf32> to vector<32x16xf32>
    %213 = vector.extract_strided_slice %211 {offsets = [0, 0], sizes = [1, 16], strides = [1, 1]} : vector<1x96xf32> to vector<1x16xf32>
    %214 = vector.broadcast %213 : vector<1x16xf32> to vector<32x16xf32>
    %215 = arith.addf %212, %214 : vector<32x16xf32>
    %216 = vector.extract_strided_slice %209 {offsets = [32, 32], sizes = [32, 16], strides = [1, 1]} : vector<64x96xf32> to vector<32x16xf32>
    %217 = vector.extract_strided_slice %211 {offsets = [0, 32], sizes = [1, 16], strides = [1, 1]} : vector<1x96xf32> to vector<1x16xf32>
    %218 = vector.broadcast %217 : vector<1x16xf32> to vector<32x16xf32>
    %219 = arith.addf %216, %218 : vector<32x16xf32>
    %220 = vector.shape_cast %219 : vector<32x16xf32> to vector<4x8x16xf32>
    %221 = vector.shape_cast %159 : vector<8x16xf32> to vector<1x8x16xf32>
    %222 = vector.broadcast %221 : vector<1x8x16xf32> to vector<4x8x16xf32>
    %223 = arith.addf %220, %222 : vector<4x8x16xf32>
    %224 = vector.extract_strided_slice %209 {offsets = [32, 64], sizes = [32, 16], strides = [1, 1]} : vector<64x96xf32> to vector<32x16xf32>
    %225 = vector.extract_strided_slice %211 {offsets = [0, 64], sizes = [1, 16], strides = [1, 1]} : vector<1x96xf32> to vector<1x16xf32>
    %226 = vector.broadcast %225 : vector<1x16xf32> to vector<32x16xf32>
    %227 = arith.addf %224, %226 : vector<32x16xf32>
    %228 = vector.shape_cast %227 : vector<32x16xf32> to vector<4x8x16xf32>
    %229 = vector.shape_cast %161 : vector<8x16xf32> to vector<1x8x16xf32>
    %230 = vector.broadcast %229 : vector<1x8x16xf32> to vector<4x8x16xf32>
    %231 = arith.addf %228, %230 : vector<4x8x16xf32>
    %232 = vector.shape_cast %215 : vector<32x16xf32> to vector<4x8x16xf32>
    "tpu.trace_start"() <{level = 10 : i32, message = "bqd,bkd->bqk"}> : () -> ()
    %cst_86 = arith.constant dense<0.000000e+00> : vector<4x8x8xf32>
    %233 = tpu.matmul %232, %223, %cst_86 {dimension_numbers = #tpu.dot_dimension_numbers<[2], [2], [1], [1], [0, 0, 0, 1, 1, 1], [0], [0]>} : vector<4x8x16xf32>, vector<4x8x16xf32>, vector<4x8x8xf32> -> vector<4x8x8xf32>
    "tpu.trace_stop"() : () -> ()
    %234 = vector.shape_cast %233 : vector<4x8x8xf32> to vector<32x8xf32>
    %235 = vector.shape_cast %215 : vector<32x16xf32> to vector<32x1x16xf32>
    %236 = vector.broadcast %235 : vector<32x1x16xf32> to vector<32x8x16xf32>
    %237 = arith.mulf %155, %236 : vector<32x8x16xf32>
    %cst_87 = arith.constant dense<0.000000e+00> : vector<32x8xf32>
    %238 = vector.multi_reduction <add>, %237, %cst_87 [2] : vector<32x8x16xf32> to vector<32x8xf32>
    %239 = arith.addf %234, %238 : vector<32x8xf32>
    %cst_88 = arith.constant 2.500000e-01 : f32
    %240 = vector.broadcast %cst_88 : f32 to vector<32x8xf32>
    %241 = arith.mulf %239, %240 : vector<32x8xf32>
    %242 = arith.addf %241, %177 : vector<32x8xf32>
    %cst_89 = arith.constant dense<0xFF800000> : vector<32xf32>
    %243 = vector.multi_reduction <maximumf>, %242, %cst_89 [1] : vector<32x8xf32> to vector<32xf32>
    %244 = vector.shape_cast %243 : vector<32xf32> to vector<32x1xf32>
    %245 = vector.broadcast %244 : vector<32x1xf32> to vector<32x8xf32>
    %246 = arith.subf %242, %245 : vector<32x8xf32>
    %247 = math.exp %246 : vector<32x8xf32>
    %cst_90 = arith.constant dense<0.000000e+00> : vector<32xf32>
    %248 = vector.multi_reduction <add>, %247, %cst_90 [1] : vector<32x8xf32> to vector<32xf32>
    %249 = vector.shape_cast %248 : vector<32xf32> to vector<32x1xf32>
    %250 = vector.broadcast %249 : vector<32x1xf32> to vector<32x8xf32>
    %251 = arith.divf %247, %250 : vector<32x8xf32>
    %252 = vector.shape_cast %251 : vector<32x8xf32> to vector<4x8x8xf32>
    "tpu.trace_start"() <{level = 10 : i32, message = "bqk,bkd->bqd"}> : () -> ()
    %cst_91 = arith.constant dense<0.000000e+00> : vector<4x8x16xf32>
    %253 = tpu.matmul %252, %231, %cst_91 {dimension_numbers = #tpu.dot_dimension_numbers<[2], [1], [1], [2], [0, 0, 0, 1, 1, 2], [0], [0]>} : vector<4x8x8xf32>, vector<4x8x16xf32>, vector<4x8x16xf32> -> vector<4x8x16xf32>
    "tpu.trace_stop"() : () -> ()
    %254 = vector.shape_cast %253 : vector<4x8x16xf32> to vector<32x16xf32>
    %255 = vector.shape_cast %251 : vector<32x8xf32> to vector<32x8x1xf32>
    %256 = vector.broadcast %255 : vector<32x8x1xf32> to vector<32x8x16xf32>
    %257 = arith.mulf %256, %157 : vector<32x8x16xf32>
    %cst_92 = arith.constant dense<0.000000e+00> : vector<32x16xf32>
    %258 = vector.multi_reduction <add>, %257, %cst_92 [1] : vector<32x8x16xf32> to vector<32x16xf32>
    %259 = arith.addf %254, %258 : vector<32x16xf32>
    %260 = vector.extract_strided_slice %209 {offsets = [0, 16], sizes = [32, 16], strides = [1, 1]} : vector<64x96xf32> to vector<32x16xf32>
    %261 = vector.extract_strided_slice %211 {offsets = [0, 16], sizes = [1, 16], strides = [1, 1]} : vector<1x96xf32> to vector<1x16xf32>
    %262 = vector.broadcast %261 : vector<1x16xf32> to vector<32x16xf32>
    %263 = arith.addf %260, %262 : vector<32x16xf32>
    %264 = vector.extract_strided_slice %209 {offsets = [32, 48], sizes = [32, 16], strides = [1, 1]} : vector<64x96xf32> to vector<32x16xf32>
    %265 = vector.extract_strided_slice %211 {offsets = [0, 48], sizes = [1, 16], strides = [1, 1]} : vector<1x96xf32> to vector<1x16xf32>
    %266 = vector.broadcast %265 : vector<1x16xf32> to vector<32x16xf32>
    %267 = arith.addf %264, %266 : vector<32x16xf32>
    %268 = vector.shape_cast %267 : vector<32x16xf32> to vector<4x8x16xf32>
    %269 = vector.shape_cast %160 : vector<8x16xf32> to vector<1x8x16xf32>
    %270 = vector.broadcast %269 : vector<1x8x16xf32> to vector<4x8x16xf32>
    %271 = arith.addf %268, %270 : vector<4x8x16xf32>
    %272 = vector.extract_strided_slice %209 {offsets = [32, 80], sizes = [32, 16], strides = [1, 1]} : vector<64x96xf32> to vector<32x16xf32>
    %273 = vector.extract_strided_slice %211 {offsets = [0, 80], sizes = [1, 16], strides = [1, 1]} : vector<1x96xf32> to vector<1x16xf32>
    %274 = vector.broadcast %273 : vector<1x16xf32> to vector<32x16xf32>
    %275 = arith.addf %272, %274 : vector<32x16xf32>
    %276 = vector.shape_cast %275 : vector<32x16xf32> to vector<4x8x16xf32>
    %277 = vector.shape_cast %162 : vector<8x16xf32> to vector<1x8x16xf32>
    %278 = vector.broadcast %277 : vector<1x8x16xf32> to vector<4x8x16xf32>
    %279 = arith.addf %276, %278 : vector<4x8x16xf32>
    %280 = vector.shape_cast %263 : vector<32x16xf32> to vector<4x8x16xf32>
    "tpu.trace_start"() <{level = 10 : i32, message = "bqd,bkd->bqk"}> : () -> ()
    %cst_93 = arith.constant dense<0.000000e+00> : vector<4x8x8xf32>
    %281 = tpu.matmul %280, %271, %cst_93 {dimension_numbers = #tpu.dot_dimension_numbers<[2], [2], [1], [1], [0, 0, 0, 1, 1, 1], [0], [0]>} : vector<4x8x16xf32>, vector<4x8x16xf32>, vector<4x8x8xf32> -> vector<4x8x8xf32>
    "tpu.trace_stop"() : () -> ()
    %282 = vector.shape_cast %281 : vector<4x8x8xf32> to vector<32x8xf32>
    %283 = vector.shape_cast %263 : vector<32x16xf32> to vector<32x1x16xf32>
    %284 = vector.broadcast %283 : vector<32x1x16xf32> to vector<32x8x16xf32>
    %285 = arith.mulf %156, %284 : vector<32x8x16xf32>
    %cst_94 = arith.constant dense<0.000000e+00> : vector<32x8xf32>
    %286 = vector.multi_reduction <add>, %285, %cst_94 [2] : vector<32x8x16xf32> to vector<32x8xf32>
    %287 = arith.addf %282, %286 : vector<32x8xf32>
    %cst_95 = arith.constant 2.500000e-01 : f32
    %288 = vector.broadcast %cst_95 : f32 to vector<32x8xf32>
    %289 = arith.mulf %287, %288 : vector<32x8xf32>
    %290 = arith.addf %289, %177 : vector<32x8xf32>
    %cst_96 = arith.constant dense<0xFF800000> : vector<32xf32>
    %291 = vector.multi_reduction <maximumf>, %290, %cst_96 [1] : vector<32x8xf32> to vector<32xf32>
    %292 = vector.shape_cast %291 : vector<32xf32> to vector<32x1xf32>
    %293 = vector.broadcast %292 : vector<32x1xf32> to vector<32x8xf32>
    %294 = arith.subf %290, %293 : vector<32x8xf32>
    %295 = math.exp %294 : vector<32x8xf32>
    %cst_97 = arith.constant dense<0.000000e+00> : vector<32xf32>
    %296 = vector.multi_reduction <add>, %295, %cst_97 [1] : vector<32x8xf32> to vector<32xf32>
    %297 = vector.shape_cast %296 : vector<32xf32> to vector<32x1xf32>
    %298 = vector.broadcast %297 : vector<32x1xf32> to vector<32x8xf32>
    %299 = arith.divf %295, %298 : vector<32x8xf32>
    %300 = vector.shape_cast %299 : vector<32x8xf32> to vector<4x8x8xf32>
    "tpu.trace_start"() <{level = 10 : i32, message = "bqk,bkd->bqd"}> : () -> ()
    %cst_98 = arith.constant dense<0.000000e+00> : vector<4x8x16xf32>
    %301 = tpu.matmul %300, %279, %cst_98 {dimension_numbers = #tpu.dot_dimension_numbers<[2], [1], [1], [2], [0, 0, 0, 1, 1, 2], [0], [0]>} : vector<4x8x8xf32>, vector<4x8x16xf32>, vector<4x8x16xf32> -> vector<4x8x16xf32>
    "tpu.trace_stop"() : () -> ()
    %302 = vector.shape_cast %301 : vector<4x8x16xf32> to vector<32x16xf32>
    %303 = vector.shape_cast %299 : vector<32x8xf32> to vector<32x8x1xf32>
    %304 = vector.broadcast %303 : vector<32x8x1xf32> to vector<32x8x16xf32>
    %305 = arith.mulf %304, %158 : vector<32x8x16xf32>
    %cst_99 = arith.constant dense<0.000000e+00> : vector<32x16xf32>
    %306 = vector.multi_reduction <add>, %305, %cst_99 [1] : vector<32x8x16xf32> to vector<32x16xf32>
    %307 = arith.addf %302, %306 : vector<32x16xf32>
    %308 = tpu.concatenate %259, %307 in 1 : vector<32x16xf32>, vector<32x16xf32> -> vector<32x32xf32>
    %309 = arith.addf %205, %308 : vector<32x32xf32>
    %c0_100 = arith.constant 0 : index
    %c0_101 = arith.constant 0 : index
    %c0_102 = arith.constant 0 : index
    %310 = vector.load %arg16[%c0_100, %c0_101, %c0_102] : memref<2x1x32xf32, #tpu.memory_space<vmem>>, vector<1x1x32xf32>
    %311 = vector.shape_cast %310 : vector<1x1x32xf32> to vector<1x32xf32>
    %c0_103 = arith.constant 0 : index
    %c0_104 = arith.constant 0 : index
    %c0_105 = arith.constant 0 : index
    %312 = vector.load %arg17[%c0_103, %c0_104, %c0_105] : memref<2x1x32xf32, #tpu.memory_space<vmem>>, vector<1x1x32xf32>
    %313 = vector.shape_cast %312 : vector<1x1x32xf32> to vector<1x32xf32>
    %cst_106 = arith.constant dense<0.000000e+00> : vector<32xf32>
    %314 = vector.multi_reduction <add>, %309, %cst_106 [1] : vector<32x32xf32> to vector<32xf32>
    %315 = vector.shape_cast %314 : vector<32xf32> to vector<32x1xf32>
    %cst_107 = arith.constant 3.200000e+01 : f32
    %316 = vector.broadcast %cst_107 : f32 to vector<32x1xf32>
    %317 = arith.divf %315, %316 : vector<32x1xf32>
    %318 = vector.broadcast %317 : vector<32x1xf32> to vector<32x32xf32>
    %319 = arith.subf %309, %318 : vector<32x32xf32>
    %320 = vector.broadcast %317 : vector<32x1xf32> to vector<32x32xf32>
    %321 = arith.subf %309, %320 : vector<32x32xf32>
    %322 = arith.mulf %319, %321 : vector<32x32xf32>
    %cst_108 = arith.constant dense<0.000000e+00> : vector<32xf32>
    %323 = vector.multi_reduction <add>, %322, %cst_108 [1] : vector<32x32xf32> to vector<32xf32>
    %324 = vector.shape_cast %323 : vector<32xf32> to vector<32x1xf32>
    %cst_109 = arith.constant 3.200000e+01 : f32
    %325 = vector.broadcast %cst_109 : f32 to vector<32x1xf32>
    %326 = arith.divf %324, %325 : vector<32x1xf32>
    %327 = vector.broadcast %317 : vector<32x1xf32> to vector<32x32xf32>
    %328 = arith.subf %309, %327 : vector<32x32xf32>
    %cst_110 = arith.constant 9.99999993E-9 : f32
    %329 = vector.broadcast %cst_110 : f32 to vector<32x1xf32>
    %330 = arith.addf %326, %329 : vector<32x1xf32>
    %331 = math.rsqrt %330 : vector<32x1xf32>
    %332 = vector.broadcast %331 : vector<32x1xf32> to vector<32x32xf32>
    %333 = arith.mulf %328, %332 : vector<32x32xf32>
    %334 = vector.broadcast %311 : vector<1x32xf32> to vector<32x32xf32>
    %335 = arith.mulf %333, %334 : vector<32x32xf32>
    %336 = vector.broadcast %313 : vector<1x32xf32> to vector<32x32xf32>
    %337 = arith.addf %335, %336 : vector<32x32xf32>
    %c0_111 = arith.constant 0 : index
    %c0_112 = arith.constant 0 : index
    %c0_113 = arith.constant 0 : index
    %338 = vector.load %arg18[%c0_111, %c0_112, %c0_113] : memref<2x32x32xf32, #tpu.memory_space<vmem>>, vector<1x32x32xf32>
    %339 = vector.shape_cast %338 : vector<1x32x32xf32> to vector<32x32xf32>
    %cst_114 = arith.constant dense<0.000000e+00> : vector<32x32xf32>
    %340 = tpu.matmul %337, %339, %cst_114 {dimension_numbers = #tpu.dot_dimension_numbers<[1], [0], [0], [1], [0, 0, 1, 1], [], []>} : vector<32x32xf32>, vector<32x32xf32>, vector<32x32xf32> -> vector<32x32xf32>
    %c0_115 = arith.constant 0 : index
    %c0_116 = arith.constant 0 : index
    %c0_117 = arith.constant 0 : index
    %341 = vector.load %arg19[%c0_115, %c0_116, %c0_117] : memref<2x1x32xf32, #tpu.memory_space<vmem>>, vector<1x1x32xf32>
    %342 = vector.shape_cast %341 : vector<1x1x32xf32> to vector<1x32xf32>
    %343 = vector.broadcast %342 : vector<1x32xf32> to vector<32x32xf32>
    %344 = arith.addf %340, %343 : vector<32x32xf32>
    %cst_118 = arith.constant 0.000000e+00 : f32
    %345 = vector.broadcast %cst_118 : f32 to vector<32x32xf32>
    %346 = arith.maximumf %344, %345 : vector<32x32xf32>
    %c0_119 = arith.constant 0 : index
    %c0_120 = arith.constant 0 : index
    %c0_121 = arith.constant 0 : index
    %347 = vector.load %arg20[%c0_119, %c0_120, %c0_121] : memref<2x32x32xf32, #tpu.memory_space<vmem>>, vector<1x32x32xf32>
    %348 = vector.shape_cast %347 : vector<1x32x32xf32> to vector<32x32xf32>
    %cst_122 = arith.constant dense<0.000000e+00> : vector<32x32xf32>
    %349 = tpu.matmul %346, %348, %cst_122 {dimension_numbers = #tpu.dot_dimension_numbers<[1], [0], [0], [1], [0, 0, 1, 1], [], []>} : vector<32x32xf32>, vector<32x32xf32>, vector<32x32xf32> -> vector<32x32xf32>
    %c0_123 = arith.constant 0 : index
    %c0_124 = arith.constant 0 : index
    %c0_125 = arith.constant 0 : index
    %350 = vector.load %arg21[%c0_123, %c0_124, %c0_125] : memref<2x1x32xf32, #tpu.memory_space<vmem>>, vector<1x1x32xf32>
    %351 = vector.shape_cast %350 : vector<1x1x32xf32> to vector<1x32xf32>
    %352 = vector.broadcast %351 : vector<1x32xf32> to vector<32x32xf32>
    %353 = arith.addf %349, %352 : vector<32x32xf32>
    %354 = arith.addf %353, %337 : vector<32x32xf32>
    %355 = vector.broadcast %118 : vector<32x1xf32> to vector<32x32xf32>
    %356 = arith.mulf %354, %355 : vector<32x32xf32>
    %c1 = arith.constant 1 : index
    %c0_126 = arith.constant 0 : index
    %c0_127 = arith.constant 0 : index
    %357 = vector.load %arg12[%c1, %c0_126, %c0_127] : memref<2x1x32xf32, #tpu.memory_space<vmem>>, vector<1x1x32xf32>
    %358 = vector.shape_cast %357 : vector<1x1x32xf32> to vector<1x32xf32>
    %c1_128 = arith.constant 1 : index
    %c0_129 = arith.constant 0 : index
    %c0_130 = arith.constant 0 : index
    %359 = vector.load %arg13[%c1_128, %c0_129, %c0_130] : memref<2x1x32xf32, #tpu.memory_space<vmem>>, vector<1x1x32xf32>
    %360 = vector.shape_cast %359 : vector<1x1x32xf32> to vector<1x32xf32>
    %cst_131 = arith.constant dense<0.000000e+00> : vector<32xf32>
    %361 = vector.multi_reduction <add>, %356, %cst_131 [1] : vector<32x32xf32> to vector<32xf32>
    %362 = vector.shape_cast %361 : vector<32xf32> to vector<32x1xf32>
    %cst_132 = arith.constant 3.200000e+01 : f32
    %363 = vector.broadcast %cst_132 : f32 to vector<32x1xf32>
    %364 = arith.divf %362, %363 : vector<32x1xf32>
    %365 = vector.broadcast %364 : vector<32x1xf32> to vector<32x32xf32>
    %366 = arith.subf %356, %365 : vector<32x32xf32>
    %367 = vector.broadcast %364 : vector<32x1xf32> to vector<32x32xf32>
    %368 = arith.subf %356, %367 : vector<32x32xf32>
    %369 = arith.mulf %366, %368 : vector<32x32xf32>
    %cst_133 = arith.constant dense<0.000000e+00> : vector<32xf32>
    %370 = vector.multi_reduction <add>, %369, %cst_133 [1] : vector<32x32xf32> to vector<32xf32>
    %371 = vector.shape_cast %370 : vector<32xf32> to vector<32x1xf32>
    %cst_134 = arith.constant 3.200000e+01 : f32
    %372 = vector.broadcast %cst_134 : f32 to vector<32x1xf32>
    %373 = arith.divf %371, %372 : vector<32x1xf32>
    %374 = vector.broadcast %364 : vector<32x1xf32> to vector<32x32xf32>
    %375 = arith.subf %356, %374 : vector<32x32xf32>
    %cst_135 = arith.constant 9.99999993E-9 : f32
    %376 = vector.broadcast %cst_135 : f32 to vector<32x1xf32>
    %377 = arith.addf %373, %376 : vector<32x1xf32>
    %378 = math.rsqrt %377 : vector<32x1xf32>
    %379 = vector.broadcast %378 : vector<32x1xf32> to vector<32x32xf32>
    %380 = arith.mulf %375, %379 : vector<32x32xf32>
    %381 = vector.broadcast %358 : vector<1x32xf32> to vector<32x32xf32>
    %382 = arith.mulf %380, %381 : vector<32x32xf32>
    %383 = vector.broadcast %360 : vector<1x32xf32> to vector<32x32xf32>
    %384 = arith.addf %382, %383 : vector<32x32xf32>
    %385 = tpu.concatenate %384, %356 in 0 : vector<32x32xf32>, vector<32x32xf32> -> vector<64x32xf32>
    %c1_136 = arith.constant 1 : index
    %c0_137 = arith.constant 0 : index
    %c0_138 = arith.constant 0 : index
    %386 = vector.load %arg14[%c1_136, %c0_137, %c0_138] : memref<2x32x96xf32, #tpu.memory_space<vmem>>, vector<1x32x96xf32>
    %387 = vector.shape_cast %386 : vector<1x32x96xf32> to vector<32x96xf32>
    %cst_139 = arith.constant dense<0.000000e+00> : vector<64x96xf32>
    %388 = tpu.matmul %385, %387, %cst_139 {dimension_numbers = #tpu.dot_dimension_numbers<[1], [0], [0], [1], [0, 0, 1, 1], [], []>} : vector<64x32xf32>, vector<32x96xf32>, vector<64x96xf32> -> vector<64x96xf32>
    %c1_140 = arith.constant 1 : index
    %c0_141 = arith.constant 0 : index
    %c0_142 = arith.constant 0 : index
    %389 = vector.load %arg15[%c1_140, %c0_141, %c0_142] : memref<2x1x96xf32, #tpu.memory_space<vmem>>, vector<1x1x96xf32>
    %390 = vector.shape_cast %389 : vector<1x1x96xf32> to vector<1x96xf32>
    %391 = vector.extract_strided_slice %388 {offsets = [0, 0], sizes = [32, 16], strides = [1, 1]} : vector<64x96xf32> to vector<32x16xf32>
    %392 = vector.extract_strided_slice %390 {offsets = [0, 0], sizes = [1, 16], strides = [1, 1]} : vector<1x96xf32> to vector<1x16xf32>
    %393 = vector.broadcast %392 : vector<1x16xf32> to vector<32x16xf32>
    %394 = arith.addf %391, %393 : vector<32x16xf32>
    %395 = vector.extract_strided_slice %388 {offsets = [32, 32], sizes = [32, 16], strides = [1, 1]} : vector<64x96xf32> to vector<32x16xf32>
    %396 = vector.extract_strided_slice %390 {offsets = [0, 32], sizes = [1, 16], strides = [1, 1]} : vector<1x96xf32> to vector<1x16xf32>
    %397 = vector.broadcast %396 : vector<1x16xf32> to vector<32x16xf32>
    %398 = arith.addf %395, %397 : vector<32x16xf32>
    %399 = vector.shape_cast %398 : vector<32x16xf32> to vector<4x8x16xf32>
    %400 = vector.shape_cast %159 : vector<8x16xf32> to vector<1x8x16xf32>
    %401 = vector.broadcast %400 : vector<1x8x16xf32> to vector<4x8x16xf32>
    %402 = arith.addf %399, %401 : vector<4x8x16xf32>
    %403 = vector.extract_strided_slice %388 {offsets = [32, 64], sizes = [32, 16], strides = [1, 1]} : vector<64x96xf32> to vector<32x16xf32>
    %404 = vector.extract_strided_slice %390 {offsets = [0, 64], sizes = [1, 16], strides = [1, 1]} : vector<1x96xf32> to vector<1x16xf32>
    %405 = vector.broadcast %404 : vector<1x16xf32> to vector<32x16xf32>
    %406 = arith.addf %403, %405 : vector<32x16xf32>
    %407 = vector.shape_cast %406 : vector<32x16xf32> to vector<4x8x16xf32>
    %408 = vector.shape_cast %161 : vector<8x16xf32> to vector<1x8x16xf32>
    %409 = vector.broadcast %408 : vector<1x8x16xf32> to vector<4x8x16xf32>
    %410 = arith.addf %407, %409 : vector<4x8x16xf32>
    %411 = vector.shape_cast %394 : vector<32x16xf32> to vector<4x8x16xf32>
    "tpu.trace_start"() <{level = 10 : i32, message = "bqd,bkd->bqk"}> : () -> ()
    %cst_143 = arith.constant dense<0.000000e+00> : vector<4x8x8xf32>
    %412 = tpu.matmul %411, %402, %cst_143 {dimension_numbers = #tpu.dot_dimension_numbers<[2], [2], [1], [1], [0, 0, 0, 1, 1, 1], [0], [0]>} : vector<4x8x16xf32>, vector<4x8x16xf32>, vector<4x8x8xf32> -> vector<4x8x8xf32>
    "tpu.trace_stop"() : () -> ()
    %413 = vector.shape_cast %412 : vector<4x8x8xf32> to vector<32x8xf32>
    %414 = vector.shape_cast %394 : vector<32x16xf32> to vector<32x1x16xf32>
    %415 = vector.broadcast %414 : vector<32x1x16xf32> to vector<32x8x16xf32>
    %416 = arith.mulf %155, %415 : vector<32x8x16xf32>
    %cst_144 = arith.constant dense<0.000000e+00> : vector<32x8xf32>
    %417 = vector.multi_reduction <add>, %416, %cst_144 [2] : vector<32x8x16xf32> to vector<32x8xf32>
    %418 = arith.addf %413, %417 : vector<32x8xf32>
    %cst_145 = arith.constant 2.500000e-01 : f32
    %419 = vector.broadcast %cst_145 : f32 to vector<32x8xf32>
    %420 = arith.mulf %418, %419 : vector<32x8xf32>
    %421 = arith.addf %420, %177 : vector<32x8xf32>
    %cst_146 = arith.constant dense<0xFF800000> : vector<32xf32>
    %422 = vector.multi_reduction <maximumf>, %421, %cst_146 [1] : vector<32x8xf32> to vector<32xf32>
    %423 = vector.shape_cast %422 : vector<32xf32> to vector<32x1xf32>
    %424 = vector.broadcast %423 : vector<32x1xf32> to vector<32x8xf32>
    %425 = arith.subf %421, %424 : vector<32x8xf32>
    %426 = math.exp %425 : vector<32x8xf32>
    %cst_147 = arith.constant dense<0.000000e+00> : vector<32xf32>
    %427 = vector.multi_reduction <add>, %426, %cst_147 [1] : vector<32x8xf32> to vector<32xf32>
    %428 = vector.shape_cast %427 : vector<32xf32> to vector<32x1xf32>
    %429 = vector.broadcast %428 : vector<32x1xf32> to vector<32x8xf32>
    %430 = arith.divf %426, %429 : vector<32x8xf32>
    %431 = vector.shape_cast %430 : vector<32x8xf32> to vector<4x8x8xf32>
    "tpu.trace_start"() <{level = 10 : i32, message = "bqk,bkd->bqd"}> : () -> ()
    %cst_148 = arith.constant dense<0.000000e+00> : vector<4x8x16xf32>
    %432 = tpu.matmul %431, %410, %cst_148 {dimension_numbers = #tpu.dot_dimension_numbers<[2], [1], [1], [2], [0, 0, 0, 1, 1, 2], [0], [0]>} : vector<4x8x8xf32>, vector<4x8x16xf32>, vector<4x8x16xf32> -> vector<4x8x16xf32>
    "tpu.trace_stop"() : () -> ()
    %433 = vector.shape_cast %432 : vector<4x8x16xf32> to vector<32x16xf32>
    %434 = vector.shape_cast %430 : vector<32x8xf32> to vector<32x8x1xf32>
    %435 = vector.broadcast %434 : vector<32x8x1xf32> to vector<32x8x16xf32>
    %436 = arith.mulf %435, %157 : vector<32x8x16xf32>
    %cst_149 = arith.constant dense<0.000000e+00> : vector<32x16xf32>
    %437 = vector.multi_reduction <add>, %436, %cst_149 [1] : vector<32x8x16xf32> to vector<32x16xf32>
    %438 = arith.addf %433, %437 : vector<32x16xf32>
    %439 = vector.extract_strided_slice %388 {offsets = [0, 16], sizes = [32, 16], strides = [1, 1]} : vector<64x96xf32> to vector<32x16xf32>
    %440 = vector.extract_strided_slice %390 {offsets = [0, 16], sizes = [1, 16], strides = [1, 1]} : vector<1x96xf32> to vector<1x16xf32>
    %441 = vector.broadcast %440 : vector<1x16xf32> to vector<32x16xf32>
    %442 = arith.addf %439, %441 : vector<32x16xf32>
    %443 = vector.extract_strided_slice %388 {offsets = [32, 48], sizes = [32, 16], strides = [1, 1]} : vector<64x96xf32> to vector<32x16xf32>
    %444 = vector.extract_strided_slice %390 {offsets = [0, 48], sizes = [1, 16], strides = [1, 1]} : vector<1x96xf32> to vector<1x16xf32>
    %445 = vector.broadcast %444 : vector<1x16xf32> to vector<32x16xf32>
    %446 = arith.addf %443, %445 : vector<32x16xf32>
    %447 = vector.shape_cast %446 : vector<32x16xf32> to vector<4x8x16xf32>
    %448 = vector.shape_cast %160 : vector<8x16xf32> to vector<1x8x16xf32>
    %449 = vector.broadcast %448 : vector<1x8x16xf32> to vector<4x8x16xf32>
    %450 = arith.addf %447, %449 : vector<4x8x16xf32>
    %451 = vector.extract_strided_slice %388 {offsets = [32, 80], sizes = [32, 16], strides = [1, 1]} : vector<64x96xf32> to vector<32x16xf32>
    %452 = vector.extract_strided_slice %390 {offsets = [0, 80], sizes = [1, 16], strides = [1, 1]} : vector<1x96xf32> to vector<1x16xf32>
    %453 = vector.broadcast %452 : vector<1x16xf32> to vector<32x16xf32>
    %454 = arith.addf %451, %453 : vector<32x16xf32>
    %455 = vector.shape_cast %454 : vector<32x16xf32> to vector<4x8x16xf32>
    %456 = vector.shape_cast %162 : vector<8x16xf32> to vector<1x8x16xf32>
    %457 = vector.broadcast %456 : vector<1x8x16xf32> to vector<4x8x16xf32>
    %458 = arith.addf %455, %457 : vector<4x8x16xf32>
    %459 = vector.shape_cast %442 : vector<32x16xf32> to vector<4x8x16xf32>
    "tpu.trace_start"() <{level = 10 : i32, message = "bqd,bkd->bqk"}> : () -> ()
    %cst_150 = arith.constant dense<0.000000e+00> : vector<4x8x8xf32>
    %460 = tpu.matmul %459, %450, %cst_150 {dimension_numbers = #tpu.dot_dimension_numbers<[2], [2], [1], [1], [0, 0, 0, 1, 1, 1], [0], [0]>} : vector<4x8x16xf32>, vector<4x8x16xf32>, vector<4x8x8xf32> -> vector<4x8x8xf32>
    "tpu.trace_stop"() : () -> ()
    %461 = vector.shape_cast %460 : vector<4x8x8xf32> to vector<32x8xf32>
    %462 = vector.shape_cast %442 : vector<32x16xf32> to vector<32x1x16xf32>
    %463 = vector.broadcast %462 : vector<32x1x16xf32> to vector<32x8x16xf32>
    %464 = arith.mulf %156, %463 : vector<32x8x16xf32>
    %cst_151 = arith.constant dense<0.000000e+00> : vector<32x8xf32>
    %465 = vector.multi_reduction <add>, %464, %cst_151 [2] : vector<32x8x16xf32> to vector<32x8xf32>
    %466 = arith.addf %461, %465 : vector<32x8xf32>
    %cst_152 = arith.constant 2.500000e-01 : f32
    %467 = vector.broadcast %cst_152 : f32 to vector<32x8xf32>
    %468 = arith.mulf %466, %467 : vector<32x8xf32>
    %469 = arith.addf %468, %177 : vector<32x8xf32>
    %cst_153 = arith.constant dense<0xFF800000> : vector<32xf32>
    %470 = vector.multi_reduction <maximumf>, %469, %cst_153 [1] : vector<32x8xf32> to vector<32xf32>
    %471 = vector.shape_cast %470 : vector<32xf32> to vector<32x1xf32>
    %472 = vector.broadcast %471 : vector<32x1xf32> to vector<32x8xf32>
    %473 = arith.subf %469, %472 : vector<32x8xf32>
    %474 = math.exp %473 : vector<32x8xf32>
    %cst_154 = arith.constant dense<0.000000e+00> : vector<32xf32>
    %475 = vector.multi_reduction <add>, %474, %cst_154 [1] : vector<32x8xf32> to vector<32xf32>
    %476 = vector.shape_cast %475 : vector<32xf32> to vector<32x1xf32>
    %477 = vector.broadcast %476 : vector<32x1xf32> to vector<32x8xf32>
    %478 = arith.divf %474, %477 : vector<32x8xf32>
    %479 = vector.shape_cast %478 : vector<32x8xf32> to vector<4x8x8xf32>
    "tpu.trace_start"() <{level = 10 : i32, message = "bqk,bkd->bqd"}> : () -> ()
    %cst_155 = arith.constant dense<0.000000e+00> : vector<4x8x16xf32>
    %480 = tpu.matmul %479, %458, %cst_155 {dimension_numbers = #tpu.dot_dimension_numbers<[2], [1], [1], [2], [0, 0, 0, 1, 1, 2], [0], [0]>} : vector<4x8x8xf32>, vector<4x8x16xf32>, vector<4x8x16xf32> -> vector<4x8x16xf32>
    "tpu.trace_stop"() : () -> ()
    %481 = vector.shape_cast %480 : vector<4x8x16xf32> to vector<32x16xf32>
    %482 = vector.shape_cast %478 : vector<32x8xf32> to vector<32x8x1xf32>
    %483 = vector.broadcast %482 : vector<32x8x1xf32> to vector<32x8x16xf32>
    %484 = arith.mulf %483, %158 : vector<32x8x16xf32>
    %cst_156 = arith.constant dense<0.000000e+00> : vector<32x16xf32>
    %485 = vector.multi_reduction <add>, %484, %cst_156 [1] : vector<32x8x16xf32> to vector<32x16xf32>
    %486 = arith.addf %481, %485 : vector<32x16xf32>
    %487 = tpu.concatenate %438, %486 in 1 : vector<32x16xf32>, vector<32x16xf32> -> vector<32x32xf32>
    %488 = arith.addf %384, %487 : vector<32x32xf32>
    %c1_157 = arith.constant 1 : index
    %c0_158 = arith.constant 0 : index
    %c0_159 = arith.constant 0 : index
    %489 = vector.load %arg16[%c1_157, %c0_158, %c0_159] : memref<2x1x32xf32, #tpu.memory_space<vmem>>, vector<1x1x32xf32>
    %490 = vector.shape_cast %489 : vector<1x1x32xf32> to vector<1x32xf32>
    %c1_160 = arith.constant 1 : index
    %c0_161 = arith.constant 0 : index
    %c0_162 = arith.constant 0 : index
    %491 = vector.load %arg17[%c1_160, %c0_161, %c0_162] : memref<2x1x32xf32, #tpu.memory_space<vmem>>, vector<1x1x32xf32>
    %492 = vector.shape_cast %491 : vector<1x1x32xf32> to vector<1x32xf32>
    %cst_163 = arith.constant dense<0.000000e+00> : vector<32xf32>
    %493 = vector.multi_reduction <add>, %488, %cst_163 [1] : vector<32x32xf32> to vector<32xf32>
    %494 = vector.shape_cast %493 : vector<32xf32> to vector<32x1xf32>
    %cst_164 = arith.constant 3.200000e+01 : f32
    %495 = vector.broadcast %cst_164 : f32 to vector<32x1xf32>
    %496 = arith.divf %494, %495 : vector<32x1xf32>
    %497 = vector.broadcast %496 : vector<32x1xf32> to vector<32x32xf32>
    %498 = arith.subf %488, %497 : vector<32x32xf32>
    %499 = vector.broadcast %496 : vector<32x1xf32> to vector<32x32xf32>
    %500 = arith.subf %488, %499 : vector<32x32xf32>
    %501 = arith.mulf %498, %500 : vector<32x32xf32>
    %cst_165 = arith.constant dense<0.000000e+00> : vector<32xf32>
    %502 = vector.multi_reduction <add>, %501, %cst_165 [1] : vector<32x32xf32> to vector<32xf32>
    %503 = vector.shape_cast %502 : vector<32xf32> to vector<32x1xf32>
    %cst_166 = arith.constant 3.200000e+01 : f32
    %504 = vector.broadcast %cst_166 : f32 to vector<32x1xf32>
    %505 = arith.divf %503, %504 : vector<32x1xf32>
    %506 = vector.broadcast %496 : vector<32x1xf32> to vector<32x32xf32>
    %507 = arith.subf %488, %506 : vector<32x32xf32>
    %cst_167 = arith.constant 9.99999993E-9 : f32
    %508 = vector.broadcast %cst_167 : f32 to vector<32x1xf32>
    %509 = arith.addf %505, %508 : vector<32x1xf32>
    %510 = math.rsqrt %509 : vector<32x1xf32>
    %511 = vector.broadcast %510 : vector<32x1xf32> to vector<32x32xf32>
    %512 = arith.mulf %507, %511 : vector<32x32xf32>
    %513 = vector.broadcast %490 : vector<1x32xf32> to vector<32x32xf32>
    %514 = arith.mulf %512, %513 : vector<32x32xf32>
    %515 = vector.broadcast %492 : vector<1x32xf32> to vector<32x32xf32>
    %516 = arith.addf %514, %515 : vector<32x32xf32>
    %c1_168 = arith.constant 1 : index
    %c0_169 = arith.constant 0 : index
    %c0_170 = arith.constant 0 : index
    %517 = vector.load %arg18[%c1_168, %c0_169, %c0_170] : memref<2x32x32xf32, #tpu.memory_space<vmem>>, vector<1x32x32xf32>
    %518 = vector.shape_cast %517 : vector<1x32x32xf32> to vector<32x32xf32>
    %cst_171 = arith.constant dense<0.000000e+00> : vector<32x32xf32>
    %519 = tpu.matmul %516, %518, %cst_171 {dimension_numbers = #tpu.dot_dimension_numbers<[1], [0], [0], [1], [0, 0, 1, 1], [], []>} : vector<32x32xf32>, vector<32x32xf32>, vector<32x32xf32> -> vector<32x32xf32>
    %c1_172 = arith.constant 1 : index
    %c0_173 = arith.constant 0 : index
    %c0_174 = arith.constant 0 : index
    %520 = vector.load %arg19[%c1_172, %c0_173, %c0_174] : memref<2x1x32xf32, #tpu.memory_space<vmem>>, vector<1x1x32xf32>
    %521 = vector.shape_cast %520 : vector<1x1x32xf32> to vector<1x32xf32>
    %522 = vector.broadcast %521 : vector<1x32xf32> to vector<32x32xf32>
    %523 = arith.addf %519, %522 : vector<32x32xf32>
    %cst_175 = arith.constant 0.000000e+00 : f32
    %524 = vector.broadcast %cst_175 : f32 to vector<32x32xf32>
    %525 = arith.maximumf %523, %524 : vector<32x32xf32>
    %c1_176 = arith.constant 1 : index
    %c0_177 = arith.constant 0 : index
    %c0_178 = arith.constant 0 : index
    %526 = vector.load %arg20[%c1_176, %c0_177, %c0_178] : memref<2x32x32xf32, #tpu.memory_space<vmem>>, vector<1x32x32xf32>
    %527 = vector.shape_cast %526 : vector<1x32x32xf32> to vector<32x32xf32>
    %cst_179 = arith.constant dense<0.000000e+00> : vector<32x32xf32>
    %528 = tpu.matmul %525, %527, %cst_179 {dimension_numbers = #tpu.dot_dimension_numbers<[1], [0], [0], [1], [0, 0, 1, 1], [], []>} : vector<32x32xf32>, vector<32x32xf32>, vector<32x32xf32> -> vector<32x32xf32>
    %c1_180 = arith.constant 1 : index
    %c0_181 = arith.constant 0 : index
    %c0_182 = arith.constant 0 : index
    %529 = vector.load %arg21[%c1_180, %c0_181, %c0_182] : memref<2x1x32xf32, #tpu.memory_space<vmem>>, vector<1x1x32xf32>
    %530 = vector.shape_cast %529 : vector<1x1x32xf32> to vector<1x32xf32>
    %531 = vector.broadcast %530 : vector<1x32xf32> to vector<32x32xf32>
    %532 = arith.addf %528, %531 : vector<32x32xf32>
    %533 = arith.addf %532, %516 : vector<32x32xf32>
    %534 = vector.broadcast %118 : vector<32x1xf32> to vector<32x32xf32>
    %535 = arith.mulf %533, %534 : vector<32x32xf32>
    %c0_183 = arith.constant 0 : index
    %c0_184 = arith.constant 0 : index
    %536 = vector.load %arg22[%c0_183, %c0_184] : memref<1x32xf32, #tpu.memory_space<vmem>>, vector<1x32xf32>
    %c0_185 = arith.constant 0 : index
    %c0_186 = arith.constant 0 : index
    %537 = vector.load %arg23[%c0_185, %c0_186] : memref<1x32xf32, #tpu.memory_space<vmem>>, vector<1x32xf32>
    %cst_187 = arith.constant dense<0.000000e+00> : vector<32xf32>
    %538 = vector.multi_reduction <add>, %535, %cst_187 [1] : vector<32x32xf32> to vector<32xf32>
    %539 = vector.shape_cast %538 : vector<32xf32> to vector<32x1xf32>
    %cst_188 = arith.constant 3.200000e+01 : f32
    %540 = vector.broadcast %cst_188 : f32 to vector<32x1xf32>
    %541 = arith.divf %539, %540 : vector<32x1xf32>
    %542 = vector.broadcast %541 : vector<32x1xf32> to vector<32x32xf32>
    %543 = arith.subf %535, %542 : vector<32x32xf32>
    %544 = vector.broadcast %541 : vector<32x1xf32> to vector<32x32xf32>
    %545 = arith.subf %535, %544 : vector<32x32xf32>
    %546 = arith.mulf %543, %545 : vector<32x32xf32>
    %cst_189 = arith.constant dense<0.000000e+00> : vector<32xf32>
    %547 = vector.multi_reduction <add>, %546, %cst_189 [1] : vector<32x32xf32> to vector<32xf32>
    %548 = vector.shape_cast %547 : vector<32xf32> to vector<32x1xf32>
    %cst_190 = arith.constant 3.200000e+01 : f32
    %549 = vector.broadcast %cst_190 : f32 to vector<32x1xf32>
    %550 = arith.divf %548, %549 : vector<32x1xf32>
    %551 = vector.broadcast %541 : vector<32x1xf32> to vector<32x32xf32>
    %552 = arith.subf %535, %551 : vector<32x32xf32>
    %cst_191 = arith.constant 9.99999993E-9 : f32
    %553 = vector.broadcast %cst_191 : f32 to vector<32x1xf32>
    %554 = arith.addf %550, %553 : vector<32x1xf32>
    %555 = math.rsqrt %554 : vector<32x1xf32>
    %556 = vector.broadcast %555 : vector<32x1xf32> to vector<32x32xf32>
    %557 = arith.mulf %552, %556 : vector<32x32xf32>
    %558 = vector.broadcast %536 : vector<1x32xf32> to vector<32x32xf32>
    %559 = arith.mulf %557, %558 : vector<32x32xf32>
    %560 = vector.broadcast %537 : vector<1x32xf32> to vector<32x32xf32>
    %561 = arith.addf %559, %560 : vector<32x32xf32>
    %562 = vector.extract_strided_slice %561 {offsets = [0, 0], sizes = [16, 32], strides = [1, 1]} : vector<32x32xf32> to vector<16x32xf32>
    %563 = vector.extract_strided_slice %561 {offsets = [16, 0], sizes = [16, 32], strides = [1, 1]} : vector<32x32xf32> to vector<16x32xf32>
    "tpu.trace_start"() <{level = 10 : i32, message = "nh,mh->nm"}> : () -> ()
    %cst_192 = arith.constant dense<0.000000e+00> : vector<16x11xf32>
    %564 = tpu.matmul %562, %58, %cst_192 {dimension_numbers = #tpu.dot_dimension_numbers<[1], [1], [0], [0], [0, 0, 1, 0], [], []>} : vector<16x32xf32>, vector<11x32xf32>, vector<16x11xf32> -> vector<16x11xf32>
    %cst_193 = arith.constant dense<0.000000e+00> : vector<16x11xf32>
    %565 = tpu.matmul %563, %61, %cst_193 {dimension_numbers = #tpu.dot_dimension_numbers<[1], [1], [0], [0], [0, 0, 1, 0], [], []>} : vector<16x32xf32>, vector<11x32xf32>, vector<16x11xf32> -> vector<16x11xf32>
    "tpu.trace_stop"() : () -> ()
    %c0_194 = arith.constant 0 : index
    %c0_195 = arith.constant 0 : index
    %566 = vector.load %arg29[%c0_194, %c0_195] : memref<16x11xf32, #tpu.memory_space<vmem>>, vector<16x11xf32>
    tpu.vector_store %arg29[%c0_194, %c0_195], %564 {strides = array<i32>} : memref<16x11xf32, #tpu.memory_space<vmem>>, vector<16x11xf32>,
    %c0_196 = arith.constant 0 : index
    %c0_197 = arith.constant 0 : index
    %567 = vector.load %arg30[%c0_196, %c0_197] : memref<16x11xf32, #tpu.memory_space<vmem>>, vector<16x11xf32>
    tpu.vector_store %arg30[%c0_196, %c0_197], %565 {strides = array<i32>} : memref<16x11xf32, #tpu.memory_space<vmem>>, vector<16x11xf32>,
    %568 = arith.mulf %564, %104 : vector<16x11xf32>
    %cst_198 = arith.constant dense<0.000000e+00> : vector<16xf32>
    %569 = vector.multi_reduction <add>, %568, %cst_198 [1] : vector<16x11xf32> to vector<16xf32>
    %570 = vector.shape_cast %569 : vector<16xf32> to vector<16x1xf32>
    %571 = arith.mulf %564, %112 : vector<16x11xf32>
    %cst_199 = arith.constant dense<0.000000e+00> : vector<16xf32>
    %572 = vector.multi_reduction <add>, %571, %cst_199 [1] : vector<16x11xf32> to vector<16xf32>
    %573 = vector.shape_cast %572 : vector<16xf32> to vector<16x1xf32>
    %574 = arith.mulf %565, %104 : vector<16x11xf32>
    %cst_200 = arith.constant dense<0.000000e+00> : vector<16xf32>
    %575 = vector.multi_reduction <add>, %574, %cst_200 [1] : vector<16x11xf32> to vector<16xf32>
    %576 = vector.shape_cast %575 : vector<16xf32> to vector<16x1xf32>
    %577 = tpu.concatenate %570, %573, %576 in 1 : vector<16x1xf32>, vector<16x1xf32>, vector<16x1xf32> -> vector<16x3xf32>
    %c0_201 = arith.constant 0 : index
    %c0_202 = arith.constant 0 : index
    %578 = vector.load %arg28[%c0_201, %c0_202] : memref<16x3xf32, #tpu.memory_space<vmem>>, vector<16x3xf32>
    tpu.vector_store %arg28[%c0_201, %c0_202], %577 {strides = array<i32>} : memref<16x3xf32, #tpu.memory_space<vmem>>, vector<16x3xf32>,
    return
  }
}

</mosaic_0001>

<bundles_post_ra>
// kernel: squeeze.6
= control target key start
LH: loop header
LB: loop body
LE: loop exit
PB: predicated region body
PF: predicated region fallthrough
CT: control target
= control target key end

     0   :  { %s85_s0 = inlined_call_operand.vmem [shape: f32[16], index: 0, kind: input, shape index: {}]   ;;  %s86_s1 = inlined_call_operand.hbm [shape: f32[2,8], index: 1, kind: output, shape index: {}]  }
   0x1   :  { %v5_v0 = vld [vmem:[%s85_s0] sm:$0x1] }
   0x2   :  { %2 = vsyncpa [#allocation1], 0  ;;  %6 = vst [vmem:[#allocation3] sm:$0x1] %v5_v0  ;;  %vm8_vm0 = vcmask 64512   ;;  %s58_s0 = smov 120  }
   0x3   :  { %s59_s8 = smov [#allocation0]  }
   0x4   :  { %s26_s9 = sshll.u32 %s59_s8, 4  ;;  %s27_s9 = int_to_ptr.vmem [resolvable:$true] %s26_s9 }
   0x5   :  { %s34_s10 = scalar_lea.vmem %s27_s9, 32  ;;  %p39_p1 = scmp.lt.s32.totalorder %s27_s9, %s27_s9 }
   0x6   :  { %p35_p0 = scmp.ne.s32.totalorder %s27_s9, %s34_s10  ;;  %p40_p2 = scmp.lt.s32.totalorder %s34_s10, %s34_s10 }
   0x8   :  { %p41_p3 = por %p40_p2, %p39_p1 }
   0x9   :  { %v10_v1 = vld [vmem:[#allocation3] sm:$0x1]  }
   0xa   :  { %v7_v2 = vld [vmem:[#allocation3] sm:$0x1]   ;;  %11 = vrot.lane.b32.xlu0 %v10_v1, %s58_s0  ;;  %p42_p4 = pnand %p41_p3, %p35_p0 }
   0xb   :  { %9 = vst.msk [vmem:[#allocation2] sm:$0x1] %vm8_vm0, %v7_v2  }
  0x7c   :  { %v12_v3 = vpop.permute.xlu0 %11  }
  0x7d   :  { %15 = vst.msk [vmem:[#allocation2 + $0x1] sm:$0x1] %vm8_vm0, %v12_v3  }
  0x84   :  { %v19_v4 = vld [vmem:[#allocation2] sm:$0x3] }
  0x85   :  { %21 = vst [vmem:[#allocation0] sm:$0x3] %v19_v4 }
  0x86   :  { %45 = shalt.err (!%p42_p4)
}
  0x87   :  { %s46_s13 = scalar_lea.hbm %s86_s1, 32 }
  0x88   :  { %p47_p5 = scmp.ne.s32.totalorder %s86_s1, %s46_s13  ;;  %p50_p6 = scmp.lt.u32.totalorder %s46_s13, %s86_s1 }
  0x8a   :  { %p52_p7 = pnand %p50_p6, %p47_p5 }
  0x8c   :  { %55 = shalt.err (!%p52_p7)
}
  0x8d   :  { %29 = dma.vmem_to_hbm [thread:$0]  %s27_s9, 32, %s86_s1, [#allocation1]  }
  0x8e   :  { %56 = dma.done.wait [#allocation1], 32  }
  0x8f   :  { %57 = vsyncadd [#allocation1], 4294967264 }
  0x90   :  { %31 = vsyncpa [#allocation1], 1 }

// kernel: depoi_forward.1
= control target key start
LH: loop header
LB: loop body
LE: loop exit
PB: predicated region body
PF: predicated region fallthrough
CT: control target
= control target key end

     0   :  { %s11431_s6 = smov 1   ;;  %s11432_s10 = smov 2   ;;  %s14823_s0 = inlined_call_operand.smem [shape: u32[31], index: -1, kind: input, shape index: {}] }
   0x1   :  { %s11504_s5 = sld [smem:[%s14823_s0]]   ;;  %s11433_s14 = smov 3  }
   0x2   :  { %s11509_s9 = sld [smem:[%s14823_s0 + %s11431_s6]]   ;;  %s11434_s18 = smov 4  }
   0x3   :  { %s11514_s13 = sld [smem:[%s14823_s0 + %s11432_s10]]   ;;  %s11435_s22 = smov 5  }
   0x4   :  { %s11519_s17 = sld [smem:[%s14823_s0 + %s11433_s14]]   ;;  %s11436_s26 = smov 6  }
   0x5   :  { %s11524_s21 = sld [smem:[%s14823_s0 + %s11434_s18]]   ;;  %s11437_s30 = smov 7  }
   0x6   :  { %s11529_s25 = sld [smem:[%s14823_s0 + %s11435_s22]]   ;;  %s11438_s4 = smov 8  }
   0x7   :  { %s11534_s29 = sld [smem:[%s14823_s0 + %s11436_s26]]   ;;  %s11439_s10 = smov 9  }
   0x8   :  { %s11539_s3 = sld [smem:[%s14823_s0 + %s11437_s30]]   ;;  %s11440_s15 = smov 10  }
   0x9   :  { %14997 = sst [smem:[#allocation43_spill]] %s11514_s13  ;;  %s11441_s20 = smov 11  }
   0xa   :  { %s11544_s8 = sld [smem:[%s14823_s0 + %s11438_s4]]   ;;  %s11442_s26 = smov 12  }
   0xb   :  { %14998 = sst [smem:[#allocation44_spill]] %s11524_s21  ;;  %s11443_s1 = smov 13  }
   0xc   :  { %s11549_s14 = sld [smem:[%s14823_s0 + %s11439_s10]]   ;;  %s11444_s7 = smov 14  }
   0xd   :  { %s11554_s19 = sld [smem:[%s14823_s0 + %s11440_s15]]   ;;  %s11445_s15 = smov 15  }
   0xe   :  { %s11559_s24 = sld [smem:[%s14823_s0 + %s11441_s20]]   ;;  %s11446_s22 = smov 16  }
   0xf   :  { %s11564_s30 = sld [smem:[%s14823_s0 + %s11442_s26]]   ;;  %s11447_s28 = smov 17  }
  0x10   :  { %s11569_s6 = sld [smem:[%s14823_s0 + %s11443_s1]]  }
  0x11   :  { %s11574_s12 = sld [smem:[%s14823_s0 + %s11444_s7]]   ;;  %s11448_s7 = smov 18  }
  0x12   :  { %14999 = sst [smem:[#allocation45_spill]] %s11549_s14 }
  0x13   :  { %s11579_s20 = sld [smem:[%s14823_s0 + %s11445_s15]]   ;;  %s11449_s15 = smov 19  }
  0x14   :  { %s11584_s27 = sld [smem:[%s14823_s0 + %s11446_s22]]   ;;  %s11450_s22 = smov 20  }
  0x15   :  { %15000 = sst [smem:[#allocation46_spill]] %s11564_s30 }
  0x16   :  { %15001 = sst [smem:[#allocation47_spill]] %s11569_s6 }
  0x17   :  { %s11589_s4 = sld [smem:[%s14823_s0 + %s11447_s28]]   ;;  %s11451_s28 = smov 21  }
  0x18   :  { %s11594_s6 = sld [smem:[%s14823_s0 + %s11448_s7]]   ;;  %s11452_s7 = smov 22  }
  0x19   :  { %s11599_s30 = sld [smem:[%s14823_s0 + %s11449_s15]]   ;;  %s11453_s15 = smov 23  }
  0x1a   :  { %15002 = sst [smem:[#allocation48_spill]] %s11584_s27 }
  0x1b   :  { %s11604_s27 = sld [smem:[%s14823_s0 + %s11450_s22]]   ;;  %s11454_s22 = smov 24  }
  0x1c   :  { %s11614_s14 = sld [smem:[%s14823_s0 + %s11452_s7]]   ;;  %s11456_s7 = smov 26  }
  0x1d   :  { %15003 = sst [smem:[#allocation49_spill]] %s11589_s4 }
  0x1e   :  { %s11609_s4 = sld [smem:[%s14823_s0 + %s11451_s28]]   ;;  %s11455_s28 = smov 25  }
  0x1f   :  { %s11619_s21 = sld [smem:[%s14823_s0 + %s11453_s15]]   ;;  %s11457_s15 = smov 27  }
  0x20   :  { %s11624_s13 = sld [smem:[%s14823_s0 + %s11454_s22]]   ;;  %s11458_s22 = smov 28  }
  0x22   :  { %15005 = sst [smem:[#allocation51_spill]] %s11614_s14 }
  0x23   :  { %s11634_s14 = sld [smem:[%s14823_s0 + %s11456_s7]]   ;;  %s11460_s7 = smov 30  }
  0x24   :  { %15004 = sst [smem:[#allocation50_spill]] %s11609_s4 }
  0x25   :  { %15006 = sst [smem:[#allocation52_spill]] %s11619_s21 }
  0x26   :  { %15007 = sst [smem:[#allocation53_spill]] %s11624_s13 }
  0x27   :  { %s11629_s4 = sld [smem:[%s14823_s0 + %s11455_s28]]   ;;  %s11459_s28 = smov 29  }
  0x28   :  { %s11639_s21 = sld [smem:[%s14823_s0 + %s11457_s15]]  }
  0x29   :  { %15009 = sst [smem:[#allocation55_spill]] %s11634_s14 }
  0x2a   :  { %s11644_s13 = sld [smem:[%s14823_s0 + %s11458_s22]]  }
  0x2b   :  { %s11654_s14 = sld [smem:[%s14823_s0 + %s11460_s7]]  }
  0x2d   :  { %15008 = sst [smem:[#allocation54_spill]] %s11629_s4 }
  0x2e   :  { %s11649_s4 = sld [smem:[%s14823_s0 + %s11459_s28]]  }
  0x2f   :  { %67 = vsyncpa [#allocation3], 0 }
  0x30   :  { %68 = vsyncpa [#allocation6], 0 }
  0x31   :  { %69 = vsyncpa [#allocation9], 0 }
  0x32   :  { %70 = vsyncpa [#allocation12], 0 }
  0x33   :  { %71 = vsyncpa [#allocation15], 0 }
  0x34   :  { %72 = vsyncpa [#allocation18], 0 }
  0x35   :  { %73 = vsyncpa [#allocation21], 0 }
  0x36   :  { %74 = vsyncpa [#allocation24], 0 }
  0x37   :  { %75 = vsyncpa [#allocation4], 0 }
  0x38   :  { %76 = vsyncpa [#allocation28], 0 }
  0x39   :  { %77 = vsyncpa [#allocation31], 0  ;;  %s11461_s15 = smov [#allocation5]   ;;  %s11462_s18 = smov [#allocation8]  }
  0x3a   :  { %s95_s16 = sshll.u32 %s11461_s15, 4  ;;  %s124_s22 = sshll.u32 %s11462_s18, 4  ;;  %s96_s16 = int_to_ptr.vmem [resolvable:$true] %s95_s16  ;;  %s125_s22 = int_to_ptr.vmem [resolvable:$true] %s124_s22 }
  0x3b   :  { %s10991_s0 = scalar_lea.hbm %s11509_s9, 256 }
  0x3c   :  { %p10992_p0 = scmp.ne.s32.totalorder %s11509_s9, %s10991_s0  ;;  %p10995_p1 = scmp.lt.u32.totalorder %s10991_s0, %s11509_s9 }
  0x3e   :  { %p10997_p2 = pnand %p10995_p1, %p10992_p0 }
  0x40   :  { %11000 = shalt.err (!%p10997_p2)
}
  0x41   :  { %s11001_s23 = scalar_lea.vmem %s96_s16, 256  ;;  %p11006_p4 = scmp.lt.s32.totalorder %s96_s16, %s96_s16 }
  0x42   :  { %p11002_p3 = scmp.ne.s32.totalorder %s96_s16, %s11001_s23  ;;  %p11007_p5 = scmp.lt.s32.totalorder %s11001_s23, %s11001_s23 }
  0x44   :  { %p11008_p6 = por %p11007_p5, %p11006_p4 }
  0x46   :  { %p11009_p7 = pnand %p11008_p6, %p11002_p3 }
  0x48   :  { %11012 = shalt.err (!%p11009_p7)
}
  0x49   :  { %s11463_s26 = smov 128   ;;  %s11464_s28 = smov 8  }
  0x4a   :  { %101 = dma.hbm_to_vmem [thread:$0]  %s11509_s9, 256, %s96_s16, [#allocation6], %s11463_s26, %s11463_s26, %s11464_s28  }
  0x4b   :  { %s11013_s1 = scalar_lea.hbm %s11529_s25, 32 }
  0x4c   :  { %p11014_p8 = scmp.ne.s32.totalorder %s11529_s25, %s11013_s1  ;;  %p11017_p9 = scmp.lt.u32.totalorder %s11013_s1, %s11529_s25 }
  0x4e   :  { %p11019_p10 = pnand %p11017_p9, %p11014_p8 }
  0x50   :  { %11022 = shalt.err (!%p11019_p10)
}
  0x51   :  { %s11023_s2 = scalar_lea.vmem %s125_s22, 32  ;;  %p11028_p12 = scmp.lt.s32.totalorder %s125_s22, %s125_s22 }
  0x52   :  { %p11024_p11 = scmp.ne.s32.totalorder %s125_s22, %s11023_s2  ;;  %p11029_p13 = scmp.lt.s32.totalorder %s11023_s2, %s11023_s2 }
  0x54   :  { %p11030_p0 = por %p11029_p13, %p11028_p12 }
  0x56   :  { %p11031_p1 = pnand %p11030_p0, %p11024_p11 }
  0x58   :  { %11034 = shalt.err (!%p11031_p1)
}
  0x59   :  { %127 = dma.hbm_to_vmem [thread:$0]  %s11529_s25, 32, %s125_s22, [#allocation9]  }
  0x5a   :  { %s11465_s7 = smov [#allocation11]   ;;  %s11466_s9 = smov [#allocation14]  }
  0x5b   :  { %s143_s10 = sshll.u32 %s11465_s7, 4  ;;  %s170_s11 = sshll.u32 %s11466_s9, 4  ;;  %s144_s10 = int_to_ptr.vmem [resolvable:$true] %s143_s10  ;;  %s171_s11 = int_to_ptr.vmem [resolvable:$true] %s170_s11 }
  0x5c   :  { %s11035_s15 = scalar_lea.hbm %s11539_s3, 256 }
  0x5d   :  { %p11036_p2 = scmp.ne.s32.totalorder %s11539_s3, %s11035_s15  ;;  %p11039_p3 = scmp.lt.u32.totalorder %s11035_s15, %s11539_s3 }
  0x5f   :  { %p11041_p4 = pnand %p11039_p3, %p11036_p2 }
  0x61   :  { %11044 = shalt.err (!%p11041_p4)
}
  0x62   :  { %s11045_s16 = scalar_lea.vmem %s144_s10, 256  ;;  %p11050_p6 = scmp.lt.s32.totalorder %s144_s10, %s144_s10 }
  0x63   :  { %p11046_p5 = scmp.ne.s32.totalorder %s144_s10, %s11045_s16  ;;  %p11051_p7 = scmp.lt.s32.totalorder %s11045_s16, %s11045_s16 }
  0x65   :  { %p11052_p8 = por %p11051_p7, %p11050_p6 }
  0x67   :  { %p11053_p9 = pnand %p11052_p8, %p11046_p5 }
  0x69   :  { %11056 = shalt.err (!%p11053_p9)
}
  0x6a   :  { %149 = dma.hbm_to_vmem [thread:$0]  %s11539_s3, 256, %s144_s10, [#allocation12], %s11463_s26, %s11463_s26, %s11464_s28  }
  0x6b   :  { %s11057_s25 = scalar_lea.hbm %s11554_s19, 128 }
  0x6c   :  { %p11058_p10 = scmp.ne.s32.totalorder %s11554_s19, %s11057_s25  ;;  %p11061_p11 = scmp.lt.u32.totalorder %s11057_s25, %s11554_s19 }
  0x6e   :  { %p11063_p12 = pnand %p11061_p11, %p11058_p10 }
  0x70   :  { %11066 = shalt.err (!%p11063_p12)
}
  0x71   :  { %s11067_s18 = scalar_lea.vmem %s171_s11, 128  ;;  %p11072_p0 = scmp.lt.s32.totalorder %s171_s11, %s171_s11 }
  0x72   :  { %p11068_p13 = scmp.ne.s32.totalorder %s171_s11, %s11067_s18  ;;  %p11073_p1 = scmp.lt.s32.totalorder %s11067_s18, %s11067_s18 }
  0x74   :  { %p11074_p2 = por %p11073_p1, %p11072_p0 }
  0x76   :  { %p11075_p3 = pnand %p11074_p2, %p11068_p13 }
  0x78   :  { %11078 = shalt.err (!%p11075_p3)
}
  0x79   :  { %173 = dma.hbm_to_vmem [thread:$0]  %s11554_s19, 128, %s171_s11, [#allocation15]  }
  0x7a   :  { %s11467_s22 = smov [#allocation17]   ;;  %s11468_s3 = smov [#allocation20]  }
  0x7b   :  { %s193_s0 = sshll.u32 %s11467_s22, 4  ;;  %s221_s23 = sshll.u32 %s11468_s3, 4  ;;  %s194_s0 = int_to_ptr.vmem [resolvable:$true] %s193_s0  ;;  %s11678_s23 = int_to_ptr.vmem [resolvable:$true] %s221_s23 }
  0x7c   :  { %s11079_s1 = scalar_lea.hbm %s11574_s12, 1024 }
  0x7d   :  { %p11080_p4 = scmp.ne.s32.totalorder %s11574_s12, %s11079_s1  ;;  %p11083_p5 = scmp.lt.u32.totalorder %s11079_s1, %s11574_s12 }
  0x7f   :  { %p11085_p6 = pnand %p11083_p5, %p11080_p4 }
  0x81   :  { %11088 = shalt.err (!%p11085_p6)
}
  0x82   :  { %s11089_s2 = scalar_lea.vmem %s194_s0, 1024  ;;  %p11094_p8 = scmp.lt.s32.totalorder %s194_s0, %s194_s0 }
  0x83   :  { %p11090_p7 = scmp.ne.s32.totalorder %s194_s0, %s11089_s2  ;;  %p11095_p9 = scmp.lt.s32.totalorder %s11089_s2, %s11089_s2 }
  0x85   :  { %p11096_p10 = por %p11095_p9, %p11094_p8 }
  0x87   :  { %p11097_p11 = pnand %p11096_p10, %p11090_p7 }
  0x89   :  { %11100 = shalt.err (!%p11097_p11)
}
  0x8a   :  { %199 = dma.hbm_to_vmem [thread:$0]  %s11574_s12, 1024, %s194_s0, [#allocation18], %s11463_s26, %s11463_s26, %s11464_s28  }
  0x8b   :  { %s11101_s19 = scalar_lea.hbm %s11594_s6, 1024 }
  0x8c   :  { %p11102_p12 = scmp.ne.s32.totalorder %s11594_s6, %s11101_s19  ;;  %p11105_p13 = scmp.lt.u32.totalorder %s11101_s19, %s11594_s6 }
  0x8e   :  { %p11107_p0 = pnand %p11105_p13, %p11102_p12 }
  0x90   :  { %11110 = shalt.err (!%p11107_p0)
}
  0x91   :  { %s11111_s7 = scalar_lea.vmem %s11678_s23, 1024  ;;  %p11116_p2 = scmp.lt.s32.totalorder %s11678_s23, %s11678_s23 }
  0x92   :  { %p11112_p1 = scmp.ne.s32.totalorder %s11678_s23, %s11111_s7  ;;  %p11117_p3 = scmp.lt.s32.totalorder %s11111_s7, %s11111_s7 }
  0x94   :  { %p11118_p4 = por %p11117_p3, %p11116_p2 }
  0x96   :  { %p11119_p5 = pnand %p11118_p4, %p11112_p1 }
  0x98   :  { %11122 = shalt.err (!%p11119_p5)
}
  0x99   :  { %227 = dma.hbm_to_vmem [thread:$0]  %s11594_s6, 1024, %s11678_s23, [#allocation21], %s11463_s26, %s11463_s26, %s11464_s28  }
  0x9a   :  { %s11469_s12 = smov [#allocation23]   ;;  %s11470_s9 = smov [#allocation2]  }
  0x9b   :  { %s245_s10 = sshll.u32 %s11469_s12, 4  ;;  %s83_s11 = sshll.u32 %s11470_s9, 4  ;;  %s246_s10 = int_to_ptr.vmem [resolvable:$true] %s245_s10  ;;  %s11699_s11 = int_to_ptr.vmem [resolvable:$true] %s83_s11 }
  0x9c   :  { %s11123_s15 = scalar_lea.hbm %s11604_s27, 1024 }
  0x9d   :  { %p11124_p6 = scmp.ne.s32.totalorder %s11604_s27, %s11123_s15  ;;  %p11127_p7 = scmp.lt.u32.totalorder %s11123_s15, %s11604_s27 }
  0x9f   :  { %p11129_p8 = pnand %p11127_p7, %p11124_p6 }
  0xa1   :  { %11132 = shalt.err (!%p11129_p8)
}
  0xa2   :  { %s11133_s16 = scalar_lea.vmem %s246_s10, 1024  ;;  %p11138_p10 = scmp.lt.s32.totalorder %s246_s10, %s246_s10 }
  0xa3   :  { %p11134_p9 = scmp.ne.s32.totalorder %s246_s10, %s11133_s16  ;;  %p11139_p11 = scmp.lt.s32.totalorder %s11133_s16, %s11133_s16 }
  0xa5   :  { %p11140_p12 = por %p11139_p11, %p11138_p10 }
  0xa7   :  { %p11141_p13 = pnand %p11140_p12, %p11134_p9 }
  0xa9   :  { %11144 = shalt.err (!%p11141_p13)
}
  0xaa   :  { %251 = dma.hbm_to_vmem [thread:$0]  %s11604_s27, 1024, %s246_s10, [#allocation24], %s11463_s26, %s11463_s26, %s11464_s28  }
  0xab   :  { %s11145_s6 = scalar_lea.hbm %s11504_s5, 256 }
  0xac   :  { %p11146_p0 = scmp.ne.s32.totalorder %s11504_s5, %s11145_s6  ;;  %p11149_p1 = scmp.lt.u32.totalorder %s11145_s6, %s11504_s5 }
  0xae   :  { %p11151_p2 = pnand %p11149_p1, %p11146_p0 }
  0xb0   :  { %11154 = shalt.err (!%p11151_p2)
}
  0xb1   :  { %s11155_s25 = scalar_lea.vmem %s11699_s11, 256  ;;  %p11160_p4 = scmp.lt.s32.totalorder %s11699_s11, %s11699_s11 }
  0xb2   :  { %p11156_p3 = scmp.ne.s32.totalorder %s11699_s11, %s11155_s25  ;;  %p11161_p5 = scmp.lt.s32.totalorder %s11155_s25, %s11155_s25 }
  0xb4   :  { %p11162_p6 = por %p11161_p5, %p11160_p4 }
  0xb6   :  { %p11163_p7 = pnand %p11162_p6, %p11156_p3 }
  0xb8   :  { %11166 = shalt.err (!%p11163_p7)
}
  0xb9   :  { %89 = dma.hbm_to_vmem [thread:$0]  %s11504_s5, 256, %s11699_s11, [#allocation3], %s11463_s26, %s11463_s26, %s11464_s28  }
  0xba   :  { %s11471_s27 = smov [#allocation7]   ;;  %s11472_s22 = smov [#allocation10]  }
  0xbb   :  { %s109_s18 = sshll.u32 %s11471_s27, 4  ;;  %s134_s0 = sshll.u32 %s11472_s22, 4  ;;  %s110_s18 = int_to_ptr.vmem [resolvable:$true] %s109_s18  ;;  %s135_s0 = int_to_ptr.vmem [resolvable:$true] %s134_s0 }
  0xbc   :  { %s11167_s3 = scalar_lea.hbm %s11519_s17, 512 }
  0xbd   :  { %p11168_p8 = scmp.ne.s32.totalorder %s11519_s17, %s11167_s3  ;;  %p11171_p9 = scmp.lt.u32.totalorder %s11167_s3, %s11519_s17 }
  0xbf   :  { %p11173_p10 = pnand %p11171_p9, %p11168_p8 }
  0xc1   :  { %11176 = shalt.err (!%p11173_p10)
}
  0xc2   :  { %s11177_s23 = scalar_lea.vmem %s110_s18, 512  ;;  %p11182_p12 = scmp.lt.s32.totalorder %s110_s18, %s110_s18 }
  0xc3   :  { %p11178_p11 = scmp.ne.s32.totalorder %s110_s18, %s11177_s23  ;;  %p11183_p13 = scmp.lt.s32.totalorder %s11177_s23, %s11177_s23 }
  0xc5   :  { %p11184_p0 = por %p11183_p13, %p11182_p12 }
  0xc7   :  { %p11185_p1 = pnand %p11184_p0, %p11178_p11 }
  0xc9   :  { %11188 = shalt.err (!%p11185_p1)
}
  0xca   :  { %115 = dma.hbm_to_vmem [thread:$0]  %s11519_s17, 512, %s110_s18, [#allocation6], %s11463_s26, %s11463_s26, %s11464_s28  }
  0xcb   :  { %s11189_s5 = scalar_lea.hbm %s11534_s29, 32 }
  0xcc   :  { %p11190_p2 = scmp.ne.s32.totalorder %s11534_s29, %s11189_s5  ;;  %p11193_p3 = scmp.lt.u32.totalorder %s11189_s5, %s11534_s29 }
  0xce   :  { %p11195_p4 = pnand %p11193_p3, %p11190_p2 }
  0xd0   :  { %11198 = shalt.err (!%p11195_p4)
}
  0xd1   :  { %s11199_s1 = scalar_lea.vmem %s135_s0, 32  ;;  %p11204_p6 = scmp.lt.s32.totalorder %s135_s0, %s135_s0 }
  0xd2   :  { %p11200_p5 = scmp.ne.s32.totalorder %s135_s0, %s11199_s1  ;;  %p11205_p7 = scmp.lt.s32.totalorder %s11199_s1, %s11199_s1 }
  0xd4   :  { %p11206_p8 = por %p11205_p7, %p11204_p6 }
  0xd6   :  { %p11207_p9 = pnand %p11206_p8, %p11200_p5 }
  0xd8   :  { %11210 = shalt.err (!%p11207_p9)
}
  0xd9   :  { %137 = dma.hbm_to_vmem [thread:$0]  %s11534_s29, 32, %s135_s0, [#allocation9]  }
  0xda   :  { %s11473_s2 = smov [#allocation13]   ;;  %s11474_s17 = smov [#allocation16]  }
  0xdb   :  { %s155_s19 = sshll.u32 %s11473_s2, 4  ;;  %s180_s7 = sshll.u32 %s11474_s17, 4  ;;  %s156_s19 = int_to_ptr.vmem [resolvable:$true] %s155_s19  ;;  %s181_s7 = int_to_ptr.vmem [resolvable:$true] %s180_s7 }
  0xdc   :  { %s11211_s12 = scalar_lea.hbm %s11544_s8, 256 }
  0xdd   :  { %p11212_p10 = scmp.ne.s32.totalorder %s11544_s8, %s11211_s12  ;;  %p11215_p11 = scmp.lt.u32.totalorder %s11211_s12, %s11544_s8 }
  0xdf   :  { %p11217_p12 = pnand %p11215_p11, %p11212_p10 }
  0xe1   :  { %11220 = shalt.err (!%p11217_p12)
}
  0xe2   :  { %s11221_s10 = scalar_lea.vmem %s156_s19, 256  ;;  %p11226_p0 = scmp.lt.s32.totalorder %s156_s19, %s156_s19 }
  0xe3   :  { %p11222_p13 = scmp.ne.s32.totalorder %s156_s19, %s11221_s10  ;;  %p11227_p1 = scmp.lt.s32.totalorder %s11221_s10, %s11221_s10 }
  0xe5   :  { %p11228_p2 = por %p11227_p1, %p11226_p0 }
  0xe7   :  { %p11229_p3 = pnand %p11228_p2, %p11222_p13 }
  0xe9   :  { %11232 = shalt.err (!%p11229_p3)
}
  0xea   :  { %161 = dma.hbm_to_vmem [thread:$0]  %s11544_s8, 256, %s156_s19, [#allocation12], %s11463_s26, %s11463_s26, %s11464_s28  }
  0xeb   :  { %s11233_s29 = scalar_lea.hbm %s11559_s24, 128 }
  0xec   :  { %p11234_p4 = scmp.ne.s32.totalorder %s11559_s24, %s11233_s29  ;;  %p11237_p5 = scmp.lt.u32.totalorder %s11233_s29, %s11559_s24 }
  0xee   :  { %p11239_p6 = pnand %p11237_p5, %p11234_p4 }
  0xf0   :  { %11242 = shalt.err (!%p11239_p6)
}
  0xf1   :  { %s11243_s9 = scalar_lea.vmem %s181_s7, 128  ;;  %p11248_p8 = scmp.lt.s32.totalorder %s181_s7, %s181_s7 }
  0xf2   :  { %p11244_p7 = scmp.ne.s32.totalorder %s181_s7, %s11243_s9  ;;  %p11249_p9 = scmp.lt.s32.totalorder %s11243_s9, %s11243_s9 }
  0xf4   :  { %p11250_p10 = por %p11249_p9, %p11248_p8 }
  0xf6   :  { %p11251_p11 = pnand %p11250_p10, %p11244_p7 }
  0xf8   :  { %11254 = shalt.err (!%p11251_p11)
}
  0xf9   :  { %183 = dma.hbm_to_vmem [thread:$0]  %s11559_s24, 128, %s181_s7, [#allocation15]  }
  0xfa   :  { %s11475_s11 = smov [#allocation19]   ;;  %s11255_s8 = scalar_lea.hbm %s11579_s20, 32 }
  0xfb   :  { %s205_s15 = sshll.u32 %s11475_s11, 4  ;;  %p11256_p12 = scmp.ne.s32.totalorder %s11579_s20, %s11255_s8  ;;  %s206_s15 = int_to_ptr.vmem [resolvable:$true] %s205_s15 }
  0xfc   :  { %p11259_p13 = scmp.lt.u32.totalorder %s11255_s8, %s11579_s20 }
  0xfe   :  { %p11261_p0 = pnand %p11259_p13, %p11256_p12 }
 0x100   :  { %11264 = shalt.err (!%p11261_p0)
}
 0x101   :  { %s11265_s16 = scalar_lea.vmem %s206_s15, 32  ;;  %p11270_p2 = scmp.lt.s32.totalorder %s206_s15, %s206_s15 }
 0x102   :  { %p11266_p1 = scmp.ne.s32.totalorder %s206_s15, %s11265_s16  ;;  %p11271_p3 = scmp.lt.s32.totalorder %s11265_s16, %s11265_s16 }
 0x104   :  { %p11272_p4 = por %p11271_p3, %p11270_p2 }
 0x106   :  { %p11273_p5 = pnand %p11272_p4, %p11266_p1 }
 0x108   :  { %11276 = shalt.err (!%p11273_p5)
}
 0x109   :  { %s11476_s6 = smov 16   ;;  %s11477_s24 = smov 1  }
 0x10a   :  { %211 = dma.hbm_to_vmem [thread:$0]  %s11579_s20, 32, %s206_s15, [#allocation18], %s11476_s6, %s11476_s6, %s11477_s24  }
 0x10b   :  { %s11478_s25 = smov [#allocation22]   ;;  %s11479_s18 = smov [#allocation25]  }
 0x10c   :  { %s233_s27 = sshll.u32 %s11478_s25, 4  ;;  %s257_s22 = sshll.u32 %s11479_s18, 4  ;;  %s234_s27 = int_to_ptr.vmem [resolvable:$true] %s233_s27  ;;  %s258_s22 = int_to_ptr.vmem [resolvable:$true] %s257_s22 }
 0x10d   :  { %s11277_s0 = scalar_lea.hbm %s11599_s30, 32 }
 0x10e   :  { %p11278_p6 = scmp.ne.s32.totalorder %s11599_s30, %s11277_s0  ;;  %p11281_p7 = scmp.lt.u32.totalorder %s11277_s0, %s11599_s30 }
 0x110   :  { %p11283_p8 = pnand %p11281_p7, %p11278_p6 }
 0x112   :  { %11286 = shalt.err (!%p11283_p8)
}
 0x113   :  { %s11287_s3 = scalar_lea.vmem %s234_s27, 32  ;;  %p11292_p10 = scmp.lt.s32.totalorder %s234_s27, %s234_s27 }
 0x114   :  { %p11288_p9 = scmp.ne.s32.totalorder %s234_s27, %s11287_s3  ;;  %p11293_p11 = scmp.lt.s32.totalorder %s11287_s3, %s11287_s3 }
 0x116   :  { %p11294_p12 = por %p11293_p11, %p11292_p10 }
 0x118   :  { %p11295_p13 = pnand %p11294_p12, %p11288_p9 }
 0x11a   :  { %11298 = shalt.err (!%p11295_p13)
}
 0x11b   :  { %s15010_s20 = sld [smem:[#allocation50_spill]] }
 0x11c   :  { %239 = dma.hbm_to_vmem [thread:$0]  %s11599_s30, 32, %s234_s27, [#allocation21], %s11476_s6, %s11476_s6, %s11477_s24  }
 0x121   :  { %s11299_s23 = scalar_lea.hbm %s15010_s20, 32 }
 0x122   :  { %p11300_p0 = scmp.ne.s32.totalorder %s15010_s20, %s11299_s23  ;;  %p11303_p1 = scmp.lt.u32.totalorder %s11299_s23, %s15010_s20 }
 0x124   :  { %p11305_p2 = pnand %p11303_p1, %p11300_p0 }
 0x126   :  { %11308 = shalt.err (!%p11305_p2)
}
 0x127   :  { %s11309_s5 = scalar_lea.vmem %s258_s22, 32  ;;  %p11314_p4 = scmp.lt.s32.totalorder %s258_s22, %s258_s22 }
 0x128   :  { %p11310_p3 = scmp.ne.s32.totalorder %s258_s22, %s11309_s5  ;;  %p11315_p5 = scmp.lt.s32.totalorder %s11309_s5, %s11309_s5 }
 0x12a   :  { %p11316_p6 = por %p11315_p5, %p11314_p4 }
 0x12c   :  { %p11317_p7 = pnand %p11316_p6, %p11310_p3 }
 0x12e   :  { %11320 = shalt.err (!%p11317_p7)
}
 0x12f   :  { %263 = dma.hbm_to_vmem [thread:$0]  %s15010_s20, 32, %s258_s22, [#allocation24], %s11476_s6, %s11476_s6, %s11477_s24  }
 0x130   :  { %11409 = dma.done.wait [#allocation3], 256  }
 0x131   :  { %11410 = vsyncadd [#allocation3], 4294967040 }
 0x132   :  { %11411 = dma.done.wait [#allocation6], 768  }
 0x133   :  { %11412 = vsyncadd [#allocation6], 4294966528 }
 0x134   :  { %11413 = dma.done.wait [#allocation9], 64  }
 0x135   :  { %11414 = vsyncadd [#allocation9], 4294967232 }
 0x136   :  { %11415 = dma.done.wait [#allocation12], 512  }
 0x137   :  { %11416 = vsyncadd [#allocation12], 4294966784 }
 0x138   :  { %11417 = dma.done.wait [#allocation15], 256  }
 0x139   :  { %11418 = vsyncadd [#allocation15], 4294967040 }
 0x13a   :  { %11419 = dma.done.wait [#allocation18], 1056  }
 0x13b   :  { %11420 = vsyncadd [#allocation18], 4294966240 }
 0x13c   :  { %11421 = dma.done.wait [#allocation21], 1056  }
 0x13d   :  { %11422 = vsyncadd [#allocation21], 4294966240 }
 0x13e   :  { %11423 = dma.done.wait [#allocation24], 1056  }
 0x13f   :  { %11424 = vsyncadd [#allocation24], 4294966240  ;;  %v498_v0 = vlaneseq  ;;  %v11480_v1 = vmov 0.0|0.0   ;;  %s15011_s30 = sld [smem:[#allocation43_spill]]  ;;  %s15013_s1 = sld [smem:[#allocation44_spill]]  ;;  %v313_v4 = vld [vmem:[#allocation2] sm:$0xff] }
 0x140   :  { %10709 = vmatprep.subr.bf16.mxu0 %v11480_v1  ;;  %10715 = vmatprep.subr.bf16.mxu1 %v11480_v1  ;;  %v314_v5 = vld [vmem:[#allocation2 + $0x8] sm:$0x7]  ;;  %v11770_v6 = vld [vmem:[#allocation5] sm:$0xff]  ;;  %vm321_vm0 = vcmask 261120   ;;  %vm11481_vm1 = vmmov 0   ;;  %v14834_v7 = vmov 0.0  }
 0x141   :  { %v11765_v2 = vshrl.u32 %v498_v0, 7  ;;  %10384 = vmatprep.mubr.msk.f32.mxu0 %vm11481_vm1, %v14834_v7  ;;  %10395 = vmatprep.mubr.msk.f32.mxu1 %vm11481_vm1, %v14834_v7  ;;  %v11776_v8 = vld [vmem:[#allocation5 + $0x8] sm:$0x7]  ;;  %v317_v9 = vmul.f32 0.5, %v313_v4  ;;  %v319_v10 = vmul.f32 0.5, %v11770_v6  ;;  %s15014_s2 = sld [smem:[#allocation53_spill]] }
 0x142   :  { %v318_v12 = vmul.f32 0.5, %v314_v5  ;;  %v320_v13 = vmul.f32 0.5, %v11776_v8  ;;  %vm323_vm2 = vcmask 256000   ;;  %v322_v21 = vsel %vm321_vm0, %v313_v4, 0.0  ;;  %s11484_s19 = smov 32   ;;  %s11486_s17 = smov 96  }
 0x143   :  { %v11768_v3 = vsub.s32 1, %v11765_v2  ;;  %v11783_v16 = vadd.f32 %v319_v10, %v313_v4  ;;  %v582_v17 = vmul.f32 0.5, %v319_v10  ;;  %v324_v26 = vsel %vm323_vm2, %v314_v5, 0.0  ;;  %s15024_s7 = sld [smem:[#allocation45_spill]]  ;;  %s15028_s12 = sld [smem:[#allocation46_spill]] }
 0x144   :  { %v11789_v22 = vadd.f32 %v320_v13, %v314_v5  ;;  %v583_v23 = vmul.f32 0.5, %v320_v13  ;;  %v11803_v28 = vsub.s32 0, %v11765_v2  ;;  %v325_v30 = vadd.f32 %v324_v26, %v322_v21  ;;  %s15030_s10 = sld [smem:[#allocation47_spill]]  ;;  %s11488_s29 = smov 64  }
 0x145   :  { %15012 = vst [vmem:[#allocation56_spill] sm:$0xff] %v11768_v3  ;;  %v334_v11 = vld [vmem:[%s15011_s30] sm:$0xff]  ;;  %v335_v15 = vld [vmem:[%s15011_s30 + $0x8] sm:$0xff]  ;;  %15015 = vst [vmem:[#allocation57_spill] sm:$0xff] %v11783_v16  ;;  %v11791_v25 = vadd.f32 %v582_v17, %v317_v9  ;;  %v11483_v31 = vmov 0   ;;  %v11815_v41 = vand.u32 127, %v498_v0 }
 0x146   :  { %v649_v14 = vld [vmem:[%s15013_s1] sm:$0x3]  ;;  %v336_v19 = vld [vmem:[%s15011_s30 + $0x10] sm:$0xff]  ;;  %v337_v20 = vld [vmem:[%s15011_s30 + $0x18] sm:$0xff]  ;;  %15016 = vst [vmem:[#allocation58_spill] sm:$0xff] %v11789_v22  ;;  %v10710_v24 = vpack.c.bf16 %v335_v15, %v334_v11  ;;  %v11797_v27 = vadd.f32 %v583_v23, %v318_v12  ;;  %10865 = vset.pattern.permute.xlu1 %v11483_v31  ;;  %10866 = vset.pattern.permute.xlu0 %v11483_v31  ;;  %v326_v33 = vrot.slane %v325_v30, 4 }
 0x147   :  { %v660_v18 = vrot.slane %v649_v14, %v11768_v3  ;;  %15017 = vst [vmem:[#allocation59_spill] sm:$0xff] %v11791_v25  ;;  %586 = vst.msk [vmem:[%s15014_s2] sm:$0xff] %vm321_vm0, %v11783_v16  ;;  %v10713_v29 = vpack.c.bf16 %v337_v20, %v336_v19  ;;  %v653_v34 = vrot.slane %v649_v14, %v11803_v28  ;;  %vm636_vm4 = vcmask 1042432   ;;  %v1480_v31 = vld [vmem:[#allocation17] sm:$0xff]  ;;  %s11489_s9 = smov 80   ;;  %s11490_s11 = smov 112  }
 0x148   :  { %15018 = vst [vmem:[#allocation60_spill] sm:$0xff] %v11797_v27  ;;  %587 = vst.msk [vmem:[%s15014_s2 + $0x8] sm:$0x7] %vm323_vm2, %v11789_v22  ;;  %10711 = vmatpush3.bf16.msra.mxu0 %v10710_v24  ;;  %v10860_v32 = vpack.i.bf16 %v11797_v27, %v11791_v25  ;;  %v327_v35 = vadd.f32 %v326_v33, %v325_v30  ;;  %vm11485_vm5 = vmmov 1   ;;  %vm722_vm7 = vcmask 89088   ;;  %s11491_s15 = smov 48  }
 0x149   :  { %662 = vbcast.lane.b32.xlu1 %v660_v18, 256  ;;  %15019 = vst [vmem:[#allocation61_spill] sm:$0xff] %v11803_v28  ;;  %588 = vst.msk [vmem:[#allocation26] sm:$0xff] %vm321_vm0, %v11791_v25  ;;  %10712 = vmatprep.subr.bf16.mxu0 %v11480_v1  ;;  %vm1231_vm9 = vcmask 1041408   ;;  %vm1182_vm13 = vcmask 277504   ;;  %s15135_s8 = sld [smem:[#allocation48_spill]] }
 0x14a   :  { %589 = vst.msk [vmem:[#allocation26 + $0x8] sm:$0x7] %vm323_vm2, %v11797_v27  ;;  %10861 = vrot.lane.b32.xlu0 %v10860_v32, %s11484_s19  ;;  %v328_v36 = vrot.slane %v327_v35, 2  ;;  %15020 = vst [vmem:[#allocation62_spill] sm:$0xff] %v11815_v41  ;;  %v1481_v32 = vld [vmem:[#allocation17 + $0x8] sm:$0xff]  ;;  %s15136_s16 = sld [smem:[#allocation49_spill]] }
 0x14b   :  { %vm10722_vm6 = vmpackc.low %vm636_vm4, %vm11485_vm5  ;;  %v10735_v33 = vpack.c.bf16 %v1481_v32, %v1480_v31  ;;  %v1179_v31 = vld [vmem:[%s15024_s7 + $0x10] sm:$0xff]  ;;  %v1180_v32 = vld [vmem:[%s15024_s7 + $0x18] sm:$0xff]  ;;  %s15238_s24 = sld [smem:[#allocation52_spill]]  ;;  %s15239_s25 = sld [smem:[#allocation55_spill]] }
 0x14c   :  { %10714 = vmatpush3.bf16.msra.mxu0 %v10713_v29  ;;  %v329_v37 = vadd.f32 %v328_v36, %v327_v35  ;;  %v1483_v35 = vld [vmem:[#allocation17 + $0x18] sm:$0xff]  ;;  %s11492_s27 = smov [#allocation27]   ;;  %s11493_s22 = smov [#allocation26]  }
 0x14d   :  { %s9955_s18 = sshll.u32 %s11492_s27, 4  ;;  %s9940_s0 = sshll.u32 %s11493_s22, 4  ;;  %s14778_s18 = int_to_ptr.vmem [resolvable:$true] %s9955_s18  ;;  %s9941_s0 = int_to_ptr.vmem [resolvable:$true] %s9940_s0 }
 0x14e   :  { %655 = vbcast.lane.b32.xlu0 %v653_v34, 256  ;;  %v330_v38 = vrot.slane %v329_v37, 1  ;;  %v1482_v34 = vld [vmem:[#allocation17 + $0x10] sm:$0xff]  ;;  %s11321_s3 = scalar_lea.vmem %s9941_s0, 256  ;;  %p11326_p9 = scmp.lt.s32.totalorder %s9941_s0, %s9941_s0 }
 0x14f   :  { %v10739_v36 = vpack.c.bf16 %v1483_v35, %v1482_v34  ;;  %v10731_v34 = vpack.c.bf16 %v1180_v32, %v1179_v31  ;;  %p11322_p8 = scmp.ne.s32.totalorder %s9941_s0, %s11321_s3  ;;  %p11327_p10 = scmp.lt.s32.totalorder %s11321_s3, %s11321_s3 }
 0x150   :  { %v331_v39 = vadd.f32 %v330_v38, %v329_v37  ;;  %v421_v37 = vld [vmem:[#allocation7] sm:$0xff]  ;;  %v422_v38 = vld [vmem:[#allocation7 + $0x8] sm:$0xff] }
 0x151   :  { %p11328_p11 = por %p11327_p10, %p11326_p9 }
 0x152   :  { %v333_v40 = vmul.f32 0.09090909, %v331_v39  ;;  %v10716_v39 = vpack.c.bf16 %v422_v38, %v421_v37 }
 0x153   :  { %p11329_p12 = pnand %p11328_p11, %p11322_p8 }
 0x154   :  { %10385 = vmatmul.mubr.msk.f32.vlgmr.msra.gmra.mrb[0].mxu0 %vm321_vm0, %v333_v40  ;;  %10717 = vmatpush3.bf16.msra.mxu1 %v10716_v39 }
 0x155   :  { %10718 = vmatprep.subr.bf16.mxu1 %v11480_v1 }
 0x1bb   :  { %v663_v42 = vpop.permute.xlu1 %662 }
 0x1bc   :  { %vm665_vm3 = vcmp.eq.s32.totalorder %v11815_v41, %v663_v42  ;;  %v10862_v45 = vpop.permute.xlu0 %10861 }
 0x1bd   :  { %v11819_v43 = vsel %vm665_vm3, 1.0, %v14834_v7  ;;  %v10864_v46 = vunpack.i.h.bf16 %v10862_v45  ;;  %v10863_v47 = vunpack.i.l.bf16 %v10862_v45 }
 0x1be   :  { %v14836_v44 = vsub.f32 1.0, %v11819_v43 }
 0x1bf   :  { %v721_v48 = vsel %vm321_vm0, %v11789_v22, %v10864_v46  ;;  %v720_v49 = vsel %vm321_vm0, %v11783_v16, %v10863_v47 }
 0x1c0   :  { %828 = vperm.xlu0 %10866, %v14836_v44   ;;  %v656_v50 = vpop.permute.xlu0 %655  ;;  %v10721_v51 = vpack.c.bf16 %v721_v48, %v720_v49 }
 0x1c1   :  { %vm664_vm8 = vcmp.eq.s32.totalorder %v11815_v41, %v656_v50 }
 0x1c2   :  { %v11831_v52 = vsel %vm664_vm8, 1.0, %v14834_v7  ;;  %10723 = vmatprep.subr.msk.bf16.mxu0 %vm10722_vm6, %v10721_v51 }
 0x1c3   :  { %v14837_v53 = vsub.f32 1.0, %v11831_v52  ;;  %10726 = vmatpush3.bf16.msk.msra.mxu0 %vm10722_vm6, %v10721_v51  ;;  %10402 = vmatprep.mubr.msk.f32.mxu0 %vm722_vm7, %v11831_v52 }
 0x1c4   :  { %10736 = vmatprep.subr.bf16.mxu0 %v10735_v33 }
 0x1c5   :  { %823 = vperm.xlu1 %10865, %v14837_v53  }
 0x1c6   :  { %10403 = vmatmul.mubr.msk.f32.vlgmr.msra.gmra.mrb[2].mxu0 %vm722_vm7, %v11819_v43 }
 0x1c7   :  { %10738 = vmatpush3.bf16.msra.mxu0 %v10735_v33 }
 0x1c8   :  { %10740 = vmatprep.subr.bf16.mxu0 %v10739_v36 }
 0x1cb   :  { %10742 = vmatpush3.bf16.msra.mxu0 %v10739_v36  ;;  %v11921_v36 = vsub.s32 3, %v11765_v2 }
 0x1cc   :  { %10459 = vmatprep.subr.mxu0 %v14834_v7 }
 0x1cd   :  { %15026 = vst [vmem:[#allocation67_spill] sm:$0xff] %v11921_v36 }
 0x227   :  { %v11840_v54 = vpop.f32.mrb[0].mxu0 }
 0x228   :  { %15021 = vst [vmem:[#allocation63_spill] sm:$0xff] %v11840_v54  ;;  %v10386_v55 = vpop.f32.mrb[1].mxu0 }
 0x229   :  { %v411_v55 = vsel %vm321_vm0, %v11770_v6, 0.0 }
 0x23f   :  { %v11851_v63 = vpop.permute.xlu0 %828 }
 0x240   :  { %15023 = vst [vmem:[#allocation65_spill] sm:$0xff] %v11851_v63 }
 0x244   :  { %v11843_v59 = vpop.permute.xlu1 %823 }
 0x245   :  { %15022 = vst [vmem:[#allocation64_spill] sm:$0xff] %v11843_v59 }
 0x299   :  { %v10404_v56 = vpop.f32.mrb[2].mxu0 }
 0x29a   :  { %v798_v57 = vpop.f32.mrb[3].mxu0  ;;  %v818_v62 = vmul.f32 5.656854, %v10404_v56 }
 0x29b   :  { %v817_v58 = vmul.f32 5.656854, %v798_v57  ;;  %811 = vrot.lane.b32.xlu1 %v798_v57, %s11486_s17 }
 0x29c   :  { %v11854_v0 = vmul.f32 %v11851_v63, %v818_v62  ;;  %v11898_v62 = vld [vmem:[#allocation11] sm:$0xff] }
 0x29d   :  { %v11846_v60 = vmul.f32 %v11843_v59, %v817_v58 }
 0x29e   :  { %v1410_v4 = vsel %vm321_vm0, %v11854_v0, 0.0 }
 0x29f   :  { %813 = vrot.lane.b32.xlu1 %v10404_v56, %s11486_s17  ;;  %v1407_v61 = vsel %vm321_vm0, %v11846_v60, 0.0  ;;  %v412_v56 = vsel %vm323_vm2, %v11776_v8, 0.0  ;;  %v851_v8 = vrot.slane %v11898_v62, %v11768_v3 }
 0x2a0   :  { %1408 = vadd.xlane.f32.xlu0 %v1407_v61  ;;  %v413_v57 = vadd.f32 %v412_v56, %v411_v55  ;;  %v11944_v56 = vsub.s32 6, %v11765_v2 }
 0x2a2   :  { %v414_v58 = vrot.slane %v413_v57, 4  ;;  %15031 = vst [vmem:[#allocation70_spill] sm:$0xff] %v11944_v56 }
 0x2a4   :  { %v415_v61 = vadd.f32 %v414_v58, %v413_v57 }
 0x2c3   :  { %1411 = vadd.xlane.f32.xlu1 %v1410_v4  ;;  %v416_v4 = vrot.slane %v415_v61, 2 }
 0x30d   :  { %v812_v5 = vpop.permute.xlu1 %811 }
 0x30e   :  { %v819_v9 = vmul.f32 5.656854, %v812_v5  ;;  %v844_v5 = vrot.slane %v11898_v62, %v11803_v28 }
 0x310   :  { %v11859_v10 = vmul.f32 %v11843_v59, %v819_v9  ;;  %v417_v9 = vadd.f32 %v416_v4, %v415_v61  ;;  %v11949_v61 = vld [vmem:[%s15028_s12] ss:$0 sm:$0xff] }
 0x311   :  { %v814_v11 = vpop.permute.xlu1 %813 }
 0x312   :  { %v820_v12 = vmul.f32 5.656854, %v814_v11  ;;  %v1413_v13 = vsel %vm321_vm0, %v11859_v10, 0.0  ;;  %v837_v11 = vld [vmem:[#allocation13] sm:$0xff]  ;;  %v418_v6 = vrot.slane %v417_v9, 1 }
 0x313   :  { %1414 = vadd.xlane.f32.xlu0 %v1413_v13  ;;  %v424_v13 = vld [vmem:[#allocation7 + $0x18] sm:$0xff] }
 0x314   :  { %v11864_v14 = vmul.f32 %v11851_v63, %v820_v12  ;;  %v423_v12 = vld [vmem:[#allocation7 + $0x10] sm:$0xff] }
 0x316   :  { %v1416_v15 = vsel %vm321_vm0, %v11864_v14, 0.0 }
 0x317   :  { %1417 = vadd.xlane.f32.xlu0 %v1416_v15  ;;  %v10719_v15 = vpack.c.bf16 %v424_v13, %v423_v12  ;;  %v838_v12 = vld [vmem:[#allocation13 + $0x8] sm:$0xff] }
 0x318   :  { %v11960_v13 = vld [vmem:[%s15030_s10] ss:$0 sm:$0xff] }
 0x319   :  { %10720 = vmatpush3.bf16.msra.mxu1 %v10719_v15 }
 0x32d   :  { %v1409_v17 = vpop.xlane.xlu0 %1408 }
 0x32e   :  { %v1420_v18 = vmul.f32 0.03125, %v1409_v17  ;;  %v11904_v17 = vadd.s32 17, %v837_v11  ;;  %v886_v11 = vrot.slane %v11898_v62, %v11944_v56 }
 0x330   :  { %v11869_v19 = vsub.f32 %v11846_v60, %v1420_v18  ;;  %v1177_v18 = vld [vmem:[%s15024_s7] sm:$0xff]  ;;  %v1004_v33 = vrot.slane %v11904_v17, %v11803_v28  ;;  %v1046_v4 = vrot.slane %v11904_v17, %v11944_v56 }
 0x332   :  { %v1428_v20 = vmul.f32 %v11869_v19, %v11869_v19 }
 0x334   :  { %v1432_v21 = vsel %vm321_vm0, %v1428_v20, 0.0  ;;  %v1178_v20 = vld [vmem:[%s15024_s7 + $0x8] sm:$0xff] }
 0x335   :  { %1433 = vadd.xlane.f32.xlu1 %v1432_v21  ;;  %v419_v21 = vadd.f32 %v418_v6, %v417_v9 }
 0x350   :  { %v1412_v23 = vpop.xlane.xlu1 %1411 }
 0x351   :  { %v1421_v24 = vmul.f32 0.03125, %v1412_v23  ;;  %v10727_v23 = vpack.c.bf16 %v1178_v20, %v1177_v18  ;;  %v836_v20 = vld [vmem:[#allocation11 + $0x8] sm:$0xff] }
 0x353   :  { %v11875_v26 = vsub.f32 %v11854_v0, %v1421_v24  ;;  %v420_v24 = vmul.f32 0.09090909, %v419_v21  ;;  %10728 = vmatprep.subr.bf16.mxu1 %v10727_v23 }
 0x355   :  { %v1429_v29 = vmul.f32 %v11875_v26, %v11875_v26  ;;  %10396 = vmatmul.mubr.msk.f32.vlgmr.msra.gmra.mrb[0].mxu1 %vm321_vm0, %v420_v24  ;;  %v907_v24 = vrot.slane %v836_v20, %v11768_v3 }
 0x356   :  { %10730 = vmatpush3.bf16.msra.mxu1 %v10727_v23  ;;  %v900_v23 = vrot.slane %v836_v20, %v11803_v28 }
 0x357   :  { %v1435_v30 = vsel %vm321_vm0, %v1429_v29, 0.0  ;;  %v1011_v29 = vrot.slane %v11904_v17, %v11768_v3  ;;  %10732 = vmatprep.subr.bf16.mxu1 %v10731_v34 }
 0x358   :  { %1436 = vadd.xlane.f32.xlu0 %v1435_v30  ;;  %v11911_v30 = vsub.s32 2, %v11765_v2 }
 0x35a   :  { %15025 = vst [vmem:[#allocation66_spill] sm:$0xff] %v11911_v30  ;;  %v1018_v35 = vrot.slane %v11904_v17, %v11911_v30  ;;  %v858_v38 = vrot.slane %v11898_v62, %v11911_v30  ;;  %10734 = vmatpush3.bf16.msra.mxu1 %v10731_v34  ;;  %v921_v34 = vrot.slane %v836_v20, %v11921_v36 }
 0x3a0   :  { %v1415_v40 = vpop.xlane.xlu0 %1414 }
 0x3a1   :  { %v1422_v42 = vmul.f32 0.03125, %v1415_v40  ;;  %v1181_v40 = vld [vmem:[%s15024_s7 + $0x20] sm:$0x3] }
 0x3a2   :  { %10413 = vmatprep.subr.msk.mxu1 %vm1231_vm9, %v1181_v40 }
 0x3a3   :  { %v11883_v45 = vsub.f32 %v11859_v10, %v1422_v42  ;;  %10414 = vmatpush3.msk.msra.mxu1 %vm1231_vm9, %v1181_v40 }
 0x3a4   :  { %v1418_v46 = vpop.xlane.xlu0 %1417  ;;  %10479 = vmatprep.subr.mxu1 %v14834_v7 }
 0x3a5   :  { %v1423_v47 = vmul.f32 0.03125, %v1418_v46  ;;  %v1430_v48 = vmul.f32 %v11883_v45, %v11883_v45  ;;  %v1025_v46 = vrot.slane %v11904_v17, %v11921_v36 }
 0x3a7   :  { %v11888_v49 = vsub.f32 %v11864_v14, %v1423_v47  ;;  %v1438_v50 = vsel %vm321_vm0, %v1430_v48, 0.0  ;;  %v11929_v47 = vsub.s32 4, %v11765_v2  ;;  %v865_v48 = vrot.slane %v11898_v62, %v11921_v36 }
 0x3a8   :  { %1439 = vadd.xlane.f32.xlu1 %v1438_v50 }
 0x3a9   :  { %v1431_v51 = vmul.f32 %v11888_v49, %v11888_v49  ;;  %15027 = vst [vmem:[#allocation68_spill] sm:$0xff] %v11929_v47  ;;  %v1032_v50 = vrot.slane %v11904_v17, %v11929_v47 }
 0x3ab   :  { %v1441_v1 = vsel %vm321_vm0, %v1431_v51, 0.0  ;;  %v11937_v51 = vsub.s32 5, %v11765_v2 }
 0x3ac   :  { %1442 = vadd.xlane.f32.xlu0 %v1441_v1  ;;  %v872_v1 = vrot.slane %v11898_v62, %v11929_v47 }
 0x3ad   :  { %15029 = vst [vmem:[#allocation69_spill] sm:$0xff] %v11937_v51  ;;  %v1039_v55 = vrot.slane %v11904_v17, %v11937_v51  ;;  %v879_v57 = vrot.slane %v11898_v62, %v11937_v51  ;;  %v935_v40 = vrot.slane %v836_v20, %v11937_v51 }
 0x3b9   :  { %846 = vbcast.lane.b32.xlu1 %v844_v5, 256  ;;  %v11954_v5 = vsub.s32 7, %v11765_v2 }
 0x3bb   :  { %15032 = vst [vmem:[#allocation71_spill] sm:$0xff] %v11954_v5  ;;  %v1053_v6 = vrot.slane %v11904_v17, %v11954_v5 }
 0x3bd   :  { %853 = vbcast.lane.b32.xlu1 %v851_v8, 256  ;;  %v840_v8 = vadd.s32 17, %v838_v12 }
 0x3bf   :  { %v1060_v21 = vrot.slane %v840_v8, %v11803_v28  ;;  %v1067_v17 = vrot.slane %v840_v8, %v11768_v3  ;;  %v1081_v32 = vrot.slane %v840_v8, %v11921_v36 }
 0x3c1   :  { %1013 = vbcast.lane.b32.xlu1 %v1011_v29, 256  ;;  %v1074_v29 = vrot.slane %v840_v8, %v11911_v30 }
 0x3c2   :  { %v1434_v37 = vpop.xlane.xlu1 %1433  ;;  %1006 = vbcast.lane.b32.xlu0 %v1004_v33, 256 }
 0x3c3   :  { %v1444_v39 = vmul.f32 0.03125, %v1434_v37  ;;  %v1088_v37 = vrot.slane %v840_v8, %v11929_v47 }
 0x3c5   :  { %v1448_v42 = vadd.f32 1e-08, %v1444_v39  ;;  %1020 = vbcast.lane.b32.xlu1 %v1018_v35, 256  ;;  %v1095_v39 = vrot.slane %v840_v8, %v11937_v51 }
 0x3c6   :  { %860 = vbcast.lane.b32.xlu0 %v858_v38, 256  ;;  %v928_v38 = vrot.slane %v836_v20, %v11929_v47 }
 0x3c7   :  { %10867 = vrsqrt.f32 %v1448_v42  ;;  %v1102_v42 = vrot.slane %v840_v8, %v11944_v56 }
 0x3c9   :  { %1027 = vbcast.lane.b32.xlu1 %v1025_v46, 256  ;;  %v942_v46 = vrot.slane %v836_v20, %v11944_v56 }
 0x3ca   :  { %867 = vbcast.lane.b32.xlu0 %v865_v48, 256 }
 0x3cd   :  { %1034 = vbcast.lane.b32.xlu1 %v1032_v50, 256 }
 0x3ce   :  { %874 = vbcast.lane.b32.xlu0 %v872_v1, 256  ;;  %v1109_v1 = vrot.slane %v840_v8, %v11954_v5 }
 0x3d1   :  { %v10868_v58 = vpop.eup %10867  ;;  %1041 = vbcast.lane.b32.xlu1 %v1039_v55, 256  ;;  %v949_v55 = vrot.slane %v836_v20, %v11954_v5 }
 0x3d2   :  { %v1456_v9 = vmul.f32 %v10868_v58, %v11869_v19  ;;  %881 = vbcast.lane.b32.xlu0 %v879_v57, 256  ;;  %v893_v19 = vrot.slane %v11898_v62, %v11954_v5  ;;  %v914_v62 = vrot.slane %v836_v20, %v11911_v30 }
 0x3d4   :  { %v1466_v15 = vmul.f32 %v11949_v61, %v1456_v9 }
 0x3d5   :  { %1048 = vbcast.lane.b32.xlu1 %v1046_v4, 256  ;;  %v1380_v4 = vld [vmem:[#allocation14] sm:$0xff] }
 0x3d6   :  { %v11966_v18 = vadd.f32 %v11960_v13, %v1466_v15  ;;  %888 = vbcast.lane.b32.xlu0 %v886_v11, 256 }
 0x3d8   :  { %15033 = vst [vmem:[#allocation72_spill] sm:$0xff] %v11966_v18  ;;  %10447 = vmatprep.mubr.msk.f32.mxu0 %vm321_vm0, %v11966_v18 }
 0x3d9   :  { %1055 = vbcast.lane.b32.xlu1 %v1053_v6, 256 }
 0x3da   :  { %895 = vbcast.lane.b32.xlu0 %v893_v19, 256 }
 0x3dd   :  { %1062 = vbcast.lane.b32.xlu1 %v1060_v21, 256 }
 0x3de   :  { %902 = vbcast.lane.b32.xlu0 %v900_v23, 256 }
 0x3e1   :  { %1069 = vbcast.lane.b32.xlu1 %v1067_v17, 256 }
 0x3e2   :  { %909 = vbcast.lane.b32.xlu0 %v907_v24, 256 }
 0x3e5   :  { %v1437_v31 = vpop.xlane.xlu0 %1436  ;;  %1076 = vbcast.lane.b32.xlu1 %v1074_v29, 256 }
 0x3e6   :  { %v1445_v33 = vmul.f32 0.03125, %v1437_v31  ;;  %916 = vbcast.lane.b32.xlu0 %v914_v62, 256 }
 0x3e8   :  { %v1449_v35 = vadd.f32 1e-08, %v1445_v33 }
 0x3e9   :  { %1083 = vbcast.lane.b32.xlu1 %v1081_v32, 256 }
 0x3ea   :  { %10869 = vrsqrt.f32 %v1449_v35  ;;  %923 = vbcast.lane.b32.xlu0 %v921_v34, 256 }
 0x3ed   :  { %1090 = vbcast.lane.b32.xlu1 %v1088_v37, 256 }
 0x3ee   :  { %930 = vbcast.lane.b32.xlu0 %v928_v38, 256 }
 0x3f1   :  { %1097 = vbcast.lane.b32.xlu1 %v1095_v39, 256 }
 0x3f2   :  { %937 = vbcast.lane.b32.xlu0 %v935_v40, 256 }
 0x3f4   :  { %v10870_v48 = vpop.eup %10869 }
 0x3f5   :  { %v1457_v50 = vmul.f32 %v10870_v48, %v11875_v26  ;;  %1104 = vbcast.lane.b32.xlu1 %v1102_v42, 256 }
 0x3f6   :  { %944 = vbcast.lane.b32.xlu0 %v942_v46, 256 }
 0x3f7   :  { %v1467_v57 = vmul.f32 %v11949_v61, %v1457_v50 }
 0x3f9   :  { %v11991_v58 = vadd.f32 %v11960_v13, %v1467_v57  ;;  %1111 = vbcast.lane.b32.xlu1 %v1109_v1, 256 }
 0x3fa   :  { %951 = vbcast.lane.b32.xlu0 %v949_v55, 256 }
 0x3fb   :  { %15034 = vst [vmem:[#allocation73_spill] sm:$0xff] %v11991_v58  ;;  %10448 = vmatmul.mubr.msk.f32.vlgmr.msra.gmra.mrb[4].mxu0 %vm321_vm0, %v11991_v58 }
 0x3fe   :  { %1629 = vrot.lane.b32.xlu0 %v1380_v4, %s11484_s19 }
 0x435   :  { %v1440_v26 = vpop.xlane.xlu1 %1439 }
 0x436   :  { %v1446_v9 = vmul.f32 0.03125, %v1440_v26 }
 0x438   :  { %v1450_v11 = vadd.f32 1e-08, %v1446_v9 }
 0x439   :  { %v847_v12 = vpop.permute.xlu1 %846  ;;  %v1443_v15 = vpop.xlane.xlu0 %1442 }
 0x43a   :  { %10871 = vrsqrt.f32 %v1450_v11  ;;  %vm953_vm10 = vcmp.eq.s32.totalorder %v11815_v41, %v847_v12  ;;  %v1447_v6 = vmul.f32 0.03125, %v1443_v15 }
 0x43b   :  { %v10055_v19 = vsel %vm953_vm10, 1.0, %v14834_v7 }
 0x43c   :  { %v1451_v8 = vadd.f32 1e-08, %v1447_v6 }
 0x43d   :  { %v854_v20 = vpop.permute.xlu1 %853  ;;  %v1007_v21 = vpop.permute.xlu0 %1006 }
 0x43e   :  { %10873 = vrsqrt.f32 %v1451_v8  ;;  %vm954_vm11 = vcmp.eq.s32.totalorder %v11815_v41, %v854_v20  ;;  %vm1113_vm12 = vcmp.eq.s32.totalorder %v11815_v41, %v1007_v21 }
 0x43f   :  { %v10071_v23 = vsel %vm1113_vm12, 1.0, %v14834_v7  ;;  %v10056_v24 = vsel %vm954_vm11, 1.0, %v14834_v7 }
 0x440   :  { %v1161_v17 = vadd.f32 %v10071_v23, %v10055_v19 }
 0x441   :  { %v1014_v29 = vpop.permute.xlu1 %1013  ;;  %v861_v62 = vpop.permute.xlu0 %860 }
 0x442   :  { %vm1114_vm14 = vcmp.eq.s32.totalorder %v11815_v41, %v1014_v29  ;;  %10415 = vmatprep.mubr.msk.f32.mxu1 %vm1182_vm13, %v1161_v17  ;;  %vm955_vm15 = vcmp.eq.s32.totalorder %v11815_v41, %v861_v62 }
 0x443   :  { %v10072_v31 = vsel %vm1114_vm14, 1.0, %v14834_v7  ;;  %v10057_v35 = vsel %vm955_vm15, 1.0, %v14834_v7 }
 0x444   :  { %v10872_v32 = vpop.eup %10871  ;;  %v1162_v33 = vadd.f32 %v10072_v31, %v10056_v24 }
 0x445   :  { %v1021_v34 = vpop.permute.xlu1 %1020  ;;  %v868_v37 = vpop.permute.xlu0 %867  ;;  %v1458_v38 = vmul.f32 %v10872_v32, %v11883_v45 }
 0x446   :  { %vm1115_vm3 = vcmp.eq.s32.totalorder %v11815_v41, %v1021_v34  ;;  %10416 = vmatmul.mubr.msk.f32.vlgmr.msra.gmra.mrb[2].mxu1 %vm1182_vm13, %v1162_v33  ;;  %vm956_vm5 = vcmp.eq.s32.totalorder %v11815_v41, %v868_v37 }
 0x447   :  { %v10073_v39 = vsel %vm1115_vm3, 1.0, %v14834_v7  ;;  %v1468_v40 = vmul.f32 %v11949_v61, %v1458_v38  ;;  %v10058_v50 = vsel %vm956_vm5, 1.0, %v14834_v7 }
 0x448   :  { %v10874_v42 = vpop.eup %10873  ;;  %v1163_v46 = vadd.f32 %v10073_v39, %v10057_v35 }
 0x449   :  { %v1028_v48 = vpop.permute.xlu1 %1027  ;;  %v12015_v1 = vadd.f32 %v11960_v13, %v1468_v40  ;;  %v875_v55 = vpop.permute.xlu0 %874  ;;  %v1459_v45 = vmul.f32 %v10874_v42, %v11888_v49 }
 0x44a   :  { %vm1116_vm6 = vcmp.eq.s32.totalorder %v11815_v41, %v1028_v48  ;;  %10418 = vmatprep.mubr.msk.f32.mxu1 %vm1182_vm13, %v1163_v46  ;;  %vm957_vm8 = vcmp.eq.s32.totalorder %v11815_v41, %v875_v55 }
 0x44b   :  { %15035 = vst [vmem:[#allocation74_spill] sm:$0xff] %v12015_v1  ;;  %v10074_v57 = vsel %vm1116_vm6, 1.0, %v14834_v7  ;;  %10450 = vmatprep.mubr.msk.f32.mxu0 %vm321_vm0, %v12015_v1  ;;  %v1469_v4 = vmul.f32 %v11949_v61, %v1459_v45  ;;  %v10059_v11 = vsel %vm957_vm8, 1.0, %v14834_v7 }
 0x44c   :  { %v1164_v26 = vadd.f32 %v10074_v57, %v10058_v50 }
 0x44d   :  { %v1035_v9 = vpop.permute.xlu1 %1034  ;;  %v12027_v12 = vadd.f32 %v11960_v13, %v1469_v4  ;;  %v882_v49 = vpop.permute.xlu0 %881 }
 0x44e   :  { %vm1117_vm9 = vcmp.eq.s32.totalorder %v11815_v41, %v1035_v9  ;;  %10419 = vmatmul.mubr.msk.f32.gmra.mrb[4].mxu1 %vm1182_vm13, %v1164_v26  ;;  %vm958_vm10 = vcmp.eq.s32.totalorder %v11815_v41, %v882_v49 }
 0x44f   :  { %15036 = vst [vmem:[#allocation75_spill] sm:$0xff] %v12027_v12  ;;  %v10075_v15 = vsel %vm1117_vm9, 1.0, %v14834_v7  ;;  %10451 = vmatmul.mubr.msk.f32.gmra.mrb[6].mxu0 %vm321_vm0, %v12027_v12  ;;  %v10060_v13 = vsel %vm958_vm10, 1.0, %v14834_v7 }
 0x450   :  { %v1165_v61 = vadd.f32 %v10075_v15, %v10059_v11  ;;  %10453 = vmatprep.mubr.msk.f32.mxu0 %vm321_vm0, %v11846_v60 }
 0x451   :  { %v1042_v6 = vpop.permute.xlu1 %1041  ;;  %v889_v8 = vpop.permute.xlu0 %888 }
 0x452   :  { %vm1118_vm11 = vcmp.eq.s32.totalorder %v11815_v41, %v1042_v6  ;;  %10421 = vmatprep.mubr.msk.f32.mxu1 %vm1182_vm13, %v1165_v61  ;;  %vm959_vm12 = vcmp.eq.s32.totalorder %v11815_v41, %v889_v8 }
 0x453   :  { %v10076_v19 = vsel %vm1118_vm11, 1.0, %v14834_v7  ;;  %10454 = vmatmul.mubr.msk.f32.gmra.mrb[8].mxu0 %vm321_vm0, %v11854_v0  ;;  %v10061_v21 = vsel %vm959_vm12, 1.0, %v14834_v7 }
 0x454   :  { %v1166_v20 = vadd.f32 %v10076_v19, %v10060_v13  ;;  %10456 = vmatprep.mubr.msk.f32.mxu0 %vm321_vm0, %v11859_v10 }
 0x455   :  { %v1049_v60 = vpop.permute.xlu1 %1048  ;;  %v896_v23 = vpop.permute.xlu0 %895 }
 0x456   :  { %vm1119_vm14 = vcmp.eq.s32.totalorder %v11815_v41, %v1049_v60  ;;  %10422 = vmatmul.mubr.msk.f32.gmra.mrb[6].mxu1 %vm1182_vm13, %v1166_v20  ;;  %vm960_vm15 = vcmp.eq.s32.totalorder %v11815_v41, %v896_v23 }
 0x457   :  { %v10077_v17 = vsel %vm1119_vm14, 1.0, %v14834_v7  ;;  %10457 = vmatmul.mubr.msk.f32.gmra.mrb[10].mxu0 %vm321_vm0, %v11864_v14  ;;  %v10062_v24 = vsel %vm960_vm15, 1.0, %v14834_v7 }
 0x458   :  { %v1167_v0 = vadd.f32 %v10077_v17, %v10061_v21  ;;  %10461 = vmatprep.mubr.msk.f32.mxu0 %vm11481_vm1, %v14834_v7 }
 0x459   :  { %v1056_v10 = vpop.permute.xlu1 %1055  ;;  %v903_v29 = vpop.permute.xlu0 %902 }
 0x45a   :  { %vm1120_vm3 = vcmp.eq.s32.totalorder %v11815_v41, %v1056_v10  ;;  %10424 = vmatprep.mubr.msk.f32.mxu1 %vm1182_vm13, %v1167_v0  ;;  %vm961_vm5 = vcmp.eq.s32.totalorder %v11815_v41, %v903_v29 }
 0x45b   :  { %v10078_v62 = vsel %vm1120_vm3, 1.0, %v14834_v7  ;;  %v10063_v14 = vsel %vm961_vm5, 1.0, %v14834_v7 }
 0x45c   :  { %v1168_v31 = vadd.f32 %v10078_v62, %v10062_v24 }
 0x45d   :  { %v1063_v32 = vpop.permute.xlu1 %1062  ;;  %v910_v33 = vpop.permute.xlu0 %909 }
 0x45e   :  { %vm1121_vm6 = vcmp.eq.s32.totalorder %v11815_v41, %v1063_v32  ;;  %10425 = vmatmul.mubr.msk.f32.gmra.mrb[8].mxu1 %vm1182_vm13, %v1168_v31  ;;  %vm962_vm8 = vcmp.eq.s32.totalorder %v11815_v41, %v910_v33 }
 0x45f   :  { %v10079_v34 = vsel %vm1121_vm6, 1.0, %v14834_v7  ;;  %v10064_v38 = vsel %vm962_vm8, 1.0, %v14834_v7 }
 0x460   :  { %v1169_v35 = vadd.f32 %v10079_v34, %v10063_v14  ;;  %v12102_v14 = vpop.f32.mrb[0].mxu1 }
 0x461   :  { %v1070_v37 = vpop.permute.xlu1 %1069  ;;  %v917_v39 = vpop.permute.xlu0 %916  ;;  %15037 = vst [vmem:[#allocation76_spill] sm:$0xff] %v12102_v14 }
 0x462   :  { %vm1122_vm9 = vcmp.eq.s32.totalorder %v11815_v41, %v1070_v37  ;;  %10427 = vmatprep.mubr.msk.f32.mxu1 %vm1182_vm13, %v1169_v35  ;;  %vm963_vm10 = vcmp.eq.s32.totalorder %v11815_v41, %v917_v39  ;;  %v10397_v33 = vpop.f32.mrb[1].mxu1 }
 0x463   :  { %v10080_v40 = vsel %vm1122_vm9, 1.0, %v14834_v7  ;;  %v10065_v48 = vsel %vm963_vm10, 1.0, %v14834_v7 }
 0x464   :  { %v1170_v42 = vadd.f32 %v10080_v40, %v10064_v38 }
 0x465   :  { %v1077_v46 = vpop.permute.xlu1 %1076  ;;  %v924_v50 = vpop.permute.xlu0 %923 }
 0x466   :  { %vm1123_vm11 = vcmp.eq.s32.totalorder %v11815_v41, %v1077_v46  ;;  %10428 = vmatmul.mubr.msk.f32.gmra.mrb[10].mxu1 %vm1182_vm13, %v1170_v42  ;;  %vm964_vm12 = vcmp.eq.s32.totalorder %v11815_v41, %v924_v50 }
 0x467   :  { %v10081_v55 = vsel %vm1123_vm11, 1.0, %v14834_v7  ;;  %v10066_v4 = vsel %vm964_vm12, 1.0, %v14834_v7  ;;  %vm2601_vm12 = vcmask 1041409  }
 0x468   :  { %v1171_v45 = vadd.f32 %v10081_v55, %v10065_v48  ;;  %v12116_v48 = vld [vmem:[#allocation19] ss:$0 sm:$0xff] }
 0x469   :  { %v1084_v57 = vpop.permute.xlu1 %1083  ;;  %v931_v26 = vpop.permute.xlu0 %930 }
 0x46a   :  { %vm1124_vm14 = vcmp.eq.s32.totalorder %v11815_v41, %v1084_v57  ;;  %10430 = vmatprep.mubr.msk.f32.mxu1 %vm1182_vm13, %v1171_v45  ;;  %vm965_vm15 = vcmp.eq.s32.totalorder %v11815_v41, %v931_v26 }
 0x46b   :  { %v10082_v9 = vsel %vm1124_vm14, 1.0, %v14834_v7  ;;  %v10067_v15 = vsel %vm965_vm15, 1.0, %v14834_v7  ;;  %vm2603_vm14 = vcmask 1042434   ;;  %vm2605_vm15 = vcmask 1043459  }
 0x46c   :  { %v1172_v11 = vadd.f32 %v10082_v9, %v10066_v4 }
 0x46d   :  { %v1091_v49 = vpop.permute.xlu1 %1090  ;;  %v938_v61 = vpop.permute.xlu0 %937 }
 0x46e   :  { %vm1125_vm3 = vcmp.eq.s32.totalorder %v11815_v41, %v1091_v49  ;;  %10431 = vmatmul.mubr.msk.f32.gmra.mrb[12].mxu1 %vm1182_vm13, %v1172_v11  ;;  %vm966_vm5 = vcmp.eq.s32.totalorder %v11815_v41, %v938_v61 }
 0x46f   :  { %v10083_v6 = vsel %vm1125_vm3, 1.0, %v14834_v7  ;;  %v10068_v19 = vsel %vm966_vm5, 1.0, %v14834_v7  ;;  %vm2607_vm3 = vcmask 1044484   ;;  %vm1384_vm5 = vcmp.gt.s32.totalorder %v11815_v41, %v11765_v2 }
 0x470   :  { %v1173_v13 = vadd.f32 %v10083_v6, %v10067_v15 }
 0x471   :  { %v1098_v8 = vpop.permute.xlu1 %1097  ;;  %v945_v20 = vpop.permute.xlu0 %944 }
 0x472   :  { %vm1126_vm6 = vcmp.eq.s32.totalorder %v11815_v41, %v1098_v8  ;;  %10433 = vmatprep.mubr.msk.f32.mxu1 %vm1182_vm13, %v1173_v13  ;;  %vm967_vm8 = vcmp.eq.s32.totalorder %v11815_v41, %v945_v20  ;;  %v11487_v20 = vmov 1966171168  }
 0x473   :  { %v10084_v60 = vsel %vm1126_vm6, 1.0, %v14834_v7  ;;  %v10069_v17 = vsel %vm967_vm8, 1.0, %v14834_v7  ;;  %vm2609_vm6 = vcmask 1045509   ;;  %vm2611_vm8 = vcmask 1046534  }
 0x474   :  { %v1174_v21 = vadd.f32 %v10084_v60, %v10068_v19  ;;  %v1959_v60 = vunpack.c.l.s4 %v11487_v20 }
 0x475   :  { %v1105_v23 = vpop.permute.xlu1 %1104  ;;  %v952_v0 = vpop.permute.xlu0 %951 }
 0x476   :  { %vm1127_vm9 = vcmp.eq.s32.totalorder %v11815_v41, %v1105_v23  ;;  %10434 = vmatmul.mubr.msk.f32.gmra.mrb[14].mxu1 %vm1182_vm13, %v1174_v21  ;;  %vm968_vm10 = vcmp.eq.s32.totalorder %v11815_v41, %v952_v0 }
 0x477   :  { %v10085_v10 = vsel %vm1127_vm9, 1.0, %v14834_v7  ;;  %v10070_v62 = vsel %vm968_vm10, 1.0, %v14834_v7  ;;  %vm2613_vm9 = vcmask 1047559  }
 0x478   :  { %v1175_v24 = vadd.f32 %v10085_v10, %v10069_v17  ;;  %v1960_v17 = vunpack.c.0.s8 %v1959_v60 }
 0x479   :  { %v1112_v29 = vpop.permute.xlu1 %1111  ;;  %v12118_v55 = vpop.permute.xlu0 %1629 }
 0x47a   :  { %vm1128_vm11 = vcmp.eq.s32.totalorder %v11815_v41, %v1112_v29  ;;  %10436 = vmatprep.mubr.msk.f32.mxu1 %vm1182_vm13, %v1175_v24  ;;  %15042 = vst [vmem:[#allocation81_spill] sm:$0xff] %v12118_v55  ;;  %v12165_v0 = vsub.s32 %v1960_v17, %v11765_v2 }
 0x47b   :  { %v10086_v31 = vsel %vm1128_vm11, 1.0, %v14834_v7  ;;  %vm2652_vm11 = vcmask 64512  }
 0x47c   :  { %v1176_v32 = vadd.f32 %v10086_v31, %v10070_v62  ;;  %15047 = vst [vmem:[#allocation86_spill] sm:$0xff] %v12165_v0 }
 0x47e   :  { %10437 = vmatmul.mubr.msk.f32.gmra.mrb[16].mxu1 %vm1182_vm13, %v1176_v32  ;;  %vm1647_vm13 = vcmask 130048  }
 0x47f   :  { %10481 = vmatprep.mubr.msk.f32.mxu1 %vm11481_vm1, %v14834_v7 }
 0x4ce   :  { %v10449_v34 = vpop.f32.mrb[4].mxu0 }
 0x4cf   :  { %v1574_v35 = vpop.f32.mrb[5].mxu0  ;;  %v12177_v31 = vadd.f32 %v10449_v34, %v12116_v48 }
 0x4d0   :  { %v12168_v10 = vadd.f32 %v12116_v48, %v1574_v35 }
 0x4d1   :  { %v2006_v27 = vcombine.high %v12177_v31, %v12177_v31 }
 0x4d2   :  { %v1964_v62 = vrot.slane %v12168_v10, %v12165_v0 }
 0x4d4   :  { %v1972_v32 = vcombine.high %v1964_v62, %v1964_v62 }
 0x4d6   :  { %v1994_v35 = vrot.slane %v1972_v32, %v12165_v0 }
 0x519   :  { %v12104_v37 = vpop.f32.mrb[2].mxu1 }
 0x51a   :  { %15038 = vst [vmem:[#allocation77_spill] sm:$0xff] %v12104_v37  ;;  %v12106_v38 = vpop.f32.mrb[3].mxu1 }
 0x51b   :  { %15039 = vst [vmem:[#allocation78_spill] sm:$0xff] %v12106_v38 }
 0x521   :  { %v12108_v39 = vpop.f32.mrb[4].mxu1 }
 0x522   :  { %15040 = vst [vmem:[#allocation79_spill] sm:$0xff] %v12108_v39  ;;  %v12110_v40 = vpop.f32.mrb[5].mxu1  ;;  %v12112_v42 = vpop.f32.mrb[6].mxu0 }
 0x523   :  { %15041 = vst [vmem:[#allocation80_spill] sm:$0xff] %v12110_v40  ;;  %v12114_v46 = vpop.f32.mrb[7].mxu0 }
 0x526   :  { %v10455_v50 = vpop.f32.mrb[8].mxu0 }
 0x527   :  { %v12121_v45 = vadd.f32 %v10455_v50, %v12116_v48  ;;  %v1594_v57 = vpop.f32.mrb[9].mxu0 }
 0x528   :  { %v12124_v4 = vadd.f32 %v12116_v48, %v1594_v57  ;;  %v2013_v57 = vrot.slane %v12177_v31, %v12165_v0 }
 0x529   :  { %v12126_v26 = vpop.f32.mrb[6].mxu1  ;;  %v12130_v9 = vadd.f32 %v12118_v55, %v12121_v45 }
 0x52a   :  { %15043 = vst [vmem:[#allocation82_spill] sm:$0xff] %v12126_v26  ;;  %v12132_v11 = vpop.f32.mrb[7].mxu1  ;;  %v10458_v49 = vpop.f32.mrb[10].mxu0  ;;  %v12136_v15 = vadd.f32 %v12118_v55, %v12124_v4  ;;  %v2021_v60 = vcombine.high %v2013_v57, %v2013_v57  ;;  %v2029_v32 = vrot.slane %v2013_v57, %v12165_v0 }
 0x52b   :  { %15044 = vst [vmem:[#allocation83_spill] sm:$0xff] %v12132_v11  ;;  %v12139_v61 = vadd.f32 %v10458_v49, %v12116_v48  ;;  %v1604_v6 = vpop.f32.mrb[11].mxu0  ;;  %1724 = vrot.lane.b32.xlu0 %v12130_v9, %s11486_s17  ;;  %v1980_v49 = vrot.slane %v1964_v62, %v12165_v0  ;;  %v1957_v62 = vcombine.high %v12168_v10, %v12168_v10 }
 0x52c   :  { %v12144_v13 = vadd.f32 %v12116_v48, %v1604_v6  ;;  %1645 = vrot.lane.b32.xlu1 %v12136_v15, %s11486_s17  ;;  %v2160_v6 = vrot.slane %v1994_v35, %v11803_v28  ;;  %v2043_v53 = vrot.slane %v2021_v60, %v12165_v0  ;;  %v2051_v60 = vcombine.high %v2029_v32, %v2029_v32 }
 0x52d   :  { %v12150_v8 = vadd.f32 %v12118_v55, %v12139_v61  ;;  %v2002_v20 = vcombine.high %v1980_v49, %v1980_v49  ;;  %v1971_v25 = vrot.slane %v1957_v62, %v12165_v0 }
 0x52e   :  { %v12154_v19 = vadd.f32 %v12118_v55, %v12144_v13  ;;  %v12191_v34 = vmul.f32 %v12104_v37, %v2160_v6  ;;  %v2156_v6 = vrot.slane %v1980_v49, %v11803_v28  ;;  %v2192_v57 = vrot.slane %v2043_v53, %v11803_v28 }
 0x52f   :  { %1880 = vrot.lane.b32.xlu0 %v12150_v8, %s11486_s17  ;;  %v2164_v44 = vrot.slane %v2002_v20, %v11803_v28  ;;  %v2188_v49 = vrot.slane %v2029_v32, %v11803_v28  ;;  %v2004_v55 = vcombine.high %v1994_v35, %v1994_v35  ;;  %v2196_v63 = vrot.slane %v2051_v60, %v11803_v28 }
 0x530   :  { %1802 = vrot.lane.b32.xlu1 %v12154_v19, %s11486_s17  ;;  %15053 = vst [vmem:[#allocation92_spill] sm:$0xff] %v12191_v34  ;;  %v2348_v54 = vsel %vm1647_vm13, %v12191_v34, 0.0  ;;  %v12209_v20 = vmul.f32 %v2156_v6, %v12106_v38  ;;  %v2020_v6 = vrot.slane %v2006_v27, %v12165_v0  ;;  %v2053_v12 = vcombine.high %v2043_v53, %v2043_v53 }
 0x531   :  { %v12160_v21 = vpop.f32.mrb[8].mxu1  ;;  %v12203_v14 = vmul.f32 %v2164_v44, %v12110_v40  ;;  %v2168_v27 = vrot.slane %v2004_v55, %v11803_v28  ;;  %v12240_v60 = vadd.f32 %v12112_v42, %v12116_v48 }
 0x532   :  { %15045 = vst [vmem:[#allocation84_spill] sm:$0xff] %v12160_v21  ;;  %v12162_v23 = vpop.f32.mrb[9].mxu1  ;;  %v2345_v59 = vsel %vm1647_vm13, %v12209_v20, 0.0  ;;  %v2036_v1 = vrot.slane %v2020_v6, %v12165_v0 }
 0x533   :  { %15046 = vst [vmem:[#allocation85_spill] sm:$0xff] %v12162_v23  ;;  %v2351_v44 = vsel %vm1647_vm13, %v12203_v14, 0.0  ;;  %15058 = vst [vmem:[#allocation97_spill] sm:$0xff] %v12240_v60  ;;  %v2104_v5 = vcombine.high %v12240_v60, %v12240_v60 }
 0x535   :  { %v2118_v36 = vrot.slane %v2104_v5, %v12165_v0 }
 0x539   :  { %v12170_v24 = vpop.f32.mrb[10].mxu1 }
 0x53a   :  { %15048 = vst [vmem:[#allocation87_spill] sm:$0xff] %v12170_v24  ;;  %v12172_v29 = vpop.f32.mrb[11].mxu1  ;;  %v12218_v16 = vmul.f32 %v12170_v24, %v2192_v57  ;;  %v1987_v57 = vrot.slane %v1971_v25, %v12165_v0 }
 0x53b   :  { %15049 = vst [vmem:[#allocation88_spill] sm:$0xff] %v12172_v29  ;;  %v12227_v62 = vmul.f32 %v2188_v49, %v12172_v29  ;;  %v2022_v49 = vcombine.high %v2020_v6, %v2020_v6 }
 0x53c   :  { %v2372_v35 = vsel %vm1647_vm13, %v12218_v16, 0.0  ;;  %v2172_v6 = vrot.slane %v1987_v57, %v11803_v28  ;;  %v2003_v18 = vcombine.high %v1987_v57, %v1987_v57 }
 0x53d   :  { %15057 = vst [vmem:[#allocation96_spill] sm:$0xff] %v12227_v62  ;;  %v2369_v53 = vsel %vm1647_vm13, %v12227_v62, 0.0  ;;  %v2050_v58 = vrot.slane %v2022_v49, %v12165_v0 }
 0x541   :  { %v12179_v33 = vpop.f32.mrb[12].mxu1 }
 0x542   :  { %15050 = vst [vmem:[#allocation89_spill] sm:$0xff] %v12179_v33  ;;  %v12181_v50 = vpop.f32.mrb[13].mxu1 }
 0x543   :  { %15051 = vst [vmem:[#allocation90_spill] sm:$0xff] %v12181_v50  ;;  %v12234_v32 = vmul.f32 %v2196_v63, %v12181_v50  ;;  %v2200_v63 = vrot.slane %v2053_v12, %v11803_v28  ;;  %v12261_v12 = vadd.f32 %v12116_v48, %v12114_v46  ;;  %v2208_v46 = vrot.slane %v2050_v58, %v11803_v28 }
 0x544   :  { %v2052_v48 = vcombine.high %v2036_v1, %v2036_v1 }
 0x545   :  { %v12251_v55 = vmul.f32 %v12179_v33, %v2200_v63  ;;  %v12266_v63 = vmul.f32 %v2172_v6, %v12132_v11  ;;  %v2062_v51 = vrot.slane %v12261_v12, %v12165_v0 }
 0x547   :  { %15060 = vst [vmem:[#allocation99_spill] sm:$0xff] %v12266_v63  ;;  %v2357_v56 = vsel %vm1647_vm13, %v12266_v63, 0.0  ;;  %v2070_v5 = vcombine.high %v2062_v51, %v2062_v51 }
 0x549   :  { %v12188_v17 = vpop.f32.mrb[14].mxu1 }
 0x54a   :  { %15052 = vst [vmem:[#allocation91_spill] sm:$0xff] %v12188_v17  ;;  %v12193_v7 = vpop.f32.mrb[15].mxu1  ;;  %v12285_v57 = vmul.f32 %v12188_v17, %v2208_v46 }
 0x54b   :  { %15054 = vst [vmem:[#allocation93_spill] sm:$0xff] %v12193_v7 }
 0x54e   :  { %2349 = vadd.xlane.f32.xlu0 %v2348_v54 }
 0x551   :  { %v12213_v22 = vpop.f32.mrb[16].mxu1 }
 0x552   :  { %15055 = vst [vmem:[#allocation94_spill] sm:$0xff] %v12213_v22  ;;  %v12221_v54 = vpop.f32.mrb[17].mxu1  ;;  %2352 = vadd.xlane.f32.xlu0 %v2351_v44  ;;  %v1973_v44 = vcombine.high %v1971_v25, %v1971_v25  ;;  %v2375_v25 = vsel %vm1647_vm13, %v12234_v32, 0.0 }
 0x553   :  { %15056 = vst [vmem:[#allocation95_spill] sm:$0xff] %v12221_v54 }
 0x554   :  { %2346 = vadd.xlane.f32.xlu1 %v2345_v59  ;;  %v12245_v59 = vmul.f32 %v12108_v39, %v2168_v27  ;;  %v2001_v42 = vrot.slane %v1973_v44, %v12165_v0  ;;  %v2111_v27 = vrot.slane %v12240_v60, %v12165_v0  ;;  %v2378_v44 = vsel %vm1647_vm13, %v12251_v55, 0.0 }
 0x556   :  { %2373 = vadd.xlane.f32.xlu0 %v2372_v35  ;;  %15059 = vst [vmem:[#allocation98_spill] sm:$0xff] %v12245_v59  ;;  %v2204_v35 = vrot.slane %v2036_v1, %v11803_v28  ;;  %v2176_v49 = vrot.slane %v2001_v42, %v11803_v28  ;;  %v2005_v1 = vcombine.high %v2001_v42, %v2001_v42  ;;  %v2384_v42 = vsel %vm1647_vm13, %v12285_v57, 0.0 }
 0x557   :  { %v2127_v47 = vrot.slane %v2111_v27, %v12165_v0 }
 0x558   :  { %2370 = vadd.xlane.f32.xlu1 %v2369_v53  ;;  %v2354_v53 = vsel %vm1647_vm13, %v12245_v59, 0.0  ;;  %v12278_v6 = vmul.f32 %v12126_v26, %v2176_v49  ;;  %v2212_v49 = vrot.slane %v2052_v48, %v11803_v28  ;;  %v2055_v48 = vcombine.high %v12261_v12, %v12261_v12 }
 0x55a   :  { %2376 = vadd.xlane.f32.xlu0 %v2375_v25  ;;  %v12271_v25 = vmul.f32 %v2204_v35, %v12193_v7  ;;  %15061 = vst [vmem:[#allocation100_spill] sm:$0xff] %v12278_v6 }
 0x55c   :  { %2355 = vadd.xlane.f32.xlu1 %v2354_v53  ;;  %v2119_v53 = vcombine.high %v2111_v27, %v2111_v27  ;;  %v2381_v35 = vsel %vm1647_vm13, %v12271_v25, 0.0  ;;  %v2184_v27 = vrot.slane %v2005_v1, %v11803_v28 }
 0x55e   :  { %2379 = vadd.xlane.f32.xlu0 %v2378_v44  ;;  %v2180_v44 = vrot.slane %v2003_v18, %v11803_v28  ;;  %v12298_v46 = vrot.slane %v2119_v53, %v12165_v0  ;;  %v2078_v18 = vrot.slane %v2062_v51, %v12165_v0 }
 0x560   :  { %2358 = vadd.xlane.f32.xlu1 %v2357_v56  ;;  %v2360_v56 = vsel %vm1647_vm13, %v12278_v6, 0.0  ;;  %v12295_v30 = vmul.f32 %v2180_v44, %v12162_v23  ;;  %v2149_v44 = vcombine.high %v2127_v47, %v2127_v47  ;;  %v2256_v3 = vrot.slane %v12298_v46, %v11803_v28 }
 0x561   :  { %v2054_v6 = vcombine.high %v2050_v58, %v2050_v58 }
 0x562   :  { %2382 = vadd.xlane.f32.xlu0 %v2381_v35  ;;  %15062 = vst [vmem:[#allocation101_spill] sm:$0xff] %v12295_v30  ;;  %v12304_v35 = vmul.f32 %v2212_v49, %v12221_v54  ;;  %v2363_v53 = vsel %vm1647_vm13, %v12295_v30, 0.0  ;;  %v2220_v49 = vrot.slane %v2078_v18, %v11803_v28  ;;  %v2069_v30 = vrot.slane %v2055_v48, %v12165_v0 }
 0x563   :  { %v2260_v59 = vrot.slane %v2149_v44, %v11803_v28  ;;  %v2216_v51 = vrot.slane %v2054_v6, %v11803_v28  ;;  %v2092_v48 = vrot.slane %v2070_v5, %v12165_v0 }
 0x564   :  { %2361 = vadd.xlane.f32.xlu1 %v2360_v56  ;;  %15063 = vst [vmem:[#allocation102_spill] sm:$0xff] %v12304_v35  ;;  %v12313_v56 = vmul.f32 %v12160_v21, %v2184_v27  ;;  %v2387_v1 = vsel %vm1647_vm13, %v12304_v35, 0.0  ;;  %v12327_v63 = vmul.f32 %v2220_v49, %v12106_v38 }
 0x565   :  { %v12334_v58 = vmul.f32 %v2260_v59, %v12181_v50  ;;  %v12342_v44 = vmul.f32 %v12213_v22, %v2216_v51  ;;  %v2224_v5 = vrot.slane %v2092_v48, %v11803_v28 }
 0x566   :  { %2385 = vadd.xlane.f32.xlu0 %v2384_v42  ;;  %v12321_v42 = vmul.f32 %v12170_v24, %v2256_v3  ;;  %v2366_v27 = vsel %vm1647_vm13, %v12313_v56, 0.0  ;;  %15065 = vst [vmem:[#allocation104_spill] sm:$0xff] %v12327_v63  ;;  %v2393_v49 = vsel %vm1647_vm13, %v12327_v63, 0.0  ;;  %v2252_v24 = vrot.slane %v2127_v47, %v11803_v28 }
 0x567   :  { %15066 = vst [vmem:[#allocation105_spill] sm:$0xff] %v12334_v58  ;;  %15067 = vst [vmem:[#allocation106_spill] sm:$0xff] %v12342_v44  ;;  %v2423_v59 = vsel %vm1647_vm13, %v12334_v58, 0.0  ;;  %v2390_v51 = vsel %vm1647_vm13, %v12342_v44, 0.0  ;;  %v2071_v47 = vcombine.high %v2069_v30, %v2069_v30 }
 0x568   :  { %2364 = vadd.xlane.f32.xlu1 %v2363_v53  ;;  %15064 = vst [vmem:[#allocation103_spill] sm:$0xff] %v12321_v42  ;;  %v2134_v53 = vrot.slane %v2118_v36, %v12165_v0  ;;  %v2420_v3 = vsel %vm1647_vm13, %v12321_v42, 0.0  ;;  %v12356_v38 = vmul.f32 %v2252_v24, %v12172_v29  ;;  %v12492_v42 = vsub.s32 %v11815_v41, %v11765_v2 }
 0x56a   :  { %2388 = vadd.xlane.f32.xlu0 %v2387_v1  ;;  %v2085_v1 = vrot.slane %v2069_v30, %v12165_v0  ;;  %v2417_v24 = vsel %vm1647_vm13, %v12356_v38, 0.0  ;;  %v2150_v29 = vcombine.high %v2134_v53, %v2134_v53  ;;  %15081 = vst [vmem:[#allocation117_spill] sm:$0xff] %v12492_v42 }
 0x56c   :  { %2367 = vadd.xlane.f32.xlu1 %v2366_v27  ;;  %v2268_v27 = vrot.slane %v2134_v53, %v11803_v28  ;;  %v2236_v50 = vrot.slane %v2085_v1, %v11803_v28 }
 0x56e   :  { %2421 = vadd.xlane.f32.xlu0 %v2420_v3  ;;  %v12349_v6 = vmul.f32 %v2268_v27, %v12193_v7  ;;  %v2100_v3 = vcombine.high %v2078_v18, %v2078_v18  ;;  %v12361_v27 = vmul.f32 %v12104_v37, %v2224_v5  ;;  %v2120_v7 = vcombine.high %v2118_v36, %v2118_v36 }
 0x570   :  { %2394 = vadd.xlane.f32.xlu1 %v2393_v49  ;;  %15068 = vst [vmem:[#allocation107_spill] sm:$0xff] %v12349_v6  ;;  %v2102_v49 = vcombine.high %v2092_v48, %v2092_v48  ;;  %v2429_v58 = vsel %vm1647_vm13, %v12349_v6, 0.0  ;;  %v2228_v18 = vrot.slane %v2100_v3, %v11803_v28  ;;  %v12369_v48 = vmul.f32 %v2236_v50, %v12132_v11 }
 0x571   :  { %v2396_v5 = vsel %vm1647_vm13, %v12361_v27, 0.0 }
 0x572   :  { %2424 = vadd.xlane.f32.xlu0 %v2423_v59  ;;  %v2151_v59 = vcombine.high %v12298_v46, %v12298_v46  ;;  %15069 = vst [vmem:[#allocation108_spill] sm:$0xff] %v12369_v48  ;;  %v2232_v30 = vrot.slane %v2102_v49, %v11803_v28  ;;  %v2405_v46 = vsel %vm1647_vm13, %v12369_v48, 0.0  ;;  %v2148_v49 = vrot.slane %v2120_v7, %v12165_v0 }
 0x574   :  { %2391 = vadd.xlane.f32.xlu1 %v2390_v51  ;;  %v2099_v51 = vrot.slane %v2071_v47, %v12165_v0  ;;  %v2264_v36 = vrot.slane %v2151_v59, %v11803_v28  ;;  %v12382_v50 = vmul.f32 %v12108_v39, %v2232_v30  ;;  %v2272_v30 = vrot.slane %v2148_v49, %v11803_v28 }
 0x575   :  { %v2276_v0 = vrot.slane %v2150_v29, %v11803_v28 }
 0x576   :  { %2430 = vadd.xlane.f32.xlu0 %v2429_v58  ;;  %v12376_v58 = vmul.f32 %v2228_v18, %v12110_v40  ;;  %v2240_v3 = vrot.slane %v2099_v51, %v11803_v28  ;;  %v12389_v18 = vmul.f32 %v12179_v33, %v2264_v36  ;;  %v2402_v59 = vsel %vm1647_vm13, %v12382_v50, 0.0 }
 0x577   :  { %v2103_v53 = vcombine.high %v2099_v51, %v2099_v51 }
 0x578   :  { %2418 = vadd.xlane.f32.xlu1 %v2417_v24  ;;  %15070 = vst [vmem:[#allocation109_spill] sm:$0xff] %v12376_v58  ;;  %v2399_v47 = vsel %vm1647_vm13, %v12376_v58, 0.0  ;;  %15071 = vst [vmem:[#allocation110_spill] sm:$0xff] %v12389_v18  ;;  %v2101_v24 = vcombine.high %v2085_v1, %v2085_v1  ;;  %v2426_v7 = vsel %vm1647_vm13, %v12389_v18, 0.0  ;;  %v2152_v1 = vcombine.high %v2148_v49, %v2148_v49 }
 0x57a   :  { %2397 = vadd.xlane.f32.xlu0 %v2396_v5  ;;  %v12394_v5 = vmul.f32 %v12126_v26, %v2240_v3  ;;  %v2244_v36 = vrot.slane %v2101_v24, %v11803_v28  ;;  %v2280_v24 = vrot.slane %v2152_v1, %v11803_v28 }
 0x57c   :  { %2406 = vadd.xlane.f32.xlu1 %v2405_v46  ;;  %15072 = vst [vmem:[#allocation111_spill] sm:$0xff] %v12394_v5  ;;  %v12400_v46 = vmul.f32 %v12188_v17, %v2272_v30  ;;  %v12406_v3 = vmul.f32 %v2244_v36, %v12162_v23  ;;  %v12412_v30 = vmul.f32 %v2276_v0, %v12221_v54 }
 0x57d   :  { %v2248_v36 = vrot.slane %v2103_v53, %v11803_v28 }
 0x57e   :  { %2400 = vadd.xlane.f32.xlu0 %v2399_v47  ;;  %15073 = vst [vmem:[#allocation112_spill] sm:$0xff] %v12400_v46  ;;  %v2408_v47 = vsel %vm1647_vm13, %v12394_v5, 0.0  ;;  %15074 = vst [vmem:[#allocation113_spill] sm:$0xff] %v12406_v3  ;;  %v2411_v49 = vsel %vm1647_vm13, %v12406_v3, 0.0  ;;  %v2435_v29 = vsel %vm1647_vm13, %v12412_v30, 0.0 }
 0x57f   :  { %15075 = vst [vmem:[#allocation114_spill] sm:$0xff] %v12412_v30  ;;  %v12426_v51 = vmul.f32 %v12160_v21, %v2248_v36 }
 0x580   :  { %2403 = vadd.xlane.f32.xlu1 %v2402_v59  ;;  %v2432_v59 = vsel %vm1647_vm13, %v12400_v46, 0.0 }
 0x581   :  { %15077 = vst [vmem:[#allocation116_spill] sm:$0xff] %v12426_v51  ;;  %v2414_v1 = vsel %vm1647_vm13, %v12426_v51, 0.0 }
 0x582   :  { %2427 = vadd.xlane.f32.xlu0 %v2426_v7  ;;  %v12418_v7 = vmul.f32 %v12213_v22, %v2280_v24  ;;  %v15079_v24 = vsub.f32 1.0, %v11819_v43 }
 0x584   :  { %2409 = vadd.xlane.f32.xlu1 %v2408_v47  ;;  %15076 = vst [vmem:[#allocation115_spill] sm:$0xff] %v12418_v7  ;;  %v2438_v0 = vsel %vm1647_vm13, %v12418_v7, 0.0 }
 0x586   :  { %2433 = vadd.xlane.f32.xlu0 %v2432_v59  ;;  %v15078_v59 = vsub.f32 1.0, %v11831_v52 }
 0x588   :  { %2412 = vadd.xlane.f32.xlu1 %v2411_v49  ;;  %v1387_v53 = vsub.f32 1.0, %v15078_v59  ;;  %v1388_v49 = vsub.f32 1.0, %v15079_v24 }
 0x58a   :  { %2436 = vadd.xlane.f32.xlu0 %v2435_v29  ;;  %v15080_v29 = vmov 0.0  }
 0x58c   :  { %2439 = vadd.xlane.f32.xlu1 %v2438_v0 }
 0x590   :  { %2415 = vadd.xlane.f32.xlu1 %v2414_v1 }
 0x59d   :  { %v1725_v36 = vpop.permute.xlu0 %1724 }
 0x59e   :  { %v1646_v47 = vpop.permute.xlu1 %1645 }
 0x59f   :  { %10460 = vmatpush3.xpose.msk.msra.mxu0 %vm1647_vm13, %v1646_v47 }
 0x5a0   :  { %1391 = vperm.xlu0 %10866, %v1387_v53   ;;  %10464 = vmatprep.subr.mxu0 %v15080_v29 }
 0x5a1   :  { %1396 = vperm.xlu1 %10865, %v1388_v49   ;;  %v1881_v43 = vpop.permute.xlu0 %1880 }
 0x5a2   :  { %10462 = vmatmul.mubr.msk.f32.vlgmr.msra.gmra.mrb[12].mxu0 %vm1647_vm13, %v12168_v10  ;;  %v1803_v52 = vpop.permute.xlu1 %1802 }
 0x5a3   :  { %10465 = vmatpush3.xpose.msk.msra.mxu0 %vm1647_vm13, %v1725_v36  ;;  %10466 = vmatprep.mubr.msk.f32.mxu0 %vm11481_vm1, %v15080_v29 }
 0x5a4   :  { %10469 = vmatprep.subr.mxu0 %v15080_v29 }
 0x5a6   :  { %10467 = vmatmul.mubr.msk.f32.vlgmr.msra.gmra.mrb[14].mxu0 %vm1647_vm13, %v12177_v31 }
 0x5a7   :  { %10470 = vmatpush3.xpose.msk.msra.mxu0 %vm1647_vm13, %v1803_v52  ;;  %10471 = vmatprep.mubr.msk.f32.mxu0 %vm11481_vm1, %v15080_v29 }
 0x5a8   :  { %10474 = vmatprep.subr.mxu0 %v15080_v29 }
 0x5aa   :  { %10472 = vmatmul.mubr.msk.f32.vlgmr.msra.gmra.mrb[16].mxu0 %vm1647_vm13, %v12261_v12 }
 0x5ab   :  { %10475 = vmatpush3.xpose.msk.msra.mxu0 %vm1647_vm13, %v1881_v43  ;;  %10476 = vmatprep.mubr.msk.f32.mxu0 %vm11481_vm1, %v15080_v29 }
 0x5ac   :  { %10484 = vmatprep.subr.mxu0 %v15080_v29 }
 0x5ae   :  { %10477 = vmatmul.mubr.msk.f32.vlgmr.msra.gmra.mrb[18].mxu0 %vm1647_vm13, %v12240_v60 }
 0x5af   :  { %10486 = vmatprep.mubr.msk.f32.mxu0 %vm11481_vm1, %v15080_v29 }
 0x5db   :  { %v2350_v0 = vpop.xlane.xlu0 %2349 }
 0x5dc   :  { %v2480_v46 = vrot.slane %v2350_v0, %v12492_v42 }
 0x5df   :  { %v2353_v47 = vpop.xlane.xlu0 %2352 }
 0x5e1   :  { %v2347_v1 = vpop.xlane.xlu1 %2346 }
 0x5e2   :  { %v2476_v63 = vrot.slane %v2347_v1, %v12492_v42 }
 0x5e3   :  { %v2374_v53 = vpop.xlane.xlu0 %2373 }
 0x5e4   :  { %v2512_v34 = vrot.slane %v2374_v53, %v12492_v42  ;;  %v2602_v6 = vsel %vm2601_vm12, %v2480_v46, %v2476_v63  ;;  %v10104_v63 = vsel %vm1384_vm5, 1.0, %v15080_v29 }
 0x5e5   :  { %v2371_v59 = vpop.xlane.xlu1 %2370 }
 0x5e6   :  { %v2508_v62 = vrot.slane %v2371_v59, %v12492_v42  ;;  %v2484_v59 = vrot.slane %v2353_v47, %v12492_v42 }
 0x5e7   :  { %v2377_v49 = vpop.xlane.xlu0 %2376 }
 0x5e8   :  { %v2516_v60 = vrot.slane %v2377_v49, %v12492_v42  ;;  %v2615_v0 = vsel %vm2601_vm12, %v2512_v34, %v2508_v62  ;;  %v2604_v46 = vsel %vm2603_vm14, %v2484_v59, %v2602_v6 }
 0x5e9   :  { %v2356_v24 = vpop.xlane.xlu1 %2355 }
 0x5ea   :  { %v2488_v18 = vrot.slane %v2356_v24, %v12492_v42  ;;  %v2616_v24 = vsel %vm2603_vm14, %v2516_v60, %v2615_v0 }
 0x5eb   :  { %v2380_v52 = vpop.xlane.xlu0 %2379 }
 0x5ec   :  { %v2520_v53 = vrot.slane %v2380_v52, %v12492_v42  ;;  %v2606_v6 = vsel %vm2605_vm15, %v2488_v18, %v2604_v46 }
 0x5ed   :  { %v2359_v36 = vpop.xlane.xlu1 %2358 }
 0x5ee   :  { %v2492_v44 = vrot.slane %v2359_v36, %v12492_v42 }
 0x5ef   :  { %v12460_v22 = vpop.xlane.xlu0 %2382 }
 0x5f0   :  { %v2524_v47 = vrot.slane %v12460_v22, %v12492_v42  ;;  %v2617_v22 = vsel %vm2605_vm15, %v2520_v53, %v2616_v24  ;;  %v2608_v60 = vsel %vm2607_vm3, %v2492_v44, %v2606_v6 }
 0x5f1   :  { %v12458_v43 = vpop.xlane.xlu1 %2361 }
 0x5f2   :  { %v2496_v34 = vrot.slane %v12458_v43, %v12492_v42  ;;  %v2618_v18 = vsel %vm2607_vm3, %v2524_v47, %v2617_v22 }
 0x5f3   :  { %v12464_v17 = vpop.xlane.xlu0 %2385 }
 0x5f5   :  { %v12462_v54 = vpop.xlane.xlu1 %2364 }
 0x5f6   :  { %v2500_v49 = vrot.slane %v12462_v54, %v12492_v42 }
 0x5f7   :  { %v12468_v23 = vpop.xlane.xlu0 %2388 }
 0x5f8   :  { %v2532_v43 = vrot.slane %v12468_v23, %v12492_v42  ;;  %v2610_v23 = vsel %vm2609_vm6, %v2496_v34, %v2608_v60 }
 0x5f9   :  { %v12466_v33 = vpop.xlane.xlu1 %2367 }
 0x5fb   :  { %v12470_v11 = vpop.xlane.xlu0 %2421 }
 0x5fd   :  { %v2395_v26 = vpop.xlane.xlu1 %2394 }
 0x5fe   :  { %v2540_v36 = vrot.slane %v2395_v26, %v12492_v42 }
 0x5ff   :  { %v12474_v39 = vpop.xlane.xlu0 %2424 }
 0x600   :  { %v2580_v47 = vrot.slane %v12474_v39, %v12492_v42 }
 0x601   :  { %v12472_v21 = vpop.xlane.xlu1 %2391 }
 0x602   :  { %v2536_v44 = vrot.slane %v12472_v21, %v12492_v42 }
 0x603   :  { %v12478_v37 = vpop.xlane.xlu0 %2430 }
 0x605   :  { %v12476_v40 = vpop.xlane.xlu1 %2418 }
 0x607   :  { %v2398_v7 = vpop.xlane.xlu0 %2397 }
 0x608   :  { %v2544_v2 = vrot.slane %v2398_v7, %v12492_v42  ;;  %v2528_v7 = vrot.slane %v12464_v17, %v12492_v42  ;;  %v2572_v17 = vrot.slane %v12476_v40, %v12492_v42  ;;  %v2612_v40 = vsel %vm2611_vm8, %v2500_v49, %v2610_v23 }
 0x609   :  { %v12480_v28 = vpop.xlane.xlu1 %2406 }
 0x60a   :  { %v2622_v54 = vsel %vm2601_vm12, %v2544_v2, %v2540_v36  ;;  %v2619_v2 = vsel %vm2609_vm6, %v2528_v7, %v2618_v18  ;;  %v2556_v24 = vrot.slane %v12480_v28, %v12492_v42 }
 0x60b   :  { %v2401_v3 = vpop.xlane.xlu0 %2400  ;;  %v2620_v46 = vsel %vm2611_vm8, %v2532_v43, %v2619_v2 }
 0x60c   :  { %v2548_v62 = vrot.slane %v2401_v3, %v12492_v42  ;;  %v2504_v3 = vrot.slane %v12466_v33, %v12492_v42  ;;  %v2576_v33 = vrot.slane %v12470_v11, %v12492_v42  ;;  %v2621_v6 = vsel %vm2613_vm9, %v2536_v44, %v2620_v46 }
 0x60d   :  { %v12482_v51 = vpop.xlane.xlu1 %2403 }
 0x60e   :  { %v2552_v26 = vrot.slane %v12482_v51, %v12492_v42  ;;  %v2623_v59 = vsel %vm2603_vm14, %v2548_v62, %v2622_v54  ;;  %v2614_v51 = vsel %vm2613_vm9, %v2504_v3, %v2612_v40  ;;  %v2629_v34 = vsel %vm2601_vm12, %v2576_v33, %v2572_v17 }
 0x60f   :  { %v12486_v48 = vpop.xlane.xlu0 %2427  ;;  %v2630_v22 = vsel %vm2603_vm14, %v2580_v47, %v2629_v34 }
 0x610   :  { %v2624_v62 = vsel %vm2605_vm15, %v2552_v26, %v2623_v59  ;;  %v2584_v11 = vrot.slane %v12486_v48, %v12492_v42 }
 0x611   :  { %v12484_v5 = vpop.xlane.xlu1 %2409  ;;  %v2625_v28 = vsel %vm2607_vm3, %v2556_v24, %v2624_v62 }
 0x612   :  { %v2560_v39 = vrot.slane %v12484_v5, %v12492_v42 }
 0x613   :  { %v12494_v58 = vpop.xlane.xlu0 %2433 }
 0x614   :  { %v2592_v3 = vrot.slane %v12494_v58, %v12492_v42  ;;  %v2626_v18 = vsel %vm2609_vm6, %v2560_v39, %v2625_v28  ;;  %v1381_v39 = vld [vmem:[#allocation16] sm:$0xff] }
 0x615   :  { %v12488_v35 = vpop.xlane.xlu1 %2412 }
 0x616   :  { %v2564_v48 = vrot.slane %v12488_v35, %v12492_v42 }
 0x617   :  { %v12506_v1 = vpop.xlane.xlu0 %2436 }
 0x618   :  { %v2596_v17 = vrot.slane %v12506_v1, %v12492_v42  ;;  %v2627_v58 = vsel %vm2611_vm8, %v2564_v48, %v2626_v18  ;;  %v15095_v18 = vld [vmem:[#allocation100_spill] sm:$0xff] }
 0x619   :  { %v12497_v30 = vpop.xlane.xlu1 %2439 }
 0x61a   :  { %v2600_v23 = vrot.slane %v12497_v30, %v12492_v42 }
 0x61d   :  { %v12514_v41 = vpop.xlane.xlu1 %2415 }
 0x61f   :  { %v1392_v52 = vpop.permute.xlu0 %1391 }
 0x620   :  { %v1399_v0 = vadd.f32 %v10104_v63, %v1392_v52  ;;  %v2588_v52 = vrot.slane %v12478_v37, %v12492_v42  ;;  %v2568_v37 = vrot.slane %v12514_v41, %v12492_v42 }
 0x621   :  { %v1397_v53 = vpop.permute.xlu1 %1396 }
 0x622   :  { %vm1401_vm10 = vcmp.gt.f32.partialorder %v1399_v0, 0.0  ;;  %v1400_v7 = vadd.f32 %v10104_v63, %v1397_v53  ;;  %v2631_v63 = vsel %vm2605_vm15, %v2584_v11, %v2630_v22  ;;  %v2628_v44 = vsel %vm2613_vm9, %v2568_v37, %v2627_v58  ;;  %v15097_v58 = vld [vmem:[#allocation101_spill] sm:$0xff] }
 0x623   :  { %v12575_v5 = vsel %vm1401_vm10, -4.2949673e+09, %v15080_v29  ;;  %v2632_v41 = vsel %vm2607_vm3, %v2588_v52, %v2631_v63  ;;  %vm3261_vm10 = vcmask 392448  }
 0x624   :  { %15082 = vst [vmem:[#allocation118_spill] sm:$0xff] %v12575_v5  ;;  %vm1402_vm5 = vcmp.gt.f32.partialorder %v1400_v7, 0.0  ;;  %v2633_v53 = vsel %vm2609_vm6, %v2592_v3, %v2632_v41  ;;  %v15099_v41 = vld [vmem:[#allocation103_spill] sm:$0xff] }
 0x625   :  { %v12587_v33 = vsel %vm1402_vm5, -4.2949673e+09, %v15080_v29  ;;  %vm4906_vm5 = vcmask 523648  }
 0x626   :  { %15083 = vst [vmem:[#allocation119_spill] sm:$0xff] %v12587_v33 }
 0x675   :  { %v1719_v21 = vpop.f32.mrb[12].mxu0 }
 0x676   :  { %v2640_v49 = vadd.f32 %v2614_v51, %v1719_v21  ;;  %v10463_v36 = vpop.f32.mrb[13].mxu0  ;;  %v2634_v51 = vsel %vm2611_vm8, %v2596_v17, %v2633_v53  ;;  %v15088_v17 = vld [vmem:[#allocation107_spill] sm:$0xff] }
 0x677   :  { %v2635_v30 = vsel %vm2613_vm9, %v2600_v23, %v2634_v51  ;;  %v15102_v51 = vld [vmem:[#allocation108_spill] sm:$0xff] }
 0x678   :  { %v2644_v43 = vmul.f32 0.25, %v2640_v49 }
 0x679   :  { %v1797_v60 = vpop.f32.mrb[14].mxu0 }
 0x67a   :  { %v2641_v35 = vadd.f32 %v2621_v6, %v1797_v60  ;;  %v10468_v54 = vpop.f32.mrb[15].mxu0  ;;  %v2648_v26 = vadd.f32 %v2644_v43, %v12575_v5  ;;  %v15086_v60 = vld [vmem:[#allocation110_spill] sm:$0xff] }
 0x67b   :  { %v15093_v54 = vld [vmem:[#allocation98_spill] sm:$0xff] }
 0x67c   :  { %v2645_v59 = vmul.f32 0.25, %v2641_v35  ;;  %v2653_v0 = vsel %vm2652_vm11, %v2648_v26, -inf  ;;  %v15092_v35 = vld [vmem:[#allocation114_spill] sm:$0xff] }
 0x67d   :  { %v1875_v1 = vpop.f32.mrb[16].mxu0  ;;  %2654 = vmax.xlane.f32.xlu1 %v2653_v0  ;;  %v15098_v0 = vld [vmem:[#allocation109_spill] sm:$0xff] }
 0x67e   :  { %v2642_v40 = vadd.f32 %v2628_v44, %v1875_v1  ;;  %v10473_v2 = vpop.f32.mrb[17].mxu0  ;;  %v2649_v46 = vadd.f32 %v2645_v59, %v12587_v33  ;;  %v15096_v59 = vld [vmem:[#allocation104_spill] sm:$0xff]  ;;  %v15100_v44 = vld [vmem:[#allocation102_spill] sm:$0xff] }
 0x680   :  { %v2646_v47 = vmul.f32 0.25, %v2642_v40  ;;  %v2656_v34 = vsel %vm2652_vm11, %v2649_v46, -inf  ;;  %v15101_v40 = vld [vmem:[#allocation105_spill] sm:$0xff] }
 0x681   :  { %v1953_v62 = vpop.f32.mrb[18].mxu0  ;;  %2657 = vmax.xlane.f32.xlu0 %v2656_v34 }
 0x682   :  { %v2643_v11 = vadd.f32 %v2635_v30, %v1953_v62  ;;  %v10478_v21 = vpop.f32.mrb[19].mxu0  ;;  %v2650_v24 = vadd.f32 %v2646_v47, %v12575_v5  ;;  %v15103_v47 = vld [vmem:[#allocation111_spill] sm:$0xff]  ;;  %v15104_v62 = vld [vmem:[#allocation113_spill] sm:$0xff] }
 0x684   :  { %v2647_v7 = vmul.f32 0.25, %v2643_v11  ;;  %v2659_v49 = vsel %vm2652_vm11, %v2650_v24, -inf  ;;  %v15105_v11 = vld [vmem:[#allocation116_spill] sm:$0xff] }
 0x685   :  { %2660 = vmax.xlane.f32.xlu0 %v2659_v49 }
 0x686   :  { %v2651_v36 = vadd.f32 %v2647_v7, %v12587_v33 }
 0x688   :  { %v2662_v52 = vsel %vm2652_vm11, %v2651_v36, -inf }
 0x689   :  { %2663 = vmax.xlane.f32.xlu1 %v2662_v52 }
 0x69b   :  { %1637 = vrot.lane.b32.xlu0 %v1381_v39, %s11488_s29 }
 0x70e   :  { %v2658_v6 = vpop.xlane.xlu0 %2657 }
 0x712   :  { %v2661_v22 = vpop.xlane.xlu0 %2660 }
 0x716   :  { %v12600_v48 = vpop.permute.xlu0 %1637 }
 0x717   :  { %15084 = vst [vmem:[#allocation120_spill] sm:$0xff] %v12600_v48  ;;  %v12604_v43 = vadd.f32 %v12600_v48, %v12121_v45  ;;  %v12608_v28 = vadd.f32 %v12600_v48, %v12124_v4  ;;  %v12616_v63 = vadd.f32 %v12600_v48, %v12144_v13  ;;  %v12624_v45 = vadd.f32 %v12600_v48, %v12139_v61  ;;  %v2655_v4 = vpop.xlane.xlu1 %2654 }
 0x718   :  { %v2666_v13 = vsub.f32 %v2649_v46, %v2658_v6 }
 0x719   :  { %2775 = vrot.lane.b32.xlu0 %v12604_v43, %s11488_s29  ;;  %2698 = vrot.lane.b32.xlu1 %v12608_v28, %s11488_s29 }
 0x71d   :  { %2852 = vrot.lane.b32.xlu0 %v12616_v63, %s11488_s29  ;;  %3642 = vrot.lane.b32.xlu1 %v12130_v9, %s11489_s9  ;;  %v2665_v9 = vsub.f32 %v2648_v26, %v2655_v4  ;;  %v15094_v26 = vld [vmem:[#allocation99_spill] sm:$0xff] }
 0x71f   :  { %v2669_v61 = vmul.f32 1.442695, %v2665_v9 }
 0x721   :  { %2929 = vrot.lane.b32.xlu0 %v12624_v45, %s11488_s29  ;;  %3640 = vrot.lane.b32.xlu1 %v12177_v31, %s11490_s11  ;;  %10875 = vpow2.f32 %v2669_v61 }
 0x725   :  { %3564 = vrot.lane.b32.xlu0 %v12136_v15, %s11489_s9  ;;  %3798 = vrot.lane.b32.xlu1 %v12150_v8, %s11489_s9  ;;  %v2671_v15 = vmul.f32 1.442695, %v2666_v13  ;;  %v2667_v8 = vsub.f32 %v2650_v24, %v2661_v22  ;;  %v15106_v24 = vld [vmem:[#allocation115_spill] sm:$0xff] }
 0x727   :  { %10877 = vpow2.f32 %v2671_v15 }
 0x729   :  { %3562 = vrot.lane.b32.xlu0 %v12168_v10, %s11490_s11  ;;  %v2664_v10 = vpop.xlane.xlu1 %2663 }
 0x72a   :  { %v2668_v31 = vsub.f32 %v2651_v36, %v2664_v10 }
 0x72d   :  { %3720 = vrot.lane.b32.xlu0 %v12154_v19, %s11489_s9  ;;  %v2673_v19 = vmul.f32 1.442695, %v2667_v8 }
 0x72f   :  { %10879 = vpow2.f32 %v2673_v19 }
 0x731   :  { %3718 = vrot.lane.b32.xlu0 %v12261_v12, %s11490_s11  ;;  %v12648_v12 = vpop.eup %10875 }
 0x732   :  { %v12654_v3 = vpop.eup %10877 }
 0x735   :  { %3906 = vrot.lane.b32.xlu0 %v12209_v20, %s11490_s11  ;;  %v2675_v20 = vmul.f32 1.442695, %v2668_v31 }
 0x737   :  { %10881 = vpow2.f32 %v2675_v20 }
 0x739   :  { %3910 = vrot.lane.b32.xlu0 %v12203_v14, %s11490_s11  ;;  %v2677_v14 = vsel %vm2652_vm11, %v12648_v12, 0.0 }
 0x73d   :  { %3924 = vrot.lane.b32.xlu0 %v12218_v16, %s11490_s11  ;;  %v2680_v16 = vsel %vm2652_vm11, %v12654_v3, 0.0 }
 0x741   :  { %3926 = vrot.lane.b32.xlu0 %v12234_v32, %s11490_s11  ;;  %v12660_v32 = vpop.eup %10879 }
 0x742   :  { %v12666_v37 = vpop.eup %10881 }
 0x745   :  { %3928 = vrot.lane.b32.xlu0 %v12251_v55, %s11490_s11  ;;  %v2683_v55 = vsel %vm2652_vm11, %v12660_v32, 0.0 }
 0x749   :  { %3930 = vrot.lane.b32.xlu0 %v12271_v25, %s11490_s11  ;;  %2678 = vadd.xlane.f32.xlu1 %v2677_v14  ;;  %v2686_v25 = vsel %vm2652_vm11, %v12666_v37, 0.0 }
 0x74d   :  { %3940 = vrot.lane.b32.xlu0 %v12361_v27, %s11490_s11  ;;  %2681 = vadd.xlane.f32.xlu1 %v2680_v16  ;;  %v15085_v27 = vld [vmem:[#allocation106_spill] sm:$0xff] }
 0x751   :  { %3932 = vrot.lane.b32.xlu0 %v12285_v57, %s11490_s11  ;;  %2684 = vadd.xlane.f32.xlu1 %v2683_v55  ;;  %v15087_v57 = vld [vmem:[#allocation97_spill] sm:$0xff] }
 0x755   :  { %3954 = vrot.lane.b32.xlu0 %v12356_v38, %s11490_s11  ;;  %2687 = vadd.xlane.f32.xlu1 %v2686_v25  ;;  %v15089_v38 = vld [vmem:[#allocation92_spill] sm:$0xff] }
 0x759   :  { %3920 = vrot.lane.b32.xlu0 %v12313_v56, %s11490_s11  ;;  %v15090_v56 = vld [vmem:[#allocation112_spill] sm:$0xff] }
 0x75d   :  { %3944 = vrot.lane.b32.xlu0 %v12382_v50, %s11490_s11  ;;  %v15091_v50 = vld [vmem:[#allocation96_spill] sm:$0xff] }
 0x761   :  { %3936 = vrot.lane.b32.xlu0 %v15085_v27, %s11490_s11 }
 0x765   :  { %3960 = vrot.lane.b32.xlu0 %v15086_v60, %s11490_s11 }
 0x766   :  { %3796 = vrot.lane.b32.xlu1 %v15087_v57, %s11490_s11 }
 0x769   :  { %3962 = vrot.lane.b32.xlu0 %v15088_v17, %s11490_s11 }
 0x76a   :  { %3908 = vrot.lane.b32.xlu1 %v15089_v38, %s11490_s11 }
 0x76d   :  { %3964 = vrot.lane.b32.xlu0 %v15090_v56, %s11490_s11 }
 0x76e   :  { %3922 = vrot.lane.b32.xlu1 %v15091_v50, %s11490_s11 }
 0x771   :  { %3966 = vrot.lane.b32.xlu0 %v15092_v35, %s11490_s11 }
 0x772   :  { %3912 = vrot.lane.b32.xlu1 %v15093_v54, %s11490_s11 }
 0x776   :  { %3914 = vrot.lane.b32.xlu1 %v15094_v26, %s11490_s11 }
 0x77a   :  { %3916 = vrot.lane.b32.xlu1 %v15095_v18, %s11490_s11 }
 0x77e   :  { %3938 = vrot.lane.b32.xlu1 %v15096_v59, %s11490_s11 }
 0x782   :  { %3918 = vrot.lane.b32.xlu1 %v15097_v58, %s11490_s11 }
 0x786   :  { %3942 = vrot.lane.b32.xlu1 %v15098_v0, %s11490_s11 }
 0x78a   :  { %3956 = vrot.lane.b32.xlu1 %v15099_v41, %s11490_s11 }
 0x78b   :  { %v2776_v23 = vpop.permute.xlu0 %2775  ;;  %v2699_v1 = vpop.permute.xlu1 %2698 }
 0x78c   :  { %10480 = vmatpush3.msra.mxu1 %v2699_v1  ;;  %10485 = vmatpush3.msra.mxu0 %v2776_v23 }
 0x78d   :  { %10489 = vmatprep.subr.mxu1 %v15080_v29  ;;  %10494 = vmatprep.subr.mxu0 %v15080_v29 }
 0x78e   :  { %3934 = vrot.lane.b32.xlu1 %v15100_v44, %s11490_s11 }
 0x78f   :  { %v2853_v53 = vpop.permute.xlu0 %2852  ;;  %v3643_v39 = vpop.permute.xlu1 %3642 }
 0x792   :  { %3958 = vrot.lane.b32.xlu1 %v15101_v40, %s11490_s11 }
 0x793   :  { %v2930_v2 = vpop.permute.xlu0 %2929  ;;  %v3641_v6 = vpop.permute.xlu1 %3640 }
 0x796   :  { %3946 = vrot.lane.b32.xlu1 %v15102_v51, %s11490_s11 }
 0x797   :  { %v3565_v46 = vpop.permute.xlu0 %3564  ;;  %v3799_v22 = vpop.permute.xlu1 %3798 }
 0x79a   :  { %3948 = vrot.lane.b32.xlu1 %v15103_v47, %s11490_s11 }
 0x79b   :  { %v3563_v34 = vpop.permute.xlu0 %3562 }
 0x79e   :  { %3950 = vrot.lane.b32.xlu1 %v15104_v62, %s11490_s11 }
 0x79f   :  { %v3721_v30 = vpop.permute.xlu0 %3720 }
 0x7a2   :  { %3952 = vrot.lane.b32.xlu1 %v15105_v11, %s11490_s11 }
 0x7a3   :  { %v12722_v21 = vpop.permute.xlu0 %3718 }
 0x7a6   :  { %3968 = vrot.lane.b32.xlu1 %v15106_v24, %s11490_s11 }
 0x7a7   :  { %v3907_v7 = vpop.permute.xlu0 %3906 }
 0x7a8   :  { %v4002_v49 = vsel %vm1647_vm13, %v3907_v7, 0.0 }
 0x7a9   :  { %4003 = vadd.xlane.f32.xlu0 %v4002_v49 }
 0x7ab   :  { %v3911_v36 = vpop.permute.xlu0 %3910 }
 0x7ac   :  { %v4008_v52 = vsel %vm1647_vm13, %v3911_v36, 0.0 }
 0x7ad   :  { %4009 = vadd.xlane.f32.xlu0 %v4008_v52 }
 0x7af   :  { %v3925_v4 = vpop.permute.xlu0 %3924 }
 0x7b0   :  { %v4029_v56 = vsel %vm1647_vm13, %v3925_v4, 0.0 }
 0x7b3   :  { %v3927_v61 = vpop.permute.xlu0 %3926 }
 0x7b4   :  { %v4032_v54 = vsel %vm1647_vm13, %v3927_v61, 0.0 }
 0x7b7   :  { %v3929_v8 = vpop.permute.xlu0 %3928 }
 0x7b8   :  { %v4035_v58 = vsel %vm1647_vm13, %v3929_v8, 0.0 }
 0x7bb   :  { %v3931_v14 = vpop.permute.xlu0 %3930 }
 0x7bc   :  { %v4038_v23 = vsel %vm1647_vm13, %v3931_v14, 0.0 }
 0x7bf   :  { %v3941_v60 = vpop.permute.xlu0 %3940 }
 0x7c0   :  { %v4053_v40 = vsel %vm1647_vm13, %v3941_v60, 0.0 }
 0x7c3   :  { %v3933_v50 = vpop.permute.xlu0 %3932 }
 0x7c4   :  { %v4041_v47 = vsel %vm1647_vm13, %v3933_v50, 0.0 }
 0x7c7   :  { %v3955_v59 = vpop.permute.xlu0 %3954 }
 0x7cb   :  { %v3921_v1 = vpop.permute.xlu0 %3920 }
 0x7cc   :  { %v4023_v7 = vsel %vm1647_vm13, %v3921_v1, 0.0 }
 0x7d6   :  { %v2679_v9 = vpop.xlane.xlu1 %2678 }
 0x7d7   :  { %10883 = vrcp.f32 %v2679_v9 }
 0x7da   :  { %v2682_v13 = vpop.xlane.xlu1 %2681 }
 0x7db   :  { %10885 = vrcp.f32 %v2682_v13 }
 0x7de   :  { %v2685_v15 = vpop.xlane.xlu1 %2684 }
 0x7df   :  { %10887 = vrcp.f32 %v2685_v15 }
 0x7e1   :  { %v10884_v10 = vpop.eup %10883 }
 0x7e2   :  { %v12729_v19 = vmul.f32 %v10884_v10, %v12648_v12  ;;  %v2688_v31 = vpop.xlane.xlu1 %2687 }
 0x7e3   :  { %10889 = vrcp.f32 %v2688_v31 }
 0x7e4   :  { %10482 = vmatmul.mubr.msk.f32.vlgmr.msra.gmra.mrb[18].mxu1 %vm2652_vm11, %v12729_v19 }
 0x7e5   :  { %v10886_v20 = vpop.eup %10885  ;;  %10490 = vmatpush3.msra.mxu1 %v2853_v53  ;;  %10491 = vmatprep.mubr.msk.f32.mxu1 %vm11481_vm1, %v15080_v29 }
 0x7e6   :  { %v12736_v16 = vmul.f32 %v10886_v20, %v12654_v3  ;;  %v3797_v55 = vpop.permute.xlu1 %3796  ;;  %10499 = vmatprep.subr.mxu1 %v15080_v29 }
 0x7e8   :  { %10487 = vmatmul.mubr.msk.f32.vlgmr.msra.gmra.mrb[20].mxu0 %vm2652_vm11, %v12736_v16 }
 0x7e9   :  { %v10888_v12 = vpop.eup %10887  ;;  %10495 = vmatpush3.msra.mxu0 %v2930_v2  ;;  %10496 = vmatprep.mubr.msk.f32.mxu0 %vm11481_vm1, %v15080_v29 }
 0x7ea   :  { %v12744_v25 = vmul.f32 %v10888_v12, %v12660_v32  ;;  %v3909_v27 = vpop.permute.xlu1 %3908  ;;  %10504 = vmatprep.subr.mxu0 %v15080_v29 }
 0x7eb   :  { %v4005_v3 = vsel %vm1647_vm13, %v3909_v27, 0.0 }
 0x7ec   :  { %10492 = vmatmul.mubr.msk.f32.vlgmr.msra.gmra.mrb[20].mxu1 %vm2652_vm11, %v12744_v25  ;;  %4006 = vadd.xlane.f32.xlu1 %v4005_v3 }
 0x7ed   :  { %v10890_v57 = vpop.eup %10889  ;;  %10500 = vmatpush3.xpose.msk.msra.mxu1 %vm1647_vm13, %v3565_v46  ;;  %10501 = vmatprep.mubr.msk.f32.mxu1 %vm11481_vm1, %v15080_v29  ;;  %v3945_v46 = vpop.permute.xlu0 %3944 }
 0x7ee   :  { %v12754_v17 = vmul.f32 %v10890_v57, %v12666_v37  ;;  %v3923_v32 = vpop.permute.xlu1 %3922  ;;  %10509 = vmatprep.subr.mxu1 %v15080_v29 }
 0x7ef   :  { %v4026_v38 = vsel %vm1647_vm13, %v3923_v32, 0.0 }
 0x7f0   :  { %10497 = vmatmul.mubr.msk.f32.vlgmr.msra.gmra.mrb[22].mxu0 %vm2652_vm11, %v12754_v17  ;;  %10502 = vmatmul.mubr.msk.f32.vlgmr.msra.gmra.mrb[22].mxu1 %vm1647_vm13, %v3563_v34 }
 0x7f1   :  { %10505 = vmatpush3.xpose.msk.msra.mxu0 %vm1647_vm13, %v3643_v39  ;;  %10510 = vmatpush3.xpose.msk.msra.mxu1 %vm1647_vm13, %v3721_v30  ;;  %v4074_v30 = vsel %vm1647_vm13, %v3955_v59, 0.0  ;;  %v3937_v11 = vpop.permute.xlu0 %3936  ;;  %v4059_v39 = vsel %vm1647_vm13, %v3945_v46, 0.0 }
 0x7f2   :  { %4030 = vadd.xlane.f32.xlu1 %v4029_v56  ;;  %4027 = vadd.xlane.f32.xlu0 %v4026_v38  ;;  %v3913_v37 = vpop.permute.xlu1 %3912  ;;  %v4047_v4 = vsel %vm1647_vm13, %v3937_v11, 0.0 }
 0x7f3   :  { %10506 = vmatprep.mubr.msk.f32.mxu0 %vm11481_vm1, %v15080_v29  ;;  %10511 = vmatprep.mubr.msk.f32.mxu1 %vm11481_vm1, %v15080_v29  ;;  %v4011_v35 = vsel %vm1647_vm13, %v3913_v37, 0.0 }
 0x7f4   :  { %10514 = vmatprep.subr.mxu0 %v15080_v29  ;;  %10507 = vmatmul.mubr.msk.f32.vlgmr.msra.gmra.mrb[24].mxu0 %vm1647_vm13, %v3641_v6 }
 0x7f5   :  { %10512 = vmatmul.mubr.msk.f32.vlgmr.msra.gmra.mrb[24].mxu1 %vm1647_vm13, %v12722_v21  ;;  %10515 = vmatpush3.xpose.msk.msra.mxu0 %vm1647_vm13, %v3799_v22  ;;  %v3961_v52 = vpop.permute.xlu0 %3960 }
 0x7f6   :  { %4033 = vadd.xlane.f32.xlu1 %v4032_v54  ;;  %4012 = vadd.xlane.f32.xlu0 %v4011_v35  ;;  %v3915_v26 = vpop.permute.xlu1 %3914  ;;  %v4083_v15 = vsel %vm1647_vm13, %v3961_v52, 0.0 }
 0x7f7   :  { %10516 = vmatprep.mubr.msk.f32.mxu0 %vm11481_vm1, %v15080_v29  ;;  %v4014_v18 = vsel %vm1647_vm13, %v3915_v26, 0.0  ;;  %10519 = vmatprep.subr.mxu1 %v15080_v29 }
 0x7f8   :  { %10517 = vmatmul.mubr.msk.f32.vlgmr.msra.gmra.mrb[26].mxu0 %vm1647_vm13, %v3797_v55  ;;  %10524 = vmatprep.subr.mxu0 %v15080_v29 }
 0x7f9   :  { %10521 = vmatprep.mubr.msk.f32.mxu1 %vm11481_vm1, %v15080_v29  ;;  %10526 = vmatprep.mubr.msk.f32.mxu0 %vm11481_vm1, %v15080_v29  ;;  %v3963_v9 = vpop.permute.xlu0 %3962 }
 0x7fa   :  { %4036 = vadd.xlane.f32.xlu1 %v4035_v58  ;;  %4015 = vadd.xlane.f32.xlu0 %v4014_v18  ;;  %v3917_v0 = vpop.permute.xlu1 %3916  ;;  %v4086_v20 = vsel %vm1647_vm13, %v3963_v9, 0.0 }
 0x7fb   :  { %v4017_v41 = vsel %vm1647_vm13, %v3917_v0, 0.0 }
 0x7fd   :  { %v3965_v31 = vpop.permute.xlu0 %3964 }
 0x7fe   :  { %4039 = vadd.xlane.f32.xlu1 %v4038_v23  ;;  %4018 = vadd.xlane.f32.xlu0 %v4017_v41  ;;  %v3939_v44 = vpop.permute.xlu1 %3938  ;;  %v4089_v12 = vsel %vm1647_vm13, %v3965_v31, 0.0 }
 0x7ff   :  { %v4050_v53 = vsel %vm1647_vm13, %v3939_v44, 0.0 }
 0x801   :  { %v3967_v27 = vpop.permute.xlu0 %3966 }
 0x802   :  { %4054 = vadd.xlane.f32.xlu1 %v4053_v40  ;;  %4051 = vadd.xlane.f32.xlu0 %v4050_v53  ;;  %v3919_v2 = vpop.permute.xlu1 %3918  ;;  %v4092_v57 = vsel %vm1647_vm13, %v3967_v27, 0.0 }
 0x803   :  { %v4020_v51 = vsel %vm1647_vm13, %v3919_v2, 0.0 }
 0x806   :  { %4042 = vadd.xlane.f32.xlu1 %v4041_v47  ;;  %4021 = vadd.xlane.f32.xlu0 %v4020_v51  ;;  %v3943_v34 = vpop.permute.xlu1 %3942 }
 0x807   :  { %v4056_v62 = vsel %vm1647_vm13, %v3943_v34, 0.0 }
 0x80a   :  { %4075 = vadd.xlane.f32.xlu1 %v4074_v30  ;;  %4057 = vadd.xlane.f32.xlu0 %v4056_v62  ;;  %v3957_v21 = vpop.permute.xlu1 %3956 }
 0x80b   :  { %v4077_v24 = vsel %vm1647_vm13, %v3957_v21, 0.0 }
 0x80e   :  { %4024 = vadd.xlane.f32.xlu1 %v4023_v7  ;;  %4078 = vadd.xlane.f32.xlu0 %v4077_v24  ;;  %v3935_v49 = vpop.permute.xlu1 %3934 }
 0x80f   :  { %v4044_v36 = vsel %vm1647_vm13, %v3935_v49, 0.0 }
 0x812   :  { %4060 = vadd.xlane.f32.xlu1 %v4059_v39  ;;  %4045 = vadd.xlane.f32.xlu0 %v4044_v36  ;;  %v3959_v6 = vpop.permute.xlu1 %3958 }
 0x813   :  { %v4080_v22 = vsel %vm1647_vm13, %v3959_v6, 0.0 }
 0x816   :  { %4048 = vadd.xlane.f32.xlu1 %v4047_v4  ;;  %4081 = vadd.xlane.f32.xlu0 %v4080_v22  ;;  %v3947_v61 = vpop.permute.xlu1 %3946 }
 0x817   :  { %v4062_v13 = vsel %vm1647_vm13, %v3947_v61, 0.0 }
 0x81a   :  { %4084 = vadd.xlane.f32.xlu1 %v4083_v15  ;;  %4063 = vadd.xlane.f32.xlu0 %v4062_v13  ;;  %v3949_v8 = vpop.permute.xlu1 %3948 }
 0x81b   :  { %v4065_v10 = vsel %vm1647_vm13, %v3949_v8, 0.0 }
 0x81e   :  { %4087 = vadd.xlane.f32.xlu1 %v4086_v20  ;;  %4066 = vadd.xlane.f32.xlu0 %v4065_v10  ;;  %v3951_v14 = vpop.permute.xlu1 %3950 }
 0x81f   :  { %v4068_v55 = vsel %vm1647_vm13, %v3951_v14, 0.0 }
 0x822   :  { %4090 = vadd.xlane.f32.xlu1 %v4089_v12  ;;  %4069 = vadd.xlane.f32.xlu0 %v4068_v55  ;;  %v3953_v3 = vpop.permute.xlu1 %3952 }
 0x823   :  { %v4071_v60 = vsel %vm1647_vm13, %v3953_v3, 0.0 }
 0x826   :  { %4093 = vadd.xlane.f32.xlu1 %v4092_v57  ;;  %4072 = vadd.xlane.f32.xlu0 %v4071_v60  ;;  %v3969_v32 = vpop.permute.xlu1 %3968 }
 0x827   :  { %v4095_v38 = vsel %vm1647_vm13, %v3969_v32, 0.0 }
 0x82a   :  { %4096 = vadd.xlane.f32.xlu0 %v4095_v38 }
 0x836   :  { %v4004_v56 = vpop.xlane.xlu0 %4003 }
 0x837   :  { %v4133_v36 = vrot.slane %v4004_v56, %v12492_v42 }
 0x83a   :  { %v4010_v37 = vpop.xlane.xlu0 %4009 }
 0x83b   :  { %v4141_v4 = vrot.slane %v4010_v37, %v12492_v42 }
 0x879   :  { %v4007_v50 = vpop.xlane.xlu1 %4006 }
 0x87a   :  { %v4137_v7 = vrot.slane %v4007_v50, %v12492_v42 }
 0x87c   :  { %v4258_v6 = vsel %vm2601_vm12, %v4137_v7, %v4133_v36 }
 0x87d   :  { %v4259_v10 = vsel %vm2603_vm14, %v4141_v4, %v4258_v6 }
 0x87f   :  { %v4028_v35 = vpop.xlane.xlu0 %4027  ;;  %v4031_v54 = vpop.xlane.xlu1 %4030 }
 0x880   :  { %v4165_v9 = vrot.slane %v4028_v35, %v12492_v42  ;;  %v4169_v61 = vrot.slane %v4031_v54, %v12492_v42 }
 0x882   :  { %v4265_v38 = vsel %vm2601_vm12, %v4169_v61, %v4165_v9 }
 0x883   :  { %v4013_v26 = vpop.xlane.xlu0 %4012  ;;  %v4034_v18 = vpop.xlane.xlu1 %4033 }
 0x884   :  { %v4145_v13 = vrot.slane %v4013_v26, %v12492_v42  ;;  %v4173_v15 = vrot.slane %v4034_v18, %v12492_v42 }
 0x886   :  { %v4260_v56 = vsel %vm2605_vm15, %v4145_v13, %v4259_v10  ;;  %v4266_v37 = vsel %vm2603_vm14, %v4173_v15, %v4265_v38 }
 0x887   :  { %v4016_v59 = vpop.xlane.xlu0 %4015  ;;  %v4037_v58 = vpop.xlane.xlu1 %4036 }
 0x888   :  { %v4149_v8 = vrot.slane %v4016_v59, %v12492_v42  ;;  %v4177_v31 = vrot.slane %v4037_v58, %v12492_v42 }
 0x88a   :  { %v4261_v35 = vsel %vm2607_vm3, %v4149_v8, %v4260_v56  ;;  %v4267_v26 = vsel %vm2605_vm15, %v4177_v31, %v4266_v37 }
 0x88b   :  { %v4019_v0 = vpop.xlane.xlu0 %4018  ;;  %v4040_v41 = vpop.xlane.xlu1 %4039 }
 0x88c   :  { %v4153_v20 = vrot.slane %v4019_v0, %v12492_v42  ;;  %v4181_v12 = vrot.slane %v4040_v41, %v12492_v42 }
 0x88e   :  { %v4262_v58 = vsel %vm2609_vm6, %v4153_v20, %v4261_v35  ;;  %v4268_v0 = vsel %vm2607_vm3, %v4181_v12, %v4267_v26 }
 0x88f   :  { %v4052_v23 = vpop.xlane.xlu0 %4051  ;;  %v4055_v1 = vpop.xlane.xlu1 %4054 }
 0x890   :  { %v4197_v27 = vrot.slane %v4052_v23, %v12492_v42  ;;  %v4201_v3 = vrot.slane %v4055_v1, %v12492_v42 }
 0x892   :  { %v4272_v41 = vsel %vm2601_vm12, %v4201_v3, %v4197_v27 }
 0x893   :  { %v4022_v44 = vpop.xlane.xlu0 %4021  ;;  %v4043_v53 = vpop.xlane.xlu1 %4042 }
 0x894   :  { %v4157_v60 = vrot.slane %v4022_v44, %v12492_v42  ;;  %v4185_v50 = vrot.slane %v4043_v53, %v12492_v42 }
 0x896   :  { %v4263_v44 = vsel %vm2611_vm8, %v4157_v60, %v4262_v58  ;;  %v4269_v7 = vsel %vm2609_vm6, %v4185_v50, %v4268_v0 }
 0x897   :  { %v4058_v40 = vpop.xlane.xlu0 %4057  ;;  %v12809_v2 = vpop.xlane.xlu1 %4075 }
 0x898   :  { %v4205_v54 = vrot.slane %v4058_v40, %v12492_v42  ;;  %v4229_v6 = vrot.slane %v12809_v2, %v12492_v42 }
 0x89a   :  { %v4273_v36 = vsel %vm2603_vm14, %v4205_v54, %v4272_v41 }
 0x89b   :  { %v12811_v51 = vpop.xlane.xlu0 %4078  ;;  %v12813_v46 = vpop.xlane.xlu1 %4024 }
 0x89c   :  { %v4161_v18 = vrot.slane %v12813_v46, %v12492_v42  ;;  %v4233_v53 = vrot.slane %v12811_v51, %v12492_v42 }
 0x89e   :  { %v4264_v13 = vsel %vm2613_vm9, %v4161_v18, %v4263_v44 }
 0x89f   :  { %v12815_v47 = vpop.xlane.xlu0 %4045  ;;  %v12817_v34 = vpop.xlane.xlu1 %4060 }
 0x8a0   :  { %v4209_v23 = vrot.slane %v12817_v34, %v12492_v42  ;;  %v4189_v40 = vrot.slane %v12815_v47, %v12492_v42 }
 0x8a2   :  { %v4270_v20 = vsel %vm2611_vm8, %v4189_v40, %v4269_v7 }
 0x8a3   :  { %v12819_v62 = vpop.xlane.xlu0 %4081  ;;  %v12821_v30 = vpop.xlane.xlu1 %4048 }
 0x8a4   :  { %v4237_v34 = vrot.slane %v12819_v62, %v12492_v42  ;;  %v4193_v47 = vrot.slane %v12821_v30, %v12492_v42  ;;  %v4274_v62 = vsel %vm2605_vm15, %v4209_v23, %v4273_v36 }
 0x8a6   :  { %v4271_v38 = vsel %vm2613_vm9, %v4193_v47, %v4270_v20 }
 0x8a7   :  { %v12823_v11 = vpop.xlane.xlu0 %4063  ;;  %v12825_v21 = vpop.xlane.xlu1 %4084 }
 0x8a8   :  { %v4213_v46 = vrot.slane %v12823_v11, %v12492_v42  ;;  %v4241_v11 = vrot.slane %v12825_v21, %v12492_v42  ;;  %v4279_v21 = vsel %vm2601_vm12, %v4233_v53, %v4229_v6 }
 0x8a9   :  { %v4280_v12 = vsel %vm2603_vm14, %v4237_v34, %v4279_v21 }
 0x8aa   :  { %v4275_v31 = vsel %vm2607_vm3, %v4213_v46, %v4274_v62  ;;  %v4281_v60 = vsel %vm2605_vm15, %v4241_v11, %v4280_v12 }
 0x8ab   :  { %v12827_v24 = vpop.xlane.xlu0 %4066  ;;  %v12830_v49 = vpop.xlane.xlu1 %4087 }
 0x8af   :  { %v12833_v52 = vpop.xlane.xlu0 %4069  ;;  %v12847_v14 = vpop.xlane.xlu1 %4090 }
 0x8b0   :  { %v4221_v9 = vrot.slane %v12833_v52, %v12492_v42  ;;  %v4249_v52 = vrot.slane %v12847_v14, %v12492_v42 }
 0x8b3   :  { %v4073_v57 = vpop.xlane.xlu0 %4072  ;;  %v4094_v51 = vpop.xlane.xlu1 %4093 }
 0x8b4   :  { %v4225_v15 = vrot.slane %v4073_v57, %v12492_v42  ;;  %v4253_v27 = vrot.slane %v4094_v51, %v12492_v42 }
 0x8b7   :  { %v12835_v39 = vpop.f32.mrb[18].mxu1  ;;  %v4097_v4 = vpop.xlane.xlu0 %4096 }
 0x8b8   :  { %v10483_v22 = vpop.f32.mrb[19].mxu1  ;;  %v4257_v57 = vrot.slane %v4097_v4, %v12492_v42 }
 0x8b9   :  { %v4217_v22 = vrot.slane %v12827_v24, %v12492_v42  ;;  %v4245_v24 = vrot.slane %v12830_v49, %v12492_v42 }
 0x8bb   :  { %v12849_v55 = vpop.f32.mrb[20].mxu0  ;;  %v4276_v49 = vsel %vm2609_vm6, %v4217_v22, %v4275_v31  ;;  %v4282_v14 = vsel %vm2607_vm3, %v4245_v24, %v4281_v60 }
 0x8bc   :  { %v10488_v32 = vpop.f32.mrb[21].mxu0  ;;  %v4277_v56 = vsel %vm2611_vm8, %v4221_v9, %v4276_v49  ;;  %v4283_v0 = vsel %vm2609_vm6, %v4249_v52, %v4282_v14 }
 0x8bd   :  { %v4278_v54 = vsel %vm2613_vm9, %v4225_v15, %v4277_v56  ;;  %v4284_v23 = vsel %vm2611_vm8, %v4253_v27, %v4283_v0  ;;  %v15108_v56 = vld [vmem:[#allocation61_spill] sm:$0xff] }
 0x8be   :  { %v4285_v40 = vsel %vm2613_vm9, %v4257_v57, %v4284_v23  ;;  %v3008_v14 = vrot.slane %v12729_v19, %v15108_v56 }
 0x8bf   :  { %v12864_v59 = vpop.f32.mrb[20].mxu1 }
 0x8c0   :  { %v10493_v1 = vpop.f32.mrb[21].mxu1 }
 0x8c3   :  { %v12892_v61 = vpop.f32.mrb[22].mxu0  ;;  %v3636_v2 = vpop.f32.mrb[22].mxu1 }
 0x8c4   :  { %v4290_v8 = vadd.f32 %v4264_v13, %v3636_v2  ;;  %v10498_v30 = vpop.f32.mrb[23].mxu0  ;;  %v10503_v10 = vpop.f32.mrb[23].mxu1 }
 0x8c6   :  { %v4294_v3 = vmul.f32 0.25, %v4290_v8 }
 0x8c7   :  { %v3714_v32 = vpop.f32.mrb[24].mxu0 }
 0x8c8   :  { %v4298_v50 = vadd.f32 %v4294_v3, %v12575_v5  ;;  %v4291_v37 = vadd.f32 %v4271_v38, %v3714_v32  ;;  %v3792_v35 = vpop.f32.mrb[24].mxu1  ;;  %v10508_v26 = vpop.f32.mrb[25].mxu0  ;;  %v15107_v32 = vld [vmem:[#allocation56_spill] sm:$0xff] }
 0x8c9   :  { %v4292_v18 = vadd.f32 %v4278_v54, %v3792_v35  ;;  %v10513_v58 = vpop.f32.mrb[25].mxu1  ;;  %v3015_v38 = vrot.slane %v12729_v19, %v15107_v32 }
 0x8ca   :  { %v4295_v41 = vmul.f32 0.25, %v4291_v37  ;;  %v4302_v1 = vsel %vm2652_vm11, %v4298_v50, -inf }
 0x8cb   :  { %v4296_v44 = vmul.f32 0.25, %v4292_v18  ;;  %v3870_v53 = vpop.f32.mrb[26].mxu0  ;;  %4303 = vmax.xlane.f32.xlu1 %v4302_v1 }
 0x8cc   :  { %v4299_v46 = vadd.f32 %v4295_v41, %v12587_v33  ;;  %v4293_v7 = vadd.f32 %v4285_v40, %v3870_v53  ;;  %v10518_v36 = vpop.f32.mrb[27].mxu0  ;;  %v15109_v40 = vld [vmem:[#allocation78_spill] sm:$0xff] }
 0x8cd   :  { %v4300_v6 = vadd.f32 %v4296_v44, %v12575_v5  ;;  %v15110_v36 = vld [vmem:[#allocation77_spill] sm:$0xff] }
 0x8ce   :  { %v4297_v34 = vmul.f32 0.25, %v4293_v7  ;;  %v4305_v22 = vsel %vm2652_vm11, %v4299_v46, -inf }
 0x8cf   :  { %v4308_v51 = vsel %vm2652_vm11, %v4300_v6, -inf  ;;  %4306 = vmax.xlane.f32.xlu0 %v4305_v22 }
 0x8d0   :  { %v4301_v4 = vadd.f32 %v4297_v34, %v12587_v33  ;;  %4309 = vmax.xlane.f32.xlu1 %v4308_v51  ;;  %v15111_v34 = vld [vmem:[#allocation67_spill] sm:$0xff]  ;;  %v15112_v51 = vld [vmem:[#allocation66_spill] sm:$0xff] }
 0x8d2   :  { %v4311_v47 = vsel %vm2652_vm11, %v4301_v4, -inf }
 0x8d3   :  { %4312 = vmax.xlane.f32.xlu0 %v4311_v47 }
 0x8e1   :  { %4346 = vrot.lane.b32.xlu1 %v12608_v28, %s11491_s15 }
 0x958   :  { %v4304_v11 = vpop.xlane.xlu1 %4303 }
 0x959   :  { %v4314_v9 = vsub.f32 %v4298_v50, %v4304_v11 }
 0x95b   :  { %v4318_v2 = vmul.f32 1.442695, %v4314_v9 }
 0x95c   :  { %v4307_v13 = vpop.xlane.xlu0 %4306 }
 0x95d   :  { %10891 = vpow2.f32 %v4318_v2  ;;  %v4315_v62 = vsub.f32 %v4299_v46, %v4307_v13  ;;  %v4310_v24 = vpop.xlane.xlu1 %4309 }
 0x95e   :  { %v4316_v15 = vsub.f32 %v4300_v6, %v4310_v24 }
 0x95f   :  { %v4320_v8 = vmul.f32 1.442695, %v4315_v62 }
 0x960   :  { %v4322_v30 = vmul.f32 1.442695, %v4316_v15  ;;  %v4313_v10 = vpop.xlane.xlu0 %4312  ;;  %v15113_v15 = vld [vmem:[#allocation68_spill] sm:$0xff] }
 0x961   :  { %10893 = vpow2.f32 %v4320_v8  ;;  %v4317_v21 = vsub.f32 %v4301_v4, %v4313_v10  ;;  %v4347_v31 = vpop.permute.xlu1 %4346 }
 0x962   :  { %10895 = vpow2.f32 %v4322_v30  ;;  %10520 = vmatpush3.msra.mxu1 %v4347_v31  ;;  %v15114_v30 = vld [vmem:[#allocation71_spill] sm:$0xff] }
 0x963   :  { %v4324_v52 = vmul.f32 1.442695, %v4317_v21  ;;  %10529 = vmatprep.subr.mxu1 %v15080_v29 }
 0x965   :  { %10897 = vpow2.f32 %v4324_v52 }
 0x967   :  { %v10892_v28 = vpop.eup %10891 }
 0x968   :  { %v4326_v20 = vsel %vm2652_vm11, %v10892_v28, 0.0 }
 0x969   :  { %4327 = vadd.xlane.f32.xlu1 %v4326_v20  ;;  %v15115_v20 = vld [vmem:[#allocation69_spill] sm:$0xff] }
 0x96b   :  { %v10894_v12 = vpop.eup %10893 }
 0x96c   :  { %v10896_v27 = vpop.eup %10895  ;;  %v4329_v3 = vsel %vm2652_vm11, %v10894_v12, 0.0 }
 0x96d   :  { %4330 = vadd.xlane.f32.xlu0 %v4329_v3  ;;  %v4332_v49 = vsel %vm2652_vm11, %v10896_v27, 0.0 }
 0x96e   :  { %4333 = vadd.xlane.f32.xlu1 %v4332_v49 }
 0x96f   :  { %v10898_v60 = vpop.eup %10897 }
 0x970   :  { %v4335_v57 = vsel %vm2652_vm11, %v10898_v60, 0.0 }
 0x971   :  { %4336 = vadd.xlane.f32.xlu0 %v4335_v57 }
 0x97f   :  { %4498 = vrot.lane.b32.xlu1 %v12616_v63, %s11491_s15 }
 0x983   :  { %4574 = vrot.lane.b32.xlu1 %v12624_v45, %s11491_s15 }
 0x987   :  { %3017 = vbcast.lane.b32.xlu1 %v3015_v38, 256  ;;  %4422 = vrot.lane.b32.xlu0 %v12604_v43, %s11491_s15  ;;  %v15116_v38 = vld [vmem:[#allocation70_spill] sm:$0xff] }
 0x98b   :  { %3010 = vbcast.lane.b32.xlu0 %v3008_v14, 256 }
 0x9f6   :  { %v4328_v50 = vpop.xlane.xlu1 %4327 }
 0x9f7   :  { %10899 = vrcp.f32 %v4328_v50 }
 0x9fa   :  { %v4331_v37 = vpop.xlane.xlu0 %4330 }
 0x9fb   :  { %10901 = vrcp.f32 %v4331_v37  ;;  %v4334_v35 = vpop.xlane.xlu1 %4333 }
 0x9fc   :  { %10903 = vrcp.f32 %v4334_v35 }
 0x9fe   :  { %v4337_v63 = vpop.xlane.xlu0 %4336 }
 0x9ff   :  { %10905 = vrcp.f32 %v4337_v63  ;;  %v4499_v45 = vpop.permute.xlu1 %4498 }
 0xa01   :  { %v10900_v54 = vpop.eup %10899 }
 0xa02   :  { %v4339_v26 = vmul.f32 %v10900_v54, %v10892_v28  ;;  %v4423_v18 = vpop.permute.xlu0 %4422 }
 0xa03   :  { %v4575_v58 = vpop.permute.xlu1 %4574  ;;  %10525 = vmatpush3.msra.mxu0 %v4423_v18 }
 0xa04   :  { %10522 = vmatmul.mubr.msk.f32.vlgmr.msra.gmra.mrb[26].mxu1 %vm2652_vm11, %v4339_v26  ;;  %v4660_v43 = vrot.slane %v4339_v26, %v15107_v32  ;;  %v4653_v0 = vrot.slane %v4339_v26, %v15108_v56  ;;  %10534 = vmatprep.subr.mxu0 %v15080_v29  ;;  %v4674_v22 = vrot.slane %v4339_v26, %v15111_v34 }
 0xa05   :  { %v10902_v41 = vpop.eup %10901  ;;  %10530 = vmatpush3.msra.mxu1 %v4499_v45  ;;  %10531 = vmatprep.mubr.msk.f32.mxu1 %vm11481_vm1, %v15080_v29  ;;  %v4667_v4 = vrot.slane %v4339_v26, %v15112_v51  ;;  %v4681_v8 = vrot.slane %v4339_v26, %v15113_v15  ;;  %v4702_v10 = vrot.slane %v4339_v26, %v15114_v30 }
 0xa06   :  { %v10904_v23 = vpop.eup %10903  ;;  %v12947_v1 = vmul.f32 %v10902_v41, %v10894_v12  ;;  %v3011_v44 = vpop.permute.xlu0 %3010  ;;  %4662 = vbcast.lane.b32.xlu1 %v4660_v43, 256  ;;  %4655 = vbcast.lane.b32.xlu0 %v4653_v0, 256  ;;  %v4688_v12 = vrot.slane %v4339_v26, %v15115_v20  ;;  %v4695_v14 = vrot.slane %v4339_v26, %v15116_v38 }
 0xa07   :  { %v12949_v53 = vmul.f32 %v10904_v23, %v10896_v27  ;;  %v3229_v46 = vmul.f32 %v3011_v44, %v15109_v40  ;;  %v3018_v7 = vpop.permute.xlu1 %3017 }
 0xa08   :  { %v3230_v6 = vmul.f32 %v15110_v36, %v3018_v7  ;;  %10527 = vmatmul.mubr.msk.f32.vlgmr.msra.gmra.mrb[28].mxu0 %vm2652_vm11, %v12947_v1  ;;  %v4716_v27 = vrot.slane %v12947_v1, %v15107_v32  ;;  %v4723_v50 = vrot.slane %v12947_v1, %v15112_v51  ;;  %v4709_v63 = vrot.slane %v12947_v1, %v15108_v56 }
 0xa09   :  { %v10906_v47 = vpop.eup %10905  ;;  %v3262_v11 = vsel %vm3261_vm10, %v3229_v46, 0.0  ;;  %10532 = vmatmul.mubr.msk.f32.vlgmr.msra.gmra.mrb[28].mxu1 %vm2652_vm11, %v12949_v53  ;;  %10535 = vmatpush3.msra.mxu0 %v4575_v58  ;;  %v4730_v45 = vrot.slane %v12947_v1, %v15111_v34  ;;  %v4737_v54 = vrot.slane %v12947_v1, %v15113_v15  ;;  %v4765_v26 = vrot.slane %v12949_v53, %v15108_v56 }
 0xa0a   :  { %v12960_v9 = vmul.f32 %v10906_v47, %v10898_v60  ;;  %v3263_v2 = vrot.slane %v3262_v11, 4  ;;  %v3269_v13 = vsel %vm3261_vm10, %v3230_v6, 0.0  ;;  %4676 = vbcast.lane.b32.xlu1 %v4674_v22, 256  ;;  %4669 = vbcast.lane.b32.xlu0 %v4667_v4, 256  ;;  %v4772_v18 = vrot.slane %v12949_v53, %v15107_v32 }
 0xa0b   :  { %v3270_v62 = vrot.slane %v3269_v13, 4  ;;  %10536 = vmatprep.mubr.msk.f32.mxu0 %vm11481_vm1, %v15080_v29  ;;  %v4779_v58 = vrot.slane %v12949_v53, %v15112_v51  ;;  %v4744_v43 = vrot.slane %v12947_v1, %v15115_v20  ;;  %v4751_v0 = vrot.slane %v12947_v1, %v15116_v38 }
 0xa0c   :  { %v3264_v24 = vadd.f32 %v3263_v2, %v3262_v11  ;;  %10537 = vmatmul.mubr.msk.f32.vlgmr.msra.gmra.mrb[30].mxu0 %vm2652_vm11, %v12960_v9  ;;  %v4786_v41 = vrot.slane %v12949_v53, %v15111_v34  ;;  %v4793_v23 = vrot.slane %v12949_v53, %v15113_v15  ;;  %v4758_v44 = vrot.slane %v12947_v1, %v15114_v30 }
 0xa0d   :  { %v3271_v21 = vadd.f32 %v3270_v62, %v3269_v13  ;;  %v4800_v46 = vrot.slane %v12949_v53, %v15115_v20  ;;  %v4821_v7 = vrot.slane %v12960_v9, %v15108_v56  ;;  %v4807_v6 = vrot.slane %v12949_v53, %v15116_v38 }
 0xa0e   :  { %v3265_v31 = vrot.slane %v3264_v24, 2  ;;  %4683 = vbcast.lane.b32.xlu1 %v4681_v8, 256  ;;  %4704 = vbcast.lane.b32.xlu0 %v4702_v10, 256  ;;  %v4842_v22 = vrot.slane %v12960_v9, %v15111_v34  ;;  %v4814_v4 = vrot.slane %v12949_v53, %v15114_v30  ;;  %v4849_v1 = vrot.slane %v12960_v9, %v15113_v15 }
 0xa0f   :  { %v3272_v52 = vrot.slane %v3271_v21, 2  ;;  %v4828_v47 = vrot.slane %v12960_v9, %v15107_v32  ;;  %v4856_v11 = vrot.slane %v12960_v9, %v15115_v20  ;;  %v4835_v2 = vrot.slane %v12960_v9, %v15112_v51 }
 0xa10   :  { %v3266_v28 = vadd.f32 %v3265_v31, %v3264_v24  ;;  %v4863_v53 = vrot.slane %v12960_v9, %v15116_v38  ;;  %v4870_v13 = vrot.slane %v12960_v9, %v15114_v30  ;;  %v3022_v62 = vrot.slane %v12729_v19, %v15112_v51 }
 0xa11   :  { %v3273_v3 = vadd.f32 %v3272_v52, %v3271_v21  ;;  %v3064_v24 = vrot.slane %v12736_v16, %v15108_v56  ;;  %v3071_v8 = vrot.slane %v12736_v16, %v15107_v32  ;;  %v3029_v10 = vrot.slane %v12729_v19, %v15111_v34 }
 0xa12   :  { %v3267_v49 = vrot.slane %v3266_v28, 1  ;;  %4690 = vbcast.lane.b32.xlu1 %v4688_v12, 256  ;;  %4718 = vbcast.lane.b32.xlu0 %v4716_v27, 256  ;;  %v3078_v9 = vrot.slane %v12736_v16, %v15112_v51  ;;  %v3036_v21 = vrot.slane %v12729_v19, %v15113_v15  ;;  %v3085_v31 = vrot.slane %v12736_v16, %v15111_v34 }
 0xa13   :  { %v3274_v60 = vrot.slane %v3273_v3, 1  ;;  %v3043_v52 = vrot.slane %v12729_v19, %v15115_v20  ;;  %v3120_v12 = vrot.slane %v12744_v25, %v15108_v56  ;;  %v3127_v27 = vrot.slane %v12744_v25, %v15107_v32 }
 0xa14   :  { %v3268_v57 = vadd.f32 %v3267_v49, %v3266_v28  ;;  %v3092_v28 = vrot.slane %v12736_v16, %v15113_v15  ;;  %v3099_v49 = vrot.slane %v12736_v16, %v15115_v20 }
 0xa15   :  { %v3275_v37 = vadd.f32 %v3274_v60, %v3273_v3  ;;  %v3050_v3 = vrot.slane %v12729_v19, %v15116_v38  ;;  %v3134_v60 = vrot.slane %v12744_v25, %v15112_v51 }
 0xa16   :  { %4697 = vbcast.lane.b32.xlu1 %v4695_v14, 256  ;;  %4725 = vbcast.lane.b32.xlu0 %v4723_v50, 256  ;;  %v3183_v14 = vrot.slane %v12754_v17, %v15107_v32  ;;  %v3057_v50 = vrot.slane %v12729_v19, %v15114_v30  ;;  %v3197_v19 = vrot.slane %v12754_v17, %v15111_v34 }
 0xa17   :  { %v12976_v35 = vsel %vm2601_vm12, %v3275_v37, %v3268_v57  ;;  %v3176_v57 = vrot.slane %v12754_v17, %v15108_v56  ;;  %v3106_v37 = vrot.slane %v12736_v16, %v15116_v38 }
 0xa1a   :  { %4711 = vbcast.lane.b32.xlu1 %v4709_v63, 256  ;;  %4732 = vbcast.lane.b32.xlu0 %v4730_v45, 256  ;;  %v3141_v63 = vrot.slane %v12744_v25, %v15111_v34  ;;  %v3190_v45 = vrot.slane %v12754_v17, %v15112_v51 }
 0xa1e   :  { %4739 = vbcast.lane.b32.xlu0 %v4737_v54, 256  ;;  %4767 = vbcast.lane.b32.xlu1 %v4765_v26, 256  ;;  %v3113_v54 = vrot.slane %v12736_v16, %v15114_v30  ;;  %v3148_v26 = vrot.slane %v12744_v25, %v15113_v15 }
 0xa22   :  { %4774 = vbcast.lane.b32.xlu0 %v4772_v18, 256  ;;  %4781 = vbcast.lane.b32.xlu1 %v4779_v58, 256  ;;  %v3155_v18 = vrot.slane %v12744_v25, %v15115_v20  ;;  %v3204_v58 = vrot.slane %v12754_v17, %v15113_v15 }
 0xa26   :  { %4746 = vbcast.lane.b32.xlu0 %v4744_v43, 256  ;;  %4753 = vbcast.lane.b32.xlu1 %v4751_v0, 256  ;;  %v3162_v43 = vrot.slane %v12744_v25, %v15116_v38 }
 0xa2a   :  { %4788 = vbcast.lane.b32.xlu0 %v4786_v41, 256  ;;  %4795 = vbcast.lane.b32.xlu1 %v4793_v23, 256  ;;  %v3211_v41 = vrot.slane %v12754_v17, %v15115_v20  ;;  %v3169_v23 = vrot.slane %v12744_v25, %v15114_v30  ;;  %v3225_v25 = vrot.slane %v12754_v17, %v15114_v30 }
 0xa2e   :  { %4760 = vbcast.lane.b32.xlu0 %v4758_v44, 256  ;;  %4802 = vbcast.lane.b32.xlu1 %v4800_v46, 256 }
 0xa32   :  { %4823 = vbcast.lane.b32.xlu0 %v4821_v7, 256  ;;  %4809 = vbcast.lane.b32.xlu1 %v4807_v6, 256 }
 0xa36   :  { %4844 = vbcast.lane.b32.xlu0 %v4842_v22, 256  ;;  %4816 = vbcast.lane.b32.xlu1 %v4814_v4, 256 }
 0xa3a   :  { %4851 = vbcast.lane.b32.xlu0 %v4849_v1, 256  ;;  %4830 = vbcast.lane.b32.xlu1 %v4828_v47, 256 }
 0xa3e   :  { %4858 = vbcast.lane.b32.xlu0 %v4856_v11, 256  ;;  %4837 = vbcast.lane.b32.xlu1 %v4835_v2, 256  ;;  %v3218_v11 = vrot.slane %v12754_v17, %v15116_v38  ;;  %v15117_v2 = vld [vmem:[#allocation80_spill] sm:$0xff] }
 0xa42   :  { %4865 = vbcast.lane.b32.xlu0 %v4863_v53, 256  ;;  %4872 = vbcast.lane.b32.xlu1 %v4870_v13, 256  ;;  %v15118_v13 = vld [vmem:[#allocation79_spill] sm:$0xff] }
 0xa46   :  { %3024 = vbcast.lane.b32.xlu0 %v3022_v62, 256  ;;  %3066 = vbcast.lane.b32.xlu1 %v3064_v24, 256 }
 0xa4a   :  { %3073 = vbcast.lane.b32.xlu0 %v3071_v8, 256  ;;  %3031 = vbcast.lane.b32.xlu1 %v3029_v10, 256 }
 0xa4e   :  { %3080 = vbcast.lane.b32.xlu0 %v3078_v9, 256  ;;  %3038 = vbcast.lane.b32.xlu1 %v3036_v21, 256 }
 0xa52   :  { %3087 = vbcast.lane.b32.xlu0 %v3085_v31, 256  ;;  %3045 = vbcast.lane.b32.xlu1 %v3043_v52, 256 }
 0xa56   :  { %3094 = vbcast.lane.b32.xlu0 %v3092_v28, 256  ;;  %3122 = vbcast.lane.b32.xlu1 %v3120_v12, 256 }
 0xa5a   :  { %3129 = vbcast.lane.b32.xlu0 %v3127_v27, 256  ;;  %3052 = vbcast.lane.b32.xlu1 %v3050_v3, 256  ;;  %v15119_v3 = vld [vmem:[#allocation84_spill] sm:$0xff] }
 0xa5e   :  { %3101 = vbcast.lane.b32.xlu0 %v3099_v49, 256  ;;  %3136 = vbcast.lane.b32.xlu1 %v3134_v60, 256  ;;  %v15120_v49 = vld [vmem:[#allocation83_spill] sm:$0xff] }
 0xa62   :  { %3178 = vbcast.lane.b32.xlu0 %v3176_v57, 256  ;;  %3185 = vbcast.lane.b32.xlu1 %v3183_v14, 256 }
 0xa66   :  { %3059 = vbcast.lane.b32.xlu0 %v3057_v50, 256  ;;  %3108 = vbcast.lane.b32.xlu1 %v3106_v37, 256 }
 0xa6a   :  { %3143 = vbcast.lane.b32.xlu0 %v3141_v63, 256  ;;  %3192 = vbcast.lane.b32.xlu1 %v3190_v45, 256 }
 0xa6e   :  { %3115 = vbcast.lane.b32.xlu0 %v3113_v54, 256  ;;  %3150 = vbcast.lane.b32.xlu1 %v3148_v26, 256 }
 0xa72   :  { %3199 = vbcast.lane.b32.xlu0 %v3197_v19, 256  ;;  %3157 = vbcast.lane.b32.xlu1 %v3155_v18, 256 }
 0xa76   :  { %3206 = vbcast.lane.b32.xlu0 %v3204_v58, 256  ;;  %3164 = vbcast.lane.b32.xlu1 %v3162_v43, 256 }
 0xa78   :  { %v4656_v16 = vpop.permute.xlu0 %4655  ;;  %v4663_v0 = vpop.permute.xlu1 %4662 }
 0xa79   :  { %v4874_v44 = vmul.f32 %v4656_v16, %v15109_v40  ;;  %v4875_v46 = vmul.f32 %v15110_v36, %v4663_v0 }
 0xa7a   :  { %3213 = vbcast.lane.b32.xlu0 %v3211_v41, 256  ;;  %3171 = vbcast.lane.b32.xlu1 %v3169_v23, 256  ;;  %v15121_v41 = vld [vmem:[#allocation87_spill] sm:$0xff] }
 0xa7b   :  { %v4907_v7 = vsel %vm4906_vm5, %v4874_v44, 0.0  ;;  %v4914_v6 = vsel %vm4906_vm5, %v4875_v46, 0.0  ;;  %v15122_v44 = vld [vmem:[#allocation82_spill] sm:$0xff] }
 0xa7c   :  { %v4908_v22 = vrot.slane %v4907_v7, 4  ;;  %v4915_v4 = vrot.slane %v4914_v6, 4  ;;  %v4670_v1 = vpop.permute.xlu0 %4669  ;;  %v4677_v47 = vpop.permute.xlu1 %4676 }
 0xa7d   :  { %v4876_v53 = vmul.f32 %v4670_v1, %v15117_v2  ;;  %v4877_v62 = vmul.f32 %v15118_v13, %v4677_v47 }
 0xa7e   :  { %v4909_v24 = vadd.f32 %v4908_v22, %v4907_v7  ;;  %v4916_v8 = vadd.f32 %v4915_v4, %v4914_v6  ;;  %3220 = vbcast.lane.b32.xlu0 %v3218_v11, 256  ;;  %3227 = vbcast.lane.b32.xlu1 %v3225_v25, 256 }
 0xa7f   :  { %v4921_v10 = vsel %vm4906_vm5, %v4876_v53, 0.0  ;;  %v4928_v9 = vsel %vm4906_vm5, %v4877_v62, 0.0 }
 0xa80   :  { %v4910_v21 = vrot.slane %v4909_v24, 2  ;;  %v4917_v31 = vrot.slane %v4916_v8, 2  ;;  %v4922_v52 = vrot.slane %v4921_v10, 4  ;;  %v4929_v28 = vrot.slane %v4928_v9, 4  ;;  %v4705_v12 = vpop.permute.xlu0 %4704  ;;  %v4684_v27 = vpop.permute.xlu1 %4683 }
 0xa81   :  { %v4881_v17 = vmul.f32 %v15119_v3, %v4705_v12  ;;  %v4878_v60 = vmul.f32 %v4684_v27, %v15120_v49 }
 0xa82   :  { %v4911_v57 = vadd.f32 %v4910_v21, %v4909_v24  ;;  %v4918_v14 = vadd.f32 %v4917_v31, %v4916_v8  ;;  %v4923_v50 = vadd.f32 %v4922_v52, %v4921_v10  ;;  %v4930_v37 = vadd.f32 %v4929_v28, %v4928_v9  ;;  %v15123_v28 = vld [vmem:[#allocation90_spill] sm:$0xff] }
 0xa83   :  { %v4956_v63 = vsel %vm4906_vm5, %v4881_v17, 0.0  ;;  %v4935_v45 = vsel %vm4906_vm5, %v4878_v60, 0.0 }
 0xa84   :  { %v4912_v54 = vrot.slane %v4911_v57, 1  ;;  %v4919_v26 = vrot.slane %v4918_v14, 1  ;;  %v4924_v19 = vrot.slane %v4923_v50, 2  ;;  %v4931_v18 = vrot.slane %v4930_v37, 2  ;;  %v4719_v58 = vpop.permute.xlu0 %4718  ;;  %v4691_v43 = vpop.permute.xlu1 %4690 }
 0xa85   :  { %v4957_v16 = vrot.slane %v4956_v63, 4  ;;  %v4936_v0 = vrot.slane %v4935_v45, 4  ;;  %v4883_v23 = vmul.f32 %v15121_v41, %v4719_v58  ;;  %v4879_v46 = vmul.f32 %v15122_v44, %v4691_v43 }
 0xa86   :  { %v4913_v7 = vadd.f32 %v4912_v54, %v4911_v57  ;;  %v4920_v6 = vadd.f32 %v4919_v26, %v4918_v14  ;;  %v4925_v22 = vadd.f32 %v4924_v19, %v4923_v50  ;;  %v4932_v4 = vadd.f32 %v4931_v18, %v4930_v37  ;;  %v15124_v57 = vld [vmem:[#allocation85_spill] sm:$0xff] }
 0xa87   :  { %v4958_v1 = vadd.f32 %v4957_v16, %v4956_v63  ;;  %v4937_v47 = vadd.f32 %v4936_v0, %v4935_v45  ;;  %v4970_v11 = vsel %vm4906_vm5, %v4883_v23, 0.0  ;;  %v4942_v25 = vsel %vm4906_vm5, %v4879_v46, 0.0 }
 0xa88   :  { %v5163_v53 = vsel %vm2601_vm12, %v4920_v6, %v4913_v7  ;;  %v4926_v62 = vrot.slane %v4925_v22, 1  ;;  %v4933_v24 = vrot.slane %v4932_v4, 1  ;;  %v4971_v8 = vrot.slane %v4970_v11, 4  ;;  %v4726_v10 = vpop.permute.xlu0 %4725  ;;  %v4698_v9 = vpop.permute.xlu1 %4697 }
 0xa89   :  { %v4959_v21 = vrot.slane %v4958_v1, 2  ;;  %v4938_v31 = vrot.slane %v4937_v47, 2  ;;  %v4943_v52 = vrot.slane %v4942_v25, 4  ;;  %v4884_v12 = vmul.f32 %v4726_v10, %v15123_v28 }
 0xa8a   :  { %v4927_v27 = vadd.f32 %v4926_v62, %v4925_v22  ;;  %v4934_v17 = vadd.f32 %v4933_v24, %v4932_v4  ;;  %v4972_v60 = vadd.f32 %v4971_v8, %v4970_v11  ;;  %v4880_v14 = vmul.f32 %v4698_v9, %v15124_v57  ;;  %v15125_v22 = vld [vmem:[#allocation89_spill] sm:$0xff] }
 0xa8b   :  { %v4960_v50 = vadd.f32 %v4959_v21, %v4958_v1  ;;  %v4939_v37 = vadd.f32 %v4938_v31, %v4937_v47  ;;  %v4944_v63 = vadd.f32 %v4943_v52, %v4942_v25  ;;  %v4977_v45 = vsel %vm4906_vm5, %v4884_v12, 0.0  ;;  %v15126_v1 = vld [vmem:[#allocation88_spill] sm:$0xff] }
 0xa8c   :  { %v5164_v54 = vsel %vm2603_vm14, %v4927_v27, %v5163_v53  ;;  %v4973_v26 = vrot.slane %v4972_v60, 2  ;;  %v4978_v19 = vrot.slane %v4977_v45, 4  ;;  %v4949_v18 = vsel %vm4906_vm5, %v4880_v14, 0.0  ;;  %v4733_v58 = vpop.permute.xlu0 %4732  ;;  %v4712_v43 = vpop.permute.xlu1 %4711 }
 0xa8d   :  { %v4961_v16 = vrot.slane %v4960_v50, 1  ;;  %v4940_v0 = vrot.slane %v4939_v37, 1  ;;  %v4945_v23 = vrot.slane %v4944_v63, 2  ;;  %v4950_v46 = vrot.slane %v4949_v18, 4 }
 0xa8e   :  { %v4974_v7 = vadd.f32 %v4973_v26, %v4972_v60  ;;  %v4979_v6 = vadd.f32 %v4978_v19, %v4977_v45  ;;  %v4885_v4 = vmul.f32 %v15125_v22, %v4733_v58  ;;  %v4882_v47 = vmul.f32 %v4712_v43, %v15126_v1  ;;  %v15127_v26 = vld [vmem:[#allocation93_spill] sm:$0xff] }
 0xa8f   :  { %v4941_v11 = vadd.f32 %v4940_v0, %v4939_v37  ;;  %v4946_v25 = vadd.f32 %v4945_v23, %v4944_v63  ;;  %v4951_v62 = vadd.f32 %v4950_v46, %v4949_v18  ;;  %v13106_v53 = vadd.f32 %v4961_v16, %v4960_v50 }
 0xa90   :  { %v4975_v24 = vrot.slane %v4974_v7, 1  ;;  %v4980_v8 = vrot.slane %v4979_v6, 2  ;;  %v4984_v10 = vsel %vm4906_vm5, %v4885_v4, 0.0  ;;  %v4963_v9 = vsel %vm4906_vm5, %v4882_v47, 0.0  ;;  %v4740_v21 = vpop.permute.xlu0 %4739  ;;  %v4768_v31 = vpop.permute.xlu1 %4767 }
 0xa91   :  { %v4947_v52 = vrot.slane %v4946_v25, 1  ;;  %v4952_v12 = vrot.slane %v4951_v62, 2  ;;  %v4985_v27 = vrot.slane %v4984_v10, 4  ;;  %v4964_v60 = vrot.slane %v4963_v9, 4 }
 0xa92   :  { %v4976_v14 = vadd.f32 %v4975_v24, %v4974_v7  ;;  %v4981_v45 = vadd.f32 %v4980_v8, %v4979_v6  ;;  %v4886_v37 = vmul.f32 %v4740_v21, %v15127_v26  ;;  %v4890_v63 = vmul.f32 %v4768_v31, %v15109_v40 }
 0xa93   :  { %v4948_v50 = vadd.f32 %v4947_v52, %v4946_v25  ;;  %v4953_v19 = vadd.f32 %v4952_v12, %v4951_v62  ;;  %v4986_v18 = vadd.f32 %v4985_v27, %v4984_v10  ;;  %v4965_v58 = vadd.f32 %v4964_v60, %v4963_v9 }
 0xa94   :  { %v4982_v43 = vrot.slane %v4981_v45, 1  ;;  %v4991_v16 = vsel %vm4906_vm5, %v4886_v37, 0.0  ;;  %v5019_v0 = vsel %vm4906_vm5, %v4890_v63, 0.0  ;;  %v4775_v23 = vpop.permute.xlu0 %4774  ;;  %v4782_v46 = vpop.permute.xlu1 %4781  ;;  %v5165_v4 = vsel %vm2605_vm15, %v4934_v17, %v5164_v54 }
 0xa95   :  { %v4954_v47 = vrot.slane %v4953_v19, 1  ;;  %v4987_v7 = vrot.slane %v4986_v18, 2  ;;  %v4966_v6 = vrot.slane %v4965_v58, 2  ;;  %v4992_v24 = vrot.slane %v4991_v16, 4 }
 0xa96   :  { %v13115_v8 = vadd.f32 %v4982_v43, %v4981_v45  ;;  %v5020_v21 = vrot.slane %v5019_v0, 4  ;;  %v4891_v25 = vmul.f32 %v15110_v36, %v4775_v23  ;;  %v4892_v62 = vmul.f32 %v4782_v46, %v15117_v2  ;;  %v15128_v46 = vld [vmem:[#allocation91_spill] sm:$0xff] }
 0xa97   :  { %v4955_v10 = vadd.f32 %v4954_v47, %v4953_v19  ;;  %v4988_v9 = vadd.f32 %v4987_v7, %v4986_v18  ;;  %v4967_v31 = vadd.f32 %v4966_v6, %v4965_v58  ;;  %v4993_v52 = vadd.f32 %v4992_v24, %v4991_v16  ;;  %v15129_v18 = vld [vmem:[#allocation95_spill] sm:$0xff] }
 0xa98   :  { %v5021_v12 = vadd.f32 %v5020_v21, %v5019_v0  ;;  %v5026_v27 = vsel %vm4906_vm5, %v4891_v25, 0.0  ;;  %v5033_v17 = vsel %vm4906_vm5, %v4892_v62, 0.0  ;;  %v4747_v54 = vpop.permute.xlu0 %4746  ;;  %v4754_v60 = vpop.permute.xlu1 %4753  ;;  %v5166_v37 = vsel %vm2607_vm3, %v4941_v11, %v5165_v4 }
 0xa99   :  { %v4989_v45 = vrot.slane %v4988_v9, 1  ;;  %v4968_v63 = vrot.slane %v4967_v31, 1  ;;  %v4994_v43 = vrot.slane %v4993_v52, 2  ;;  %v5027_v38 = vrot.slane %v5026_v27, 4 }
 0xa9a   :  { %v5022_v23 = vrot.slane %v5021_v12, 2  ;;  %v5034_v20 = vrot.slane %v5033_v17, 4  ;;  %v4887_v19 = vmul.f32 %v15128_v46, %v4747_v54  ;;  %v4888_v58 = vmul.f32 %v4754_v60, %v15129_v18 }
 0xa9b   :  { %v13124_v16 = vadd.f32 %v4989_v45, %v4988_v9  ;;  %v4969_v0 = vadd.f32 %v4968_v63, %v4967_v31  ;;  %v4995_v47 = vadd.f32 %v4994_v43, %v4993_v52  ;;  %v5028_v7 = vadd.f32 %v5027_v38, %v5026_v27 }
 0xa9c   :  { %v5023_v6 = vadd.f32 %v5022_v23, %v5021_v12  ;;  %v5035_v24 = vadd.f32 %v5034_v20, %v5033_v17  ;;  %v4998_v21 = vsel %vm4906_vm5, %v4887_v19, 0.0  ;;  %v5005_v11 = vsel %vm4906_vm5, %v4888_v58, 0.0  ;;  %v4789_v4 = vpop.permute.xlu0 %4788  ;;  %v4796_v25 = vpop.permute.xlu1 %4795 }
 0xa9d   :  { %v13129_v62 = vsel %vm2601_vm12, %v4976_v14, %v4969_v0  ;;  %v4996_v30 = vrot.slane %v4995_v47, 1  ;;  %v5029_v54 = vrot.slane %v5028_v7, 2  ;;  %v4999_v15 = vrot.slane %v4998_v21, 4  ;;  %v15130_v0 = vld [vmem:[#allocation94_spill] sm:$0xff] }
 0xa9e   :  { %v5024_v60 = vrot.slane %v5023_v6, 1  ;;  %v5036_v9 = vrot.slane %v5035_v24, 2  ;;  %v5006_v45 = vrot.slane %v5005_v11, 4  ;;  %v5167_v31 = vsel %vm2609_vm6, %v4948_v50, %v5166_v37 }
 0xa9f   :  { %v13132_v38 = vadd.f32 %v4996_v30, %v4995_v47  ;;  %v5030_v20 = vadd.f32 %v5029_v54, %v5028_v7  ;;  %v5000_v52 = vadd.f32 %v4999_v15, %v4998_v21  ;;  %v5168_v12 = vsel %vm2611_vm8, %v4955_v10, %v5167_v31 }
 0xaa0   :  { %v5025_v27 = vadd.f32 %v5024_v60, %v5023_v6  ;;  %v5037_v17 = vadd.f32 %v5036_v9, %v5035_v24  ;;  %v5007_v63 = vadd.f32 %v5006_v45, %v5005_v11  ;;  %v5169_v14 = vsel %vm2613_vm9, %v13106_v53, %v5168_v12  ;;  %v4761_v43 = vpop.permute.xlu0 %4760  ;;  %v4803_v23 = vpop.permute.xlu1 %4802 }
 0xaa1   :  { %v5031_v19 = vrot.slane %v5030_v20, 1  ;;  %v5001_v58 = vrot.slane %v5000_v52, 2  ;;  %5191 = vrot.lane.b32.xlu0 %v5169_v14, %s11489_s9  ;;  %v4893_v50 = vmul.f32 %v15118_v13, %v4789_v4  ;;  %v4894_v30 = vmul.f32 %v4796_v25, %v15120_v49 }
 0xaa2   :  { %v5038_v37 = vrot.slane %v5037_v17, 1  ;;  %v5008_v15 = vrot.slane %v5007_v63, 2  ;;  %v4889_v10 = vmul.f32 %v15130_v0, %v4761_v43  ;;  %v4895_v47 = vmul.f32 %v15122_v44, %v4803_v23 }
 0xaa3   :  { %v5032_v7 = vadd.f32 %v5031_v19, %v5030_v20  ;;  %v5002_v6 = vadd.f32 %v5001_v58, %v5000_v52  ;;  %v5040_v53 = vsel %vm4906_vm5, %v4893_v50, 0.0  ;;  %v5047_v24 = vsel %vm4906_vm5, %v4894_v30, 0.0 }
 0xaa4   :  { %v5039_v21 = vadd.f32 %v5038_v37, %v5037_v17  ;;  %v5009_v11 = vadd.f32 %v5008_v15, %v5007_v63  ;;  %v5041_v54 = vrot.slane %v5040_v53, 4  ;;  %v5048_v60 = vrot.slane %v5047_v24, 4  ;;  %v4824_v9 = vpop.permute.xlu0 %4823  ;;  %v4810_v4 = vpop.permute.xlu1 %4809 }
 0xaa5   :  { %v5177_v25 = vsel %vm2601_vm12, %v5032_v7, %v5025_v27  ;;  %v5003_v45 = vrot.slane %v5002_v6, 1  ;;  %v5012_v31 = vsel %vm4906_vm5, %v4889_v10, 0.0  ;;  %v5054_v12 = vsel %vm4906_vm5, %v4895_v47, 0.0 }
 0xaa6   :  { %v13148_v20 = vsel %vm2603_vm14, %v5039_v21, %v5177_v25  ;;  %v5010_v52 = vrot.slane %v5009_v11, 1  ;;  %v5042_v14 = vadd.f32 %v5041_v54, %v5040_v53  ;;  %v5049_v43 = vadd.f32 %v5048_v60, %v5047_v24 }
 0xaa7   :  { %v13150_v23 = vadd.f32 %v5003_v45, %v5002_v6  ;;  %v5013_v17 = vrot.slane %v5012_v31, 4  ;;  %v5055_v63 = vrot.slane %v5054_v12, 4  ;;  %v4898_v19 = vmul.f32 %v4824_v9, %v15126_v1 }
 0xaa8   :  { %v13153_v58 = vadd.f32 %v5010_v52, %v5009_v11  ;;  %v5043_v27 = vrot.slane %v5042_v14, 2  ;;  %v5050_v50 = vrot.slane %v5049_v43, 2  ;;  %v4896_v30 = vmul.f32 %v4810_v4, %v15124_v57  ;;  %v4845_v37 = vpop.permute.xlu0 %4844  ;;  %v4817_v15 = vpop.permute.xlu1 %4816 }
 0xaa9   :  { %v5014_v10 = vadd.f32 %v5013_v17, %v5012_v31  ;;  %v5056_v47 = vadd.f32 %v5055_v63, %v5054_v12  ;;  %v5075_v7 = vsel %vm4906_vm5, %v4898_v19, 0.0  ;;  %v4901_v53 = vmul.f32 %v15125_v22, %v4845_v37 }
 0xaaa   :  { %v5044_v6 = vadd.f32 %v5043_v27, %v5042_v14  ;;  %v5051_v24 = vadd.f32 %v5050_v50, %v5049_v43  ;;  %v5076_v21 = vrot.slane %v5075_v7, 4  ;;  %v5061_v54 = vsel %vm4906_vm5, %v4896_v30, 0.0 }
 0xaab   :  { %v5015_v60 = vrot.slane %v5014_v10, 2  ;;  %v5057_v11 = vrot.slane %v5056_v47, 2  ;;  %v5062_v9 = vrot.slane %v5061_v54, 4  ;;  %v5096_v25 = vsel %vm4906_vm5, %v4901_v53, 0.0 }
 0xaac   :  { %v5045_v45 = vrot.slane %v5044_v6, 1  ;;  %v5052_v4 = vrot.slane %v5051_v24, 1  ;;  %v5077_v52 = vadd.f32 %v5076_v21, %v5075_v7  ;;  %v5097_v51 = vrot.slane %v5096_v25, 4  ;;  %v4852_v31 = vpop.permute.xlu0 %4851  ;;  %v4831_v12 = vpop.permute.xlu1 %4830 }
 0xaad   :  { %v5016_v17 = vadd.f32 %v5015_v60, %v5014_v10  ;;  %v5058_v63 = vadd.f32 %v5057_v11, %v5056_v47  ;;  %v5063_v19 = vadd.f32 %v5062_v9, %v5061_v54  ;;  %v4897_v14 = vmul.f32 %v15119_v3, %v4817_v15 }
 0xaae   :  { %v13161_v43 = vadd.f32 %v5045_v45, %v5044_v6  ;;  %v13163_v27 = vadd.f32 %v5052_v4, %v5051_v24  ;;  %v5078_v50 = vrot.slane %v5077_v52, 2  ;;  %v5098_v30 = vadd.f32 %v5097_v51, %v5096_v25 }
 0xaaf   :  { %v5017_v37 = vrot.slane %v5016_v17, 1  ;;  %v5059_v34 = vrot.slane %v5058_v63, 1  ;;  %v5064_v53 = vrot.slane %v5063_v19, 2  ;;  %v5068_v32 = vsel %vm4906_vm5, %v4897_v14, 0.0 }
 0xab0   :  { %v5079_v7 = vadd.f32 %v5078_v50, %v5077_v52  ;;  %v5099_v21 = vrot.slane %v5098_v30, 2  ;;  %v5069_v33 = vrot.slane %v5068_v32, 4  ;;  %v4902_v10 = vmul.f32 %v4852_v31, %v15127_v26  ;;  %v4859_v47 = vpop.permute.xlu0 %4858  ;;  %v4838_v54 = vpop.permute.xlu1 %4837 }
 0xab1   :  { %v13167_v60 = vadd.f32 %v5059_v34, %v5058_v63  ;;  %v5065_v15 = vadd.f32 %v5064_v53, %v5063_v19  ;;  %v4899_v6 = vmul.f32 %v15121_v41, %v4831_v12  ;;  %v4903_v24 = vmul.f32 %v15128_v46, %v4859_v47 }
 0xab2   :  { %v5080_v51 = vrot.slane %v5079_v7, 1  ;;  %v5100_v11 = vadd.f32 %v5099_v21, %v5098_v30  ;;  %v5070_v9 = vadd.f32 %v5069_v33, %v5068_v32  ;;  %v5103_v25 = vsel %vm4906_vm5, %v4902_v10, 0.0 }
 0xab3   :  { %v5066_v45 = vrot.slane %v5065_v15, 1  ;;  %v5104_v4 = vrot.slane %v5103_v25, 4  ;;  %v5082_v52 = vsel %vm4906_vm5, %v4899_v6, 0.0  ;;  %v5110_v31 = vsel %vm4906_vm5, %v4903_v24, 0.0 }
 0xab4   :  { %v5081_v14 = vadd.f32 %v5080_v51, %v5079_v7  ;;  %v5101_v50 = vrot.slane %v5100_v11, 1  ;;  %v5071_v34 = vrot.slane %v5070_v9, 2  ;;  %v5083_v63 = vrot.slane %v5082_v52, 4  ;;  %v4866_v19 = vpop.permute.xlu0 %4865  ;;  %v4873_v53 = vpop.permute.xlu1 %4872 }
 0xab5   :  { %v13174_v12 = vadd.f32 %v5066_v45, %v5065_v15  ;;  %v5105_v47 = vadd.f32 %v5104_v4, %v5103_v25  ;;  %v5111_v5 = vrot.slane %v5110_v31, 4  ;;  %v4900_v33 = vmul.f32 %v4838_v54, %v15123_v28 }
 0xab6   :  { %v13177_v32 = vadd.f32 %v5101_v50, %v5100_v11  ;;  %v5072_v30 = vadd.f32 %v5071_v34, %v5070_v9  ;;  %v5084_v21 = vadd.f32 %v5083_v63, %v5082_v52  ;;  %v5018_v10 = vadd.f32 %v5017_v37, %v5016_v17 }
 0xab7   :  { %v5106_v6 = vrot.slane %v5105_v47, 2  ;;  %v5112_v42 = vadd.f32 %v5111_v5, %v5110_v31  ;;  %v5089_v7 = vsel %vm4906_vm5, %v4900_v33, 0.0  ;;  %v5171_v24 = vsel %vm2603_vm14, %v13115_v8, %v13129_v62 }
 0xab8   :  { %v5073_v51 = vrot.slane %v5072_v30, 1  ;;  %v5085_v15 = vrot.slane %v5084_v21, 2  ;;  %v5090_v45 = vrot.slane %v5089_v7, 4  ;;  %v5172_v25 = vsel %vm2605_vm15, %v13124_v16, %v5171_v24  ;;  %v3025_v54 = vpop.permute.xlu0 %3024  ;;  %v3067_v11 = vpop.permute.xlu1 %3066 }
 0xab9   :  { %v5107_v4 = vadd.f32 %v5106_v6, %v5105_v47  ;;  %v5113_v9 = vrot.slane %v5112_v42, 2  ;;  %v5173_v17 = vsel %vm2607_vm3, %v13132_v38, %v5172_v25  ;;  %v4904_v5 = vmul.f32 %v4866_v19, %v15129_v18 }
 0xaba   :  { %v5086_v37 = vadd.f32 %v5085_v15, %v5084_v21  ;;  %v5091_v52 = vadd.f32 %v5090_v45, %v5089_v7  ;;  %v5174_v8 = vsel %vm2609_vm6, %v13150_v23, %v5173_v17  ;;  %v4905_v62 = vmul.f32 %v15130_v0, %v4873_v53 }
 0xabb   :  { %v5108_v31 = vrot.slane %v5107_v4, 1  ;;  %v5114_v50 = vadd.f32 %v5113_v9, %v5112_v42  ;;  %v5175_v16 = vsel %vm2611_vm8, %v13153_v58, %v5174_v8  ;;  %v5117_v34 = vsel %vm4906_vm5, %v4904_v5, 0.0 }
 0xabc   :  { %v5087_v63 = vrot.slane %v5086_v37, 1  ;;  %v5092_v47 = vrot.slane %v5091_v52, 2  ;;  %v5176_v38 = vsel %vm2613_vm9, %v5018_v10, %v5175_v16  ;;  %v5118_v33 = vrot.slane %v5117_v34, 4  ;;  %v3074_v19 = vpop.permute.xlu0 %3073  ;;  %v3032_v21 = vpop.permute.xlu1 %3031 }
 0xabd   :  { %v13195_v6 = vadd.f32 %v5108_v31, %v5107_v4  ;;  %v5115_v7 = vrot.slane %v5114_v50, 1  ;;  %5193 = vrot.lane.b32.xlu1 %v5176_v38, %s11489_s9  ;;  %v5124_v23 = vsel %vm4906_vm5, %v4905_v62, 0.0  ;;  %v3231_v42 = vmul.f32 %v3025_v54, %v15117_v2 }
 0xabe   :  { %v5088_v53 = vadd.f32 %v5087_v63, %v5086_v37  ;;  %v5093_v58 = vadd.f32 %v5092_v47, %v5091_v52  ;;  %v5119_v24 = vadd.f32 %v5118_v33, %v5117_v34  ;;  %v5125_v15 = vrot.slane %v5124_v23, 4 }
 0xabf   :  { %v13200_v45 = vadd.f32 %v5115_v7, %v5114_v50  ;;  %v3276_v10 = vsel %vm3261_vm10, %v3231_v42, 0.0  ;;  %v3237_v25 = vmul.f32 %v3067_v11, %v15126_v1  ;;  %v5074_v9 = vadd.f32 %v5073_v51, %v5072_v30 }
 0xac0   :  { %v5184_v4 = vsel %vm2601_vm12, %v5088_v53, %v5081_v14  ;;  %v5094_v17 = vrot.slane %v5093_v58, 1  ;;  %v5120_v5 = vrot.slane %v5119_v24, 2  ;;  %v5126_v8 = vadd.f32 %v5125_v15, %v5124_v23  ;;  %v3081_v31 = vpop.permute.xlu0 %3080  ;;  %v3039_v62 = vpop.permute.xlu1 %3038 }
 0xac1   :  { %v3277_v16 = vrot.slane %v3276_v10, 4  ;;  %v3318_v54 = vsel %vm3261_vm10, %v3237_v25, 0.0  ;;  %v5179_v37 = vsel %vm2605_vm15, %v13161_v43, %v13148_v20  ;;  %v3238_v52 = vmul.f32 %v15121_v41, %v3074_v19 }
 0xac2   :  { %v5095_v50 = vadd.f32 %v5094_v17, %v5093_v58  ;;  %v5121_v34 = vadd.f32 %v5120_v5, %v5119_v24  ;;  %v5127_v11 = vrot.slane %v5126_v8, 2  ;;  %v3319_v30 = vrot.slane %v3318_v54, 4 }
 0xac3   :  { %v3278_v51 = vadd.f32 %v3277_v16, %v3276_v10  ;;  %v5180_v14 = vsel %vm2607_vm3, %v13163_v27, %v5179_v37  ;;  %v3325_v63 = vsel %vm3261_vm10, %v3238_v52, 0.0  ;;  %v3232_v47 = vmul.f32 %v15118_v13, %v3032_v21 }
 0xac4   :  { %v5185_v38 = vsel %vm2603_vm14, %v5095_v50, %v5184_v4  ;;  %v5122_v33 = vrot.slane %v5121_v34, 1  ;;  %v5128_v7 = vadd.f32 %v5127_v11, %v5126_v8  ;;  %v3320_v23 = vadd.f32 %v3319_v30, %v3318_v54  ;;  %v3088_v20 = vpop.permute.xlu0 %3087  ;;  %v3046_v43 = vpop.permute.xlu1 %3045 }
 0xac5   :  { %v3279_v19 = vrot.slane %v3278_v51, 2  ;;  %v5181_v42 = vsel %vm2609_vm6, %v13167_v60, %v5180_v14  ;;  %v3326_v53 = vrot.slane %v3325_v63, 4  ;;  %v3283_v58 = vsel %vm3261_vm10, %v3232_v47, 0.0 }
 0xac6   :  { %v5123_v24 = vadd.f32 %v5122_v33, %v5121_v34  ;;  %v5129_v27 = vrot.slane %v5128_v7, 1  ;;  %v3321_v15 = vrot.slane %v3320_v23, 2  ;;  %v5182_v21 = vsel %vm2611_vm8, %v13174_v12, %v5181_v42 }
 0xac7   :  { %v3280_v10 = vadd.f32 %v3279_v19, %v3278_v51  ;;  %v5183_v25 = vsel %vm2613_vm9, %v5074_v9, %v5182_v21  ;;  %v3327_v4 = vadd.f32 %v3326_v53, %v3325_v63  ;;  %v3284_v17 = vrot.slane %v3283_v58, 4 }
 0xac8   :  { %v3322_v5 = vadd.f32 %v3321_v15, %v3320_v23  ;;  %5195 = vrot.lane.b32.xlu0 %v5183_v25, %s11489_s9  ;;  %v3239_v8 = vmul.f32 %v3081_v31, %v15123_v28  ;;  %v3233_v60 = vmul.f32 %v3039_v62, %v15120_v49  ;;  %v3240_v16 = vmul.f32 %v15125_v22, %v3088_v20  ;;  %v3095_v54 = vpop.permute.xlu0 %3094  ;;  %v3123_v37 = vpop.permute.xlu1 %3122 }
 0xac9   :  { %v3281_v52 = vrot.slane %v3280_v10, 1  ;;  %v3328_v50 = vrot.slane %v3327_v4, 2  ;;  %v3285_v34 = vadd.f32 %v3284_v17, %v3283_v58  ;;  %v3234_v12 = vmul.f32 %v15122_v44, %v3046_v43 }
 0xaca   :  { %v3323_v11 = vrot.slane %v3322_v5, 1  ;;  %v3332_v9 = vsel %vm3261_vm10, %v3239_v8, 0.0  ;;  %v3290_v30 = vsel %vm3261_vm10, %v3233_v60, 0.0  ;;  %v3339_v51 = vsel %vm3261_vm10, %v3240_v16, 0.0 }
 0xacb   :  { %v3282_v14 = vadd.f32 %v3281_v52, %v3280_v10  ;;  %v3329_v31 = vadd.f32 %v3328_v50, %v3327_v4  ;;  %v3286_v63 = vrot.slane %v3285_v34, 2  ;;  %v3333_v62 = vrot.slane %v3332_v9, 4 }
 0xacc   :  { %v3324_v47 = vadd.f32 %v3323_v11, %v3322_v5  ;;  %v3291_v33 = vrot.slane %v3290_v30, 4  ;;  %v3340_v23 = vrot.slane %v3339_v51, 4  ;;  %v3297_v20 = vsel %vm3261_vm10, %v3234_v12, 0.0  ;;  %v3130_v19 = vpop.permute.xlu0 %3129  ;;  %v3053_v42 = vpop.permute.xlu1 %3052 }
 0xacd   :  { %v13232_v43 = vsel %vm2603_vm14, %v3282_v14, %v12976_v35  ;;  %v3330_v53 = vrot.slane %v3329_v31, 1  ;;  %v3287_v58 = vadd.f32 %v3286_v63, %v3285_v34  ;;  %v3334_v15 = vadd.f32 %v3333_v62, %v3332_v9 }
 0xace   :  { %v3292_v21 = vadd.f32 %v3291_v33, %v3290_v30  ;;  %v3341_v25 = vadd.f32 %v3340_v23, %v3339_v51  ;;  %v3298_v10 = vrot.slane %v3297_v20, 4  ;;  %v5130_v4 = vadd.f32 %v5129_v27, %v5128_v7 }
 0xacf   :  { %v3331_v17 = vadd.f32 %v3330_v53, %v3329_v31  ;;  %v3288_v8 = vrot.slane %v3287_v58, 1  ;;  %v3335_v5 = vrot.slane %v3334_v15, 2  ;;  %v5186_v60 = vsel %vm2605_vm15, %v13177_v32, %v5185_v38 }
 0xad0   :  { %v3293_v16 = vrot.slane %v3292_v21, 2  ;;  %v3342_v52 = vrot.slane %v3341_v25, 2  ;;  %v3299_v50 = vadd.f32 %v3298_v10, %v3297_v20  ;;  %v5187_v35 = vsel %vm2607_vm3, %v13195_v6, %v5186_v60  ;;  %v3102_v12 = vpop.permute.xlu0 %3101  ;;  %v3137_v11 = vpop.permute.xlu1 %3136 }
 0xad1   :  { %v3525_v34 = vsel %vm2601_vm12, %v3331_v17, %v3324_v47  ;;  %v13239_v9 = vadd.f32 %v3288_v8, %v3287_v58  ;;  %v3336_v30 = vadd.f32 %v3335_v5, %v3334_v15  ;;  %v5188_v7 = vsel %vm2609_vm6, %v13200_v45, %v5187_v35 }
 0xad2   :  { %v3294_v27 = vadd.f32 %v3293_v16, %v3292_v21  ;;  %v3343_v51 = vadd.f32 %v3342_v52, %v3341_v25  ;;  %v3300_v14 = vrot.slane %v3299_v50, 2  ;;  %v5189_v32 = vsel %vm2611_vm8, %v5123_v24, %v5188_v7 }
 0xad3   :  { %v3337_v38 = vrot.slane %v3336_v30, 1  ;;  %v5190_v31 = vsel %vm2613_vm9, %v5130_v4, %v5189_v32  ;;  %v3241_v6 = vmul.f32 %v3095_v54, %v15127_v26  ;;  %v3245_v63 = vmul.f32 %v3123_v37, %v15109_v40 }
 0xad4   :  { %v3295_v62 = vrot.slane %v3294_v27, 1  ;;  %v3344_v47 = vrot.slane %v3343_v51, 1  ;;  %v3301_v33 = vadd.f32 %v3300_v14, %v3299_v50  ;;  %5197 = vrot.lane.b32.xlu1 %v5190_v31, %s11489_s9  ;;  %v3246_v23 = vmul.f32 %v15110_v36, %v3130_v19  ;;  %v3179_v45 = vpop.permute.xlu0 %3178  ;;  %v3186_v20 = vpop.permute.xlu1 %3185 }
 0xad5   :  { %v3338_v53 = vadd.f32 %v3337_v38, %v3336_v30  ;;  %v3346_v58 = vsel %vm3261_vm10, %v3241_v6, 0.0  ;;  %v3374_v24 = vsel %vm3261_vm10, %v3245_v63, 0.0  ;;  %v3235_v15 = vmul.f32 %v3053_v42, %v15124_v57 }
 0xad6   :  { %v13252_v21 = vadd.f32 %v3295_v62, %v3294_v27  ;;  %v13254_v54 = vadd.f32 %v3344_v47, %v3343_v51  ;;  %v3302_v37 = vrot.slane %v3301_v33, 1  ;;  %v3347_v25 = vrot.slane %v3346_v58, 4 }
 0xad7   :  { %v13257_v10 = vsel %vm2603_vm14, %v3338_v53, %v3525_v34  ;;  %v3375_v4 = vrot.slane %v3374_v24, 4  ;;  %v3381_v19 = vsel %vm3261_vm10, %v3246_v23, 0.0  ;;  %v3304_v17 = vsel %vm3261_vm10, %v3235_v15, 0.0  ;;  %v13261_v8 = vpop.f32.mrb[26].mxu1 }
 0xad8   :  { %v13263_v5 = vadd.f32 %v3302_v37, %v3301_v33  ;;  %v3348_v60 = vadd.f32 %v3347_v25, %v3346_v58  ;;  %v3382_v42 = vrot.slane %v3381_v19, 4  ;;  %v3305_v16 = vrot.slane %v3304_v17, 4  ;;  %v10523_v52 = vpop.f32.mrb[27].mxu1  ;;  %v3060_v50 = vpop.permute.xlu0 %3059 }
 0xad9   :  { %v3376_v35 = vadd.f32 %v3375_v4, %v3374_v24  ;;  %v3242_v30 = vmul.f32 %v15128_v46, %v3102_v12  ;;  %v3247_v34 = vmul.f32 %v3137_v11, %v15117_v2  ;;  %v3253_v7 = vmul.f32 %v3179_v45, %v15126_v1  ;;  %v3109_v27 = vpop.permute.xlu1 %3108 }
 0xada   :  { %v3349_v51 = vrot.slane %v3348_v60, 2  ;;  %v3383_v14 = vadd.f32 %v3382_v42, %v3381_v19  ;;  %v3306_v32 = vadd.f32 %v3305_v16, %v3304_v17  ;;  %v3254_v38 = vmul.f32 %v15121_v41, %v3186_v20 }
 0xadb   :  { %v3377_v31 = vrot.slane %v3376_v35, 2  ;;  %v3353_v6 = vsel %vm3261_vm10, %v3242_v30, 0.0  ;;  %v3388_v63 = vsel %vm3261_vm10, %v3247_v34, 0.0  ;;  %v3430_v62 = vsel %vm3261_vm10, %v3253_v7, 0.0  ;;  %v13272_v47 = vpop.f32.mrb[28].mxu0 }
 0xadc   :  { %v3350_v12 = vadd.f32 %v3349_v51, %v3348_v60  ;;  %v3384_v33 = vrot.slane %v3383_v14, 2  ;;  %v3307_v11 = vrot.slane %v3306_v32, 2  ;;  %v3354_v23 = vrot.slane %v3353_v6, 4  ;;  %v13274_v45 = vpop.f32.mrb[28].mxu1  ;;  %v10528_v53 = vpop.f32.mrb[29].mxu0 }
 0xadd   :  { %v3378_v58 = vadd.f32 %v3377_v31, %v3376_v35  ;;  %v3389_v24 = vrot.slane %v3388_v63, 4  ;;  %v3431_v15 = vrot.slane %v3430_v62, 4  ;;  %v3437_v20 = vsel %vm3261_vm10, %v3254_v38, 0.0  ;;  %v3144_v37 = vpop.permute.xlu0 %3143  ;;  %v10533_v25 = vpop.f32.mrb[29].mxu1 }
 0xade   :  { %v3351_v4 = vrot.slane %v3350_v12, 1  ;;  %v3385_v19 = vadd.f32 %v3384_v33, %v3383_v14  ;;  %v3308_v17 = vadd.f32 %v3307_v11, %v3306_v32  ;;  %v3355_v42 = vadd.f32 %v3354_v23, %v3353_v6  ;;  %v3193_v16 = vpop.permute.xlu1 %3192 }
 0xadf   :  { %v3379_v52 = vrot.slane %v3378_v58, 1  ;;  %v3390_v60 = vadd.f32 %v3389_v24, %v3388_v63  ;;  %v3432_v30 = vadd.f32 %v3431_v15, %v3430_v62  ;;  %v3438_v34 = vrot.slane %v3437_v20, 4  ;;  %v13277_v7 = vpop.f32.mrb[30].mxu0 }
 0xae0   :  { %v13279_v51 = vadd.f32 %v3351_v4, %v3350_v12  ;;  %v3386_v35 = vrot.slane %v3385_v19, 1  ;;  %v3309_v31 = vrot.slane %v3308_v17, 1  ;;  %v3356_v53 = vrot.slane %v3355_v42, 2  ;;  %v10538_v48 = vpop.f32.mrb[31].mxu0 }
 0xae1   :  { %v3380_v38 = vadd.f32 %v3379_v52, %v3378_v58  ;;  %v3391_v41 = vrot.slane %v3390_v60, 2  ;;  %v3433_v25 = vrot.slane %v3432_v30, 2  ;;  %v3439_v36 = vadd.f32 %v3438_v34, %v3437_v20  ;;  %v3116_v14 = vpop.permute.xlu0 %3115 }
 0xae2   :  { %v3387_v32 = vadd.f32 %v3386_v35, %v3385_v19  ;;  %v13281_v6 = vadd.f32 %v3309_v31, %v3308_v17  ;;  %v3357_v33 = vadd.f32 %v3356_v53, %v3355_v42  ;;  %v3236_v63 = vmul.f32 %v15119_v3, %v3060_v50  ;;  %v3151_v62 = vpop.permute.xlu1 %3150 }
 0xae3   :  { %v3392_v11 = vadd.f32 %v3391_v41, %v3390_v60  ;;  %v3434_v23 = vadd.f32 %v3433_v25, %v3432_v30  ;;  %v3440_v12 = vrot.slane %v3439_v36, 2  ;;  %v3243_v24 = vmul.f32 %v3109_v27, %v15129_v18 }
 0xae4   :  { %v3532_v15 = vsel %vm2601_vm12, %v3387_v32, %v3380_v38  ;;  %v3358_v48 = vrot.slane %v3357_v33, 1  ;;  %v3311_v58 = vsel %vm3261_vm10, %v3236_v63, 0.0  ;;  %v3248_v20 = vmul.f32 %v15118_v13, %v3144_v37 }
 0xae5   :  { %v3393_v4 = vrot.slane %v3392_v11, 1  ;;  %v3435_v19 = vrot.slane %v3434_v23, 1  ;;  %v3441_v17 = vadd.f32 %v3440_v12, %v3439_v36  ;;  %v3312_v52 = vrot.slane %v3311_v58, 4  ;;  %v3200_v42 = vpop.permute.xlu0 %3199 }
 0xae6   :  { %v13288_v34 = vadd.f32 %v3358_v48, %v3357_v33  ;;  %v3360_v41 = vsel %vm3261_vm10, %v3243_v24, 0.0  ;;  %v3395_v50 = vsel %vm3261_vm10, %v3248_v20, 0.0  ;;  %v3255_v27 = vmul.f32 %v3193_v16, %v15123_v28  ;;  %v3158_v60 = vpop.permute.xlu1 %3157 }
 0xae7   :  { %v3394_v30 = vadd.f32 %v3393_v4, %v3392_v11  ;;  %v3436_v35 = vadd.f32 %v3435_v19, %v3434_v23  ;;  %v3442_v31 = vrot.slane %v3441_v17, 1  ;;  %v3313_v53 = vadd.f32 %v3312_v52, %v3311_v58 }
 0xae8   :  { %v3361_v38 = vrot.slane %v3360_v41, 4  ;;  %v3396_v37 = vrot.slane %v3395_v50, 4  ;;  %v3444_v25 = vsel %vm3261_vm10, %v3255_v27, 0.0  ;;  %v3244_v36 = vmul.f32 %v15130_v0, %v3116_v14 }
 0xae9   :  { %v13296_v32 = vsel %vm2603_vm14, %v3394_v30, %v3532_v15  ;;  %v3443_v33 = vadd.f32 %v3442_v31, %v3441_v17  ;;  %v3314_v63 = vrot.slane %v3313_v53, 2  ;;  %v3445_v12 = vrot.slane %v3444_v25, 4  ;;  %v3207_v19 = vpop.permute.xlu0 %3206 }
 0xaea   :  { %v3362_v24 = vadd.f32 %v3361_v38, %v3360_v41  ;;  %v3397_v48 = vadd.f32 %v3396_v37, %v3395_v50  ;;  %v3367_v16 = vsel %vm3261_vm10, %v3244_v36, 0.0  ;;  %v3249_v11 = vmul.f32 %v3151_v62, %v15120_v49  ;;  %v3165_v27 = vpop.permute.xlu1 %3164 }
 0xaeb   :  { %v3539_v23 = vsel %vm2601_vm12, %v3443_v33, %v3436_v35  ;;  %v3315_v58 = vadd.f32 %v3314_v63, %v3313_v53  ;;  %v3446_v20 = vadd.f32 %v3445_v12, %v3444_v25  ;;  %v3368_v4 = vrot.slane %v3367_v16, 4 }
 0xaec   :  { %v3363_v52 = vrot.slane %v3362_v24, 2  ;;  %v3398_v14 = vrot.slane %v3397_v48, 2  ;;  %v3402_v15 = vsel %vm3261_vm10, %v3249_v11, 0.0  ;;  %v3256_v17 = vmul.f32 %v15125_v22, %v3200_v42 }
 0xaed   :  { %v3316_v30 = vrot.slane %v3315_v58, 1  ;;  %v3447_v41 = vrot.slane %v3446_v20, 2  ;;  %v3369_v50 = vadd.f32 %v3368_v4, %v3367_v16  ;;  %v3403_v31 = vrot.slane %v3402_v15, 4 }
 0xaee   :  { %v3364_v38 = vadd.f32 %v3363_v52, %v3362_v24  ;;  %v3399_v37 = vadd.f32 %v3398_v14, %v3397_v48  ;;  %v3451_v62 = vsel %vm3261_vm10, %v3256_v17, 0.0  ;;  %v3250_v35 = vmul.f32 %v15122_v44, %v3158_v60  ;;  %v3214_v24 = vpop.permute.xlu0 %3213  ;;  %v3172_v14 = vpop.permute.xlu1 %3171 }
 0xaef   :  { %v3448_v53 = vadd.f32 %v3447_v41, %v3446_v20  ;;  %v3370_v25 = vrot.slane %v3369_v50, 2  ;;  %v3404_v36 = vadd.f32 %v3403_v31, %v3402_v15  ;;  %v3452_v33 = vrot.slane %v3451_v62, 4 }
 0xaf0   :  { %v3365_v63 = vrot.slane %v3364_v38, 1  ;;  %v3400_v12 = vrot.slane %v3399_v37, 1  ;;  %v3409_v11 = vsel %vm3261_vm10, %v3250_v35, 0.0  ;;  %v3257_v42 = vmul.f32 %v3207_v19, %v15127_v26 }
 0xaf1   :  { %v3449_v22 = vrot.slane %v3448_v53, 1  ;;  %v3371_v28 = vadd.f32 %v3370_v25, %v3369_v50  ;;  %v3405_v16 = vrot.slane %v3404_v36, 2  ;;  %v3453_v4 = vadd.f32 %v3452_v33, %v3451_v62 }
 0xaf2   :  { %v13307_v48 = vadd.f32 %v3365_v63, %v3364_v38  ;;  %v13309_v52 = vadd.f32 %v3400_v12, %v3399_v37  ;;  %v3410_v60 = vrot.slane %v3409_v11, 4  ;;  %v3458_v20 = vsel %vm3261_vm10, %v3257_v42, 0.0 }
 0xaf3   :  { %v3450_v15 = vadd.f32 %v3449_v22, %v3448_v53  ;;  %v3372_v17 = vrot.slane %v3371_v28, 1  ;;  %v3406_v41 = vadd.f32 %v3405_v16, %v3404_v36  ;;  %v3454_v31 = vrot.slane %v3453_v4, 2 }
 0xaf4   :  { %v3411_v35 = vadd.f32 %v3410_v60, %v3409_v11  ;;  %v3459_v44 = vrot.slane %v3458_v20, 4  ;;  %v3251_v19 = vmul.f32 %v3165_v27, %v15124_v57  ;;  %v3317_v50 = vadd.f32 %v3316_v30, %v3315_v58  ;;  %v3221_v58 = vpop.permute.xlu0 %3220 }
 0xaf5   :  { %v13314_v62 = vsel %vm2603_vm14, %v3450_v15, %v3539_v23  ;;  %v3407_v38 = vrot.slane %v3406_v41, 1  ;;  %v3455_v25 = vadd.f32 %v3454_v31, %v3453_v4  ;;  %v3520_v37 = vsel %vm2605_vm15, %v13239_v9, %v13232_v43 }
 0xaf6   :  { %v3412_v33 = vrot.slane %v3411_v35, 2  ;;  %v3460_v63 = vadd.f32 %v3459_v44, %v3458_v20  ;;  %v3416_v22 = vsel %vm3261_vm10, %v3251_v19, 0.0  ;;  %v3521_v53 = vsel %vm2607_vm3, %v13252_v21, %v3520_v37  ;;  %v3228_v44 = vpop.permute.xlu1 %3227 }
 0xaf7   :  { %v3408_v36 = vadd.f32 %v3407_v38, %v3406_v41  ;;  %v3456_v12 = vrot.slane %v3455_v25, 1  ;;  %v3417_v27 = vrot.slane %v3416_v22, 4  ;;  %v3522_v23 = vsel %vm2609_vm6, %v13263_v5, %v3521_v53 }
 0xaf8   :  { %v3413_v30 = vadd.f32 %v3412_v33, %v3411_v35  ;;  %v3461_v11 = vrot.slane %v3460_v63, 2  ;;  %v3523_v42 = vsel %vm2611_vm8, %v13281_v6, %v3522_v23  ;;  %v3258_v43 = vmul.f32 %v15128_v46, %v3214_v24 }
 0xaf9   :  { %v3457_v9 = vadd.f32 %v3456_v12, %v3455_v25  ;;  %v3418_v16 = vadd.f32 %v3417_v27, %v3416_v22  ;;  %v3524_v4 = vsel %vm2613_vm9, %v3317_v50, %v3523_v42  ;;  %v3252_v21 = vmul.f32 %v15119_v3, %v3172_v14 }
 0xafa   :  { %v3414_v60 = vrot.slane %v3413_v30, 1  ;;  %v3462_v20 = vadd.f32 %v3461_v11, %v3460_v63  ;;  %3546 = vrot.lane.b32.xlu0 %v3524_v4, %s11486_s17  ;;  %v3465_v5 = vsel %vm3261_vm10, %v3258_v43, 0.0  ;;  %v3259_v15 = vmul.f32 %v3221_v58, %v15129_v18 }
 0xafb   :  { %v3419_v41 = vrot.slane %v3418_v16, 2  ;;  %v3466_v31 = vrot.slane %v3465_v5, 4  ;;  %v3423_v6 = vsel %vm3261_vm10, %v3252_v21, 0.0  ;;  %v3260_v24 = vmul.f32 %v15130_v0, %v3228_v44 }
 0xafc   :  { %v3415_v35 = vadd.f32 %v3414_v60, %v3413_v30  ;;  %v3463_v19 = vrot.slane %v3462_v20, 1  ;;  %v3424_v38 = vrot.slane %v3423_v6, 4  ;;  %v3472_v50 = vsel %vm3261_vm10, %v3259_v15, 0.0 }
 0xafd   :  { %v3420_v14 = vadd.f32 %v3419_v41, %v3418_v16  ;;  %v3467_v25 = vadd.f32 %v3466_v31, %v3465_v5  ;;  %v3473_v37 = vrot.slane %v3472_v50, 4  ;;  %v3479_v33 = vsel %vm3261_vm10, %v3260_v24, 0.0 }
 0xafe   :  { %v3464_v63 = vadd.f32 %v3463_v19, %v3462_v20  ;;  %v3425_v22 = vadd.f32 %v3424_v38, %v3423_v6  ;;  %v3480_v53 = vrot.slane %v3479_v33, 4  ;;  %v3373_v12 = vadd.f32 %v3372_v17, %v3371_v28 }
 0xaff   :  { %v3421_v27 = vrot.slane %v3420_v14, 1  ;;  %v3468_v23 = vrot.slane %v3467_v25, 2  ;;  %v3474_v58 = vadd.f32 %v3473_v37, %v3472_v50  ;;  %v3527_v30 = vsel %vm2605_vm15, %v13254_v54, %v13257_v10 }
 0xb00   :  { %v3426_v11 = vrot.slane %v3425_v22, 2  ;;  %v3481_v42 = vadd.f32 %v3480_v53, %v3479_v33  ;;  %v3528_v43 = vsel %vm2607_vm3, %v13279_v51, %v3527_v30  ;;  %v3534_v44 = vsel %vm2605_vm15, %v13309_v52, %v13296_v32 }
 0xb01   :  { %v3422_v16 = vadd.f32 %v3421_v27, %v3420_v14  ;;  %v3469_v4 = vadd.f32 %v3468_v23, %v3467_v25  ;;  %v3475_v21 = vrot.slane %v3474_v58, 2  ;;  %v3529_v28 = vsel %vm2609_vm6, %v13288_v34, %v3528_v43 }
 0xb02   :  { %v3427_v17 = vadd.f32 %v3426_v11, %v3425_v22  ;;  %v3482_v60 = vrot.slane %v3481_v42, 2  ;;  %v3530_v54 = vsel %vm2611_vm8, %v13307_v48, %v3529_v28  ;;  %v3535_v10 = vsel %vm2607_vm3, %v3408_v36, %v3534_v44 }
 0xb03   :  { %v3470_v20 = vrot.slane %v3469_v4, 1  ;;  %v3476_v5 = vadd.f32 %v3475_v21, %v3474_v58  ;;  %v3531_v51 = vsel %vm2613_vm9, %v3373_v12, %v3530_v54  ;;  %v3536_v15 = vsel %vm2609_vm6, %v3415_v35, %v3535_v10  ;;  %v15133_v54 = vld [vmem:[#allocation74_spill] sm:$0xff] }
 0xb04   :  { %v3428_v32 = vrot.slane %v3427_v17, 1  ;;  %v3483_v52 = vadd.f32 %v3482_v60, %v3481_v42  ;;  %3548 = vrot.lane.b32.xlu1 %v3531_v51, %s11486_s17  ;;  %v3537_v41 = vsel %vm2611_vm8, %v3422_v16, %v3536_v15  ;;  %v3541_v34 = vsel %vm2605_vm15, %v3457_v9, %v13314_v62  ;;  %v15134_v15 = vld [vmem:[#allocation75_spill] sm:$0xff] }
 0xb05   :  { %v3471_v31 = vadd.f32 %v3470_v20, %v3469_v4  ;;  %v3477_v6 = vrot.slane %v3476_v5, 1  ;;  %v3542_v48 = vsel %vm2607_vm3, %v3464_v63, %v3541_v34  ;;  %v15132_v4 = vld [vmem:[#allocation73_spill] sm:$0xff] }
 0xb06   :  { %v3484_v36 = vrot.slane %v3483_v52, 1  ;;  %v3429_v24 = vadd.f32 %v3428_v32, %v3427_v17 }
 0xb07   :  { %v3478_v19 = vadd.f32 %v3477_v6, %v3476_v5  ;;  %v3543_v38 = vsel %vm2609_vm6, %v3471_v31, %v3542_v48 }
 0xb08   :  { %v3538_v35 = vsel %vm2613_vm9, %v3429_v24, %v3537_v41  ;;  %v3485_v50 = vadd.f32 %v3484_v36, %v3483_v52 }
 0xb09   :  { %3550 = vrot.lane.b32.xlu0 %v3538_v35, %s11486_s17  ;;  %v3544_v14 = vsel %vm2611_vm8, %v3478_v19, %v3543_v38 }
 0xb0a   :  { %v3545_v25 = vsel %vm2613_vm9, %v3485_v50, %v3544_v14 }
 0xb0b   :  { %3552 = vrot.lane.b32.xlu1 %v3545_v25, %s11486_s17 }
 0xb13   :  { %v5192_v62 = vpop.permute.xlu0 %5191 }
 0xb14   :  { %v5203_v9 = vadd.f32 %v5192_v62, %v13261_v8 }
 0xb16   :  { %5211 = vrot.lane.b32.xlu0 %v5203_v9, %s11476_s6 }
 0xb2f   :  { %v5194_v37 = vpop.permute.xlu1 %5193 }
 0xb30   :  { %v5204_v33 = vadd.f32 %v5194_v37, %v13272_v47  ;;  %v15131_v47 = vld [vmem:[#allocation72_spill] sm:$0xff] }
 0xb32   :  { %5213 = vrot.lane.b32.xlu1 %v5204_v33, %s11476_s6 }
 0xb3a   :  { %v5196_v63 = vpop.permute.xlu0 %5195 }
 0xb3b   :  { %v5205_v22 = vadd.f32 %v5196_v63, %v13274_v45 }
 0xb3d   :  { %5215 = vrot.lane.b32.xlu0 %v5205_v22, %s11476_s6  ;;  %v5305_v22 = vld [vmem:[#allocation20] sm:$0xff] }
 0xb46   :  { %v5198_v53 = vpop.permute.xlu1 %5197 }
 0xb47   :  { %v5206_v12 = vadd.f32 %v5198_v53, %v13277_v7  ;;  %v5306_v53 = vld [vmem:[#allocation20 + $0x8] sm:$0xff] }
 0xb49   :  { %5217 = vrot.lane.b32.xlu1 %v5206_v12, %s11476_s6  ;;  %v5307_v12 = vld [vmem:[#allocation20 + $0x10] sm:$0xff] }
 0xb6c   :  { %v3547_v27 = vpop.permute.xlu0 %3546 }
 0xb6d   :  { %v3558_v8 = vadd.f32 %v3547_v27, %v12835_v39  ;;  %v10743_v27 = vpack.c.bf16 %v5306_v53, %v5305_v22 }
 0xb6f   :  { %10744 = vmatprep.subr.bf16.mxu1 %v10743_v27 }
 0xb70   :  { %10746 = vmatpush3.bf16.msra.mxu1 %v10743_v27 }
 0xb76   :  { %v3549_v45 = vpop.permute.xlu1 %3548 }
 0xb77   :  { %v3559_v44 = vadd.f32 %v3549_v45, %v12849_v55 }
 0xb7b   :  { %v3551_v23 = vpop.permute.xlu0 %3550 }
 0xb7c   :  { %v3560_v39 = vadd.f32 %v3551_v23, %v12864_v59  ;;  %v5308_v23 = vld [vmem:[#allocation20 + $0x18] sm:$0xff] }
 0xb7d   :  { %v3553_v43 = vpop.permute.xlu1 %3552 }
 0xb7e   :  { %v3561_v55 = vadd.f32 %v3553_v43, %v12892_v61 }
 0xb88   :  { %v5212_v58 = vpop.permute.xlu0 %5211 }
 0xb89   :  { %v5223_v30 = vsel %vm1647_vm13, %v3558_v8, %v5212_v58  ;;  %v10747_v8 = vpack.c.bf16 %v5308_v23, %v5307_v12  ;;  %v5417_v58 = vld [vmem:[#allocation23] sm:$0xff] }
 0xb8a   :  { %v5227_v11 = vadd.f32 %v5223_v30, %v15131_v47  ;;  %v5418_v30 = vld [vmem:[#allocation23 + $0x8] sm:$0xff]  ;;  %v10147_v23 = vld [vmem:[#allocation25] ss:$0 sm:$0xff] }
 0xb8b   :  { %10748 = vmatprep.subr.bf16.mxu1 %v10747_v8  ;;  %v10751_v47 = vpack.c.bf16 %v5418_v30, %v5417_v58 }
 0xb8c   :  { %v5233_v42 = vsel %vm321_vm0, %v5227_v11, 0.0  ;;  %10750 = vmatpush3.bf16.msra.mxu1 %v10747_v8 }
 0xb8d   :  { %5234 = vadd.xlane.f32.xlu0 %v5233_v42  ;;  %10752 = vmatprep.subr.bf16.mxu0 %v10751_v47 }
 0xb8e   :  { %10754 = vmatpush3.bf16.msra.mxu0 %v10751_v47 }
 0xba4   :  { %v5214_v16 = vpop.permute.xlu1 %5213 }
 0xba5   :  { %v5224_v7 = vsel %vm1647_vm13, %v3559_v44, %v5214_v16  ;;  %v10140_v44 = vld [vmem:[%s15135_s8] ss:$0 sm:$0xff] }
 0xba6   :  { %v5228_v21 = vadd.f32 %v5224_v7, %v15132_v4  ;;  %v10141_v7 = vld [vmem:[%s15136_s16] ss:$0 sm:$0xff] }
 0xba8   :  { %v5236_v28 = vsel %vm321_vm0, %v5228_v21, 0.0 }
 0xba9   :  { %5237 = vadd.xlane.f32.xlu1 %v5236_v28 }
 0xbaf   :  { %v5216_v17 = vpop.permute.xlu0 %5215 }
 0xbb0   :  { %v5225_v60 = vsel %vm1647_vm13, %v3560_v39, %v5216_v17 }
 0xbb1   :  { %v5229_v10 = vadd.f32 %v5225_v60, %v15133_v54 }
 0xbb3   :  { %v5239_v20 = vsel %vm321_vm0, %v5229_v10, 0.0 }
 0xbb4   :  { %5240 = vadd.xlane.f32.xlu0 %v5239_v20 }
 0xbbb   :  { %v5218_v5 = vpop.permute.xlu1 %5217 }
 0xbbc   :  { %v5226_v51 = vsel %vm1647_vm13, %v3561_v55, %v5218_v5 }
 0xbbd   :  { %v5230_v32 = vadd.f32 %v5226_v51, %v15134_v15 }
 0xbbf   :  { %v5242_v52 = vsel %vm321_vm0, %v5230_v32, 0.0 }
 0xbc0   :  { %5243 = vadd.xlane.f32.xlu0 %v5242_v52 }
 0xc1a   :  { %v5235_v41 = vpop.xlane.xlu0 %5234 }
 0xc1b   :  { %v5245_v59 = vmul.f32 0.03125, %v5235_v41 }
 0xc1d   :  { %v5249_v34 = vsub.f32 %v5227_v11, %v5245_v59 }
 0xc1f   :  { %v5253_v31 = vmul.f32 %v5249_v34, %v5249_v34 }
 0xc21   :  { %v5257_v6 = vsel %vm321_vm0, %v5253_v31, 0.0 }
 0xc22   :  { %5258 = vadd.xlane.f32.xlu1 %v5257_v6 }
 0xc36   :  { %v5238_v48 = vpop.xlane.xlu1 %5237 }
 0xc37   :  { %v5246_v36 = vmul.f32 0.03125, %v5238_v48 }
 0xc39   :  { %v5250_v24 = vsub.f32 %v5228_v21, %v5246_v36 }
 0xc3b   :  { %v5254_v19 = vmul.f32 %v5250_v24, %v5250_v24 }
 0xc3d   :  { %v5260_v61 = vsel %vm321_vm0, %v5254_v19, 0.0 }
 0xc3e   :  { %5261 = vadd.xlane.f32.xlu0 %v5260_v61  ;;  %v5420_v61 = vld [vmem:[#allocation23 + $0x18] sm:$0xff] }
 0xc41   :  { %v5241_v38 = vpop.xlane.xlu0 %5240 }
 0xc42   :  { %v5247_v35 = vmul.f32 0.03125, %v5241_v38 }
 0xc44   :  { %v5251_v50 = vsub.f32 %v5229_v10, %v5247_v35  ;;  %v10142_v35 = vld [vmem:[#allocation22] ss:$0 sm:$0xff] }
 0xc46   :  { %v5255_v14 = vmul.f32 %v5251_v50, %v5251_v50 }
 0xc48   :  { %v5263_v25 = vsel %vm321_vm0, %v5255_v14, 0.0 }
 0xc49   :  { %5264 = vadd.xlane.f32.xlu1 %v5263_v25 }
 0xc4d   :  { %v5244_v62 = vpop.xlane.xlu0 %5243 }
 0xc4e   :  { %v5248_v9 = vmul.f32 0.03125, %v5244_v62 }
 0xc50   :  { %v5252_v37 = vsub.f32 %v5230_v32, %v5248_v9 }
 0xc52   :  { %v5256_v33 = vmul.f32 %v5252_v37, %v5252_v37 }
 0xc54   :  { %v5266_v63 = vsel %vm321_vm0, %v5256_v33, 0.0 }
 0xc55   :  { %5267 = vadd.xlane.f32.xlu0 %v5266_v63 }
 0xcaf   :  { %v5259_v11 = vpop.xlane.xlu1 %5258 }
 0xcb0   :  { %v5269_v42 = vmul.f32 0.03125, %v5259_v11 }
 0xcb2   :  { %v5273_v45 = vadd.f32 1e-08, %v5269_v42 }
 0xcb4   :  { %10907 = vrsqrt.f32 %v5273_v45  ;;  %v15137_v45 = vld [vmem:[#allocation65_spill] sm:$0xff] }
 0xcbe   :  { %v10908_v43 = vpop.eup %10907 }
 0xcbf   :  { %v5281_v16 = vmul.f32 %v10908_v43, %v5249_v34 }
 0xcc1   :  { %v5291_v4 = vmul.f32 %v10140_v44, %v5281_v16 }
 0xcc3   :  { %v5301_v21 = vadd.f32 %v10141_v7, %v5291_v4 }
 0xcc5   :  { %10547 = vmatprep.mubr.msk.f32.mxu1 %vm321_vm0, %v5301_v21 }
 0xccb   :  { %v5262_v28 = vpop.xlane.xlu0 %5261 }
 0xccc   :  { %v5270_v39 = vmul.f32 0.03125, %v5262_v28 }
 0xcce   :  { %v5274_v17 = vadd.f32 1e-08, %v5270_v39 }
 0xcd0   :  { %10909 = vrsqrt.f32 %v5274_v17 }
 0xcd6   :  { %v5265_v60 = vpop.xlane.xlu1 %5264 }
 0xcd7   :  { %v5271_v54 = vmul.f32 0.03125, %v5265_v60 }
 0xcd9   :  { %v5275_v10 = vadd.f32 1e-08, %v5271_v54 }
 0xcda   :  { %v10910_v20 = vpop.eup %10909 }
 0xcdb   :  { %v5282_v55 = vmul.f32 %v10910_v20, %v5250_v24  ;;  %10911 = vrsqrt.f32 %v5275_v10  ;;  %v5419_v24 = vld [vmem:[#allocation23 + $0x10] sm:$0xff] }
 0xcdc   :  { %v10755_v38 = vpack.c.bf16 %v5420_v61, %v5419_v24 }
 0xcdd   :  { %v5292_v5 = vmul.f32 %v10140_v44, %v5282_v55 }
 0xcde   :  { %10756 = vmatprep.subr.bf16.mxu0 %v10755_v38 }
 0xcdf   :  { %v5302_v51 = vadd.f32 %v10141_v7, %v5292_v5  ;;  %10758 = vmatpush3.bf16.msra.mxu0 %v10755_v38 }
 0xce0   :  { %10587 = vmatprep.subr.mxu0 %v15080_v29 }
 0xce1   :  { %10548 = vmatmul.mubr.msk.f32.vlgmr.msra.gmra.mrb[30].mxu1 %vm321_vm0, %v5302_v51 }
 0xce2   :  { %v5268_v15 = vpop.xlane.xlu0 %5267 }
 0xce3   :  { %v5272_v32 = vmul.f32 0.03125, %v5268_v15 }
 0xce5   :  { %v10912_v52 = vpop.eup %10911  ;;  %v5276_v41 = vadd.f32 1e-08, %v5272_v32 }
 0xce6   :  { %v5283_v59 = vmul.f32 %v10912_v52, %v5251_v50 }
 0xce7   :  { %10913 = vrsqrt.f32 %v5276_v41 }
 0xce8   :  { %v5293_v34 = vmul.f32 %v10140_v44, %v5283_v59 }
 0xcea   :  { %v5303_v31 = vadd.f32 %v10141_v7, %v5293_v34 }
 0xcec   :  { %10550 = vmatprep.mubr.msk.f32.mxu1 %vm321_vm0, %v5303_v31 }
 0xcf1   :  { %v10914_v6 = vpop.eup %10913 }
 0xcf2   :  { %v5284_v48 = vmul.f32 %v10914_v6, %v5252_v37 }
 0xcf4   :  { %v5294_v36 = vmul.f32 %v10140_v44, %v5284_v48  ;;  %v15138_v44 = vld [vmem:[#allocation64_spill] sm:$0xff] }
 0xcf6   :  { %v5304_v19 = vadd.f32 %v10141_v7, %v5294_v36 }
 0xcf8   :  { %10551 = vmatmul.mubr.msk.f32.gmra.mrb[32].mxu1 %vm321_vm0, %v5304_v19 }
 0xdb4   :  { %v10549_v50 = vpop.f32.mrb[30].mxu1 }
 0xdb5   :  { %v5400_v14 = vadd.f32 %v10549_v50, %v10142_v35  ;;  %v5394_v25 = vpop.f32.mrb[31].mxu1 }
 0xdb6   :  { %v5395_v62 = vadd.f32 %v10142_v35, %v5394_v25 }
 0xdb7   :  { %v5414_v33 = vmax.f32 %v5400_v14, 0.0 }
 0xdb8   :  { %v5413_v9 = vmax.f32 %v5395_v62, 0.0 }
 0xdba   :  { %10561 = vmatprep.mubr.msk.f32.mxu0 %vm321_vm0, %v5413_v9  ;;  %v5610_v9 = vld [vmem:[#allocation17 + $0x20] sm:$0xff] }
 0xdbb   :  { %10562 = vmatmul.mubr.msk.f32.vlgmr.msra.gmra.mrb[32].mxu0 %vm321_vm0, %v5414_v33  ;;  %v5611_v33 = vld [vmem:[#allocation17 + $0x28] sm:$0xff] }
 0xdcb   :  { %v10552_v37 = vpop.f32.mrb[32].mxu1 }
 0xdcc   :  { %v5410_v63 = vadd.f32 %v10552_v37, %v10142_v35  ;;  %v5404_v22 = vpop.f32.mrb[33].mxu1  ;;  %v5612_v37 = vld [vmem:[#allocation17 + $0x30] sm:$0xff] }
 0xdcd   :  { %v5405_v53 = vadd.f32 %v10142_v35, %v5404_v22  ;;  %v5613_v22 = vld [vmem:[#allocation17 + $0x38] sm:$0xff] }
 0xdce   :  { %v5416_v27 = vmax.f32 %v5410_v63, 0.0  ;;  %v10759_v63 = vpack.c.bf16 %v5611_v33, %v5610_v9 }
 0xdcf   :  { %v5415_v12 = vmax.f32 %v5405_v53, 0.0  ;;  %v10763_v53 = vpack.c.bf16 %v5613_v22, %v5612_v37 }
 0xdd0   :  { %10760 = vmatprep.subr.bf16.mxu1 %v10759_v63 }
 0xdd1   :  { %10564 = vmatprep.mubr.msk.f32.mxu0 %vm321_vm0, %v5415_v12  ;;  %10762 = vmatpush3.bf16.msra.mxu1 %v10759_v63 }
 0xdd2   :  { %10565 = vmatmul.mubr.msk.f32.gmra.mrb[34].mxu0 %vm321_vm0, %v5416_v27  ;;  %10764 = vmatprep.subr.bf16.mxu1 %v10763_v53 }
 0xdd3   :  { %10589 = vmatprep.mubr.msk.f32.mxu0 %vm11481_vm1, %v15080_v29 }
 0xdd5   :  { %10766 = vmatpush3.bf16.msra.mxu1 %v10763_v53 }
 0xdd6   :  { %10607 = vmatprep.subr.mxu1 %v15080_v29 }
 0xe8e   :  { %v10563_v8 = vpop.f32.mrb[32].mxu0 }
 0xe8f   :  { %v5512_v58 = vadd.f32 %v10563_v8, %v10147_v23  ;;  %v5506_v30 = vpop.f32.mrb[33].mxu0 }
 0xe90   :  { %v5507_v47 = vadd.f32 %v10147_v23, %v5506_v30 }
 0xe91   :  { %v5526_v11 = vadd.f32 %v5512_v58, %v5302_v51 }
 0xe92   :  { %v5525_v42 = vadd.f32 %v5507_v47, %v5301_v21 }
 0xe93   :  { %v13404_v43 = vmul.f32 %v5526_v11, %v15137_v45  ;;  %v10154_v11 = vld [vmem:[%s15028_s12 + $0x1] ss:$0 sm:$0xff] }
 0xe94   :  { %v13407_v16 = vmul.f32 %v5525_v42, %v15138_v44 }
 0xe95   :  { %v5540_v7 = vsel %vm321_vm0, %v13404_v43, 0.0 }
 0xe96   :  { %5541 = vadd.xlane.f32.xlu0 %v5540_v7  ;;  %v5537_v4 = vsel %vm321_vm0, %v13407_v16, 0.0 }
 0xe97   :  { %5538 = vadd.xlane.f32.xlu1 %v5537_v4 }
 0xea5   :  { %v10566_v28 = vpop.f32.mrb[34].mxu0 }
 0xea6   :  { %v5522_v39 = vadd.f32 %v10566_v28, %v10147_v23  ;;  %v5516_v17 = vpop.f32.mrb[35].mxu0  ;;  %v10155_v28 = vld [vmem:[%s15030_s10 + $0x1] ss:$0 sm:$0xff] }
 0xea7   :  { %v5517_v60 = vadd.f32 %v10147_v23, %v5516_v17 }
 0xea8   :  { %v5528_v54 = vadd.f32 %v5522_v39, %v5304_v19 }
 0xea9   :  { %v5527_v21 = vadd.f32 %v5517_v60, %v5303_v31 }
 0xeaa   :  { %v13414_v10 = vmul.f32 %v5528_v54, %v15137_v45 }
 0xeab   :  { %v13417_v20 = vmul.f32 %v5527_v21, %v15138_v44 }
 0xeac   :  { %v5546_v55 = vsel %vm321_vm0, %v13414_v10, 0.0 }
 0xead   :  { %5547 = vadd.xlane.f32.xlu0 %v5546_v55  ;;  %v5543_v5 = vsel %vm321_vm0, %v13417_v20, 0.0 }
 0xeae   :  { %5544 = vadd.xlane.f32.xlu1 %v5543_v5 }
 0xf23   :  { %v5542_v51 = vpop.xlane.xlu0 %5541 }
 0xf24   :  { %v5550_v15 = vmul.f32 0.03125, %v5542_v51  ;;  %v5539_v32 = vpop.xlane.xlu1 %5538 }
 0xf25   :  { %v5549_v52 = vmul.f32 0.03125, %v5539_v32 }
 0xf26   :  { %v5554_v41 = vsub.f32 %v13404_v43, %v5550_v15 }
 0xf27   :  { %v5553_v59 = vsub.f32 %v13407_v16, %v5549_v52 }
 0xf28   :  { %v5558_v34 = vmul.f32 %v5554_v41, %v5554_v41 }
 0xf29   :  { %v5557_v31 = vmul.f32 %v5553_v59, %v5553_v59 }
 0xf2a   :  { %v5564_v6 = vsel %vm321_vm0, %v5558_v34, 0.0 }
 0xf2b   :  { %5565 = vadd.xlane.f32.xlu0 %v5564_v6  ;;  %v5561_v48 = vsel %vm321_vm0, %v5557_v31, 0.0 }
 0xf2c   :  { %5562 = vadd.xlane.f32.xlu1 %v5561_v48 }
 0xf3a   :  { %v5548_v36 = vpop.xlane.xlu0 %5547 }
 0xf3b   :  { %v5552_v19 = vmul.f32 0.03125, %v5548_v36  ;;  %v5545_v24 = vpop.xlane.xlu1 %5544 }
 0xf3c   :  { %v5551_v61 = vmul.f32 0.03125, %v5545_v24 }
 0xf3d   :  { %v5556_v38 = vsub.f32 %v13414_v10, %v5552_v19 }
 0xf3e   :  { %v5555_v35 = vsub.f32 %v13417_v20, %v5551_v61 }
 0xf3f   :  { %v5560_v50 = vmul.f32 %v5556_v38, %v5556_v38 }
 0xf40   :  { %v5559_v14 = vmul.f32 %v5555_v35, %v5555_v35 }
 0xf41   :  { %v5570_v25 = vsel %vm321_vm0, %v5560_v50, 0.0 }
 0xf42   :  { %5571 = vadd.xlane.f32.xlu0 %v5570_v25  ;;  %v5567_v62 = vsel %vm321_vm0, %v5559_v14, 0.0 }
 0xf43   :  { %5568 = vadd.xlane.f32.xlu1 %v5567_v62 }
 0xfb8   :  { %v5566_v12 = vpop.xlane.xlu0 %5565 }
 0xfb9   :  { %v5574_v27 = vmul.f32 0.03125, %v5566_v12  ;;  %v5563_v23 = vpop.xlane.xlu1 %5562  ;;  %v15144_v12 = vld [vmem:[#allocation86_spill] sm:$0xff] }
 0xfba   :  { %v5573_v8 = vmul.f32 0.03125, %v5563_v23 }
 0xfbb   :  { %v5578_v58 = vadd.f32 1e-08, %v5574_v27 }
 0xfbc   :  { %v5577_v30 = vadd.f32 1e-08, %v5573_v8 }
 0xfbd   :  { %10915 = vrsqrt.f32 %v5578_v58 }
 0xfbe   :  { %10917 = vrsqrt.f32 %v5577_v30 }
 0xfc7   :  { %v10916_v47 = vpop.eup %10915 }
 0xfc8   :  { %v10918_v42 = vpop.eup %10917  ;;  %v5586_v7 = vmul.f32 %v10916_v47, %v5554_v41 }
 0xfc9   :  { %v5585_v4 = vmul.f32 %v10918_v42, %v5553_v59 }
 0xfca   :  { %v5596_v39 = vmul.f32 %v10154_v11, %v5586_v7 }
 0xfcb   :  { %v5595_v17 = vmul.f32 %v10154_v11, %v5585_v4 }
 0xfcc   :  { %v13436_v54 = vadd.f32 %v10155_v28, %v5596_v39 }
 0xfcd   :  { %v13434_v60 = vadd.f32 %v10155_v28, %v5595_v17 }
 0xfce   :  { %15140 = vst [vmem:[#allocation110_spill] sm:$0xff] %v13436_v54 }
 0xfcf   :  { %15139 = vst [vmem:[#allocation106_spill] sm:$0xff] %v13434_v60  ;;  %v5572_v21 = vpop.xlane.xlu0 %5571  ;;  %10575 = vmatprep.mubr.msk.f32.mxu1 %vm321_vm0, %v13434_v60 }
 0xfd0   :  { %v5576_v55 = vmul.f32 0.03125, %v5572_v21  ;;  %v5569_v5 = vpop.xlane.xlu1 %5568  ;;  %10576 = vmatmul.mubr.msk.f32.vlgmr.msra.gmra.mrb[34].mxu1 %vm321_vm0, %v13436_v54 }
 0xfd1   :  { %v5575_v51 = vmul.f32 0.03125, %v5569_v5 }
 0xfd2   :  { %v5580_v15 = vadd.f32 1e-08, %v5576_v55 }
 0xfd3   :  { %v5579_v32 = vadd.f32 1e-08, %v5575_v51 }
 0xfd4   :  { %10919 = vrsqrt.f32 %v5580_v15 }
 0xfd5   :  { %10921 = vrsqrt.f32 %v5579_v32 }
 0xfde   :  { %v10920_v52 = vpop.eup %10919 }
 0xfdf   :  { %v10922_v41 = vpop.eup %10921  ;;  %v5588_v59 = vmul.f32 %v10920_v52, %v5556_v38 }
 0xfe0   :  { %v5587_v34 = vmul.f32 %v10922_v41, %v5555_v35  ;;  %v10164_v35 = vld [vmem:[#allocation19 + $0x1] ss:$0 sm:$0xff] }
 0xfe1   :  { %v5598_v31 = vmul.f32 %v10154_v11, %v5588_v59 }
 0xfe2   :  { %v5597_v6 = vmul.f32 %v10154_v11, %v5587_v34 }
 0xfe3   :  { %v13444_v36 = vadd.f32 %v10155_v28, %v5598_v31 }
 0xfe4   :  { %v13442_v48 = vadd.f32 %v10155_v28, %v5597_v6 }
 0xfe5   :  { %15142 = vst [vmem:[#allocation107_spill] sm:$0xff] %v13444_v36 }
 0xfe6   :  { %15141 = vst [vmem:[#allocation97_spill] sm:$0xff] %v13442_v48  ;;  %10578 = vmatprep.mubr.msk.f32.mxu1 %vm321_vm0, %v13442_v48 }
 0xfe7   :  { %10579 = vmatmul.mubr.msk.f32.gmra.mrb[36].mxu1 %vm321_vm0, %v13444_v36 }
 0xfe8   :  { %10581 = vmatprep.mubr.msk.f32.mxu1 %vm321_vm0, %v13407_v16 }
 0xfeb   :  { %10582 = vmatmul.mubr.msk.f32.gmra.mrb[38].mxu1 %vm321_vm0, %v13404_v43  ;;  %v15143_v43 = vld [vmem:[#allocation81_spill] sm:$0xff] }
 0xfec   :  { %10584 = vmatprep.mubr.msk.f32.mxu1 %vm321_vm0, %v13417_v20 }
 0xfef   :  { %10585 = vmatmul.mubr.msk.f32.gmra.mrb[40].mxu1 %vm321_vm0, %v13414_v10 }
 0xff0   :  { %10609 = vmatprep.mubr.msk.f32.mxu1 %vm11481_vm1, %v15080_v29 }
0x10a3   :  { %v10577_v19 = vpop.f32.mrb[34].mxu1 }
0x10a4   :  { %v5704_v24 = vpop.f32.mrb[35].mxu1  ;;  %v13496_v23 = vadd.f32 %v10577_v19, %v10164_v35 }
0x10a5   :  { %v13492_v53 = vadd.f32 %v10164_v35, %v5704_v24 }
0x10a6   :  { %v6135_v58 = vrot.slane %v13496_v23, %v15144_v12  ;;  %v6128_v19 = vcombine.high %v13496_v23, %v13496_v23 }
0x10a7   :  { %v6086_v27 = vrot.slane %v13492_v53, %v15144_v12  ;;  %v6079_v42 = vcombine.high %v13492_v53, %v13492_v53 }
0x10a8   :  { %v6151_v28 = vrot.slane %v6135_v58, %v15144_v12  ;;  %v6143_v15 = vcombine.high %v6135_v58, %v6135_v58 }
0x10a9   :  { %v6102_v8 = vrot.slane %v6086_v27, %v15144_v12  ;;  %v6094_v30 = vcombine.high %v6086_v27, %v6086_v27  ;;  %v6093_v17 = vrot.slane %v6079_v42, %v15144_v12 }
0x10aa   :  { %v6310_v5 = vrot.slane %v6151_v28, %v15108_v56  ;;  %v6165_v6 = vrot.slane %v6143_v15, %v15144_v12  ;;  %v6173_v58 = vcombine.high %v6151_v28, %v6151_v28 }
0x10ab   :  { %v6278_v47 = vrot.slane %v6102_v8, %v15108_v56  ;;  %v6124_v11 = vcombine.high %v6102_v8, %v6102_v8  ;;  %v6116_v39 = vrot.slane %v6094_v30, %v15144_v12  ;;  %v6109_v32 = vrot.slane %v6093_v17, %v15144_v12 }
0x10ac   :  { %v6095_v52 = vcombine.high %v6093_v17, %v6093_v17  ;;  %v13521_v59 = vmul.f32 %v6310_v5, %v15126_v1  ;;  %v6314_v8 = vrot.slane %v6165_v6, %v15108_v56  ;;  %v15146_v17 = vld [vmem:[#allocation87_spill] sm:$0xff]  ;;  %v6318_v5 = vrot.slane %v6173_v58, %v15108_v56 }
0x10ad   :  { %v13505_v7 = vmul.f32 %v6278_v47, %v15109_v40  ;;  %v6286_v4 = vrot.slane %v6124_v11, %v15108_v56  ;;  %v6126_v51 = vcombine.high %v6116_v39, %v6116_v39  ;;  %v6282_v31 = vrot.slane %v6116_v39, %v15108_v56 }
0x10ae   :  { %v6294_v24 = vrot.slane %v6109_v32, %v15108_v56  ;;  %v6142_v47 = vrot.slane %v6128_v19, %v15144_v12  ;;  %v6125_v39 = vcombine.high %v6109_v32, %v6109_v32 }
0x10af   :  { %v6467_v21 = vsel %vm1647_vm13, %v13505_v7, 0.0  ;;  %v13514_v55 = vmul.f32 %v6286_v4, %v15117_v2  ;;  %v6290_v34 = vrot.slane %v6126_v51, %v15108_v56  ;;  %v6175_v51 = vcombine.high %v6165_v6, %v6165_v6  ;;  %v15148_v6 = vld [vmem:[#allocation90_spill] sm:$0xff] }
0x10b0   :  { %v13544_v30 = vmul.f32 %v6294_v24, %v15120_v49  ;;  %v13575_v19 = vmul.f32 %v6318_v5, %v15148_v6  ;;  %v15149_v5 = vld [vmem:[#allocation89_spill] sm:$0xff] }
0x10b1   :  { %v6473_v41 = vsel %vm1647_vm13, %v13514_v55, 0.0  ;;  %v6322_v24 = vrot.slane %v6175_v51, %v15108_v56 }
0x10ba   :  { %v10580_v61 = vpop.f32.mrb[36].mxu1 }
0x10bb   :  { %v5714_v38 = vpop.f32.mrb[37].mxu1  ;;  %v13549_v11 = vadd.f32 %v10580_v61, %v10164_v35  ;;  %v6479_v61 = vsel %vm1647_vm13, %v13544_v30, 0.0 }
0x10bd   :  { %v6233_v15 = vrot.slane %v13549_v11, %v15144_v12 }
0x10be   :  { %v10583_v50 = vpop.f32.mrb[38].mxu1 }
0x10bf   :  { %v13460_v14 = vadd.f32 %v10583_v50, %v10164_v35  ;;  %v5724_v16 = vpop.f32.mrb[39].mxu1  ;;  %v13530_v50 = vrot.slane %v6095_v52, %v15144_v12  ;;  %v15147_v52 = vld [vmem:[#allocation82_spill] sm:$0xff]  ;;  %v6241_v36 = vcombine.high %v6233_v15, %v6233_v15 }
0x10c0   :  { %v13462_v25 = vadd.f32 %v10164_v35, %v5724_v16  ;;  %v13532_v16 = vadd.f32 %v10164_v35, %v5714_v38 }
0x10c1   :  { %v13466_v20 = vadd.f32 %v13460_v14, %v15143_v43  ;;  %v6298_v38 = vrot.slane %v13530_v50, %v15108_v56 }
0x10c2   :  { %v13470_v10 = vadd.f32 %v13462_v25, %v15143_v43  ;;  %v10586_v62 = vpop.f32.mrb[40].mxu1  ;;  %v6184_v42 = vrot.slane %v13532_v16, %v15144_v12 }
0x10c3   :  { %5846 = vrot.lane.b32.xlu0 %v13466_v20, %s11486_s17  ;;  %v5734_v9 = vpop.f32.mrb[41].mxu1  ;;  %v13478_v37 = vadd.f32 %v10586_v62, %v10164_v35  ;;  %v13537_v62 = vmul.f32 %v15118_v13, %v6290_v34  ;;  %v13566_v32 = vmul.f32 %v15147_v52, %v6298_v38 }
0x10c4   :  { %v13474_v33 = vadd.f32 %v10164_v35, %v5734_v9  ;;  %5768 = vrot.lane.b32.xlu1 %v13470_v10, %s11486_s17  ;;  %v15145_v9 = vld [vmem:[#allocation77_spill] sm:$0xff]  ;;  %v6144_v35 = vcombine.high %v6142_v47, %v6142_v47  ;;  %v13570_v34 = vrot.slane %v6184_v42, %v15144_v12  ;;  %v6192_v54 = vcombine.high %v6184_v42, %v6184_v42 }
0x10c5   :  { %v13488_v22 = vadd.f32 %v13478_v37, %v15143_v43  ;;  %v13540_v27 = vmul.f32 %v15145_v9, %v6282_v31  ;;  %v6476_v4 = vsel %vm1647_vm13, %v13537_v62, 0.0  ;;  %v6482_v58 = vsel %vm1647_vm13, %v13566_v32, 0.0 }
0x10c6   :  { %v13482_v63 = vadd.f32 %v13474_v33, %v15143_v43  ;;  %v6491_v43 = vsel %vm1647_vm13, %v13521_v59, 0.0  ;;  %v13626_v42 = vrot.slane %v6241_v36, %v15144_v12 }
0x10c7   :  { %v6470_v28 = vsel %vm1647_vm13, %v13540_v27, 0.0 }
0x10c8   :  { %5924 = vrot.lane.b32.xlu1 %v13482_v63, %s11486_s17 }
0x10cc   :  { %6002 = vrot.lane.b32.xlu1 %v13488_v22, %s11486_s17 }
0x10e2   :  { %6468 = vadd.xlane.f32.xlu0 %v6467_v21  ;;  %v13558_v21 = vmul.f32 %v15146_v17, %v6314_v8  ;;  %v6172_v8 = vrot.slane %v6144_v35, %v15144_v12  ;;  %v6177_v35 = vcombine.high %v13532_v16, %v13532_v16 }
0x10e4   :  { %v6494_v31 = vsel %vm1647_vm13, %v13558_v21, 0.0  ;;  %v6191_v60 = vrot.slane %v6177_v35, %v15144_v12 }
0x10e6   :  { %6474 = vadd.xlane.f32.xlu0 %v6473_v41  ;;  %v6302_v41 = vrot.slane %v6125_v39, %v15108_v56  ;;  %v6249_v39 = vrot.slane %v6233_v15, %v15144_v12  ;;  %v6226_v15 = vcombine.high %v13549_v11, %v13549_v11 }
0x10e8   :  { %v13583_v38 = vmul.f32 %v6302_v41, %v15124_v57 }
0x10ea   :  { %6492 = vadd.xlane.f32.xlu0 %v6491_v43  ;;  %v6158_v43 = vrot.slane %v6142_v47, %v15144_v12  ;;  %v13591_v47 = vmul.f32 %v15149_v5, %v6322_v24  ;;  %v6485_v41 = vsel %vm1647_vm13, %v13583_v38, 0.0 }
0x10ec   :  { %v6326_v51 = vrot.slane %v6158_v43, %v15108_v56  ;;  %v6174_v44 = vcombine.high %v6158_v43, %v6158_v43  ;;  %v6500_v24 = vsel %vm1647_vm13, %v13591_v47, 0.0 }
0x10ee   :  { %6477 = vadd.xlane.f32.xlu0 %v6476_v4  ;;  %v6342_v4 = vrot.slane %v13570_v34, %v15108_v56  ;;  %v13605_v45 = vmul.f32 %v6326_v51, %v15127_v26  ;;  %v6334_v51 = vrot.slane %v6174_v44, %v15108_v56 }
0x10f0   :  { %6471 = vadd.xlane.f32.xlu1 %v6470_v28  ;;  %v6497_v28 = vsel %vm1647_vm13, %v13575_v19, 0.0  ;;  %15150 = vst [vmem:[#allocation92_spill] sm:$0xff] %v13605_v45 }
0x10f2   :  { %6480 = vadd.xlane.f32.xlu0 %v6479_v61  ;;  %v6176_v61 = vcombine.high %v6172_v8, %v6172_v8 }
0x10f4   :  { %6495 = vadd.xlane.f32.xlu1 %v6494_v31  ;;  %v13599_v31 = vmul.f32 %v6342_v4, %v15109_v40  ;;  %v6338_v48 = vrot.slane %v6176_v61, %v15108_v56  ;;  %v6127_v4 = vcombine.high %v13530_v50, %v13530_v50 }
0x10f6   :  { %6483 = vadd.xlane.f32.xlu0 %v6482_v58  ;;  %v6374_v58 = vrot.slane %v6249_v39, %v15108_v56  ;;  %v6306_v61 = vrot.slane %v6127_v4, %v15108_v56  ;;  %v13632_v44 = vmul.f32 %v15130_v0, %v6338_v48  ;;  %v6378_v4 = vrot.slane %v13626_v42, %v15108_v56 }
0x10f8   :  { %6498 = vadd.xlane.f32.xlu1 %v6497_v28  ;;  %v6330_v28 = vrot.slane %v6172_v8, %v15108_v56  ;;  %v13614_v43 = vmul.f32 %v6374_v58, %v15126_v1  ;;  %v6503_v8 = vsel %vm1647_vm13, %v13605_v45, 0.0  ;;  %15153 = vst [vmem:[#allocation114_spill] sm:$0xff] %v13632_v44  ;;  %v6207_v58 = vrot.slane %v6191_v60, %v15144_v12 }
0x10f9   :  { %v13645_v48 = vmul.f32 %v15119_v3, %v6306_v61  ;;  %v6193_v1 = vcombine.high %v6191_v60, %v6191_v60 }
0x10fa   :  { %6486 = vadd.xlane.f32.xlu0 %v6485_v41  ;;  %v6515_v41 = vsel %vm1647_vm13, %v13599_v31, 0.0  ;;  %15151 = vst [vmem:[#allocation112_spill] sm:$0xff] %v13614_v43  ;;  %v13623_v50 = vmul.f32 %v15128_v46, %v6330_v28  ;;  %v6539_v35 = vsel %vm1647_vm13, %v13614_v43, 0.0  ;;  %v13637_v28 = vmul.f32 %v6334_v51, %v15129_v18 }
0x10fb   :  { %15155 = vst [vmem:[#allocation99_spill] sm:$0xff] %v13645_v48  ;;  %v13653_v43 = vmul.f32 %v15146_v17, %v6378_v4  ;;  %v6488_v61 = vsel %vm1647_vm13, %v13645_v48, 0.0  ;;  %v15174_v48 = vld [vmem:[#allocation117_spill] sm:$0xff] }
0x10fc   :  { %6501 = vadd.xlane.f32.xlu1 %v6500_v24  ;;  %15152 = vst [vmem:[#allocation96_spill] sm:$0xff] %v13623_v50  ;;  %v6214_v24 = vrot.slane %v6192_v54, %v15144_v12  ;;  %15154 = vst [vmem:[#allocation98_spill] sm:$0xff] %v13637_v28  ;;  %v6506_v36 = vsel %vm1647_vm13, %v13623_v50, 0.0  ;;  %v6512_v54 = vsel %vm1647_vm13, %v13632_v44, 0.0  ;;  %v6509_v40 = vsel %vm1647_vm13, %v13637_v28, 0.0 }
0x10fd   :  { %15156 = vst [vmem:[#allocation100_spill] sm:$0xff] %v13653_v43  ;;  %v6542_v4 = vsel %vm1647_vm13, %v13653_v43, 0.0 }
0x10fe   :  { %6516 = vadd.xlane.f32.xlu0 %v6515_v41  ;;  %v6271_v41 = vcombine.high %v6249_v39, %v6249_v39  ;;  %v6224_v51 = vcombine.high %v6214_v24, %v6214_v24 }
0x1100   :  { %6504 = vadd.xlane.f32.xlu1 %v6503_v8  ;;  %v6240_v8 = vrot.slane %v6226_v15, %v15144_v12  ;;  %v6382_v39 = vrot.slane %v6271_v41, %v15108_v56  ;;  %v6354_v60 = vrot.slane %v6224_v51, %v15108_v56 }
0x1102   :  { %6540 = vadd.xlane.f32.xlu0 %v6539_v35  ;;  %v6358_v35 = vrot.slane %v6207_v58, %v15108_v56  ;;  %v6256_v15 = vrot.slane %v6240_v8, %v15144_v12  ;;  %v13667_v17 = vmul.f32 %v6382_v39, %v15148_v6  ;;  %v6346_v6 = vrot.slane %v6214_v24, %v15108_v56 }
0x1104   :  { %6507 = vadd.xlane.f32.xlu1 %v6506_v36  ;;  %v13660_v36 = vmul.f32 %v6358_v35, %v15120_v49  ;;  %15158 = vst [vmem:[#allocation101_spill] sm:$0xff] %v13667_v17  ;;  %v6390_v41 = vrot.slane %v6256_v15, %v15108_v56  ;;  %v13673_v35 = vmul.f32 %v15118_v13, %v6354_v60 }
0x1105   :  { %v13694_v24 = vmul.f32 %v15145_v9, %v6346_v6 }
0x1106   :  { %6513 = vadd.xlane.f32.xlu0 %v6512_v54  ;;  %15157 = vst [vmem:[#allocation104_spill] sm:$0xff] %v13660_v36  ;;  %v6221_v54 = vrot.slane %v6193_v1, %v15144_v12  ;;  %v6527_v44 = vsel %vm1647_vm13, %v13660_v36, 0.0  ;;  %15159 = vst [vmem:[#allocation109_spill] sm:$0xff] %v13673_v35  ;;  %v6242_v1 = vcombine.high %v6240_v8, %v6240_v8  ;;  %v6524_v60 = vsel %vm1647_vm13, %v13673_v35, 0.0 }
0x1107   :  { %v13679_v39 = vmul.f32 %v6390_v41, %v15127_v26  ;;  %15162 = vst [vmem:[#allocation105_spill] sm:$0xff] %v13694_v24  ;;  %v6518_v6 = vsel %vm1647_vm13, %v13694_v24, 0.0 }
0x1108   :  { %6510 = vadd.xlane.f32.xlu1 %v6509_v40  ;;  %v6223_v40 = vcombine.high %v6207_v58, %v6207_v58  ;;  %v6362_v51 = vrot.slane %v6221_v54, %v15108_v56  ;;  %v6222_v58 = vcombine.high %v13570_v34, %v13570_v34  ;;  %v6270_v49 = vrot.slane %v6242_v1, %v15144_v12 }
0x1109   :  { %15160 = vst [vmem:[#allocation103_spill] sm:$0xff] %v13679_v39  ;;  %v6551_v41 = vsel %vm1647_vm13, %v13679_v39, 0.0 }
0x110a   :  { %6489 = vadd.xlane.f32.xlu0 %v6488_v61  ;;  %v6545_v61 = vsel %vm1647_vm13, %v13667_v17, 0.0  ;;  %v13688_v8 = vmul.f32 %v15147_v52, %v6362_v51  ;;  %v6350_v34 = vrot.slane %v6222_v58, %v15108_v56  ;;  %v6274_v1 = vcombine.high %v6270_v49, %v6270_v49 }
0x110c   :  { %6543 = vadd.xlane.f32.xlu1 %v6542_v4  ;;  %v6366_v4 = vrot.slane %v6223_v40, %v15108_v56  ;;  %15161 = vst [vmem:[#allocation102_spill] sm:$0xff] %v13688_v8  ;;  %v6273_v40 = vcombine.high %v13626_v42, %v13626_v42  ;;  %v6530_v51 = vsel %vm1647_vm13, %v13688_v8, 0.0 }
0x110e   :  { %6528 = vadd.xlane.f32.xlu0 %v6527_v44  ;;  %v6225_v44 = vcombine.high %v6221_v54, %v6221_v54  ;;  %v13702_v54 = vmul.f32 %v6366_v4, %v15124_v57  ;;  %v6386_v58 = vrot.slane %v6273_v40, %v15108_v56  ;;  %v6402_v4 = vrot.slane %v6274_v1, %v15108_v56 }
0x1110   :  { %6546 = vadd.xlane.f32.xlu1 %v6545_v61  ;;  %15163 = vst [vmem:[#allocation108_spill] sm:$0xff] %v13702_v54  ;;  %v6370_v12 = vrot.slane %v6225_v44, %v15108_v56  ;;  %v13708_v61 = vmul.f32 %v6350_v34, %v15117_v2  ;;  %v6533_v42 = vsel %vm1647_vm13, %v13702_v54, 0.0  ;;  %v6394_v34 = vrot.slane %v6270_v49, %v15108_v56 }
0x1112   :  { %6525 = vadd.xlane.f32.xlu0 %v6524_v60  ;;  %v13714_v60 = vmul.f32 %v15119_v3, %v6370_v12  ;;  %v6521_v44 = vsel %vm1647_vm13, %v13708_v61, 0.0  ;;  %v13731_v1 = vmul.f32 %v15128_v46, %v6394_v34 }
0x1114   :  { %6552 = vadd.xlane.f32.xlu1 %v6551_v41  ;;  %15164 = vst [vmem:[#allocation111_spill] sm:$0xff] %v13714_v60  ;;  %v13720_v41 = vmul.f32 %v15149_v5, %v6386_v58  ;;  %v6536_v40 = vsel %vm1647_vm13, %v13714_v60, 0.0  ;;  %15167 = vst [vmem:[#allocation115_spill] sm:$0xff] %v13731_v1 }
0x1116   :  { %6531 = vadd.xlane.f32.xlu0 %v6530_v51  ;;  %15165 = vst [vmem:[#allocation113_spill] sm:$0xff] %v13720_v41  ;;  %v6272_v51 = vcombine.high %v6256_v15, %v6256_v15  ;;  %v6548_v12 = vsel %vm1647_vm13, %v13720_v41, 0.0  ;;  %v6554_v15 = vsel %vm1647_vm13, %v13731_v1, 0.0 }
0x1118   :  { %6519 = vadd.xlane.f32.xlu1 %v6518_v6  ;;  %v13726_v6 = vmul.f32 %v15130_v0, %v6402_v4  ;;  %v6398_v58 = vrot.slane %v6272_v51, %v15108_v56 }
0x111a   :  { %6534 = vadd.xlane.f32.xlu0 %v6533_v42  ;;  %15166 = vst [vmem:[#allocation116_spill] sm:$0xff] %v13726_v6  ;;  %v6560_v49 = vsel %vm1647_vm13, %v13726_v6, 0.0  ;;  %v13739_v42 = vmul.f32 %v6398_v58, %v15129_v18 }
0x111c   :  { %6522 = vadd.xlane.f32.xlu1 %v6521_v44  ;;  %15168 = vst [vmem:[#allocation72_spill] sm:$0xff] %v13739_v42  ;;  %v6557_v4 = vsel %vm1647_vm13, %v13739_v42, 0.0  ;;  %v15169_v44 = vld [vmem:[#allocation120_spill] sm:$0xff] }
0x111d   :  { %v13745_v34 = vadd.f32 %v13460_v14, %v15169_v44  ;;  %v13761_v14 = vadd.f32 %v13474_v33, %v15169_v44  ;;  %v13773_v58 = vadd.f32 %v13478_v37, %v15169_v44 }
0x111e   :  { %6537 = vadd.xlane.f32.xlu0 %v6536_v40  ;;  %v13749_v40 = vadd.f32 %v13462_v25, %v15169_v44 }
0x111f   :  { %15170 = vst [vmem:[#allocation73_spill] sm:$0xff] %v13745_v34  ;;  %15172 = vst [vmem:[#allocation75_spill] sm:$0xff] %v13761_v14 }
0x1120   :  { %6549 = vadd.xlane.f32.xlu1 %v6548_v12  ;;  %15171 = vst [vmem:[#allocation74_spill] sm:$0xff] %v13749_v40  ;;  %15173 = vst [vmem:[#allocation81_spill] sm:$0xff] %v13773_v58 }
0x1122   :  { %6561 = vadd.xlane.f32.xlu0 %v6560_v49 }
0x1124   :  { %6555 = vadd.xlane.f32.xlu1 %v6554_v15 }
0x1128   :  { %6558 = vadd.xlane.f32.xlu1 %v6557_v4 }
0x1135   :  { %v5847_v12 = vpop.permute.xlu0 %5846 }
0x1136   :  { %v5769_v51 = vpop.permute.xlu1 %5768 }
0x1137   :  { %10588 = vmatpush3.xpose.msk.msra.mxu0 %vm1647_vm13, %v5769_v51 }
0x1138   :  { %6889 = vrot.lane.b32.xlu0 %v13745_v34, %s11488_s29  ;;  %10592 = vmatprep.subr.mxu0 %v15080_v29 }
0x1139   :  { %6812 = vrot.lane.b32.xlu1 %v13749_v40, %s11488_s29 }
0x113a   :  { %10590 = vmatmul.mubr.msk.f32.vlgmr.msra.gmra.mrb[36].mxu0 %vm1647_vm13, %v13492_v53  ;;  %v5925_v25 = vpop.permute.xlu1 %5924 }
0x113b   :  { %10593 = vmatpush3.xpose.msk.msra.mxu0 %vm1647_vm13, %v5847_v12  ;;  %10594 = vmatprep.mubr.msk.f32.mxu0 %vm11481_vm1, %v15080_v29 }
0x113c   :  { %10597 = vmatprep.subr.mxu0 %v15080_v29 }
0x113d   :  { %6966 = vrot.lane.b32.xlu1 %v13761_v14, %s11488_s29 }
0x113e   :  { %10595 = vmatmul.mubr.msk.f32.vlgmr.msra.gmra.mrb[38].mxu0 %vm1647_vm13, %v13496_v23  ;;  %v6003_v33 = vpop.permute.xlu1 %6002 }
0x113f   :  { %10598 = vmatpush3.xpose.msk.msra.mxu0 %vm1647_vm13, %v5925_v25  ;;  %10599 = vmatprep.mubr.msk.f32.mxu0 %vm11481_vm1, %v15080_v29 }
0x1140   :  { %10602 = vmatprep.subr.mxu0 %v15080_v29 }
0x1141   :  { %7043 = vrot.lane.b32.xlu1 %v13773_v58, %s11488_s29 }
0x1142   :  { %10600 = vmatmul.mubr.msk.f32.vlgmr.msra.gmra.mrb[40].mxu0 %vm1647_vm13, %v13532_v16 }
0x1143   :  { %10603 = vmatpush3.xpose.msk.msra.mxu0 %vm1647_vm13, %v6003_v33  ;;  %10604 = vmatprep.mubr.msk.f32.mxu0 %vm11481_vm1, %v15080_v29 }
0x1144   :  { %10612 = vmatprep.subr.mxu0 %v15080_v29 }
0x1146   :  { %10605 = vmatmul.mubr.msk.f32.vlgmr.msra.gmra.mrb[42].mxu0 %vm1647_vm13, %v13549_v11 }
0x1147   :  { %10614 = vmatprep.mubr.msk.f32.mxu0 %vm11481_vm1, %v15080_v29 }
0x116f   :  { %v6469_v37 = vpop.xlane.xlu0 %6468 }
0x1170   :  { %v6598_v17 = vrot.slane %v6469_v37, %v15174_v48 }
0x1173   :  { %v6475_v49 = vpop.xlane.xlu0 %6474 }
0x1174   :  { %v6606_v28 = vrot.slane %v6475_v49, %v15174_v48 }
0x1177   :  { %v6493_v15 = vpop.xlane.xlu0 %6492 }
0x117b   :  { %v6478_v4 = vpop.xlane.xlu0 %6477 }
0x117c   :  { %v6610_v45 = vrot.slane %v6478_v4, %v15174_v48 }
0x117d   :  { %v6472_v44 = vpop.xlane.xlu1 %6471 }
0x117e   :  { %v6602_v36 = vrot.slane %v6472_v44, %v15174_v48 }
0x117f   :  { %v6481_v51 = vpop.xlane.xlu0 %6480 }
0x1180   :  { %v6723_v50 = vsel %vm2601_vm12, %v6602_v36, %v6598_v17 }
0x1181   :  { %v6496_v12 = vpop.xlane.xlu1 %6495 }
0x1182   :  { %v6634_v37 = vrot.slane %v6496_v12, %v15174_v48 }
0x1183   :  { %v6484_v25 = vpop.xlane.xlu0 %6483 }
0x1184   :  { %v6618_v36 = vrot.slane %v6484_v25, %v15174_v48 }
0x1185   :  { %v6499_v33 = vpop.xlane.xlu1 %6498 }
0x1187   :  { %v13791_v0 = vpop.xlane.xlu0 %6486 }
0x1189   :  { %v6502_v18 = vpop.xlane.xlu1 %6501 }
0x118b   :  { %v6517_v46 = vpop.xlane.xlu0 %6516 }
0x118d   :  { %v6505_v26 = vpop.xlane.xlu1 %6504 }
0x118e   :  { %v6646_v4 = vrot.slane %v6505_v26, %v15174_v48 }
0x118f   :  { %v13793_v5 = vpop.xlane.xlu0 %6540 }
0x1190   :  { %v6694_v25 = vrot.slane %v13793_v5, %v15174_v48 }
0x1191   :  { %v13795_v57 = vpop.xlane.xlu1 %6507 }
0x1193   :  { %v13797_v52 = vpop.xlane.xlu0 %6513 }
0x1195   :  { %v13799_v3 = vpop.xlane.xlu1 %6510 }
0x1197   :  { %v13801_v13 = vpop.xlane.xlu0 %6489 }
0x1199   :  { %v13803_v2 = vpop.xlane.xlu1 %6543 }
0x119a   :  { %v6698_v12 = vrot.slane %v13803_v2, %v15174_v48 }
0x119b   :  { %v6529_v9 = vpop.xlane.xlu0 %6528 }
0x119d   :  { %v13805_v56 = vpop.xlane.xlu1 %6546 }
0x119f   :  { %v6526_v34 = vpop.xlane.xlu0 %6525 }
0x11a0   :  { %v6674_v49 = vrot.slane %v6526_v34, %v15174_v48  ;;  %v6678_v34 = vrot.slane %v6529_v9, %v15174_v48 }
0x11a1   :  { %v13807_v58 = vpop.xlane.xlu1 %6552 }
0x11a3   :  { %v13809_v14 = vpop.xlane.xlu0 %6531 }
0x11a4   :  { %v6682_v9 = vrot.slane %v13809_v14, %v15174_v48 }
0x11a5   :  { %v6520_v40 = vpop.xlane.xlu1 %6519 }
0x11a6   :  { %v6666_v24 = vrot.slane %v6520_v40, %v15174_v48  ;;  %v6638_v40 = vrot.slane %v6499_v33, %v15174_v48  ;;  %v6702_v33 = vrot.slane %v13805_v56, %v15174_v48  ;;  %v6658_v56 = vrot.slane %v13797_v52, %v15174_v48 }
0x11a7   :  { %v13811_v42 = vpop.xlane.xlu0 %6534 }
0x11a9   :  { %v6523_v1 = vpop.xlane.xlu1 %6522 }
0x11aa   :  { %v6670_v43 = vrot.slane %v6523_v1, %v15174_v48  ;;  %v6622_v1 = vrot.slane %v13791_v0, %v15174_v48 }
0x11ab   :  { %v13813_v39 = vpop.xlane.xlu0 %6537 }
0x11ad   :  { %v13815_v6 = vpop.xlane.xlu1 %6549 }
0x11af   :  { %v13817_v41 = vpop.xlane.xlu0 %6561 }
0x11b1   :  { %v13819_v60 = vpop.xlane.xlu1 %6555 }
0x11b3   :  { %v6890_v54 = vpop.permute.xlu0 %6889 }
0x11b4   :  { %10613 = vmatpush3.msra.mxu0 %v6890_v54  ;;  %v6724_v54 = vsel %vm2603_vm14, %v6606_v28, %v6723_v50  ;;  %v6630_v28 = vrot.slane %v6493_v15, %v15174_v48 }
0x11b5   :  { %v13821_v35 = vpop.xlane.xlu1 %6558  ;;  %10622 = vmatprep.subr.mxu0 %v15080_v29  ;;  %v6725_v44 = vsel %vm2605_vm15, %v6610_v45, %v6724_v54  ;;  %v6706_v54 = vrot.slane %v13815_v6, %v15174_v48  ;;  %v6686_v6 = vrot.slane %v13811_v42, %v15174_v48 }
0x11b9   :  { %v6813_v8 = vpop.permute.xlu1 %6812 }
0x11ba   :  { %10608 = vmatpush3.msra.mxu1 %v6813_v8  ;;  %v6662_v8 = vrot.slane %v6517_v46, %v15174_v48  ;;  %v6642_v46 = vrot.slane %v6502_v18, %v15174_v48  ;;  %v6654_v18 = vrot.slane %v13799_v3, %v15174_v48 }
0x11bb   :  { %10617 = vmatprep.subr.mxu1 %v15080_v29  ;;  %v6614_v29 = vrot.slane %v6481_v51, %v15174_v48  ;;  %v6650_v51 = vrot.slane %v13795_v57, %v15174_v48 }
0x11bc   :  { %v6737_v17 = vsel %vm2601_vm12, %v6666_v24, %v6662_v8  ;;  %v6730_v24 = vsel %vm2601_vm12, %v6634_v37, %v6630_v28  ;;  %v6710_v28 = vrot.slane %v13807_v58, %v15174_v48  ;;  %v6690_v58 = vrot.slane %v13813_v39, %v15174_v48 }
0x11bd   :  { %v6738_v50 = vsel %vm2603_vm14, %v6670_v43, %v6737_v17  ;;  %v6726_v45 = vsel %vm2607_vm3, %v6614_v29, %v6725_v44  ;;  %v6626_v43 = vrot.slane %v13801_v13, %v15174_v48  ;;  %v6731_v0 = vsel %vm2603_vm14, %v6638_v40, %v6730_v24 }
0x11be   :  { %v6739_v15 = vsel %vm2605_vm15, %v6674_v49, %v6738_v50  ;;  %v6727_v29 = vsel %vm2609_vm6, %v6618_v36, %v6726_v45  ;;  %v6732_v26 = vsel %vm2605_vm15, %v6642_v46, %v6731_v0  ;;  %v6744_v36 = vsel %vm2601_vm12, %v6698_v12, %v6694_v25 }
0x11bf   :  { %v6728_v57 = vsel %vm2611_vm8, %v6622_v1, %v6727_v29  ;;  %v6733_v13 = vsel %vm2607_vm3, %v6646_v4, %v6732_v26  ;;  %v6740_v3 = vsel %vm2607_vm3, %v6678_v34, %v6739_v15  ;;  %v6745_v14 = vsel %vm2603_vm14, %v6702_v33, %v6744_v36  ;;  %v15175_v4 = vld [vmem:[#allocation118_spill] sm:$0xff]  ;;  %v15176_v29 = vld [vmem:[#allocation119_spill] sm:$0xff] }
0x11c0   :  { %v6729_v2 = vsel %vm2613_vm9, %v6626_v43, %v6728_v57  ;;  %v6734_v44 = vsel %vm2609_vm6, %v6650_v51, %v6733_v13  ;;  %v6741_v40 = vsel %vm2609_vm6, %v6682_v9, %v6740_v3  ;;  %v6746_v1 = vsel %vm2605_vm15, %v6706_v54, %v6745_v14 }
0x11c1   :  { %v6735_v5 = vsel %vm2611_vm8, %v6654_v18, %v6734_v44  ;;  %v6714_v46 = vrot.slane %v13819_v60, %v15174_v48  ;;  %v6718_v45 = vrot.slane %v13821_v35, %v15174_v48  ;;  %v6742_v42 = vsel %vm2611_vm8, %v6686_v6, %v6741_v40 }
0x11c2   :  { %v6736_v52 = vsel %vm2613_vm9, %v6658_v56, %v6735_v5  ;;  %v6747_v60 = vsel %vm2607_vm3, %v6710_v28, %v6746_v1  ;;  %v6743_v34 = vsel %vm2613_vm9, %v6690_v58, %v6742_v42  ;;  %v6722_v39 = vrot.slane %v13817_v41, %v15174_v48  ;;  %v13913_v41 = vpop.permute.xlu1 %6966 }
0x11c3   :  { %v6748_v35 = vsel %vm2609_vm6, %v6714_v46, %v6747_v60 }
0x11c4   :  { %v6749_v13 = vsel %vm2611_vm8, %v6718_v45, %v6748_v35  ;;  %v15195_v35 = vld [vmem:[#allocation72_spill] sm:$0xff] }
0x11c5   :  { %v6750_v9 = vsel %vm2613_vm9, %v6722_v39, %v6749_v13  ;;  %v15196_v13 = vmov 0.0  }
0x11c6   :  { %v13915_v56 = vpop.permute.xlu1 %7043 }
0x120d   :  { %v5841_v8 = vpop.f32.mrb[36].mxu0 }
0x120e   :  { %v6755_v37 = vadd.f32 %v6729_v2, %v5841_v8  ;;  %v10591_v17 = vpop.f32.mrb[37].mxu0 }
0x1210   :  { %v6759_v50 = vmul.f32 0.25, %v6755_v37 }
0x1211   :  { %v5919_v49 = vpop.f32.mrb[38].mxu0 }
0x1212   :  { %v6763_v24 = vadd.f32 %v6759_v50, %v15175_v4  ;;  %v6756_v51 = vadd.f32 %v6736_v52, %v5919_v49  ;;  %v10596_v43 = vpop.f32.mrb[39].mxu0 }
0x1214   :  { %v6760_v15 = vmul.f32 0.25, %v6756_v51  ;;  %v6767_v0 = vsel %vm2652_vm11, %v6763_v24, -inf }
0x1215   :  { %v5997_v18 = vpop.f32.mrb[40].mxu0  ;;  %6768 = vmax.xlane.f32.xlu1 %v6767_v0 }
0x1216   :  { %v6764_v26 = vadd.f32 %v6760_v15, %v15176_v29  ;;  %v6757_v12 = vadd.f32 %v6743_v34, %v5997_v18  ;;  %v10601_v57 = vpop.f32.mrb[41].mxu0  ;;  %v15194_v18 = vld [vmem:[#allocation115_spill] sm:$0xff] }
0x1218   :  { %v6761_v25 = vmul.f32 0.25, %v6757_v12  ;;  %v6770_v33 = vsel %vm2652_vm11, %v6764_v26, -inf }
0x1219   :  { %v6075_v3 = vpop.f32.mrb[42].mxu0  ;;  %6771 = vmax.xlane.f32.xlu0 %v6770_v33 }
0x121a   :  { %v6765_v54 = vadd.f32 %v6761_v25, %v15175_v4  ;;  %v6758_v8 = vadd.f32 %v6750_v9, %v6075_v3  ;;  %v10606_v2 = vpop.f32.mrb[43].mxu0 }
0x121c   :  { %v6762_v44 = vmul.f32 0.25, %v6758_v8  ;;  %v6773_v37 = vsel %vm2652_vm11, %v6765_v54, -inf }
0x121d   :  { %6774 = vmax.xlane.f32.xlu1 %v6773_v37 }
0x121e   :  { %v6766_v17 = vadd.f32 %v6762_v44, %v15176_v29 }
0x1220   :  { %v6776_v5 = vsel %vm2652_vm11, %v6766_v17, -inf }
0x1221   :  { %6777 = vmax.xlane.f32.xlu0 %v6776_v5 }
0x122e   :  { %7755 = vrot.lane.b32.xlu1 %v13466_v20, %s11489_s9 }
0x1237   :  { %7677 = vrot.lane.b32.xlu0 %v13470_v10, %s11489_s9 }
0x12a2   :  { %v6769_v36 = vpop.xlane.xlu1 %6768 }
0x12a3   :  { %v6779_v40 = vsub.f32 %v6763_v24, %v6769_v36 }
0x12a5   :  { %v6783_v14 = vmul.f32 1.442695, %v6779_v40 }
0x12a6   :  { %v6772_v6 = vpop.xlane.xlu0 %6771 }
0x12a7   :  { %10923 = vpow2.f32 %v6783_v14  ;;  %v6780_v50 = vsub.f32 %v6764_v26, %v6772_v6 }
0x12a9   :  { %v6785_v28 = vmul.f32 1.442695, %v6780_v50 }
0x12aa   :  { %v6775_v49 = vpop.xlane.xlu1 %6774 }
0x12ab   :  { %10925 = vpow2.f32 %v6785_v28  ;;  %v6781_v52 = vsub.f32 %v6765_v54, %v6775_v49 }
0x12ad   :  { %v6787_v24 = vmul.f32 1.442695, %v6781_v52 }
0x12ae   :  { %v6778_v45 = vpop.xlane.xlu0 %6777 }
0x12af   :  { %v6782_v51 = vsub.f32 %v6766_v17, %v6778_v45  ;;  %10927 = vpow2.f32 %v6787_v24 }
0x12b1   :  { %v13917_v1 = vpop.eup %10923  ;;  %v6789_v43 = vmul.f32 1.442695, %v6782_v51 }
0x12b2   :  { %v6791_v20 = vsel %vm2652_vm11, %v13917_v1, 0.0  ;;  %v7678_v0 = vpop.permute.xlu0 %7677 }
0x12b3   :  { %6792 = vadd.xlane.f32.xlu1 %v6791_v20  ;;  %10929 = vpow2.f32 %v6789_v43 }
0x12b5   :  { %v13921_v46 = vpop.eup %10925 }
0x12b6   :  { %v6794_v10 = vsel %vm2652_vm11, %v13921_v46, 0.0 }
0x12b7   :  { %6795 = vadd.xlane.f32.xlu0 %v6794_v10 }
0x12b9   :  { %v13929_v42 = vpop.eup %10927 }
0x12ba   :  { %v6797_v58 = vsel %vm2652_vm11, %v13929_v42, 0.0 }
0x12bd   :  { %v13933_v15 = vpop.eup %10929 }
0x12c4   :  { %7753 = vrot.lane.b32.xlu1 %v13496_v23, %s11490_s11  ;;  %v6800_v23 = vsel %vm2652_vm11, %v13933_v15, 0.0 }
0x12cd   :  { %7675 = vrot.lane.b32.xlu0 %v13492_v53, %s11490_s11  ;;  %v15179_v53 = vld [vmem:[#allocation105_spill] sm:$0xff] }
0x12e8   :  { %6798 = vadd.xlane.f32.xlu1 %v6797_v58 }
0x12ec   :  { %6801 = vadd.xlane.f32.xlu0 %v6800_v23 }
0x12f9   :  { %7911 = vrot.lane.b32.xlu1 %v13488_v22, %s11489_s9  ;;  %v15178_v22 = vld [vmem:[#allocation100_spill] sm:$0xff] }
0x12fd   :  { %7909 = vrot.lane.b32.xlu1 %v13549_v11, %s11490_s11  ;;  %v15187_v11 = vld [vmem:[#allocation109_spill] sm:$0xff] }
0x1301   :  { %8021 = vrot.lane.b32.xlu1 %v13540_v27, %s11490_s11  ;;  %v15185_v27 = vld [vmem:[#allocation99_spill] sm:$0xff] }
0x1302   :  { %7833 = vrot.lane.b32.xlu0 %v13482_v63, %s11489_s9  ;;  %v15177_v63 = vld [vmem:[#allocation92_spill] sm:$0xff] }
0x1305   :  { %8035 = vrot.lane.b32.xlu1 %v13521_v59, %s11490_s11  ;;  %v15182_v59 = vld [vmem:[#allocation101_spill] sm:$0xff] }
0x1306   :  { %7831 = vrot.lane.b32.xlu0 %v13532_v16, %s11490_s11  ;;  %v15183_v16 = vld [vmem:[#allocation112_spill] sm:$0xff] }
0x1309   :  { %8025 = vrot.lane.b32.xlu1 %v13537_v62, %s11490_s11  ;;  %v15184_v62 = vld [vmem:[#allocation104_spill] sm:$0xff] }
0x130a   :  { %8019 = vrot.lane.b32.xlu0 %v13505_v7, %s11490_s11  ;;  %v15180_v7 = vld [vmem:[#allocation98_spill] sm:$0xff] }
0x130d   :  { %8027 = vrot.lane.b32.xlu1 %v13544_v30, %s11490_s11  ;;  %v15186_v30 = vld [vmem:[#allocation102_spill] sm:$0xff] }
0x130e   :  { %8023 = vrot.lane.b32.xlu0 %v13514_v55, %s11490_s11  ;;  %v15181_v55 = vld [vmem:[#allocation96_spill] sm:$0xff] }
0x1311   :  { %8029 = vrot.lane.b32.xlu1 %v13566_v32, %s11490_s11  ;;  %v15189_v32 = vld [vmem:[#allocation114_spill] sm:$0xff] }
0x1312   :  { %8037 = vrot.lane.b32.xlu0 %v13558_v21, %s11490_s11  ;;  %v15188_v21 = vld [vmem:[#allocation108_spill] sm:$0xff] }
0x1315   :  { %8051 = vrot.lane.b32.xlu1 %v13599_v31, %s11490_s11  ;;  %v15192_v31 = vld [vmem:[#allocation116_spill] sm:$0xff] }
0x1316   :  { %8039 = vrot.lane.b32.xlu0 %v13575_v19, %s11490_s11  ;;  %v15190_v19 = vld [vmem:[#allocation111_spill] sm:$0xff] }
0x1319   :  { %8031 = vrot.lane.b32.xlu1 %v13583_v38, %s11490_s11  ;;  %v15191_v38 = vld [vmem:[#allocation113_spill] sm:$0xff] }
0x131a   :  { %8041 = vrot.lane.b32.xlu0 %v13591_v47, %s11490_s11  ;;  %v7756_v47 = vpop.permute.xlu1 %7755 }
0x131d   :  { %8055 = vrot.lane.b32.xlu1 %v13708_v61, %s11490_s11  ;;  %v15193_v61 = vld [vmem:[#allocation103_spill] sm:$0xff] }
0x131e   :  { %8043 = vrot.lane.b32.xlu0 %v15177_v63, %s11490_s11 }
0x1321   :  { %8069 = vrot.lane.b32.xlu1 %v15178_v22, %s11490_s11 }
0x1322   :  { %8053 = vrot.lane.b32.xlu0 %v15179_v53, %s11490_s11 }
0x1325   :  { %8047 = vrot.lane.b32.xlu1 %v15180_v7, %s11490_s11 }
0x1326   :  { %8045 = vrot.lane.b32.xlu0 %v15181_v55, %s11490_s11 }
0x1329   :  { %8071 = vrot.lane.b32.xlu1 %v15182_v59, %s11490_s11 }
0x132a   :  { %8067 = vrot.lane.b32.xlu0 %v15183_v16, %s11490_s11 }
0x132d   :  { %8059 = vrot.lane.b32.xlu1 %v15184_v62, %s11490_s11 }
0x132e   :  { %8033 = vrot.lane.b32.xlu0 %v15185_v27, %s11490_s11 }
0x1331   :  { %8061 = vrot.lane.b32.xlu1 %v15186_v30, %s11490_s11 }
0x1332   :  { %8057 = vrot.lane.b32.xlu0 %v15187_v11, %s11490_s11 }
0x1335   :  { %8063 = vrot.lane.b32.xlu1 %v15188_v21, %s11490_s11 }
0x1336   :  { %8049 = vrot.lane.b32.xlu0 %v15189_v32, %s11490_s11 }
0x1339   :  { %8065 = vrot.lane.b32.xlu1 %v15190_v19, %s11490_s11 }
0x133a   :  { %8073 = vrot.lane.b32.xlu0 %v15191_v38, %s11490_s11 }
0x133d   :  { %8081 = vrot.lane.b32.xlu1 %v15192_v31, %s11490_s11 }
0x133e   :  { %8075 = vrot.lane.b32.xlu0 %v15193_v61, %s11490_s11 }
0x1340   :  { %v6793_v60 = vpop.xlane.xlu1 %6792 }
0x1341   :  { %10931 = vrcp.f32 %v6793_v60 }
0x1342   :  { %8077 = vrot.lane.b32.xlu0 %v15194_v18, %s11490_s11 }
0x1344   :  { %v6796_v34 = vpop.xlane.xlu0 %6795  ;;  %v7754_v25 = vpop.permute.xlu1 %7753 }
0x1345   :  { %10933 = vrcp.f32 %v6796_v34 }
0x1346   :  { %8079 = vrot.lane.b32.xlu0 %v15195_v35, %s11490_s11 }
0x1348   :  { %v7676_v33 = vpop.permute.xlu0 %7675 }
0x134b   :  { %v10932_v26 = vpop.eup %10931 }
0x134c   :  { %v14010_v12 = vmul.f32 %v10932_v26, %v13917_v1 }
0x134e   :  { %10610 = vmatmul.mubr.msk.f32.vlgmr.msra.gmra.mrb[42].mxu1 %vm2652_vm11, %v14010_v12 }
0x134f   :  { %v10934_v57 = vpop.eup %10933  ;;  %10618 = vmatpush3.msra.mxu1 %v13913_v41  ;;  %10619 = vmatprep.mubr.msk.f32.mxu1 %vm11481_vm1, %v15196_v13 }
0x1350   :  { %v14018_v39 = vmul.f32 %v10934_v57, %v13921_v46  ;;  %10627 = vmatprep.subr.mxu1 %v15196_v13 }
0x1352   :  { %10615 = vmatmul.mubr.msk.f32.vlgmr.msra.gmra.mrb[44].mxu0 %vm2652_vm11, %v14018_v39 }
0x1353   :  { %10623 = vmatpush3.msra.mxu0 %v13915_v56  ;;  %10624 = vmatprep.mubr.msk.f32.mxu0 %vm11481_vm1, %v15196_v13 }
0x1354   :  { %10632 = vmatprep.subr.mxu0 %v15196_v13 }
0x1375   :  { %v6799_v3 = vpop.xlane.xlu1 %6798 }
0x1376   :  { %10935 = vrcp.f32 %v6799_v3 }
0x1379   :  { %v6802_v9 = vpop.xlane.xlu0 %6801  ;;  %v7912_v54 = vpop.permute.xlu1 %7911 }
0x137a   :  { %10937 = vrcp.f32 %v6802_v9 }
0x137d   :  { %v7834_v8 = vpop.permute.xlu0 %7833  ;;  %v7910_v2 = vpop.permute.xlu1 %7909 }
0x1380   :  { %v10936_v44 = vpop.eup %10935 }
0x1381   :  { %v14028_v37 = vmul.f32 %v10936_v44, %v13929_v42  ;;  %v7832_v17 = vpop.permute.xlu0 %7831  ;;  %v8022_v5 = vpop.permute.xlu1 %8021 }
0x1382   :  { %v8118_v41 = vsel %vm1647_vm13, %v8022_v5, 0.0 }
0x1383   :  { %10620 = vmatmul.mubr.msk.f32.vlgmr.msra.gmra.mrb[44].mxu1 %vm2652_vm11, %v14028_v37  ;;  %8119 = vadd.xlane.f32.xlu1 %v8118_v41 }
0x1384   :  { %v10938_v56 = vpop.eup %10937  ;;  %10628 = vmatpush3.xpose.msk.msra.mxu1 %vm1647_vm13, %v7678_v0  ;;  %10629 = vmatprep.mubr.msk.f32.mxu1 %vm11481_vm1, %v15196_v13 }
0x1385   :  { %v14037_v36 = vmul.f32 %v10938_v56, %v13933_v15  ;;  %v8020_v40 = vpop.permute.xlu0 %8019  ;;  %v8036_v14 = vpop.permute.xlu1 %8035  ;;  %10637 = vmatprep.subr.mxu1 %v15196_v13 }
0x1386   :  { %v8115_v6 = vsel %vm1647_vm13, %v8020_v40, 0.0  ;;  %v8139_v49 = vsel %vm1647_vm13, %v8036_v14, 0.0 }
0x1387   :  { %8116 = vadd.xlane.f32.xlu0 %v8115_v6  ;;  %10625 = vmatmul.mubr.msk.f32.vlgmr.msra.gmra.mrb[46].mxu0 %vm2652_vm11, %v14037_v36 }
0x1388   :  { %10630 = vmatmul.mubr.msk.f32.vlgmr.msra.gmra.mrb[46].mxu1 %vm1647_vm13, %v7676_v33  ;;  %10633 = vmatpush3.xpose.msk.msra.mxu0 %vm1647_vm13, %v7756_v47 }
0x1389   :  { %10638 = vmatpush3.xpose.msk.msra.mxu1 %vm1647_vm13, %v7834_v8  ;;  %v8024_v50 = vpop.permute.xlu0 %8023  ;;  %v8026_v28 = vpop.permute.xlu1 %8025  ;;  %10634 = vmatprep.mubr.msk.f32.mxu0 %vm11481_vm1, %v15196_v13 }
0x138a   :  { %10639 = vmatprep.mubr.msk.f32.mxu1 %vm11481_vm1, %v15196_v13  ;;  %10642 = vmatprep.subr.mxu0 %v15196_v13  ;;  %v8121_v1 = vsel %vm1647_vm13, %v8024_v50, 0.0  ;;  %v8124_v51 = vsel %vm1647_vm13, %v8026_v28, 0.0 }
0x138b   :  { %8122 = vadd.xlane.f32.xlu0 %v8121_v1  ;;  %10635 = vmatmul.mubr.msk.f32.vlgmr.msra.gmra.mrb[48].mxu0 %vm1647_vm13, %v7754_v25 }
0x138c   :  { %10640 = vmatmul.mubr.msk.f32.vlgmr.msra.gmra.mrb[48].mxu1 %vm1647_vm13, %v7832_v17  ;;  %10643 = vmatpush3.xpose.msk.msra.mxu0 %vm1647_vm13, %v7912_v54 }
0x138d   :  { %v8038_v20 = vpop.permute.xlu0 %8037  ;;  %v8028_v46 = vpop.permute.xlu1 %8027  ;;  %10644 = vmatprep.mubr.msk.f32.mxu0 %vm11481_vm1, %v15196_v13  ;;  %10647 = vmatprep.subr.mxu1 %v15196_v13 }
0x138e   :  { %v8142_v10 = vsel %vm1647_vm13, %v8038_v20, 0.0  ;;  %10652 = vmatprep.subr.mxu0 %v15196_v13  ;;  %10649 = vmatprep.mubr.msk.f32.mxu1 %vm11481_vm1, %v15196_v13  ;;  %v8127_v15 = vsel %vm1647_vm13, %v8028_v46, 0.0 }
0x138f   :  { %10645 = vmatmul.mubr.msk.f32.vlgmr.msra.gmra.mrb[50].mxu0 %vm1647_vm13, %v7910_v2  ;;  %8143 = vadd.xlane.f32.xlu1 %v8142_v10 }
0x1390   :  { %8140 = vadd.xlane.f32.xlu0 %v8139_v49  ;;  %10654 = vmatprep.mubr.msk.f32.mxu0 %vm11481_vm1, %v15196_v13 }
0x1391   :  { %v8040_v52 = vpop.permute.xlu0 %8039  ;;  %v8030_v45 = vpop.permute.xlu1 %8029 }
0x1392   :  { %v8145_v24 = vsel %vm1647_vm13, %v8040_v52, 0.0  ;;  %v8130_v53 = vsel %vm1647_vm13, %v8030_v45, 0.0 }
0x1393   :  { %8146 = vadd.xlane.f32.xlu1 %v8145_v24 }
0x1394   :  { %8125 = vadd.xlane.f32.xlu0 %v8124_v51 }
0x1395   :  { %v8042_v43 = vpop.permute.xlu0 %8041  ;;  %v8052_v42 = vpop.permute.xlu1 %8051 }
0x1396   :  { %v8148_v58 = vsel %vm1647_vm13, %v8042_v43, 0.0  ;;  %v8163_v16 = vsel %vm1647_vm13, %v8052_v42, 0.0 }
0x1397   :  { %8149 = vadd.xlane.f32.xlu1 %v8148_v58 }
0x1398   :  { %8128 = vadd.xlane.f32.xlu0 %v8127_v15 }
0x1399   :  { %v8044_v23 = vpop.permute.xlu0 %8043  ;;  %v8032_v63 = vpop.permute.xlu1 %8031 }
0x139a   :  { %v8151_v22 = vsel %vm1647_vm13, %v8044_v23, 0.0  ;;  %v8133_v11 = vsel %vm1647_vm13, %v8032_v63, 0.0 }
0x139b   :  { %8152 = vadd.xlane.f32.xlu1 %v8151_v22 }
0x139c   :  { %8131 = vadd.xlane.f32.xlu0 %v8130_v53 }
0x139d   :  { %v8054_v7 = vpop.permute.xlu0 %8053  ;;  %v8056_v55 = vpop.permute.xlu1 %8055 }
0x139e   :  { %v8166_v59 = vsel %vm1647_vm13, %v8054_v7, 0.0  ;;  %v8169_v38 = vsel %vm1647_vm13, %v8056_v55, 0.0 }
0x139f   :  { %8167 = vadd.xlane.f32.xlu1 %v8166_v59 }
0x13a0   :  { %8164 = vadd.xlane.f32.xlu0 %v8163_v16 }
0x13a1   :  { %v8046_v62 = vpop.permute.xlu0 %8045  ;;  %v8070_v27 = vpop.permute.xlu1 %8069 }
0x13a2   :  { %v8154_v30 = vsel %vm1647_vm13, %v8046_v62, 0.0  ;;  %v8190_v0 = vsel %vm1647_vm13, %v8070_v27, 0.0 }
0x13a3   :  { %8155 = vadd.xlane.f32.xlu1 %v8154_v30 }
0x13a4   :  { %8134 = vadd.xlane.f32.xlu0 %v8133_v11 }
0x13a5   :  { %v8068_v21 = vpop.permute.xlu0 %8067  ;;  %v8048_v32 = vpop.permute.xlu1 %8047 }
0x13a6   :  { %v8187_v19 = vsel %vm1647_vm13, %v8068_v21, 0.0  ;;  %v8157_v35 = vsel %vm1647_vm13, %v8048_v32, 0.0 }
0x13a7   :  { %8188 = vadd.xlane.f32.xlu1 %v8187_v19 }
0x13a8   :  { %8170 = vadd.xlane.f32.xlu0 %v8169_v38 }
0x13a9   :  { %v8034_v47 = vpop.permute.xlu0 %8033  ;;  %v8072_v31 = vpop.permute.xlu1 %8071 }
0x13aa   :  { %v8136_v61 = vsel %vm1647_vm13, %v8034_v47, 0.0  ;;  %v8193_v33 = vsel %vm1647_vm13, %v8072_v31, 0.0 }
0x13ab   :  { %8137 = vadd.xlane.f32.xlu1 %v8136_v61 }
0x13ac   :  { %8191 = vadd.xlane.f32.xlu0 %v8190_v0 }
0x13ad   :  { %v8058_v60 = vpop.permute.xlu0 %8057  ;;  %v8060_v18 = vpop.permute.xlu1 %8059 }
0x13ae   :  { %v8172_v34 = vsel %vm1647_vm13, %v8058_v60, 0.0  ;;  %v8175_v54 = vsel %vm1647_vm13, %v8060_v18, 0.0 }
0x13af   :  { %8173 = vadd.xlane.f32.xlu1 %v8172_v34 }
0x13b0   :  { %8158 = vadd.xlane.f32.xlu0 %v8157_v35 }
0x13b1   :  { %v8050_v26 = vpop.permute.xlu0 %8049  ;;  %v8062_v57 = vpop.permute.xlu1 %8061 }
0x13b2   :  { %v8160_v25 = vsel %vm1647_vm13, %v8050_v26, 0.0  ;;  %v8178_v17 = vsel %vm1647_vm13, %v8062_v57, 0.0 }
0x13b3   :  { %8161 = vadd.xlane.f32.xlu1 %v8160_v25 }
0x13b4   :  { %8194 = vadd.xlane.f32.xlu0 %v8193_v33 }
0x13b5   :  { %v8074_v3 = vpop.permute.xlu0 %8073  ;;  %v8064_v8 = vpop.permute.xlu1 %8063 }
0x13b6   :  { %v8196_v9 = vsel %vm1647_vm13, %v8074_v3, 0.0  ;;  %v8181_v40 = vsel %vm1647_vm13, %v8064_v8, 0.0 }
0x13b7   :  { %8197 = vadd.xlane.f32.xlu1 %v8196_v9 }
0x13b8   :  { %8176 = vadd.xlane.f32.xlu0 %v8175_v54 }
0x13b9   :  { %v8076_v2 = vpop.permute.xlu0 %8075  ;;  %v8066_v41 = vpop.permute.xlu1 %8065 }
0x13ba   :  { %v8199_v44 = vsel %vm1647_vm13, %v8076_v2, 0.0  ;;  %v8184_v50 = vsel %vm1647_vm13, %v8066_v41, 0.0 }
0x13bb   :  { %8200 = vadd.xlane.f32.xlu1 %v8199_v44 }
0x13bc   :  { %8179 = vadd.xlane.f32.xlu0 %v8178_v17 }
0x13bd   :  { %v8078_v5 = vpop.permute.xlu0 %8077  ;;  %v8082_v28 = vpop.permute.xlu1 %8081 }
0x13be   :  { %v8202_v56 = vsel %vm1647_vm13, %v8078_v5, 0.0  ;;  %v8208_v1 = vsel %vm1647_vm13, %v8082_v28, 0.0 }
0x13bf   :  { %8203 = vadd.xlane.f32.xlu1 %v8202_v56 }
0x13c0   :  { %8182 = vadd.xlane.f32.xlu0 %v8181_v40 }
0x13c1   :  { %v8080_v14 = vpop.permute.xlu0 %8079 }
0x13c2   :  { %v8205_v6 = vsel %vm1647_vm13, %v8080_v14, 0.0 }
0x13c3   :  { %8206 = vadd.xlane.f32.xlu1 %v8205_v6 }
0x13c4   :  { %8185 = vadd.xlane.f32.xlu0 %v8184_v50 }
0x13c8   :  { %8209 = vadd.xlane.f32.xlu0 %v8208_v1 }
0x1410   :  { %v8120_v46 = vpop.xlane.xlu1 %8119 }
0x1411   :  { %v8250_v35 = vrot.slane %v8120_v46, %v15174_v48 }
0x1414   :  { %v8117_v20 = vpop.xlane.xlu0 %8116 }
0x1415   :  { %v8246_v0 = vrot.slane %v8117_v20, %v15174_v48 }
0x1417   :  { %v8371_v3 = vsel %vm2601_vm12, %v8250_v35, %v8246_v0 }
0x1418   :  { %v8123_v10 = vpop.xlane.xlu0 %8122 }
0x1419   :  { %v8254_v26 = vrot.slane %v8123_v10, %v15174_v48 }
0x141b   :  { %v8372_v41 = vsel %vm2603_vm14, %v8254_v26, %v8371_v3 }
0x141c   :  { %v8144_v49 = vpop.xlane.xlu1 %8143 }
0x141d   :  { %v8141_v52 = vpop.xlane.xlu0 %8140  ;;  %v8282_v34 = vrot.slane %v8144_v49, %v15174_v48 }
0x141e   :  { %v8278_v18 = vrot.slane %v8141_v52, %v15174_v48 }
0x1420   :  { %v8147_v45 = vpop.xlane.xlu1 %8146  ;;  %v8378_v8 = vsel %vm2601_vm12, %v8282_v34, %v8278_v18 }
0x1421   :  { %v8126_v24 = vpop.xlane.xlu0 %8125  ;;  %v14093_v51 = vpop.f32.mrb[42].mxu1  ;;  %v8286_v57 = vrot.slane %v8147_v45, %v15174_v48 }
0x1422   :  { %v10611_v43 = vpop.f32.mrb[43].mxu1  ;;  %v8258_v25 = vrot.slane %v8126_v24, %v15174_v48 }
0x1423   :  { %v8379_v56 = vsel %vm2603_vm14, %v8286_v57, %v8378_v8 }
0x1424   :  { %v8150_v42 = vpop.xlane.xlu1 %8149  ;;  %v8373_v50 = vsel %vm2605_vm15, %v8258_v25, %v8372_v41 }
0x1425   :  { %v8129_v58 = vpop.xlane.xlu0 %8128  ;;  %v14095_v15 = vpop.f32.mrb[44].mxu0  ;;  %v8290_v33 = vrot.slane %v8150_v42, %v15174_v48 }
0x1426   :  { %v10616_v23 = vpop.f32.mrb[45].mxu0  ;;  %v8262_v9 = vrot.slane %v8129_v58, %v15174_v48 }
0x1427   :  { %v8380_v28 = vsel %vm2605_vm15, %v8290_v33, %v8379_v56 }
0x1428   :  { %v8153_v63 = vpop.xlane.xlu1 %8152  ;;  %v8374_v1 = vsel %vm2607_vm3, %v8262_v9, %v8373_v50 }
0x1429   :  { %v8132_v22 = vpop.xlane.xlu0 %8131  ;;  %v8294_v54 = vrot.slane %v8153_v63, %v15174_v48 }
0x142a   :  { %v8266_v2 = vrot.slane %v8132_v22, %v15174_v48 }
0x142b   :  { %v8381_v20 = vsel %vm2607_vm3, %v8294_v54, %v8380_v28 }
0x142c   :  { %v8168_v53 = vpop.xlane.xlu1 %8167  ;;  %v8375_v42 = vsel %vm2609_vm6, %v8266_v2, %v8374_v1 }
0x142d   :  { %v8165_v7 = vpop.xlane.xlu0 %8164  ;;  %v8314_v17 = vrot.slane %v8168_v53, %v15174_v48 }
0x142e   :  { %v8310_v44 = vrot.slane %v8165_v7, %v15174_v48 }
0x1430   :  { %v8156_v55 = vpop.xlane.xlu1 %8155  ;;  %v8385_v52 = vsel %vm2601_vm12, %v8314_v17, %v8310_v44 }
0x1431   :  { %v8135_v59 = vpop.xlane.xlu0 %8134  ;;  %v8298_v14 = vrot.slane %v8156_v55, %v15174_v48 }
0x1432   :  { %v8270_v40 = vrot.slane %v8135_v59, %v15174_v48 }
0x1433   :  { %v8382_v22 = vsel %vm2609_vm6, %v8298_v14, %v8381_v20 }
0x1434   :  { %v14097_v16 = vpop.xlane.xlu1 %8188  ;;  %v8376_v63 = vsel %vm2611_vm8, %v8270_v40, %v8375_v42 }
0x1435   :  { %v8171_v62 = vpop.xlane.xlu0 %8170  ;;  %v8342_v53 = vrot.slane %v14097_v16, %v15174_v48 }
0x1436   :  { %v8318_v46 = vrot.slane %v8171_v62, %v15174_v48 }
0x1438   :  { %v8138_v27 = vpop.xlane.xlu1 %8137 }
0x1439   :  { %v8192_v30 = vpop.xlane.xlu0 %8191  ;;  %v8274_v10 = vrot.slane %v8138_v27, %v15174_v48  ;;  %v8386_v27 = vsel %vm2603_vm14, %v8318_v46, %v8385_v52 }
0x143a   :  { %v8346_v45 = vrot.slane %v8192_v30, %v15174_v48 }
0x143c   :  { %v8174_v11 = vpop.xlane.xlu1 %8173 }
0x143d   :  { %v14099_v21 = vpop.xlane.xlu0 %8158  ;;  %v8322_v24 = vrot.slane %v8174_v11, %v15174_v48 }
0x143e   :  { %v8302_v58 = vrot.slane %v14099_v21, %v15174_v48 }
0x1440   :  { %v14103_v19 = vpop.xlane.xlu1 %8161  ;;  %v8383_v57 = vsel %vm2611_vm8, %v8302_v58, %v8382_v22 }
0x1441   :  { %v14101_v32 = vpop.xlane.xlu0 %8194  ;;  %v8306_v55 = vrot.slane %v14103_v19, %v15174_v48  ;;  %v8387_v19 = vsel %vm2605_vm15, %v8322_v24, %v8386_v27 }
0x1442   :  { %v8350_v7 = vrot.slane %v14101_v32, %v15174_v48  ;;  %v8377_v32 = vsel %vm2613_vm9, %v8274_v10, %v8376_v63 }
0x1443   :  { %v8384_v3 = vsel %vm2613_vm9, %v8306_v55, %v8383_v57 }
0x1444   :  { %v14105_v47 = vpop.xlane.xlu1 %8197 }
0x1445   :  { %v8177_v38 = vpop.xlane.xlu0 %8176  ;;  %v8354_v30 = vrot.slane %v14105_v47, %v15174_v48 }
0x1446   :  { %v8326_v23 = vrot.slane %v8177_v38, %v15174_v48  ;;  %v8392_v38 = vsel %vm2601_vm12, %v8346_v45, %v8342_v53 }
0x1447   :  { %v8393_v25 = vsel %vm2603_vm14, %v8350_v7, %v8392_v38  ;;  %v15197_v7 = vld [vmem:[#allocation74_spill] sm:$0xff] }
0x1448   :  { %v14109_v61 = vpop.xlane.xlu1 %8200  ;;  %v8388_v47 = vsel %vm2607_vm3, %v8326_v23, %v8387_v19  ;;  %v8394_v9 = vsel %vm2605_vm15, %v8354_v30, %v8393_v25  ;;  %v15198_v25 = vld [vmem:[#allocation75_spill] sm:$0xff] }
0x1449   :  { %v14107_v31 = vpop.xlane.xlu0 %8179 }
0x144a   :  { %v8330_v59 = vrot.slane %v14107_v31, %v15174_v48  ;;  %v8358_v31 = vrot.slane %v14109_v61, %v15174_v48 }
0x144c   :  { %v14128_v5 = vpop.xlane.xlu1 %8203  ;;  %v8389_v61 = vsel %vm2609_vm6, %v8330_v59, %v8388_v47  ;;  %v8395_v17 = vsel %vm2607_vm3, %v8358_v31, %v8394_v9  ;;  %v15201_v9 = vld [vmem:[#allocation73_spill] sm:$0xff] }
0x144d   :  { %v14112_v60 = vpop.xlane.xlu0 %8182 }
0x144e   :  { %v8334_v11 = vrot.slane %v14112_v60, %v15174_v48  ;;  %v8362_v60 = vrot.slane %v14128_v5, %v15174_v48 }
0x1450   :  { %v8207_v62 = vpop.xlane.xlu1 %8206  ;;  %v8390_v44 = vsel %vm2611_vm8, %v8334_v11, %v8389_v61  ;;  %v8396_v28 = vsel %vm2609_vm6, %v8362_v60, %v8395_v17 }
0x1451   :  { %v8186_v6 = vpop.xlane.xlu0 %8185  ;;  %v8366_v33 = vrot.slane %v8207_v62, %v15174_v48 }
0x1452   :  { %v8338_v0 = vrot.slane %v8186_v6, %v15174_v48 }
0x1454   :  { %v8391_v56 = vsel %vm2613_vm9, %v8338_v0, %v8390_v44 }
0x1455   :  { %v8210_v21 = vpop.xlane.xlu0 %8209 }
0x1456   :  { %v14140_v49 = vpop.f32.mrb[44].mxu1  ;;  %v8370_v54 = vrot.slane %v8210_v21, %v15174_v48  ;;  %v8397_v48 = vsel %vm2611_vm8, %v8366_v33, %v8396_v28  ;;  %v15199_v33 = vld [vmem:[#allocation81_spill] sm:$0xff] }
0x1457   :  { %v10621_v43 = vpop.f32.mrb[45].mxu1 }
0x1458   :  { %v8398_v10 = vsel %vm2613_vm9, %v8370_v54, %v8397_v48  ;;  %v15202_v54 = vld [vmem:[#allocation61_spill] sm:$0xff] }
0x145a   :  { %v14164_v16 = vpop.f32.mrb[46].mxu0 }
0x145b   :  { %v7749_v18 = vpop.f32.mrb[46].mxu1  ;;  %v10626_v34 = vpop.f32.mrb[47].mxu0 }
0x145c   :  { %v8403_v35 = vadd.f32 %v8377_v32, %v7749_v18  ;;  %v10631_v26 = vpop.f32.mrb[47].mxu1 }
0x145e   :  { %v8407_v8 = vmul.f32 0.25, %v8403_v35  ;;  %v7827_v2 = vpop.f32.mrb[48].mxu0 }
0x145f   :  { %v8404_v5 = vadd.f32 %v8384_v3, %v7827_v2  ;;  %v7905_v41 = vpop.f32.mrb[48].mxu1  ;;  %v10636_v40 = vpop.f32.mrb[49].mxu0  ;;  %v15200_v3 = vld [vmem:[#allocation56_spill] sm:$0xff] }
0x1460   :  { %v8411_v14 = vadd.f32 %v8407_v8, %v15175_v4  ;;  %v8405_v6 = vadd.f32 %v8391_v56, %v7905_v41  ;;  %v10641_v50 = vpop.f32.mrb[49].mxu1  ;;  %v7129_v61 = vrot.slane %v14010_v12, %v15200_v3  ;;  %v7122_v8 = vrot.slane %v14010_v12, %v15202_v54 }
0x1461   :  { %v8408_v1 = vmul.f32 0.25, %v8404_v5 }
0x1462   :  { %v8409_v20 = vmul.f32 0.25, %v8405_v6  ;;  %v7983_v46 = vpop.f32.mrb[50].mxu0  ;;  %v8415_v52 = vsel %vm2652_vm11, %v8411_v14, -inf }
0x1463   :  { %v8412_v45 = vadd.f32 %v8408_v1, %v15176_v29  ;;  %v8406_v24 = vadd.f32 %v8398_v10, %v7983_v46  ;;  %8416 = vmax.xlane.f32.xlu1 %v8415_v52  ;;  %v10646_v43 = vpop.f32.mrb[51].mxu0  ;;  %v15203_v52 = vld [vmem:[#allocation78_spill] sm:$0xff] }
0x1464   :  { %v8413_v42 = vadd.f32 %v8409_v20, %v15175_v4  ;;  %v15204_v43 = vld [vmem:[#allocation77_spill] sm:$0xff] }
0x1465   :  { %v8410_v58 = vmul.f32 0.25, %v8406_v24  ;;  %v8418_v23 = vsel %vm2652_vm11, %v8412_v45, -inf }
0x1466   :  { %v8421_v63 = vsel %vm2652_vm11, %v8413_v42, -inf  ;;  %8419 = vmax.xlane.f32.xlu0 %v8418_v23 }
0x1467   :  { %v8414_v22 = vadd.f32 %v8410_v58, %v15176_v29  ;;  %8422 = vmax.xlane.f32.xlu1 %v8421_v63  ;;  %v15205_v63 = vld [vmem:[#allocation67_spill] sm:$0xff] }
0x1469   :  { %v8424_v53 = vsel %vm2652_vm11, %v8414_v22, -inf }
0x146a   :  { %8425 = vmax.xlane.f32.xlu0 %v8424_v53  ;;  %v15206_v53 = vld [vmem:[#allocation66_spill] sm:$0xff] }
0x1478   :  { %8459 = vrot.lane.b32.xlu1 %v15197_v7, %s11491_s15 }
0x14f0   :  { %v8417_v55 = vpop.xlane.xlu1 %8416 }
0x14f1   :  { %v8427_v59 = vsub.f32 %v8411_v14, %v8417_v55 }
0x14f3   :  { %v8431_v62 = vmul.f32 1.442695, %v8427_v59  ;;  %v8420_v27 = vpop.xlane.xlu0 %8419 }
0x14f4   :  { %v8428_v4 = vsub.f32 %v8412_v45, %v8420_v27  ;;  %v8423_v30 = vpop.xlane.xlu1 %8422 }
0x14f5   :  { %10939 = vpow2.f32 %v8431_v62  ;;  %v8429_v11 = vsub.f32 %v8413_v42, %v8423_v30 }
0x14f6   :  { %v8433_v21 = vmul.f32 1.442695, %v8428_v4 }
0x14f7   :  { %v8435_v32 = vmul.f32 1.442695, %v8429_v11  ;;  %v8426_v38 = vpop.xlane.xlu0 %8425  ;;  %v15207_v11 = vld [vmem:[#allocation68_spill] sm:$0xff] }
0x14f8   :  { %10941 = vpow2.f32 %v8433_v21  ;;  %v8430_v29 = vsub.f32 %v8414_v22, %v8426_v38  ;;  %v8460_v19 = vpop.permute.xlu1 %8459 }
0x14f9   :  { %10943 = vpow2.f32 %v8435_v32  ;;  %10648 = vmatpush3.msra.mxu1 %v8460_v19  ;;  %v15208_v32 = vld [vmem:[#allocation71_spill] sm:$0xff] }
0x14fa   :  { %v8437_v31 = vmul.f32 1.442695, %v8430_v29  ;;  %10657 = vmatprep.subr.mxu1 %v15196_v13 }
0x14fc   :  { %10945 = vpow2.f32 %v8437_v31 }
0x14ff   :  { %v10940_v0 = vpop.eup %10939 }
0x1500   :  { %v8439_v18 = vsel %vm2652_vm11, %v10940_v0, 0.0 }
0x1501   :  { %8440 = vadd.xlane.f32.xlu1 %v8439_v18  ;;  %v15209_v18 = vld [vmem:[#allocation69_spill] sm:$0xff] }
0x1502   :  { %v10942_v34 = vpop.eup %10941 }
0x1503   :  { %v10944_v47 = vpop.eup %10943  ;;  %v8442_v60 = vsel %vm2652_vm11, %v10942_v34, 0.0 }
0x1504   :  { %8443 = vadd.xlane.f32.xlu0 %v8442_v60  ;;  %v8445_v35 = vsel %vm2652_vm11, %v10944_v47, 0.0 }
0x1505   :  { %8446 = vadd.xlane.f32.xlu1 %v8445_v35 }
0x1506   :  { %v10946_v26 = vpop.eup %10945 }
0x1507   :  { %v8448_v57 = vsel %vm2652_vm11, %v10946_v26, 0.0 }
0x1508   :  { %8449 = vadd.xlane.f32.xlu0 %v8448_v57 }
0x1516   :  { %8611 = vrot.lane.b32.xlu1 %v15198_v25, %s11491_s15  ;;  %v15210_v25 = vld [vmem:[#allocation70_spill] sm:$0xff] }
0x151a   :  { %8687 = vrot.lane.b32.xlu1 %v15199_v33, %s11491_s15 }
0x151e   :  { %7131 = vbcast.lane.b32.xlu1 %v7129_v61, 256  ;;  %8535 = vrot.lane.b32.xlu0 %v15201_v9, %s11491_s15 }
0x1522   :  { %7124 = vbcast.lane.b32.xlu0 %v7122_v8, 256 }
0x158e   :  { %v8441_v2 = vpop.xlane.xlu1 %8440 }
0x158f   :  { %10947 = vrcp.f32 %v8441_v2 }
0x1591   :  { %v8444_v44 = vpop.xlane.xlu0 %8443 }
0x1592   :  { %10949 = vrcp.f32 %v8444_v44  ;;  %v8447_v17 = vpop.xlane.xlu1 %8446 }
0x1593   :  { %10951 = vrcp.f32 %v8447_v17 }
0x1595   :  { %v8450_v5 = vpop.xlane.xlu0 %8449 }
0x1596   :  { %10953 = vrcp.f32 %v8450_v5  ;;  %v8612_v41 = vpop.permute.xlu1 %8611 }
0x1599   :  { %v10948_v56 = vpop.eup %10947  ;;  %v8536_v40 = vpop.permute.xlu0 %8535 }
0x159a   :  { %v8452_v14 = vmul.f32 %v10948_v56, %v10940_v0  ;;  %v8688_v6 = vpop.permute.xlu1 %8687  ;;  %10653 = vmatpush3.msra.mxu0 %v8536_v40 }
0x159b   :  { %10662 = vmatprep.subr.mxu0 %v15196_v13 }
0x159c   :  { %v10950_v50 = vpop.eup %10949  ;;  %10650 = vmatmul.mubr.msk.f32.vlgmr.msra.gmra.mrb[50].mxu1 %vm2652_vm11, %v8452_v14  ;;  %v8773_v28 = vrot.slane %v8452_v14, %v15200_v3  ;;  %v8766_v1 = vrot.slane %v8452_v14, %v15202_v54  ;;  %v8787_v22 = vrot.slane %v8452_v14, %v15205_v63  ;;  %v8780_v7 = vrot.slane %v8452_v14, %v15206_v53 }
0x159d   :  { %v10952_v48 = vpop.eup %10951  ;;  %v14217_v20 = vmul.f32 %v10950_v50, %v10942_v34  ;;  %10658 = vmatpush3.msra.mxu1 %v8612_v41  ;;  %v7125_v46 = vpop.permute.xlu0 %7124  ;;  %10659 = vmatprep.mubr.msk.f32.mxu1 %vm11481_vm1, %v15196_v13  ;;  %v8794_v21 = vrot.slane %v8452_v14, %v15207_v11  ;;  %v8815_v38 = vrot.slane %v8452_v14, %v15208_v32 }
0x159e   :  { %v14221_v10 = vmul.f32 %v10952_v48, %v10944_v47  ;;  %v7343_v45 = vmul.f32 %v7125_v46, %v15203_v52  ;;  %8775 = vbcast.lane.b32.xlu1 %v8773_v28, 256  ;;  %8768 = vbcast.lane.b32.xlu0 %v8766_v1, 256  ;;  %v7132_v24 = vpop.permute.xlu1 %7131  ;;  %v8801_v34 = vrot.slane %v8452_v14, %v15209_v18 }
0x159f   :  { %v7344_v42 = vmul.f32 %v15204_v43, %v7132_v24  ;;  %10655 = vmatmul.mubr.msk.f32.vlgmr.msra.gmra.mrb[52].mxu0 %vm2652_vm11, %v14217_v20  ;;  %v8829_v47 = vrot.slane %v14217_v20, %v15200_v3  ;;  %v8808_v33 = vrot.slane %v8452_v14, %v15210_v25  ;;  %v8836_v61 = vrot.slane %v14217_v20, %v15206_v53 }
0x15a0   :  { %v10954_v58 = vpop.eup %10953  ;;  %v7375_v23 = vsel %vm3261_vm10, %v7343_v45, 0.0  ;;  %10660 = vmatmul.mubr.msk.f32.vlgmr.msra.gmra.mrb[52].mxu1 %vm2652_vm11, %v14221_v10  ;;  %10663 = vmatpush3.msra.mxu0 %v8688_v6  ;;  %v8822_v8 = vrot.slane %v14217_v20, %v15202_v54  ;;  %v8843_v2 = vrot.slane %v14217_v20, %v15205_v63  ;;  %v8850_v44 = vrot.slane %v14217_v20, %v15207_v11 }
0x15a1   :  { %v14232_v55 = vmul.f32 %v10954_v58, %v10946_v26  ;;  %v7376_v59 = vrot.slane %v7375_v23, 4  ;;  %v7382_v62 = vsel %vm3261_vm10, %v7344_v42, 0.0  ;;  %10664 = vmatprep.mubr.msk.f32.mxu0 %vm11481_vm1, %v15196_v13  ;;  %v8878_v17 = vrot.slane %v14221_v10, %v15202_v54  ;;  %vm10784_vm1 = vmpackc.low %vm321_vm0, %vm321_vm0 }
0x15a2   :  { %v7383_v27 = vrot.slane %v7382_v62, 4  ;;  %8789 = vbcast.lane.b32.xlu1 %v8787_v22, 256  ;;  %8782 = vbcast.lane.b32.xlu0 %v8780_v7, 256  ;;  %v8885_v5 = vrot.slane %v14221_v10, %v15200_v3  ;;  %v8892_v41 = vrot.slane %v14221_v10, %v15206_v53  ;;  %v8857_v56 = vrot.slane %v14217_v20, %v15209_v18 }
0x15a3   :  { %v7377_v4 = vadd.f32 %v7376_v59, %v7375_v23  ;;  %10665 = vmatmul.mubr.msk.f32.vlgmr.msra.gmra.mrb[54].mxu0 %vm2652_vm11, %v14232_v55  ;;  %v8864_v40 = vrot.slane %v14217_v20, %v15210_v25  ;;  %v8899_v14 = vrot.slane %v14221_v10, %v15205_v63  ;;  %v8906_v6 = vrot.slane %v14221_v10, %v15207_v11 }
0x15a4   :  { %v7384_v30 = vadd.f32 %v7383_v27, %v7382_v62  ;;  %v8871_v50 = vrot.slane %v14217_v20, %v15208_v32  ;;  %v8913_v28 = vrot.slane %v14221_v10, %v15209_v18  ;;  %v8934_v1 = vrot.slane %v14232_v55, %v15202_v54 }
0x15a5   :  { %v7378_v29 = vrot.slane %v7377_v4, 2  ;;  %v8920_v48 = vrot.slane %v14221_v10, %v15210_v25  ;;  %v8955_v46 = vrot.slane %v14232_v55, %v15205_v63  ;;  %v8927_v45 = vrot.slane %v14221_v10, %v15208_v32 }
0x15a6   :  { %v7385_v19 = vrot.slane %v7384_v30, 2  ;;  %8796 = vbcast.lane.b32.xlu1 %v8794_v21, 256  ;;  %8817 = vbcast.lane.b32.xlu0 %v8815_v38, 256  ;;  %v8962_v20 = vrot.slane %v14232_v55, %v15207_v11  ;;  %v8941_v24 = vrot.slane %v14232_v55, %v15200_v3  ;;  %v8969_v42 = vrot.slane %v14232_v55, %v15209_v18 }
0x15a7   :  { %v7379_v31 = vadd.f32 %v7378_v29, %v7377_v4  ;;  %v8948_v58 = vrot.slane %v14232_v55, %v15206_v53  ;;  %v8976_v10 = vrot.slane %v14232_v55, %v15210_v25  ;;  %v8983_v23 = vrot.slane %v14232_v55, %v15208_v32 }
0x15a8   :  { %v7386_v0 = vadd.f32 %v7385_v19, %v7384_v30  ;;  %v7136_v22 = vrot.slane %v14010_v12, %v15206_v53  ;;  %v7178_v7 = vrot.slane %v14018_v39, %v15202_v54  ;;  %v7185_v59 = vrot.slane %v14018_v39, %v15200_v3 }
0x15a9   :  { %v7380_v60 = vrot.slane %v7379_v31, 1  ;;  %v7143_v62 = vrot.slane %v14010_v12, %v15205_v63  ;;  %v7192_v55 = vrot.slane %v14018_v39, %v15206_v53  ;;  %v7150_v27 = vrot.slane %v14010_v12, %v15207_v11 }
0x15aa   :  { %v7387_v35 = vrot.slane %v7386_v0, 1  ;;  %8803 = vbcast.lane.b32.xlu1 %v8801_v34, 256  ;;  %8831 = vbcast.lane.b32.xlu0 %v8829_v47, 256  ;;  %v7199_v4 = vrot.slane %v14018_v39, %v15205_v63  ;;  %v7157_v30 = vrot.slane %v14010_v12, %v15209_v18  ;;  %v7206_v21 = vrot.slane %v14018_v39, %v15207_v11 }
0x15ab   :  { %v7381_v26 = vadd.f32 %v7380_v60, %v7379_v31  ;;  %v7234_v38 = vrot.slane %v14028_v37, %v15202_v54  ;;  %v7241_v29 = vrot.slane %v14028_v37, %v15200_v3  ;;  %v7164_v19 = vrot.slane %v14010_v12, %v15210_v25 }
0x15ac   :  { %v7388_v57 = vadd.f32 %v7387_v35, %v7386_v0  ;;  %v7213_v31 = vrot.slane %v14018_v39, %v15209_v18  ;;  %v7248_v0 = vrot.slane %v14028_v37, %v15206_v53  ;;  %v7290_v34 = vrot.slane %v14037_v36, %v15202_v54 }
0x15ad   :  { %v7297_v47 = vrot.slane %v14037_v36, %v15200_v3  ;;  %v7171_v60 = vrot.slane %v14010_v12, %v15208_v32  ;;  %v7220_v35 = vrot.slane %v14018_v39, %v15210_v25  ;;  %v7311_v12 = vrot.slane %v14037_v36, %v15205_v63 }
0x15ae   :  { %v14248_v9 = vsel %vm2601_vm12, %v7388_v57, %v7381_v26  ;;  %8810 = vbcast.lane.b32.xlu1 %v8808_v33, 256  ;;  %8838 = vbcast.lane.b32.xlu0 %v8836_v61, 256  ;;  %v7255_v26 = vrot.slane %v14028_v37, %v15205_v63  ;;  %v7304_v57 = vrot.slane %v14037_v36, %v15206_v53 }
0x15af   :  { %v7227_v33 = vrot.slane %v14018_v39, %v15208_v32  ;;  %v7262_v61 = vrot.slane %v14028_v37, %v15207_v11  ;;  %v7318_v53 = vrot.slane %v14037_v36, %v15207_v11  ;;  %v7283_v63 = vrot.slane %v14028_v37, %v15208_v32 }
0x15b2   :  { %8824 = vbcast.lane.b32.xlu1 %v8822_v8, 256  ;;  %8845 = vbcast.lane.b32.xlu0 %v8843_v2, 256  ;;  %v7269_v8 = vrot.slane %v14028_v37, %v15209_v18  ;;  %v7276_v2 = vrot.slane %v14028_v37, %v15210_v25  ;;  %v7339_v37 = vrot.slane %v14037_v36, %v15208_v32  ;;  %v15214_v32 = vld [vmem:[#allocation83_spill] sm:$0xff] }
0x15b6   :  { %8852 = vbcast.lane.b32.xlu0 %v8850_v44, 256  ;;  %8880 = vbcast.lane.b32.xlu1 %v8878_v17, 256  ;;  %v7325_v17 = vrot.slane %v14037_v36, %v15209_v18  ;;  %v7332_v18 = vrot.slane %v14037_v36, %v15210_v25 }
0x15ba   :  { %8887 = vbcast.lane.b32.xlu0 %v8885_v5, 256  ;;  %8894 = vbcast.lane.b32.xlu1 %v8892_v41, 256 }
0x15be   :  { %8859 = vbcast.lane.b32.xlu0 %v8857_v56, 256  ;;  %8866 = vbcast.lane.b32.xlu1 %v8864_v40, 256 }
0x15c2   :  { %8901 = vbcast.lane.b32.xlu0 %v8899_v14, 256  ;;  %8908 = vbcast.lane.b32.xlu1 %v8906_v6, 256 }
0x15c6   :  { %8873 = vbcast.lane.b32.xlu0 %v8871_v50, 256  ;;  %8915 = vbcast.lane.b32.xlu1 %v8913_v28, 256  ;;  %v15211_v28 = vld [vmem:[#allocation80_spill] sm:$0xff] }
0x15ca   :  { %8936 = vbcast.lane.b32.xlu0 %v8934_v1, 256  ;;  %8922 = vbcast.lane.b32.xlu1 %v8920_v48, 256  ;;  %v15212_v48 = vld [vmem:[#allocation79_spill] sm:$0xff] }
0x15ce   :  { %8957 = vbcast.lane.b32.xlu0 %v8955_v46, 256  ;;  %8929 = vbcast.lane.b32.xlu1 %v8927_v45, 256 }
0x15d2   :  { %8964 = vbcast.lane.b32.xlu0 %v8962_v20, 256  ;;  %8943 = vbcast.lane.b32.xlu1 %v8941_v24, 256 }
0x15d6   :  { %8971 = vbcast.lane.b32.xlu0 %v8969_v42, 256  ;;  %8950 = vbcast.lane.b32.xlu1 %v8948_v58, 256 }
0x15da   :  { %8978 = vbcast.lane.b32.xlu0 %v8976_v10, 256  ;;  %8985 = vbcast.lane.b32.xlu1 %v8983_v23, 256 }
0x15de   :  { %7138 = vbcast.lane.b32.xlu0 %v7136_v22, 256  ;;  %7180 = vbcast.lane.b32.xlu1 %v7178_v7, 256 }
0x15e2   :  { %7187 = vbcast.lane.b32.xlu0 %v7185_v59, 256  ;;  %7145 = vbcast.lane.b32.xlu1 %v7143_v62, 256  ;;  %v15213_v59 = vld [vmem:[#allocation84_spill] sm:$0xff] }
0x15e6   :  { %7194 = vbcast.lane.b32.xlu0 %v7192_v55, 256  ;;  %7152 = vbcast.lane.b32.xlu1 %v7150_v27, 256 }
0x15ea   :  { %7201 = vbcast.lane.b32.xlu0 %v7199_v4, 256  ;;  %7159 = vbcast.lane.b32.xlu1 %v7157_v30, 256 }
0x15ee   :  { %7208 = vbcast.lane.b32.xlu0 %v7206_v21, 256  ;;  %7236 = vbcast.lane.b32.xlu1 %v7234_v38, 256 }
0x15f2   :  { %7243 = vbcast.lane.b32.xlu0 %v7241_v29, 256  ;;  %7166 = vbcast.lane.b32.xlu1 %v7164_v19, 256 }
0x15f6   :  { %7215 = vbcast.lane.b32.xlu0 %v7213_v31, 256  ;;  %7250 = vbcast.lane.b32.xlu1 %v7248_v0, 256 }
0x15fa   :  { %7292 = vbcast.lane.b32.xlu0 %v7290_v34, 256  ;;  %7299 = vbcast.lane.b32.xlu1 %v7297_v47, 256 }
0x15fe   :  { %7173 = vbcast.lane.b32.xlu0 %v7171_v60, 256  ;;  %7222 = vbcast.lane.b32.xlu1 %v7220_v35, 256 }
0x1602   :  { %7257 = vbcast.lane.b32.xlu0 %v7255_v26, 256  ;;  %7306 = vbcast.lane.b32.xlu1 %v7304_v57, 256  ;;  %v15215_v26 = vld [vmem:[#allocation87_spill] sm:$0xff] }
0x1606   :  { %7229 = vbcast.lane.b32.xlu0 %v7227_v33, 256  ;;  %7264 = vbcast.lane.b32.xlu1 %v7262_v61, 256  ;;  %v15216_v33 = vld [vmem:[#allocation82_spill] sm:$0xff] }
0x160a   :  { %7313 = vbcast.lane.b32.xlu0 %v7311_v12, 256  ;;  %7271 = vbcast.lane.b32.xlu1 %v7269_v8, 256 }
0x160e   :  { %7320 = vbcast.lane.b32.xlu0 %v7318_v53, 256  ;;  %7278 = vbcast.lane.b32.xlu1 %v7276_v2, 256 }
0x1610   :  { %v8769_v39 = vpop.permute.xlu0 %8768  ;;  %v8776_v44 = vpop.permute.xlu1 %8775 }
0x1611   :  { %v8987_v5 = vmul.f32 %v8769_v39, %v15203_v52  ;;  %v8988_v41 = vmul.f32 %v15204_v43, %v8776_v44 }
0x1612   :  { %7327 = vbcast.lane.b32.xlu0 %v7325_v17, 256  ;;  %7285 = vbcast.lane.b32.xlu1 %v7283_v63, 256 }
0x1613   :  { %v9019_v11 = vsel %vm4906_vm5, %v8987_v5, 0.0  ;;  %v9026_v56 = vsel %vm4906_vm5, %v8988_v41, 0.0 }
0x1614   :  { %v9020_v40 = vrot.slane %v9019_v11, 4  ;;  %v9027_v14 = vrot.slane %v9026_v56, 4  ;;  %v8783_v6 = vpop.permute.xlu0 %8782  ;;  %v8790_v50 = vpop.permute.xlu1 %8789 }
0x1615   :  { %v8989_v1 = vmul.f32 %v8783_v6, %v15211_v28  ;;  %v8990_v46 = vmul.f32 %v15212_v48, %v8790_v50 }
0x1616   :  { %v9021_v45 = vadd.f32 %v9020_v40, %v9019_v11  ;;  %v9028_v20 = vadd.f32 %v9027_v14, %v9026_v56  ;;  %7334 = vbcast.lane.b32.xlu0 %v7332_v18, 256  ;;  %7341 = vbcast.lane.b32.xlu1 %v7339_v37, 256  ;;  %v15217_v37 = vld [vmem:[#allocation90_spill] sm:$0xff] }
0x1617   :  { %v9033_v24 = vsel %vm4906_vm5, %v8989_v1, 0.0  ;;  %v9040_v42 = vsel %vm4906_vm5, %v8990_v46, 0.0 }
0x1618   :  { %v9022_v58 = vrot.slane %v9021_v45, 2  ;;  %v9029_v10 = vrot.slane %v9028_v20, 2  ;;  %v9034_v23 = vrot.slane %v9033_v24, 4  ;;  %v9041_v22 = vrot.slane %v9040_v42, 4  ;;  %v8818_v25 = vpop.permute.xlu0 %8817  ;;  %v8797_v7 = vpop.permute.xlu1 %8796 }
0x1619   :  { %v8994_v36 = vmul.f32 %v15213_v59, %v8818_v25  ;;  %v8991_v62 = vmul.f32 %v8797_v7, %v15214_v32 }
0x161a   :  { %v9023_v55 = vadd.f32 %v9022_v58, %v9021_v45  ;;  %v9030_v27 = vadd.f32 %v9029_v10, %v9028_v20  ;;  %v9035_v4 = vadd.f32 %v9034_v23, %v9033_v24  ;;  %v9042_v30 = vadd.f32 %v9041_v22, %v9040_v42  ;;  %v15218_v24 = vld [vmem:[#allocation85_spill] sm:$0xff] }
0x161b   :  { %v9068_v21 = vsel %vm4906_vm5, %v8994_v36, 0.0  ;;  %v9047_v38 = vsel %vm4906_vm5, %v8991_v62, 0.0 }
0x161c   :  { %v9024_v29 = vrot.slane %v9023_v55, 1  ;;  %v9031_v19 = vrot.slane %v9030_v27, 1  ;;  %v9036_v31 = vrot.slane %v9035_v4, 2  ;;  %v9043_v0 = vrot.slane %v9042_v30, 2  ;;  %v8832_v34 = vpop.permute.xlu0 %8831  ;;  %v8804_v47 = vpop.permute.xlu1 %8803 }
0x161d   :  { %v9069_v60 = vrot.slane %v9068_v21, 4  ;;  %v9048_v35 = vrot.slane %v9047_v38, 4  ;;  %v8996_v57 = vmul.f32 %v15215_v26, %v8832_v34  ;;  %v8992_v61 = vmul.f32 %v15216_v33, %v8804_v47  ;;  %v15220_v34 = vld [vmem:[#allocation88_spill] sm:$0xff] }
0x161e   :  { %v9025_v12 = vadd.f32 %v9024_v29, %v9023_v55  ;;  %v9032_v8 = vadd.f32 %v9031_v19, %v9030_v27  ;;  %v9037_v53 = vadd.f32 %v9036_v31, %v9035_v4  ;;  %v9044_v2 = vadd.f32 %v9043_v0, %v9042_v30  ;;  %v15219_v31 = vld [vmem:[#allocation89_spill] sm:$0xff] }
0x161f   :  { %v9070_v39 = vadd.f32 %v9069_v60, %v9068_v21  ;;  %v9049_v44 = vadd.f32 %v9048_v35, %v9047_v38  ;;  %v9082_v17 = vsel %vm4906_vm5, %v8996_v57, 0.0  ;;  %v9054_v63 = vsel %vm4906_vm5, %v8992_v61, 0.0 }
0x1620   :  { %v9275_v5 = vsel %vm2601_vm12, %v9032_v8, %v9025_v12  ;;  %v9038_v41 = vrot.slane %v9037_v53, 1  ;;  %v9045_v11 = vrot.slane %v9044_v2, 1  ;;  %v9083_v56 = vrot.slane %v9082_v17, 4  ;;  %v8839_v40 = vpop.permute.xlu0 %8838  ;;  %v8811_v14 = vpop.permute.xlu1 %8810 }
0x1621   :  { %v9071_v6 = vrot.slane %v9070_v39, 2  ;;  %v9050_v50 = vrot.slane %v9049_v44, 2  ;;  %v9055_v18 = vrot.slane %v9054_v63, 4  ;;  %v8997_v1 = vmul.f32 %v8839_v40, %v15217_v37  ;;  %v15221_v40 = vld [vmem:[#allocation93_spill] sm:$0xff] }
0x1622   :  { %v9039_v46 = vadd.f32 %v9038_v41, %v9037_v53  ;;  %v9046_v45 = vadd.f32 %v9045_v11, %v9044_v2  ;;  %v9084_v20 = vadd.f32 %v9083_v56, %v9082_v17  ;;  %v8993_v42 = vmul.f32 %v8811_v14, %v15218_v24 }
0x1623   :  { %v9072_v58 = vadd.f32 %v9071_v6, %v9070_v39  ;;  %v9051_v10 = vadd.f32 %v9050_v50, %v9049_v44  ;;  %v9056_v23 = vadd.f32 %v9055_v18, %v9054_v63  ;;  %v9089_v22 = vsel %vm4906_vm5, %v8997_v1, 0.0 }
0x1624   :  { %v9276_v25 = vsel %vm2603_vm14, %v9039_v46, %v9275_v5  ;;  %v9085_v7 = vrot.slane %v9084_v20, 2  ;;  %v9090_v36 = vrot.slane %v9089_v22, 4  ;;  %v9061_v62 = vsel %vm4906_vm5, %v8993_v42, 0.0  ;;  %v8846_v55 = vpop.permute.xlu0 %8845  ;;  %v8825_v27 = vpop.permute.xlu1 %8824 }
0x1625   :  { %v9073_v4 = vrot.slane %v9072_v58, 1  ;;  %v9052_v30 = vrot.slane %v9051_v10, 1  ;;  %v9057_v21 = vrot.slane %v9056_v23, 2  ;;  %v9062_v38 = vrot.slane %v9061_v62, 4 }
0x1626   :  { %v9086_v29 = vadd.f32 %v9085_v7, %v9084_v20  ;;  %v9091_v19 = vadd.f32 %v9090_v36, %v9089_v22  ;;  %v8998_v0 = vmul.f32 %v15219_v31, %v8846_v55  ;;  %v8995_v47 = vmul.f32 %v8825_v27, %v15220_v34 }
0x1627   :  { %v9053_v60 = vadd.f32 %v9052_v30, %v9051_v10  ;;  %v9058_v35 = vadd.f32 %v9057_v21, %v9056_v23  ;;  %v9063_v57 = vadd.f32 %v9062_v38, %v9061_v62  ;;  %v14378_v61 = vadd.f32 %v9073_v4, %v9072_v58 }
0x1628   :  { %v9087_v12 = vrot.slane %v9086_v29, 1  ;;  %v9092_v8 = vrot.slane %v9091_v19, 2  ;;  %v9096_v53 = vsel %vm4906_vm5, %v8998_v0, 0.0  ;;  %v9075_v2 = vsel %vm4906_vm5, %v8995_v47, 0.0  ;;  %v8853_v39 = vpop.permute.xlu0 %8852  ;;  %v8881_v44 = vpop.permute.xlu1 %8880 }
0x1629   :  { %v9059_v17 = vrot.slane %v9058_v35, 1  ;;  %v9064_v63 = vrot.slane %v9063_v57, 2  ;;  %v9097_v5 = vrot.slane %v9096_v53, 4  ;;  %v9076_v41 = vrot.slane %v9075_v2, 4 }
0x162a   :  { %v9088_v11 = vadd.f32 %v9087_v12, %v9086_v29  ;;  %v9093_v56 = vadd.f32 %v9092_v8, %v9091_v19  ;;  %v8999_v14 = vmul.f32 %v8853_v39, %v15221_v40  ;;  %v9003_v6 = vmul.f32 %v8881_v44, %v15203_v52 }
0x162b   :  { %v9060_v50 = vadd.f32 %v9059_v17, %v9058_v35  ;;  %v9065_v18 = vadd.f32 %v9064_v63, %v9063_v57  ;;  %v9098_v1 = vadd.f32 %v9097_v5, %v9096_v53  ;;  %v9077_v46 = vadd.f32 %v9076_v41, %v9075_v2  ;;  %v15222_v63 = vld [vmem:[#allocation91_spill] sm:$0xff] }
0x162c   :  { %v9094_v20 = vrot.slane %v9093_v56, 1  ;;  %v9103_v42 = vsel %vm4906_vm5, %v8999_v14, 0.0  ;;  %v9131_v58 = vsel %vm4906_vm5, %v9003_v6, 0.0  ;;  %v8888_v10 = vpop.permute.xlu0 %8887  ;;  %v8895_v23 = vpop.permute.xlu1 %8894  ;;  %v9277_v22 = vsel %vm2605_vm15, %v9046_v45, %v9276_v25  ;;  %v15223_v41 = vld [vmem:[#allocation95_spill] sm:$0xff] }
0x162d   :  { %v9066_v7 = vrot.slane %v9065_v18, 1  ;;  %v9099_v36 = vrot.slane %v9098_v1, 2  ;;  %v9078_v62 = vrot.slane %v9077_v46, 2  ;;  %v9104_v55 = vrot.slane %v9103_v42, 4 }
0x162e   :  { %v14387_v27 = vadd.f32 %v9094_v20, %v9093_v56  ;;  %v9132_v4 = vrot.slane %v9131_v58, 4  ;;  %v9004_v30 = vmul.f32 %v15204_v43, %v8888_v10  ;;  %v9005_v21 = vmul.f32 %v8895_v23, %v15211_v28 }
0x162f   :  { %v9067_v38 = vadd.f32 %v9066_v7, %v9065_v18  ;;  %v9100_v29 = vadd.f32 %v9099_v36, %v9098_v1  ;;  %v9079_v19 = vadd.f32 %v9078_v62, %v9077_v46  ;;  %v9105_v0 = vadd.f32 %v9104_v55, %v9103_v42 }
0x1630   :  { %v9133_v47 = vadd.f32 %v9132_v4, %v9131_v58  ;;  %v9138_v35 = vsel %vm4906_vm5, %v9004_v30, 0.0  ;;  %v9145_v45 = vsel %vm4906_vm5, %v9005_v21, 0.0  ;;  %v8860_v25 = vpop.permute.xlu0 %8859  ;;  %v8867_v57 = vpop.permute.xlu1 %8866  ;;  %v9278_v12 = vsel %vm2607_vm3, %v9053_v60, %v9277_v22 }
0x1631   :  { %v9101_v8 = vrot.slane %v9100_v29, 1  ;;  %v9080_v53 = vrot.slane %v9079_v19, 1  ;;  %v9106_v2 = vrot.slane %v9105_v0, 2  ;;  %v9139_v39 = vrot.slane %v9138_v35, 4 }
0x1632   :  { %v9134_v44 = vrot.slane %v9133_v47, 2  ;;  %v9146_v17 = vrot.slane %v9145_v45, 4  ;;  %v9000_v5 = vmul.f32 %v15222_v63, %v8860_v25  ;;  %v9001_v56 = vmul.f32 %v8867_v57, %v15223_v41 }
0x1633   :  { %v14396_v14 = vadd.f32 %v9101_v8, %v9100_v29  ;;  %v9081_v6 = vadd.f32 %v9080_v53, %v9079_v19  ;;  %v9107_v18 = vadd.f32 %v9106_v2, %v9105_v0  ;;  %v9140_v1 = vadd.f32 %v9139_v39, %v9138_v35 }
0x1634   :  { %v9135_v46 = vadd.f32 %v9134_v44, %v9133_v47  ;;  %v9147_v20 = vadd.f32 %v9146_v17, %v9145_v45  ;;  %v9110_v42 = vsel %vm4906_vm5, %v9000_v5, 0.0  ;;  %v9117_v60 = vsel %vm4906_vm5, %v9001_v56, 0.0  ;;  %v8902_v58 = vpop.permute.xlu0 %8901  ;;  %v8909_v10 = vpop.permute.xlu1 %8908  ;;  %v15224_v44 = vld [vmem:[#allocation94_spill] sm:$0xff] }
0x1635   :  { %v14401_v23 = vsel %vm2601_vm12, %v9088_v11, %v9081_v6  ;;  %v9108_v22 = vrot.slane %v9107_v18, 1  ;;  %v9141_v7 = vrot.slane %v9140_v1, 2  ;;  %v9111_v36 = vrot.slane %v9110_v42, 4 }
0x1636   :  { %v9136_v62 = vrot.slane %v9135_v46, 1  ;;  %v9148_v55 = vrot.slane %v9147_v20, 2  ;;  %v9118_v4 = vrot.slane %v9117_v60, 4  ;;  %v9279_v30 = vsel %vm2609_vm6, %v9060_v50, %v9278_v12 }
0x1637   :  { %v14404_v21 = vadd.f32 %v9108_v22, %v9107_v18  ;;  %v9142_v29 = vadd.f32 %v9141_v7, %v9140_v1  ;;  %v9112_v19 = vadd.f32 %v9111_v36, %v9110_v42  ;;  %v9280_v0 = vsel %vm2611_vm8, %v9067_v38, %v9279_v30 }
0x1638   :  { %v9137_v47 = vadd.f32 %v9136_v62, %v9135_v46  ;;  %v9149_v35 = vadd.f32 %v9148_v55, %v9147_v20  ;;  %v9119_v45 = vadd.f32 %v9118_v4, %v9117_v60  ;;  %v9281_v11 = vsel %vm2613_vm9, %v14378_v61, %v9280_v0  ;;  %v8874_v25 = vpop.permute.xlu0 %8873  ;;  %v8916_v57 = vpop.permute.xlu1 %8915 }
0x1639   :  { %v9143_v8 = vrot.slane %v9142_v29, 1  ;;  %v9113_v53 = vrot.slane %v9112_v19, 2  ;;  %9303 = vrot.lane.b32.xlu0 %v9281_v11, %s11489_s9  ;;  %v9006_v50 = vmul.f32 %v15212_v48, %v8902_v58  ;;  %v9007_v12 = vmul.f32 %v8909_v10, %v15214_v32 }
0x163a   :  { %v9150_v2 = vrot.slane %v9149_v35, 1  ;;  %v9120_v39 = vrot.slane %v9119_v45, 2  ;;  %v9002_v38 = vmul.f32 %v15224_v44, %v8874_v25  ;;  %v9008_v17 = vmul.f32 %v15216_v33, %v8916_v57 }
0x163b   :  { %v9144_v5 = vadd.f32 %v9143_v8, %v9142_v29  ;;  %v9114_v56 = vadd.f32 %v9113_v53, %v9112_v19  ;;  %v9152_v61 = vsel %vm4906_vm5, %v9006_v50, 0.0  ;;  %v9159_v6 = vsel %vm4906_vm5, %v9007_v12, 0.0 }
0x163c   :  { %v9151_v18 = vadd.f32 %v9150_v2, %v9149_v35  ;;  %v9121_v1 = vadd.f32 %v9120_v39, %v9119_v45  ;;  %v9153_v46 = vrot.slane %v9152_v61, 4  ;;  %v9160_v20 = vrot.slane %v9159_v6, 4  ;;  %v8937_v42 = vpop.permute.xlu0 %8936  ;;  %v8923_v60 = vpop.permute.xlu1 %8922 }
0x163d   :  { %v9289_v58 = vsel %vm2601_vm12, %v9144_v5, %v9137_v47  ;;  %v9115_v10 = vrot.slane %v9114_v56, 1  ;;  %v9124_v22 = vsel %vm4906_vm5, %v9002_v38, 0.0  ;;  %v9166_v7 = vsel %vm4906_vm5, %v9008_v17, 0.0 }
0x163e   :  { %v9290_v36 = vsel %vm2603_vm14, %v9151_v18, %v9289_v58  ;;  %v9122_v62 = vrot.slane %v9121_v1, 1  ;;  %v9154_v55 = vadd.f32 %v9153_v46, %v9152_v61  ;;  %v9161_v4 = vadd.f32 %v9160_v20, %v9159_v6 }
0x163f   :  { %v14420_v30 = vadd.f32 %v9115_v10, %v9114_v56  ;;  %v9125_v29 = vrot.slane %v9124_v22, 4  ;;  %v9167_v19 = vrot.slane %v9166_v7, 4  ;;  %v9011_v0 = vmul.f32 %v8937_v42, %v15220_v34 }
0x1640   :  { %v14423_v35 = vadd.f32 %v9122_v62, %v9121_v1  ;;  %v9155_v45 = vrot.slane %v9154_v55, 2  ;;  %v9162_v47 = vrot.slane %v9161_v4, 2  ;;  %v9009_v11 = vmul.f32 %v8923_v60, %v15218_v24  ;;  %v8958_v25 = vpop.permute.xlu0 %8957  ;;  %v8930_v57 = vpop.permute.xlu1 %8929 }
0x1641   :  { %v9126_v8 = vadd.f32 %v9125_v29, %v9124_v22  ;;  %v9168_v53 = vadd.f32 %v9167_v19, %v9166_v7  ;;  %v9187_v50 = vsel %vm4906_vm5, %v9011_v0, 0.0  ;;  %v9014_v12 = vmul.f32 %v15219_v31, %v8958_v25 }
0x1642   :  { %v9156_v2 = vadd.f32 %v9155_v45, %v9154_v55  ;;  %v9163_v39 = vadd.f32 %v9162_v47, %v9161_v4  ;;  %v9188_v38 = vrot.slane %v9187_v50, 4  ;;  %v9173_v17 = vsel %vm4906_vm5, %v9009_v11, 0.0 }
0x1643   :  { %v9127_v5 = vrot.slane %v9126_v8, 2  ;;  %v9169_v56 = vrot.slane %v9168_v53, 2  ;;  %v9174_v61 = vrot.slane %v9173_v17, 4  ;;  %v9208_v6 = vsel %vm4906_vm5, %v9014_v12, 0.0 }
0x1644   :  { %v9157_v18 = vrot.slane %v9156_v2, 1  ;;  %v9164_v1 = vrot.slane %v9163_v39, 1  ;;  %v9189_v46 = vadd.f32 %v9188_v38, %v9187_v50  ;;  %v9209_v20 = vrot.slane %v9208_v6, 4  ;;  %v8965_v42 = vpop.permute.xlu0 %8964  ;;  %v8944_v60 = vpop.permute.xlu1 %8943 }
0x1645   :  { %v9128_v58 = vadd.f32 %v9127_v5, %v9126_v8  ;;  %v9170_v10 = vadd.f32 %v9169_v56, %v9168_v53  ;;  %v9175_v22 = vadd.f32 %v9174_v61, %v9173_v17  ;;  %v9010_v7 = vmul.f32 %v15213_v59, %v8930_v57 }
0x1646   :  { %v9158_v62 = vadd.f32 %v9157_v18, %v9156_v2  ;;  %v14431_v55 = vadd.f32 %v9164_v1, %v9163_v39  ;;  %v9190_v4 = vrot.slane %v9189_v46, 2  ;;  %v9210_v29 = vadd.f32 %v9209_v20, %v9208_v6 }
0x1647   :  { %v9129_v19 = vrot.slane %v9128_v58, 1  ;;  %v9171_v0 = vrot.slane %v9170_v10, 1  ;;  %v9176_v45 = vrot.slane %v9175_v22, 2  ;;  %v9180_v47 = vsel %vm4906_vm5, %v9010_v7, 0.0 }
0x1648   :  { %v14435_v11 = vsel %vm2605_vm15, %v9158_v62, %v9290_v36  ;;  %v9191_v25 = vadd.f32 %v9190_v4, %v9189_v46  ;;  %v9211_v50 = vrot.slane %v9210_v29, 2  ;;  %v9181_v8 = vrot.slane %v9180_v47, 4  ;;  %v8972_v53 = vpop.permute.xlu0 %8971  ;;  %v8951_v12 = vpop.permute.xlu1 %8950 }
0x1649   :  { %v9130_v38 = vadd.f32 %v9129_v19, %v9128_v58  ;;  %v14437_v57 = vadd.f32 %v9171_v0, %v9170_v10  ;;  %v9177_v2 = vadd.f32 %v9176_v45, %v9175_v22  ;;  %v9015_v39 = vmul.f32 %v8965_v42, %v15221_v40 }
0x164a   :  { %v9192_v17 = vrot.slane %v9191_v25, 1  ;;  %v9212_v5 = vadd.f32 %v9211_v50, %v9210_v29  ;;  %v9182_v56 = vadd.f32 %v9181_v8, %v9180_v47  ;;  %v9012_v61 = vmul.f32 %v15215_v26, %v8944_v60 }
0x164b   :  { %v9178_v6 = vrot.slane %v9177_v2, 1  ;;  %v9215_v36 = vsel %vm4906_vm5, %v9015_v39, 0.0  ;;  %v9016_v18 = vmul.f32 %v15222_v63, %v8972_v53  ;;  %v9013_v1 = vmul.f32 %v8951_v12, %v15217_v37 }
0x164c   :  { %v14444_v46 = vadd.f32 %v9192_v17, %v9191_v25  ;;  %v9213_v20 = vrot.slane %v9212_v5, 1  ;;  %v9183_v58 = vrot.slane %v9182_v56, 2  ;;  %v9216_v10 = vrot.slane %v9215_v36, 4  ;;  %v8979_v22 = vpop.permute.xlu0 %8978  ;;  %v8986_v7 = vpop.permute.xlu1 %8985 }
0x164d   :  { %v14446_v42 = vadd.f32 %v9178_v6, %v9177_v2  ;;  %v9194_v62 = vsel %vm4906_vm5, %v9012_v61, 0.0  ;;  %v9222_v60 = vsel %vm4906_vm5, %v9016_v18, 0.0  ;;  %v9201_v4 = vsel %vm4906_vm5, %v9013_v1, 0.0 }
0x164e   :  { %v14451_v29 = vadd.f32 %v9213_v20, %v9212_v5  ;;  %v9184_v19 = vadd.f32 %v9183_v58, %v9182_v56  ;;  %v9217_v0 = vadd.f32 %v9216_v10, %v9215_v36  ;;  %v9195_v45 = vrot.slane %v9194_v62, 4 }
0x164f   :  { %v9223_v47 = vrot.slane %v9222_v60, 4  ;;  %v9202_v25 = vrot.slane %v9201_v4, 4  ;;  %v9283_v50 = vsel %vm2603_vm14, %v14387_v27, %v14401_v23  ;;  %v9017_v8 = vmul.f32 %v8979_v22, %v15223_v41 }
0x1650   :  { %v9185_v53 = vrot.slane %v9184_v19, 1  ;;  %v9218_v12 = vrot.slane %v9217_v0, 2  ;;  %v9196_v2 = vadd.f32 %v9195_v45, %v9194_v62  ;;  %v9284_v39 = vsel %vm2605_vm15, %v14396_v14, %v9283_v50  ;;  %v7139_v17 = vpop.permute.xlu0 %7138  ;;  %v7181_v5 = vpop.permute.xlu1 %7180 }
0x1651   :  { %v9224_v61 = vadd.f32 %v9223_v47, %v9222_v60  ;;  %v9203_v56 = vadd.f32 %v9202_v25, %v9201_v4  ;;  %v9285_v6 = vsel %vm2607_vm3, %v14404_v21, %v9284_v39  ;;  %v9229_v36 = vsel %vm4906_vm5, %v9017_v8, 0.0 }
0x1652   :  { %v9186_v18 = vadd.f32 %v9185_v53, %v9184_v19  ;;  %v9219_v1 = vadd.f32 %v9218_v12, %v9217_v0  ;;  %v9197_v27 = vrot.slane %v9196_v2, 2  ;;  %v9286_v23 = vsel %vm2609_vm6, %v14420_v30, %v9285_v6 }
0x1653   :  { %v9225_v20 = vrot.slane %v9224_v61, 2  ;;  %v9204_v58 = vrot.slane %v9203_v56, 2  ;;  %v9287_v14 = vsel %vm2611_vm8, %v14423_v35, %v9286_v23  ;;  %v9230_v10 = vrot.slane %v9229_v36, 4 }
0x1654   :  { %v9220_v22 = vrot.slane %v9219_v1, 1  ;;  %v9198_v62 = vadd.f32 %v9197_v27, %v9196_v2  ;;  %v9288_v60 = vsel %vm2613_vm9, %v9130_v38, %v9287_v14  ;;  %v9018_v21 = vmul.f32 %v15224_v44, %v8986_v7  ;;  %v7188_v4 = vpop.permute.xlu0 %7187  ;;  %v7146_v45 = vpop.permute.xlu1 %7145 }
0x1655   :  { %v9226_v19 = vadd.f32 %v9225_v20, %v9224_v61  ;;  %v9205_v0 = vadd.f32 %v9204_v58, %v9203_v56  ;;  %9305 = vrot.lane.b32.xlu1 %v9288_v60, %s11489_s9  ;;  %v9231_v47 = vadd.f32 %v9230_v10, %v9229_v36  ;;  %v7345_v30 = vmul.f32 %v7139_v17, %v15211_v28 }
0x1656   :  { %v14470_v25 = vadd.f32 %v9220_v22, %v9219_v1  ;;  %v9199_v50 = vrot.slane %v9198_v62, 1  ;;  %v9236_v35 = vsel %vm4906_vm5, %v9018_v21, 0.0  ;;  %v7351_v8 = vmul.f32 %v7181_v5, %v15220_v34 }
0x1657   :  { %v9227_v53 = vrot.slane %v9226_v19, 1  ;;  %v9206_v38 = vrot.slane %v9205_v0, 1  ;;  %v9232_v12 = vrot.slane %v9231_v47, 2  ;;  %v9237_v7 = vrot.slane %v9236_v35, 4 }
0x1658   :  { %v9200_v2 = vadd.f32 %v9199_v50, %v9198_v62  ;;  %v7389_v39 = vsel %vm3261_vm10, %v7345_v30, 0.0  ;;  %v7431_v61 = vsel %vm3261_vm10, %v7351_v8, 0.0  ;;  %v9292_v17 = vsel %vm2607_vm3, %v14431_v55, %v14435_v11  ;;  %v7195_v56 = vpop.permute.xlu0 %7194  ;;  %v7153_v6 = vpop.permute.xlu1 %7152 }
0x1659   :  { %v14479_v36 = vadd.f32 %v9227_v53, %v9226_v19  ;;  %v9207_v1 = vadd.f32 %v9206_v38, %v9205_v0  ;;  %v9233_v27 = vadd.f32 %v9232_v12, %v9231_v47  ;;  %v9238_v5 = vadd.f32 %v9237_v7, %v9236_v35 }
0x165a   :  { %v9296_v23 = vsel %vm2601_vm12, %v9200_v2, %v14444_v46  ;;  %v7390_v20 = vrot.slane %v7389_v39, 4  ;;  %v7432_v58 = vrot.slane %v7431_v61, 4  ;;  %v9293_v14 = vsel %vm2609_vm6, %v14437_v57, %v9292_v17 }
0x165b   :  { %v9297_v10 = vsel %vm2603_vm14, %v9207_v1, %v9296_v23  ;;  %v9234_v22 = vrot.slane %v9233_v27, 1  ;;  %v9239_v62 = vrot.slane %v9238_v5, 2  ;;  %v9294_v55 = vsel %vm2611_vm8, %v14446_v42, %v9293_v14 }
0x165c   :  { %v7391_v11 = vadd.f32 %v7390_v20, %v7389_v39  ;;  %v7433_v60 = vadd.f32 %v7432_v58, %v7431_v61  ;;  %v9295_v21 = vsel %vm2613_vm9, %v9186_v18, %v9294_v55  ;;  %v7352_v19 = vmul.f32 %v15215_v26, %v7188_v4  ;;  %v7202_v0 = vpop.permute.xlu0 %7201  ;;  %v7160_v46 = vpop.permute.xlu1 %7159 }
0x165d   :  { %v14490_v47 = vadd.f32 %v9234_v22, %v9233_v27  ;;  %v9240_v30 = vadd.f32 %v9239_v62, %v9238_v5  ;;  %9307 = vrot.lane.b32.xlu0 %v9295_v21, %s11489_s9  ;;  %v7346_v57 = vmul.f32 %v15212_v48, %v7146_v45  ;;  %v7353_v50 = vmul.f32 %v7195_v56, %v15217_v37 }
0x165e   :  { %v7392_v35 = vrot.slane %v7391_v11, 2  ;;  %v7434_v8 = vrot.slane %v7433_v60, 2  ;;  %v7438_v42 = vsel %vm3261_vm10, %v7352_v19, 0.0  ;;  %v7347_v53 = vmul.f32 %v7153_v6, %v15214_v32 }
0x165f   :  { %v9241_v18 = vrot.slane %v9240_v30, 1  ;;  %v7439_v38 = vrot.slane %v7438_v42, 4  ;;  %v7396_v4 = vsel %vm3261_vm10, %v7346_v57, 0.0  ;;  %v7445_v12 = vsel %vm3261_vm10, %v7353_v50, 0.0 }
0x1660   :  { %v7393_v7 = vadd.f32 %v7392_v35, %v7391_v11  ;;  %v7435_v2 = vadd.f32 %v7434_v8, %v7433_v60  ;;  %v7397_v39 = vrot.slane %v7396_v4, 4  ;;  %v7446_v61 = vrot.slane %v7445_v12, 4  ;;  %v7209_v17 = vpop.permute.xlu0 %7208  ;;  %v7237_v45 = vpop.permute.xlu1 %7236 }
0x1661   :  { %v9242_v1 = vadd.f32 %v9241_v18, %v9240_v30  ;;  %v7440_v56 = vadd.f32 %v7439_v38, %v7438_v42  ;;  %v7403_v27 = vsel %vm3261_vm10, %v7347_v53, 0.0  ;;  %v7354_v5 = vmul.f32 %v15219_v31, %v7202_v0 }
0x1662   :  { %v7394_v23 = vrot.slane %v7393_v7, 1  ;;  %v7436_v6 = vrot.slane %v7435_v2, 1  ;;  %v7398_v20 = vadd.f32 %v7397_v39, %v7396_v4  ;;  %v7447_v58 = vadd.f32 %v7446_v61, %v7445_v12 }
0x1663   :  { %v7441_v14 = vrot.slane %v7440_v56, 2  ;;  %v7404_v22 = vrot.slane %v7403_v27, 4  ;;  %v7452_v62 = vsel %vm3261_vm10, %v7354_v5, 0.0  ;;  %v7348_v55 = vmul.f32 %v15216_v33, %v7160_v46 }
0x1664   :  { %v7395_v11 = vadd.f32 %v7394_v23, %v7393_v7  ;;  %v7437_v60 = vadd.f32 %v7436_v6, %v7435_v2  ;;  %v7399_v21 = vrot.slane %v7398_v20, 2  ;;  %v7448_v19 = vrot.slane %v7447_v58, 2  ;;  %v7244_v30 = vpop.permute.xlu0 %7243  ;;  %v7167_v57 = vpop.permute.xlu1 %7166 }
0x1665   :  { %v7442_v50 = vadd.f32 %v7441_v14, %v7440_v56  ;;  %v7405_v35 = vadd.f32 %v7404_v22, %v7403_v27  ;;  %v7453_v8 = vrot.slane %v7452_v62, 4  ;;  %v7410_v0 = vsel %vm3261_vm10, %v7348_v55, 0.0 }
0x1666   :  { %v7632_v42 = vsel %vm2603_vm14, %v7395_v11, %v14248_v9  ;;  %v7400_v53 = vadd.f32 %v7399_v21, %v7398_v20  ;;  %v7449_v18 = vadd.f32 %v7448_v19, %v7447_v58  ;;  %v7411_v38 = vrot.slane %v7410_v0, 4 }
0x1667   :  { %v7443_v4 = vrot.slane %v7442_v50, 1  ;;  %v7406_v12 = vrot.slane %v7405_v35, 2  ;;  %v7454_v46 = vadd.f32 %v7453_v8, %v7452_v62  ;;  %v9298_v7 = vsel %vm2605_vm15, %v14451_v29, %v9297_v10 }
0x1668   :  { %v7401_v2 = vrot.slane %v7400_v53, 1  ;;  %v7450_v39 = vrot.slane %v7449_v18, 1  ;;  %v7412_v61 = vadd.f32 %v7411_v38, %v7410_v0  ;;  %v9299_v56 = vsel %vm2607_vm3, %v14470_v25, %v9298_v7  ;;  %v7216_v27 = vpop.permute.xlu0 %7215  ;;  %v7251_v5 = vpop.permute.xlu1 %7250 }
0x1669   :  { %v7444_v23 = vadd.f32 %v7443_v4, %v7442_v50  ;;  %v7407_v6 = vadd.f32 %v7406_v12, %v7405_v35  ;;  %v7455_v9 = vrot.slane %v7454_v46, 2  ;;  %v9300_v20 = vsel %vm2609_vm6, %v14479_v36, %v9299_v56 }
0x166a   :  { %v7402_v58 = vadd.f32 %v7401_v2, %v7400_v53  ;;  %v7451_v14 = vadd.f32 %v7450_v39, %v7449_v18  ;;  %v7413_v22 = vrot.slane %v7412_v61, 2  ;;  %v9301_v29 = vsel %vm2611_vm8, %v14490_v47, %v9300_v20 }
0x166b   :  { %v7638_v10 = vsel %vm2601_vm12, %v7444_v23, %v7437_v60  ;;  %v7408_v62 = vrot.slane %v7407_v6, 1  ;;  %v7456_v55 = vadd.f32 %v7455_v9, %v7454_v46  ;;  %v9302_v25 = vsel %vm2613_vm9, %v9242_v1, %v9301_v29 }
0x166c   :  { %v14517_v11 = vsel %vm2605_vm15, %v7402_v58, %v7632_v42  ;;  %v7639_v21 = vsel %vm2603_vm14, %v7451_v14, %v7638_v10  ;;  %v7414_v19 = vadd.f32 %v7413_v22, %v7412_v61  ;;  %9309 = vrot.lane.b32.xlu1 %v9302_v25, %s11489_s9  ;;  %v7355_v36 = vmul.f32 %v7209_v17, %v15221_v40  ;;  %v7293_v50 = vpop.permute.xlu0 %7292  ;;  %v7300_v35 = vpop.permute.xlu1 %7299 }
0x166d   :  { %v14522_v8 = vadd.f32 %v7408_v62, %v7407_v6  ;;  %v7457_v47 = vrot.slane %v7456_v55, 1  ;;  %v7359_v60 = vmul.f32 %v7237_v45, %v15203_v52  ;;  %v7360_v0 = vmul.f32 %v15204_v43, %v7244_v30 }
0x166e   :  { %v7415_v1 = vrot.slane %v7414_v19, 1  ;;  %v7459_v42 = vsel %vm3261_vm10, %v7355_v36, 0.0  ;;  %v7349_v53 = vmul.f32 %v7167_v57, %v15218_v24  ;;  %v7356_v18 = vmul.f32 %v15222_v63, %v7216_v27 }
0x166f   :  { %v7458_v38 = vadd.f32 %v7457_v47, %v7456_v55  ;;  %v7460_v4 = vrot.slane %v7459_v42, 4  ;;  %v7487_v17 = vsel %vm3261_vm10, %v7359_v60, 0.0  ;;  %v7494_v12 = vsel %vm3261_vm10, %v7360_v0, 0.0  ;;  %v14531_v46 = vpop.f32.mrb[50].mxu1 }
0x1670   :  { %v14533_v7 = vadd.f32 %v7415_v1, %v7414_v19  ;;  %v7488_v52 = vrot.slane %v7487_v17, 4  ;;  %v7495_v45 = vrot.slane %v7494_v12, 4  ;;  %v7417_v43 = vsel %vm3261_vm10, %v7349_v53, 0.0  ;;  %v10651_v30 = vpop.f32.mrb[51].mxu1  ;;  %v7174_v2 = vpop.permute.xlu0 %7173 }
0x1671   :  { %v14537_v57 = vsel %vm2605_vm15, %v7458_v38, %v7639_v21  ;;  %v7461_v39 = vadd.f32 %v7460_v4, %v7459_v42  ;;  %v7418_v61 = vrot.slane %v7417_v43, 4  ;;  %v7466_v56 = vsel %vm3261_vm10, %v7356_v18, 0.0  ;;  %v7223_v27 = vpop.permute.xlu1 %7222 }
0x1672   :  { %v7489_v23 = vadd.f32 %v7488_v52, %v7487_v17  ;;  %v7496_v6 = vadd.f32 %v7495_v45, %v7494_v12  ;;  %v7467_v9 = vrot.slane %v7466_v56, 4  ;;  %v7361_v20 = vmul.f32 %v7251_v5, %v15211_v28  ;;  %v14541_v58 = vpop.f32.mrb[52].mxu0 }
0x1673   :  { %v7462_v14 = vrot.slane %v7461_v39, 2  ;;  %v7419_v22 = vadd.f32 %v7418_v61, %v7417_v43  ;;  %v7367_v29 = vmul.f32 %v7293_v50, %v15220_v34  ;;  %v7368_v10 = vmul.f32 %v15215_v26, %v7300_v35  ;;  %v14545_v62 = vpop.f32.mrb[52].mxu1  ;;  %v10656_v55 = vpop.f32.mrb[53].mxu0 }
0x1674   :  { %v7490_v25 = vrot.slane %v7489_v23, 2  ;;  %v7497_v21 = vrot.slane %v7496_v6, 2  ;;  %v7468_v19 = vadd.f32 %v7467_v9, %v7466_v56  ;;  %v7501_v36 = vsel %vm3261_vm10, %v7361_v20, 0.0  ;;  %v7258_v47 = vpop.permute.xlu0 %7257  ;;  %v10661_v60 = vpop.f32.mrb[53].mxu1 }
0x1675   :  { %v7463_v0 = vadd.f32 %v7462_v14, %v7461_v39  ;;  %v7420_v28 = vrot.slane %v7419_v22, 2  ;;  %v7502_v5 = vrot.slane %v7501_v36, 4  ;;  %v7543_v1 = vsel %vm3261_vm10, %v7367_v29, 0.0  ;;  %v7307_v42 = vpop.permute.xlu1 %7306 }
0x1676   :  { %v7491_v53 = vadd.f32 %v7490_v25, %v7489_v23  ;;  %v7498_v34 = vadd.f32 %v7497_v21, %v7496_v6  ;;  %v7469_v50 = vrot.slane %v7468_v19, 2  ;;  %v7544_v26 = vrot.slane %v7543_v1, 4  ;;  %v14549_v35 = vpop.f32.mrb[54].mxu0 }
0x1677   :  { %v7464_v18 = vrot.slane %v7463_v0, 1  ;;  %v7421_v38 = vadd.f32 %v7420_v28, %v7419_v22  ;;  %v7503_v4 = vadd.f32 %v7502_v5, %v7501_v36  ;;  %v7550_v17 = vsel %vm3261_vm10, %v7368_v10, 0.0  ;;  %v10666_v12 = vpop.f32.mrb[55].mxu0 }
0x1678   :  { %v7492_v52 = vrot.slane %v7491_v53, 1  ;;  %v7499_v45 = vrot.slane %v7498_v34, 1  ;;  %v7470_v43 = vadd.f32 %v7469_v50, %v7468_v19  ;;  %v7545_v30 = vadd.f32 %v7544_v26, %v7543_v1  ;;  %v7230_v6 = vpop.permute.xlu0 %7229 }
0x1679   :  { %v14552_v39 = vadd.f32 %v7464_v18, %v7463_v0  ;;  %v7422_v61 = vrot.slane %v7421_v38, 1  ;;  %v7504_v56 = vrot.slane %v7503_v4, 2  ;;  %v7551_v23 = vrot.slane %v7550_v17, 4  ;;  %v7265_v9 = vpop.permute.xlu1 %7264 }
0x167a   :  { %v7493_v20 = vadd.f32 %v7492_v52, %v7491_v53  ;;  %v7500_v14 = vadd.f32 %v7499_v45, %v7498_v34  ;;  %v7471_v29 = vrot.slane %v7470_v43, 1  ;;  %v7546_v55 = vrot.slane %v7545_v30, 2 }
0x167b   :  { %v14554_v22 = vadd.f32 %v7422_v61, %v7421_v38  ;;  %v7505_v25 = vadd.f32 %v7504_v56, %v7503_v4  ;;  %v7552_v10 = vadd.f32 %v7551_v23, %v7550_v17  ;;  %v7350_v21 = vmul.f32 %v15213_v59, %v7174_v2 }
0x167c   :  { %v7645_v19 = vsel %vm2601_vm12, %v7500_v14, %v7493_v20  ;;  %v14558_v36 = vadd.f32 %v7471_v29, %v7470_v43  ;;  %v7547_v60 = vadd.f32 %v7546_v55, %v7545_v30  ;;  %v7357_v0 = vmul.f32 %v7223_v27, %v15223_v41  ;;  %v7314_v12 = vpop.permute.xlu0 %7313 }
0x167d   :  { %v7506_v28 = vrot.slane %v7505_v25, 1  ;;  %v7553_v5 = vrot.slane %v7552_v10, 2  ;;  %v7424_v1 = vsel %vm3261_vm10, %v7350_v21, 0.0  ;;  %v7362_v53 = vmul.f32 %v15212_v48, %v7258_v47  ;;  %v7272_v52 = vpop.permute.xlu1 %7271 }
0x167e   :  { %v7548_v34 = vrot.slane %v7547_v60, 1  ;;  %v7425_v50 = vrot.slane %v7424_v1, 4  ;;  %v7473_v26 = vsel %vm3261_vm10, %v7357_v0, 0.0  ;;  %v7369_v18 = vmul.f32 %v7307_v42, %v15217_v37 }
0x167f   :  { %v7507_v2 = vadd.f32 %v7506_v28, %v7505_v25  ;;  %v7554_v38 = vadd.f32 %v7553_v5, %v7552_v10  ;;  %v7474_v4 = vrot.slane %v7473_v26, 4  ;;  %v7508_v17 = vsel %vm3261_vm10, %v7362_v53, 0.0 }
0x1680   :  { %v7549_v27 = vadd.f32 %v7548_v34, %v7547_v60  ;;  %v7426_v45 = vadd.f32 %v7425_v50, %v7424_v1  ;;  %v7509_v43 = vrot.slane %v7508_v17, 4  ;;  %v7557_v30 = vsel %vm3261_vm10, %v7369_v18, 0.0  ;;  %v7321_v53 = vpop.permute.xlu0 %7320 }
0x1681   :  { %v7646_v48 = vsel %vm2603_vm14, %v7507_v2, %v7645_v19  ;;  %v7555_v47 = vrot.slane %v7554_v38, 1  ;;  %v7475_v61 = vadd.f32 %v7474_v4, %v7473_v26  ;;  %v7558_v56 = vrot.slane %v7557_v30, 4 }
0x1682   :  { %v7427_v23 = vrot.slane %v7426_v45, 2  ;;  %v7510_v20 = vadd.f32 %v7509_v43, %v7508_v17  ;;  %v7358_v37 = vmul.f32 %v15224_v44, %v7230_v6  ;;  %v7363_v42 = vmul.f32 %v7265_v9, %v15214_v32  ;;  %v7279_v6 = vpop.permute.xlu1 %7278 }
0x1683   :  { %v7556_v14 = vadd.f32 %v7555_v47, %v7554_v38  ;;  %v7476_v29 = vrot.slane %v7475_v61, 2  ;;  %v7559_v55 = vadd.f32 %v7558_v56, %v7557_v30  ;;  %v7370_v25 = vmul.f32 %v15219_v31, %v7314_v12 }
0x1684   :  { %v7428_v10 = vadd.f32 %v7427_v23, %v7426_v45  ;;  %v7511_v21 = vrot.slane %v7510_v20, 2  ;;  %v7480_v60 = vsel %vm3261_vm10, %v7358_v37, 0.0  ;;  %v7515_v19 = vsel %vm3261_vm10, %v7363_v42, 0.0 }
0x1685   :  { %v7652_v0 = vsel %vm2601_vm12, %v7556_v14, %v7549_v27  ;;  %v7477_v28 = vadd.f32 %v7476_v29, %v7475_v61  ;;  %v7560_v5 = vrot.slane %v7559_v55, 2  ;;  %v7481_v1 = vrot.slane %v7480_v60, 4  ;;  %v7328_v29 = vpop.permute.xlu0 %7327 }
0x1686   :  { %v7429_v34 = vrot.slane %v7428_v10, 1  ;;  %v7512_v32 = vadd.f32 %v7511_v21, %v7510_v20  ;;  %v7516_v9 = vrot.slane %v7515_v19, 4  ;;  %v7564_v50 = vsel %vm3261_vm10, %v7370_v25, 0.0 }
0x1687   :  { %v7478_v26 = vrot.slane %v7477_v28, 1  ;;  %v7561_v31 = vadd.f32 %v7560_v5, %v7559_v55  ;;  %v7482_v18 = vadd.f32 %v7481_v1, %v7480_v60  ;;  %v7565_v2 = vrot.slane %v7564_v50, 4  ;;  %v7286_v55 = vpop.permute.xlu1 %7285 }
0x1688   :  { %v7430_v38 = vadd.f32 %v7429_v34, %v7428_v10  ;;  %v7513_v4 = vrot.slane %v7512_v32, 1  ;;  %v7517_v17 = vadd.f32 %v7516_v9, %v7515_v19  ;;  %v7364_v12 = vmul.f32 %v15216_v33, %v7272_v52 }
0x1689   :  { %v14576_v27 = vadd.f32 %v7478_v26, %v7477_v28  ;;  %v7562_v45 = vrot.slane %v7561_v31, 1  ;;  %v7483_v43 = vrot.slane %v7482_v18, 2  ;;  %v7566_v30 = vadd.f32 %v7565_v2, %v7564_v50 }
0x168a   :  { %v7514_v47 = vadd.f32 %v7513_v4, %v7512_v32  ;;  %v7518_v61 = vrot.slane %v7517_v17, 2  ;;  %v7522_v56 = vsel %vm3261_vm10, %v7364_v12, 0.0  ;;  %v7371_v23 = vmul.f32 %v7321_v53, %v15221_v40  ;;  %v7335_v4 = vpop.permute.xlu0 %7334 }
0x168b   :  { %v7563_v20 = vadd.f32 %v7562_v45, %v7561_v31  ;;  %v7484_v37 = vadd.f32 %v7483_v43, %v7482_v18  ;;  %v7567_v42 = vrot.slane %v7566_v30, 2  ;;  %v7523_v14 = vrot.slane %v7522_v56, 4 }
0x168c   :  { %v7647_v25 = vsel %vm2605_vm15, %v7514_v47, %v7646_v48  ;;  %v7519_v33 = vadd.f32 %v7518_v61, %v7517_v17  ;;  %v7571_v52 = vsel %vm3261_vm10, %v7371_v23, 0.0  ;;  %v7365_v10 = vmul.f32 %v7279_v6, %v15218_v24  ;;  %v7342_v17 = vpop.permute.xlu1 %7341 }
0x168d   :  { %v7653_v21 = vsel %vm2603_vm14, %v7563_v20, %v7652_v0  ;;  %v7485_v60 = vrot.slane %v7484_v37, 1  ;;  %v7568_v19 = vadd.f32 %v7567_v42, %v7566_v30  ;;  %v7524_v28 = vadd.f32 %v7523_v14, %v7522_v56 }
0x168e   :  { %v7520_v5 = vrot.slane %v7519_v33, 1  ;;  %v7572_v40 = vrot.slane %v7571_v52, 4  ;;  %v7529_v1 = vsel %vm3261_vm10, %v7365_v10, 0.0  ;;  %v7634_v53 = vsel %vm2607_vm3, %v14522_v8, %v14517_v11 }
0x168f   :  { %v7486_v34 = vadd.f32 %v7485_v60, %v7484_v37  ;;  %v7569_v48 = vrot.slane %v7568_v19, 1  ;;  %v7525_v32 = vrot.slane %v7524_v28, 2  ;;  %v7530_v9 = vrot.slane %v7529_v1, 4 }
0x1690   :  { %v7521_v50 = vadd.f32 %v7520_v5, %v7519_v33  ;;  %v7573_v26 = vadd.f32 %v7572_v40, %v7571_v52  ;;  %v7635_v24 = vsel %vm2609_vm6, %v14533_v7, %v7634_v53  ;;  %v7372_v0 = vmul.f32 %v15222_v63, %v7328_v29 }
0x1691   :  { %v7570_v6 = vadd.f32 %v7569_v48, %v7568_v19  ;;  %v7526_v31 = vadd.f32 %v7525_v32, %v7524_v28  ;;  %v7531_v18 = vadd.f32 %v7530_v9, %v7529_v1  ;;  %v7636_v2 = vsel %vm2611_vm8, %v14554_v22, %v7635_v24 }
0x1692   :  { %v7574_v11 = vrot.slane %v7573_v26, 2  ;;  %v7637_v8 = vsel %vm2613_vm9, %v7430_v38, %v7636_v2  ;;  %v7578_v12 = vsel %vm3261_vm10, %v7372_v0, 0.0  ;;  %v7366_v45 = vmul.f32 %v15213_v59, %v7286_v55 }
0x1693   :  { %v7654_v43 = vsel %vm2605_vm15, %v7570_v6, %v7653_v21  ;;  %v7527_v7 = vrot.slane %v7526_v31, 1  ;;  %v7532_v30 = vrot.slane %v7531_v18, 2  ;;  %7659 = vrot.lane.b32.xlu0 %v7637_v8, %s11486_s17  ;;  %v7579_v63 = vrot.slane %v7578_v12, 4 }
0x1694   :  { %v7575_v47 = vadd.f32 %v7574_v11, %v7573_v26  ;;  %v7536_v61 = vsel %vm3261_vm10, %v7366_v45, 0.0  ;;  %v7373_v22 = vmul.f32 %v7335_v4, %v15223_v41  ;;  %v7374_v56 = vmul.f32 %v15224_v44, %v7342_v17 }
0x1695   :  { %v7528_v23 = vadd.f32 %v7527_v7, %v7526_v31  ;;  %v7533_v38 = vadd.f32 %v7532_v30, %v7531_v18  ;;  %v7580_v20 = vadd.f32 %v7579_v63, %v7578_v12  ;;  %v7537_v37 = vrot.slane %v7536_v61, 4 }
0x1696   :  { %v7576_v42 = vrot.slane %v7575_v47, 1  ;;  %v7585_v59 = vsel %vm3261_vm10, %v7373_v22, 0.0  ;;  %v7592_v14 = vsel %vm3261_vm10, %v7374_v56, 0.0  ;;  %v7641_v29 = vsel %vm2607_vm3, %v14552_v39, %v14537_v57 }
0x1697   :  { %v7534_v55 = vrot.slane %v7533_v38, 1  ;;  %v7581_v33 = vrot.slane %v7580_v20, 2  ;;  %v7538_v52 = vadd.f32 %v7537_v37, %v7536_v61  ;;  %v7586_v10 = vrot.slane %v7585_v59, 4 }
0x1698   :  { %v7577_v41 = vadd.f32 %v7576_v42, %v7575_v47  ;;  %v7593_v21 = vrot.slane %v7592_v14, 4  ;;  %v7642_v44 = vsel %vm2609_vm6, %v14558_v36, %v7641_v29  ;;  %v7648_v60 = vsel %vm2607_vm3, %v7521_v50, %v7647_v25  ;;  %v15226_v29 = vld [vmem:[#allocation110_spill] sm:$0xff] }
0x1699   :  { %v7535_v19 = vadd.f32 %v7534_v55, %v7533_v38  ;;  %v7582_v28 = vadd.f32 %v7581_v33, %v7580_v20  ;;  %v7539_v5 = vrot.slane %v7538_v52, 2  ;;  %v7587_v40 = vadd.f32 %v7586_v10, %v7585_v59 }
0x169a   :  { %v7594_v1 = vadd.f32 %v7593_v21, %v7592_v14  ;;  %v7643_v53 = vsel %vm2611_vm8, %v14576_v27, %v7642_v44  ;;  %v7649_v57 = vsel %vm2609_vm6, %v7528_v23, %v7648_v60  ;;  %v7655_v39 = vsel %vm2607_vm3, %v7577_v41, %v7654_v43  ;;  %v15227_v41 = vld [vmem:[#allocation97_spill] sm:$0xff] }
0x169b   :  { %v7583_v48 = vrot.slane %v7582_v28, 1  ;;  %v7540_v32 = vadd.f32 %v7539_v5, %v7538_v52  ;;  %v7588_v9 = vrot.slane %v7587_v40, 2  ;;  %v7644_v26 = vsel %vm2613_vm9, %v7486_v34, %v7643_v53 }
0x169c   :  { %v7595_v36 = vrot.slane %v7594_v1, 2  ;;  %7661 = vrot.lane.b32.xlu1 %v7644_v26, %s11486_s17  ;;  %v7650_v25 = vsel %vm2611_vm8, %v7535_v19, %v7649_v57  ;;  %vm578_vm12 = vcmask 2048   ;;  %vm576_vm15 = vcmask 7168  }
0x169d   :  { %v7584_v50 = vadd.f32 %v7583_v48, %v7582_v28  ;;  %v7541_v24 = vrot.slane %v7540_v32, 1  ;;  %v7589_v0 = vadd.f32 %v7588_v9, %v7587_v40  ;;  %v15228_v28 = vld [vmem:[#allocation107_spill] sm:$0xff] }
0x169e   :  { %v7596_v6 = vadd.f32 %v7595_v36, %v7594_v1 }
0x169f   :  { %v7542_v31 = vadd.f32 %v7541_v24, %v7540_v32  ;;  %v7590_v27 = vrot.slane %v7589_v0, 1  ;;  %v7656_v18 = vsel %vm2609_vm6, %v7584_v50, %v7655_v39 }
0x16a0   :  { %v7597_v2 = vrot.slane %v7596_v6, 1 }
0x16a1   :  { %v7591_v4 = vadd.f32 %v7590_v27, %v7589_v0  ;;  %v7651_v17 = vsel %vm2613_vm9, %v7542_v31, %v7650_v25 }
0x16a2   :  { %v7598_v11 = vadd.f32 %v7597_v2, %v7596_v6  ;;  %7663 = vrot.lane.b32.xlu0 %v7651_v17, %s11486_s17  ;;  %v9421_v17 = vld [vmem:[#allocation20 + $0x28] sm:$0xff] }
0x16a3   :  { %v7657_v34 = vsel %vm2611_vm8, %v7591_v4, %v7656_v18  ;;  %v9420_v4 = vld [vmem:[#allocation20 + $0x20] sm:$0xff] }
0x16a4   :  { %v7658_v8 = vsel %vm2613_vm9, %v7598_v11, %v7657_v34  ;;  %v9422_v11 = vld [vmem:[#allocation20 + $0x30] sm:$0xff]  ;;  %v10767_v34 = vpack.c.bf16 %v9421_v17, %v9420_v4  ;;  %v15229_v17 = vld [vmem:[#allocation65_spill] sm:$0xff] }
0x16a5   :  { %7665 = vrot.lane.b32.xlu1 %v7658_v8, %s11486_s17  ;;  %v9423_v8 = vld [vmem:[#allocation20 + $0x38] sm:$0xff] }
0x16a6   :  { %10768 = vmatprep.subr.bf16.mxu1 %v10767_v34 }
0x16a7   :  { %10770 = vmatpush3.bf16.msra.mxu1 %v10767_v34  ;;  %v15230_v34 = vld [vmem:[#allocation64_spill] sm:$0xff] }
0x16ab   :  { %v9304_v12 = vpop.permute.xlu0 %9303 }
0x16ac   :  { %v9315_v45 = vadd.f32 %v9304_v12, %v14531_v46  ;;  %v10771_v12 = vpack.c.bf16 %v9423_v8, %v9422_v11 }
0x16ae   :  { %9323 = vrot.lane.b32.xlu0 %v9315_v45, %s11476_s6  ;;  %10772 = vmatprep.subr.bf16.mxu1 %v10771_v12  ;;  %v9534_v45 = vld [vmem:[#allocation23 + $0x20] sm:$0xff] }
0x16af   :  { %10774 = vmatpush3.bf16.msra.mxu1 %v10771_v12 }
0x16c7   :  { %v9306_v43 = vpop.permute.xlu1 %9305 }
0x16c8   :  { %v9316_v7 = vadd.f32 %v9306_v43, %v14541_v58  ;;  %v15225_v58 = vld [vmem:[#allocation106_spill] sm:$0xff] }
0x16c9   :  { %v9535_v43 = vld [vmem:[#allocation23 + $0x28] sm:$0xff] }
0x16ca   :  { %9325 = vrot.lane.b32.xlu1 %v9316_v7, %s11476_s6  ;;  %v10775_v7 = vpack.c.bf16 %v9535_v43, %v9534_v45 }
0x16cc   :  { %10776 = vmatprep.subr.bf16.mxu0 %v10775_v7 }
0x16cd   :  { %10778 = vmatpush3.bf16.msra.mxu0 %v10775_v7 }
0x16cf   :  { %v9308_v30 = vpop.permute.xlu0 %9307 }
0x16d0   :  { %v9317_v63 = vadd.f32 %v9308_v30, %v14545_v62 }
0x16d2   :  { %9327 = vrot.lane.b32.xlu0 %v9317_v63, %s11476_s6 }
0x16de   :  { %v9310_v47 = vpop.permute.xlu1 %9309 }
0x16df   :  { %v9318_v61 = vadd.f32 %v9310_v47, %v14549_v35 }
0x16e1   :  { %9329 = vrot.lane.b32.xlu1 %v9318_v61, %s11476_s6  ;;  %s15237_s6 = sld [smem:[#allocation51_spill]] }
0x1705   :  { %v7660_v22 = vpop.permute.xlu0 %7659 }
0x1706   :  { %v7671_v46 = vadd.f32 %v7660_v22, %v14093_v51  ;;  %v10191_v22 = vld [vmem:[%s15135_s8 + $0x1] ss:$0 sm:$0xff] }
0x170e   :  { %v7662_v62 = vpop.permute.xlu1 %7661 }
0x170f   :  { %v7672_v59 = vadd.f32 %v7662_v62, %v14095_v15 }
0x1714   :  { %v7664_v56 = vpop.permute.xlu0 %7663 }
0x1715   :  { %v7673_v51 = vadd.f32 %v7664_v56, %v14140_v49 }
0x1717   :  { %v7666_v42 = vpop.permute.xlu1 %7665 }
0x1718   :  { %v7674_v15 = vadd.f32 %v7666_v42, %v14164_v16 }
0x1720   :  { %v9324_v23 = vpop.permute.xlu0 %9323 }
0x1721   :  { %v9335_v38 = vsel %vm1647_vm13, %v7671_v46, %v9324_v23  ;;  %v10192_v46 = vld [vmem:[%s15136_s16 + $0x1] ss:$0 sm:$0xff] }
0x1722   :  { %v9339_v20 = vadd.f32 %v9335_v38, %v15225_v58 }
0x1724   :  { %v9347_v37 = vsel %vm321_vm0, %v9339_v20, 0.0 }
0x1725   :  { %9348 = vadd.xlane.f32.xlu0 %v9347_v37 }
0x173c   :  { %v9326_v14 = vpop.permute.xlu1 %9325 }
0x173d   :  { %v9336_v35 = vsel %vm1647_vm13, %v7672_v59, %v9326_v14 }
0x173e   :  { %v9340_v55 = vadd.f32 %v9336_v35, %v15226_v29 }
0x1740   :  { %v9350_v33 = vsel %vm321_vm0, %v9340_v55, 0.0 }
0x1741   :  { %9351 = vadd.xlane.f32.xlu1 %v9350_v33 }
0x1744   :  { %v9328_v52 = vpop.permute.xlu0 %9327 }
0x1745   :  { %v9337_v10 = vsel %vm1647_vm13, %v7673_v51, %v9328_v52 }
0x1746   :  { %v9341_v21 = vadd.f32 %v9337_v10, %v15227_v41 }
0x1748   :  { %v9353_v44 = vsel %vm321_vm0, %v9341_v21, 0.0 }
0x1749   :  { %9354 = vadd.xlane.f32.xlu0 %v9353_v44 }
0x1753   :  { %v9330_v60 = vpop.permute.xlu1 %9329 }
0x1754   :  { %v9338_v19 = vsel %vm1647_vm13, %v7674_v15, %v9330_v60 }
0x1755   :  { %v9342_v5 = vadd.f32 %v9338_v19, %v15228_v28 }
0x1757   :  { %v9356_v40 = vsel %vm321_vm0, %v9342_v5, 0.0 }
0x1758   :  { %9357 = vadd.xlane.f32.xlu0 %v9356_v40  ;;  %v9537_v40 = vld [vmem:[#allocation23 + $0x38] sm:$0xff] }
0x17b2   :  { %v9349_v1 = vpop.xlane.xlu0 %9348 }
0x17b3   :  { %v9359_v49 = vmul.f32 0.03125, %v9349_v1 }
0x17b5   :  { %v9363_v53 = vsub.f32 %v9339_v20, %v9359_v49  ;;  %v10193_v49 = vld [vmem:[#allocation22 + $0x1] ss:$0 sm:$0xff] }
0x17b7   :  { %v9367_v57 = vmul.f32 %v9363_v53, %v9363_v53 }
0x17b9   :  { %v9371_v39 = vsel %vm321_vm0, %v9367_v57, 0.0 }
0x17ba   :  { %9372 = vadd.xlane.f32.xlu1 %v9371_v39 }
0x17ce   :  { %v9352_v48 = vpop.xlane.xlu1 %9351 }
0x17cf   :  { %v9360_v32 = vmul.f32 0.03125, %v9352_v48 }
0x17d1   :  { %v9364_v9 = vsub.f32 %v9340_v55, %v9360_v32 }
0x17d3   :  { %v9368_v26 = vmul.f32 %v9364_v9, %v9364_v9 }
0x17d5   :  { %v9374_v16 = vsel %vm321_vm0, %v9368_v26, 0.0 }
0x17d6   :  { %v9355_v36 = vpop.xlane.xlu0 %9354  ;;  %9375 = vadd.xlane.f32.xlu0 %v9374_v16 }
0x17d7   :  { %v9361_v25 = vmul.f32 0.03125, %v9355_v36 }
0x17d9   :  { %v9365_v50 = vsub.f32 %v9341_v21, %v9361_v25 }
0x17db   :  { %v9369_v24 = vmul.f32 %v9365_v50, %v9365_v50 }
0x17dd   :  { %v9377_v0 = vsel %vm321_vm0, %v9369_v24, 0.0 }
0x17de   :  { %9378 = vadd.xlane.f32.xlu1 %v9377_v0  ;;  %v10198_v0 = vld [vmem:[#allocation25 + $0x1] ss:$0 sm:$0xff] }
0x17e5   :  { %v9358_v6 = vpop.xlane.xlu0 %9357 }
0x17e6   :  { %v9362_v31 = vmul.f32 0.03125, %v9358_v6 }
0x17e8   :  { %v9366_v27 = vsub.f32 %v9342_v5, %v9362_v31  ;;  %v9536_v5 = vld [vmem:[#allocation23 + $0x30] sm:$0xff] }
0x17e9   :  { %v10779_v1 = vpack.c.bf16 %v9537_v40, %v9536_v5  ;;  %v670_v40 = vld [vmem:[#allocation8] sm:$0x3] }
0x17ea   :  { %v9370_v18 = vmul.f32 %v9366_v27, %v9366_v27 }
0x17eb   :  { %10780 = vmatprep.subr.bf16.mxu0 %v10779_v1 }
0x17ec   :  { %v9380_v2 = vsel %vm321_vm0, %v9370_v18, 0.0  ;;  %10782 = vmatpush3.bf16.msra.mxu0 %v10779_v1  ;;  %v674_v1 = vrot.slane %v670_v40, %v15202_v54 }
0x17ed   :  { %9381 = vadd.xlane.f32.xlu0 %v9380_v2 }
0x1847   :  { %v9373_v30 = vpop.xlane.xlu1 %9372 }
0x1848   :  { %v9383_v63 = vmul.f32 0.03125, %v9373_v30 }
0x184a   :  { %v9387_v47 = vadd.f32 1e-08, %v9383_v63 }
0x184c   :  { %10955 = vrsqrt.f32 %v9387_v47 }
0x1856   :  { %v10956_v61 = vpop.eup %10955 }
0x1857   :  { %v9395_v56 = vmul.f32 %v10956_v61, %v9363_v53 }
0x1859   :  { %v9405_v23 = vmul.f32 %v10191_v22, %v9395_v56 }
0x185b   :  { %v9415_v38 = vadd.f32 %v10192_v46, %v9405_v23 }
0x185d   :  { %10675 = vmatprep.mubr.msk.f32.mxu1 %vm321_vm0, %v9415_v38 }
0x1863   :  { %v9376_v58 = vpop.xlane.xlu0 %9375 }
0x1864   :  { %v9384_v20 = vmul.f32 0.03125, %v9376_v58 }
0x1866   :  { %v9388_v37 = vadd.f32 1e-08, %v9384_v20 }
0x1868   :  { %10957 = vrsqrt.f32 %v9388_v37 }
0x186b   :  { %v9379_v62 = vpop.xlane.xlu1 %9378 }
0x186c   :  { %v9385_v42 = vmul.f32 0.03125, %v9379_v62 }
0x186e   :  { %v9389_v59 = vadd.f32 1e-08, %v9385_v42 }
0x1870   :  { %10959 = vrsqrt.f32 %v9389_v59 }
0x1872   :  { %v10958_v14 = vpop.eup %10957 }
0x1873   :  { %v9396_v35 = vmul.f32 %v10958_v14, %v9364_v9 }
0x1875   :  { %v9406_v29 = vmul.f32 %v10191_v22, %v9396_v35 }
0x1877   :  { %v9416_v55 = vadd.f32 %v10192_v46, %v9406_v29 }
0x1879   :  { %10676 = vmatmul.mubr.msk.f32.vlgmr.msra.gmra.mrb[54].mxu1 %vm321_vm0, %v9416_v55 }
0x187a   :  { %v10960_v33 = vpop.eup %10959  ;;  %v9382_v51 = vpop.xlane.xlu0 %9381 }
0x187b   :  { %v9386_v52 = vmul.f32 0.03125, %v9382_v51  ;;  %v9397_v10 = vmul.f32 %v10960_v33, %v9365_v50 }
0x187d   :  { %v9390_v41 = vadd.f32 1e-08, %v9386_v52  ;;  %v9407_v21 = vmul.f32 %v10191_v22, %v9397_v10 }
0x187f   :  { %10961 = vrsqrt.f32 %v9390_v41  ;;  %v9417_v44 = vadd.f32 %v10192_v46, %v9407_v21 }
0x1881   :  { %10678 = vmatprep.mubr.msk.f32.mxu1 %vm321_vm0, %v9417_v44 }
0x1889   :  { %v10962_v15 = vpop.eup %10961 }
0x188a   :  { %v9398_v60 = vmul.f32 %v10962_v15, %v9366_v27 }
0x188c   :  { %v9408_v19 = vmul.f32 %v10191_v22, %v9398_v60 }
0x188e   :  { %v9418_v28 = vadd.f32 %v10192_v46, %v9408_v19  ;;  %v15231_v19 = vld [vmem:[#allocation57_spill] sm:$0xff] }
0x1890   :  { %10679 = vmatmul.mubr.msk.f32.gmra.mrb[56].mxu1 %vm321_vm0, %v9418_v28 }
0x194c   :  { %v10677_v53 = vpop.f32.mrb[54].mxu1 }
0x194d   :  { %v9516_v57 = vadd.f32 %v10677_v53, %v10193_v49  ;;  %v9510_v39 = vpop.f32.mrb[55].mxu1  ;;  %v681_v53 = vrot.slane %v670_v40, %v15200_v3 }
0x194e   :  { %v9511_v48 = vadd.f32 %v10193_v49, %v9510_v39 }
0x194f   :  { %v9530_v9 = vmax.f32 %v9516_v57, 0.0 }
0x1950   :  { %v9529_v32 = vmax.f32 %v9511_v48, 0.0  ;;  %v15233_v48 = vld [vmem:[#allocation59_spill] sm:$0xff] }
0x1952   :  { %10689 = vmatprep.mubr.msk.f32.mxu0 %vm321_vm0, %v9529_v32  ;;  %v15234_v32 = vld [vmem:[#allocation60_spill] sm:$0xff] }
0x1953   :  { %10690 = vmatmul.mubr.msk.f32.vlgmr.msra.gmra.mrb[56].mxu0 %vm321_vm0, %v9530_v9  ;;  %v10789_v9 = vpack.c.bf16 %v15234_v32, %v15233_v48 }
0x1955   :  { %10791 = vmatprep.subr.msk.bf16.mxu0 %vm10784_vm1, %v10789_v9 }
0x1956   :  { %10794 = vmatpush3.bf16.xpose.msk.msra.mxu0 %vm10784_vm1, %v10789_v9 }
0x1963   :  { %v10680_v26 = vpop.f32.mrb[56].mxu1 }
0x1964   :  { %v9526_v16 = vadd.f32 %v10680_v26, %v10193_v49  ;;  %v9520_v36 = vpop.f32.mrb[57].mxu1  ;;  %v15235_v26 = vld [vmem:[#allocation76_spill] sm:$0xff] }
0x1965   :  { %v9521_v25 = vadd.f32 %v10193_v49, %v9520_v36  ;;  %v691_v49 = vld [vmem:[#allocation10] sm:$0x3]  ;;  %v15236_v36 = vld [vmem:[#allocation63_spill] sm:$0xff] }
0x1966   :  { %v9532_v24 = vmax.f32 %v9526_v16, 0.0  ;;  %v695_v57 = vrot.slane %v691_v49, %v15202_v54  ;;  %v702_v39 = vrot.slane %v691_v49, %v15200_v3  ;;  %v501_v16 = vrot.slane %v15235_v26, %v15202_v54  ;;  %v10204_v26 = vld [vmem:[%s15238_s24] ss:$0 sm:$0xff] }
0x1967   :  { %v9531_v50 = vmax.f32 %v9521_v25, 0.0  ;;  %v513_v25 = vrot.slane %v15236_v36, %v15202_v54  ;;  %v10990_v54 = vld [vmem:[#allocation5] sm:$0xff] }
0x1969   :  { %10692 = vmatprep.mubr.msk.f32.mxu0 %vm321_vm0, %v9531_v50  ;;  %v10987_v50 = vld [vmem:[#allocation2] sm:$0xff] }
0x196a   :  { %10693 = vmatmul.mubr.msk.f32.gmra.mrb[58].mxu0 %vm321_vm0, %v9532_v24  ;;  %v502_v24 = vmul.f32 %v10987_v50, %v501_v16 }
0x1a26   :  { %v10691_v6 = vpop.f32.mrb[56].mxu0 }
0x1a27   :  { %v9630_v31 = vadd.f32 %v10691_v6, %v10198_v0  ;;  %v9624_v27 = vpop.f32.mrb[57].mxu0  ;;  %v514_v6 = vmul.f32 %v10987_v50, %v513_v25 }
0x1a28   :  { %v9625_v18 = vadd.f32 %v10198_v0, %v9624_v27 }
0x1a29   :  { %v9644_v2 = vadd.f32 %v9630_v31, %v9416_v55  ;;  %v516_v3 = vsel %vm321_vm0, %v514_v6, 0.0  ;;  %v10988_v31 = vld [vmem:[#allocation2 + $0x8] sm:$0x7] }
0x1a2a   :  { %v9643_v4 = vadd.f32 %v9625_v18, %v9415_v38  ;;  %v515_v27 = vmul.f32 %v10988_v31, %v513_v25  ;;  %v503_v18 = vmul.f32 %v10988_v31, %v501_v16 }
0x1a2b   :  { %v9648_v11 = vmul.f32 %v9644_v2, %v15229_v17 }
0x1a2c   :  { %v9647_v8 = vmul.f32 %v9643_v4, %v15230_v34  ;;  %v519_v2 = vsel %vm323_vm2, %v515_v27, 0.0  ;;  %v10989_v4 = vld [vmem:[#allocation5 + $0x8] sm:$0x7] }
0x1a2d   :  { %v9656_v12 = vsel %vm321_vm0, %v9648_v11, 0.0 }
0x1a2e   :  { %9657 = vadd.xlane.f32.xlu0 %v9656_v12  ;;  %v9653_v45 = vsel %vm321_vm0, %v9647_v8, 0.0  ;;  %v533_v12 = vmul.f32 %v10989_v4, %v501_v16 }
0x1a2f   :  { %9654 = vadd.xlane.f32.xlu1 %v9653_v45 }
0x1a3d   :  { %v10694_v43 = vpop.f32.mrb[58].mxu0 }
0x1a3e   :  { %v9640_v7 = vadd.f32 %v10694_v43, %v10198_v0  ;;  %v9634_v30 = vpop.f32.mrb[59].mxu0  ;;  %v532_v43 = vmul.f32 %v10990_v54, %v501_v16 }
0x1a3f   :  { %v9635_v63 = vadd.f32 %v10198_v0, %v9634_v30  ;;  %v504_v0 = vsel %vm321_vm0, %v502_v24, 0.0 }
0x1a40   :  { %v9646_v47 = vadd.f32 %v9640_v7, %v9418_v28  ;;  %v15232_v28 = vld [vmem:[#allocation58_spill] sm:$0xff]  ;;  %v537_v7 = vsel %vm323_vm2, %v533_v12, 0.0  ;;  %v534_v30 = vsel %vm321_vm0, %v532_v43, 0.0 }
0x1a41   :  { %v9645_v61 = vadd.f32 %v9635_v63, %v9417_v44  ;;  %v10783_v5 = vpack.c.bf16 %v15232_v28, %v15231_v19 }
0x1a42   :  { %v9650_v22 = vmul.f32 %v9646_v47, %v15229_v17  ;;  %v525_v17 = vmul.f32 %v10989_v4, %v513_v25  ;;  %v600_v47 = vsel %vm321_vm0, %v15233_v48, 0.0 }
0x1a43   :  { %v9649_v56 = vmul.f32 %v9645_v61, %v15230_v34  ;;  %10785 = vmatprep.subr.msk.bf16.mxu1 %vm10784_vm1, %v10783_v5  ;;  %v524_v34 = vmul.f32 %v10990_v54, %v513_v25  ;;  %v601_v61 = vsel %vm323_vm2, %v15234_v32, 0.0 }
0x1a44   :  { %v9662_v46 = vsel %vm321_vm0, %v9650_v22, 0.0  ;;  %10788 = vmatpush3.bf16.xpose.msk.msra.mxu1 %vm10784_vm1, %v10783_v5 }
0x1a45   :  { %9663 = vadd.xlane.f32.xlu0 %v9662_v46  ;;  %v9659_v23 = vsel %vm321_vm0, %v9649_v56, 0.0  ;;  %v526_v45 = vsel %vm321_vm0, %v524_v34, 0.0 }
0x1a46   :  { %9660 = vadd.xlane.f32.xlu1 %v9659_v23 }
0x1abb   :  { %v9658_v38 = vpop.xlane.xlu0 %9657 }
0x1abc   :  { %v9666_v58 = vmul.f32 0.03125, %v9658_v38  ;;  %v9655_v20 = vpop.xlane.xlu1 %9654  ;;  %v602_v38 = vadd.f32 %v601_v61, %v600_v47 }
0x1abd   :  { %v9665_v37 = vmul.f32 0.03125, %v9655_v20 }
0x1abe   :  { %v14668_v62 = vsub.f32 %v9648_v11, %v9666_v58  ;;  %v507_v11 = vsel %vm323_vm2, %v503_v18, 0.0 }
0x1abf   :  { %v14670_v42 = vsub.f32 %v9647_v8, %v9665_v37  ;;  %v529_v8 = vsel %vm323_vm2, %v525_v17, 0.0 }
0x1ac0   :  { %v9674_v59 = vmul.f32 %v14668_v62, %v14668_v62 }
0x1ac1   :  { %v9673_v14 = vmul.f32 %v14670_v42, %v14670_v42 }
0x1ac2   :  { %v9680_v35 = vsel %vm321_vm0, %v9674_v59, 0.0  ;;  %v603_v59 = vrot.slane %v602_v38, 4 }
0x1ac3   :  { %9681 = vadd.xlane.f32.xlu0 %v9680_v35  ;;  %v9677_v29 = vsel %vm321_vm0, %v9673_v14, 0.0 }
0x1ac4   :  { %9678 = vadd.xlane.f32.xlu1 %v9677_v29  ;;  %v604_v29 = vadd.f32 %v603_v59, %v602_v38 }
0x1ad2   :  { %v9664_v55 = vpop.xlane.xlu0 %9663 }
0x1ad3   :  { %v9668_v33 = vmul.f32 0.03125, %v9664_v55  ;;  %v9661_v51 = vpop.xlane.xlu1 %9660 }
0x1ad4   :  { %v9667_v52 = vmul.f32 0.03125, %v9661_v51 }
0x1ad5   :  { %v14678_v10 = vsub.f32 %v9650_v22, %v9668_v33  ;;  %v590_v22 = vsel %vm321_vm0, %v15231_v19, 0.0  ;;  %v605_v33 = vrot.slane %v604_v29, 2 }
0x1ad6   :  { %v14680_v41 = vsub.f32 %v9649_v56, %v9667_v52  ;;  %v591_v56 = vsel %vm323_vm2, %v15232_v28, 0.0 }
0x1ad7   :  { %v9676_v21 = vmul.f32 %v14678_v10, %v14678_v10  ;;  %v592_v58 = vadd.f32 %v591_v56, %v590_v22  ;;  %v606_v52 = vadd.f32 %v605_v33, %v604_v29 }
0x1ad8   :  { %v9675_v44 = vmul.f32 %v14680_v41, %v14680_v41 }
0x1ad9   :  { %v9686_v15 = vsel %vm321_vm0, %v9676_v21, 0.0  ;;  %v593_v14 = vrot.slane %v592_v58, 4 }
0x1ada   :  { %9687 = vadd.xlane.f32.xlu0 %v9686_v15  ;;  %v9683_v60 = vsel %vm321_vm0, %v9675_v44, 0.0  ;;  %v607_v44 = vrot.slane %v606_v52, 1 }
0x1adb   :  { %9684 = vadd.xlane.f32.xlu1 %v9683_v60  ;;  %v594_v55 = vadd.f32 %v593_v14, %v592_v58 }
0x1adc   :  { %v608_v60 = vadd.f32 %v607_v44, %v606_v52 }
0x1add   :  { %v595_v51 = vrot.slane %v594_v55, 2 }
0x1ade   :  { %v14719_v49 = vmul.f32 0.09090909, %v608_v60 }
0x1adf   :  { %v596_v21 = vadd.f32 %v595_v51, %v594_v55 }
0x1ae0   :  { %v621_v32 = vsub.f32 %v15232_v28, %v14719_v49  ;;  %v620_v60 = vsub.f32 %v15231_v19, %v14719_v49 }
0x1ae1   :  { %v597_v15 = vrot.slane %v596_v21, 1 }
0x1ae2   :  { %v623_v25 = vmul.f32 %v621_v32, %v621_v32 }
0x1ae3   :  { %v598_v5 = vadd.f32 %v597_v15, %v596_v21 }
0x1aec   :  { %676 = vbcast.lane.b32.xlu1 %v674_v1, 256  ;;  %v10203_v1 = vld [vmem:[%s15237_s6] ss:$0 sm:$0xff] }
0x1af0   :  { %683 = vbcast.lane.b32.xlu0 %v681_v53, 256  ;;  %697 = vbcast.lane.b32.xlu1 %v695_v57, 256  ;;  %v14721_v53 = vmul.f32 0.09090909, %v598_v5 }
0x1af2   :  { %v611_v9 = vsub.f32 %v15232_v28, %v14721_v53  ;;  %v610_v5 = vsub.f32 %v15231_v19, %v14721_v53 }
0x1af4   :  { %704 = vbcast.lane.b32.xlu1 %v702_v39, 256  ;;  %v613_v50 = vmul.f32 %v611_v9, %v611_v9 }
0x1af6   :  { %v617_v6 = vsel %vm323_vm2, %v613_v50, 0.0 }
0x1b0f   :  { %505 = vadd.xlane.f32.xlu0 %v504_v0  ;;  %v627_v0 = vsel %vm323_vm2, %v623_v25, 0.0 }
0x1b13   :  { %517 = vadd.xlane.f32.xlu0 %v516_v3 }
0x1b17   :  { %520 = vadd.xlane.f32.xlu0 %v519_v2 }
0x1b18   :  { %508 = vadd.xlane.f32.xlu1 %v507_v11 }
0x1b1b   :  { %530 = vadd.xlane.f32.xlu0 %v529_v8 }
0x1b1c   :  { %527 = vadd.xlane.f32.xlu1 %v526_v45 }
0x1b1f   :  { %538 = vadd.xlane.f32.xlu0 %v537_v7 }
0x1b20   :  { %535 = vadd.xlane.f32.xlu1 %v534_v30 }
0x1b23   :  { %628 = vadd.xlane.f32.xlu0 %v627_v0 }
0x1b24   :  { %618 = vadd.xlane.f32.xlu1 %v617_v6 }
0x1b50   :  { %v9682_v63 = vpop.xlane.xlu0 %9681 }
0x1b51   :  { %v9690_v46 = vmul.f32 0.03125, %v9682_v63  ;;  %v9679_v23 = vpop.xlane.xlu1 %9678 }
0x1b52   :  { %v9689_v20 = vmul.f32 0.03125, %v9679_v23 }
0x1b53   :  { %v9694_v37 = vadd.f32 1e-08, %v9690_v46 }
0x1b54   :  { %v9693_v35 = vadd.f32 1e-08, %v9689_v20 }
0x1b55   :  { %10963 = vrsqrt.f32 %v9694_v37 }
0x1b56   :  { %10965 = vrsqrt.f32 %v9693_v35 }
0x1b5f   :  { %v10964_v40 = vpop.eup %10963 }
0x1b60   :  { %v10966_v57 = vpop.eup %10965  ;;  %v9702_v39 = vmul.f32 %v10964_v40, %v14668_v62 }
0x1b61   :  { %v9701_v48 = vmul.f32 %v10966_v57, %v14670_v42  ;;  %v622_v57 = vmul.f32 %v620_v60, %v620_v60 }
0x1b62   :  { %v9712_v16 = vmul.f32 %v10203_v1, %v9702_v39  ;;  %v612_v39 = vmul.f32 %v610_v5, %v610_v5 }
0x1b63   :  { %v9711_v36 = vmul.f32 %v10203_v1, %v9701_v48  ;;  %v624_v9 = vsel %vm321_vm0, %v622_v57, 0.0 }
0x1b64   :  { %v9722_v3 = vadd.f32 %v10204_v26, %v9712_v16  ;;  %625 = vadd.xlane.f32.xlu0 %v624_v9 }
0x1b65   :  { %v9721_v24 = vadd.f32 %v10204_v26, %v9711_v36 }
0x1b67   :  { %v9688_v62 = vpop.xlane.xlu0 %9687  ;;  %10699 = vmatprep.mubr.msk.f32.mxu1 %vm321_vm0, %v9721_v24 }
0x1b68   :  { %v9692_v42 = vmul.f32 0.03125, %v9688_v62  ;;  %v9685_v31 = vpop.xlane.xlu1 %9684  ;;  %10700 = vmatmul.mubr.msk.f32.vlgmr.msra.gmra.mrb[58].mxu1 %vm321_vm0, %v9722_v3 }
0x1b69   :  { %v9691_v28 = vmul.f32 0.03125, %v9685_v31 }
0x1b6a   :  { %v9696_v27 = vadd.f32 1e-08, %v9692_v42 }
0x1b6b   :  { %v9695_v18 = vadd.f32 1e-08, %v9691_v28  ;;  %v14740_v43 = vpop.permute.xlu0 %683  ;;  %v15240_v28 = vld [vmem:[#allocation62_spill] sm:$0xff] }
0x1b6c   :  { %10967 = vrsqrt.f32 %v9696_v27  ;;  %v14738_v45 = vpop.permute.xlu1 %676  ;;  %vm686_vm3 = vcmp.eq.s32.totalorder %v15240_v28, %v14740_v43 }
0x1b6d   :  { %10969 = vrsqrt.f32 %v9695_v18  ;;  %vm685_vm8 = vcmp.eq.s32.totalorder %v15240_v28, %v14738_v45  ;;  %v10049_v27 = vsel %vm686_vm3, 1.0, %v15196_v13 }
0x1b70   :  { %v14742_v7 = vpop.permute.xlu1 %697 }
0x1b71   :  { %vm706_vm9 = vcmp.eq.s32.totalorder %v15240_v28, %v14742_v7 }
0x1b74   :  { %v14744_v63 = vpop.permute.xlu1 %704 }
0x1b75   :  { %vm707_vm6 = vcmp.eq.s32.totalorder %v15240_v28, %v14744_v63 }
0x1b76   :  { %v10968_v2 = vpop.eup %10967  ;;  %v10051_v18 = vsel %vm707_vm6, 1.0, %v15196_v13 }
0x1b77   :  { %v10970_v4 = vpop.eup %10969  ;;  %v9704_v17 = vmul.f32 %v10968_v2, %v14678_v10  ;;  %v10048_v2 = vsel %vm685_vm8, 1.0, %v15196_v13 }
0x1b78   :  { %v9703_v11 = vmul.f32 %v10970_v4, %v14680_v41  ;;  %v10050_v4 = vsel %vm706_vm9, 1.0, %v15196_v13 }
0x1b79   :  { %v9714_v54 = vmul.f32 %v10203_v1, %v9704_v17 }
0x1b7a   :  { %v9713_v34 = vmul.f32 %v10203_v1, %v9703_v11 }
0x1b7b   :  { %v9724_v12 = vadd.f32 %v10204_v26, %v9714_v54 }
0x1b7c   :  { %v9723_v8 = vadd.f32 %v10204_v26, %v9713_v34  ;;  %v614_v26 = vsel %vm321_vm0, %v612_v39, 0.0 }
0x1b7d   :  { %615 = vadd.xlane.f32.xlu1 %v614_v26 }
0x1b7e   :  { %10706 = vmatprep.mubr.msk.f32.mxu0 %vm321_vm0, %v9723_v8 }
0x1b7f   :  { %10707 = vmatmul.mubr.msk.f32.vlgmr.msra.gmra.mrb[60].mxu0 %vm321_vm0, %v9724_v12 }
0x1b9c   :  { %v506_v30 = vpop.xlane.xlu0 %505 }
0x1ba0   :  { %v518_v10 = vpop.xlane.xlu0 %517 }
0x1ba1   :  { %v522_v47 = vsub.f32 %v506_v30, %v518_v10 }
0x1ba3   :  { %v542_v61 = vmin.f32 %v522_v47, 20.0  ;;  %vm554_vm14 = vcmp.gt.f32.partialorder %v522_v47, 20.0 }
0x1ba4   :  { %v521_v41 = vpop.xlane.xlu0 %520 }
0x1ba5   :  { %v509_v22 = vpop.xlane.xlu1 %508  ;;  %v544_v38 = vmul.f32 1.442695, %v542_v61 }
0x1ba6   :  { %v523_v56 = vsub.f32 %v509_v22, %v521_v41 }
0x1ba8   :  { %v543_v46 = vmin.f32 %v523_v56, 20.0  ;;  %v531_v23 = vpop.xlane.xlu0 %530  ;;  %vm555_vm2 = vcmp.gt.f32.partialorder %v523_v56, 20.0 }
0x1ba9   :  { %v528_v58 = vpop.xlane.xlu1 %527 }
0x1baa   :  { %v546_v20 = vmul.f32 1.442695, %v543_v46 }
0x1bac   :  { %10971 = vpow2.f32 %v546_v20  ;;  %v539_v37 = vpop.xlane.xlu0 %538 }
0x1bad   :  { %10973 = vpow2.f32 %v544_v38  ;;  %v541_v59 = vsub.f32 %v531_v23, %v539_v37  ;;  %v536_v14 = vpop.xlane.xlu1 %535 }
0x1bae   :  { %v540_v35 = vsub.f32 %v528_v58, %v536_v14 }
0x1baf   :  { %v559_v29 = vmin.f32 %v541_v59, 20.0  ;;  %vm571_vm13 = vcmp.gt.f32.partialorder %v541_v59, 20.0 }
0x1bb0   :  { %v558_v55 = vmin.f32 %v540_v35, 20.0  ;;  %vm570_vm0 = vcmp.gt.f32.partialorder %v540_v35, 20.0  ;;  %v629_v30 = vpop.xlane.xlu0 %628 }
0x1bb1   :  { %v562_v33 = vmul.f32 1.442695, %v559_v29  ;;  %v619_v63 = vpop.xlane.xlu1 %618 }
0x1bb2   :  { %v560_v51 = vmul.f32 1.442695, %v558_v55  ;;  %v631_v10 = vsub.f32 %v619_v63, %v629_v30 }
0x1bb3   :  { %10975 = vpow2.f32 %v562_v33 }
0x1bb4   :  { %10977 = vpow2.f32 %v560_v51 }
0x1bb6   :  { %v10972_v52 = vpop.eup %10971 }
0x1bb7   :  { %v10974_v21 = vpop.eup %10973  ;;  %v549_v44 = vadd.f32 1.0, %v10972_v52 }
0x1bb8   :  { %v548_v15 = vadd.f32 1.0, %v10974_v21 }
0x1bb9   :  { %10979 = vlog2.f32 %v549_v44 }
0x1bba   :  { %10981 = vlog2.f32 %v548_v15 }
0x1bbd   :  { %v10976_v40 = vpop.eup %10975 }
0x1bbe   :  { %v565_v1 = vadd.f32 1.0, %v10976_v40  ;;  %v10978_v48 = vpop.eup %10977 }
0x1bbf   :  { %v564_v32 = vadd.f32 1.0, %v10978_v48 }
0x1bc0   :  { %10983 = vlog2.f32 %v565_v1 }
0x1bc1   :  { %10985 = vlog2.f32 %v564_v32 }
0x1bc3   :  { %v10980_v16 = vpop.eup %10979 }
0x1bc4   :  { %v10982_v49 = vpop.eup %10981  ;;  %v553_v36 = vmul.f32 0.6931472, %v10980_v16 }
0x1bc5   :  { %v551_v19 = vmul.f32 0.6931472, %v10982_v49 }
0x1bc6   :  { %v557_v24 = vsel %vm555_vm2, %v523_v56, %v553_v36 }
0x1bc7   :  { %v556_v62 = vsel %vm554_vm14, %v522_v47, %v551_v19  ;;  %v633_v47 = vmul.f32 %v631_v10, %v631_v10 }
0x1bc9   :  { %v635_v41 = vadd.f32 1e-06, %v633_v47 }
0x1bca   :  { %v10984_v25 = vpop.eup %10983 }
0x1bcb   :  { %v569_v53 = vmul.f32 0.6931472, %v10984_v25  ;;  %v10986_v50 = vpop.eup %10985  ;;  %v637_v38 = vsel %vm636_vm4, %v635_v41, 0.0  ;;  %vm645_vm4 = vcmask 0  }
0x1bcc   :  { %v567_v6 = vmul.f32 0.6931472, %v10986_v50 }
0x1bcd   :  { %v573_v0 = vsel %vm571_vm13, %v541_v59, %v569_v53 }
0x1bce   :  { %v575_v3 = vadd.f32 %v573_v0, %v557_v24  ;;  %v572_v42 = vsel %vm570_vm0, %v540_v35, %v567_v6 }
0x1bcf   :  { %v574_v31 = vadd.f32 %v572_v42, %v556_v62 }
0x1bd0   :  { %579 = vst.msk [vmem:[%s15239_s25 + $0x8] sm:$0x7] %vm578_vm12, %v575_v3 }
0x1bd1   :  { %577 = vst.msk [vmem:[%s15239_s25] sm:$0xff] %vm576_vm15, %v574_v31 }
0x1bf1   :  { %v626_v61 = vpop.xlane.xlu0 %625 }
0x1c0a   :  { %v616_v22 = vpop.xlane.xlu1 %615 }
0x1c0b   :  { %v630_v56 = vsub.f32 %v616_v22, %v626_v61 }
0x1c0d   :  { %v632_v46 = vmul.f32 %v630_v56, %v630_v56 }
0x1c0f   :  { %v634_v37 = vadd.f32 1e-06, %v632_v46 }
0x1c11   :  { %v638_v35 = vadd.f32 %v637_v38, %v634_v37 }
0x1c13   :  { %v639_v55 = vrot.slane %v638_v35, 4 }
0x1c15   :  { %v640_v33 = vadd.f32 %v639_v55, %v638_v35 }
0x1c17   :  { %v641_v51 = vrot.slane %v640_v33, 2 }
0x1c19   :  { %v642_v52 = vadd.f32 %v641_v51, %v640_v33 }
0x1c1b   :  { %v643_v21 = vrot.slane %v642_v52, 1 }
0x1c1d   :  { %v644_v44 = vadd.f32 %v643_v21, %v642_v52 }
0x1c3b   :  { %v10701_v17 = vpop.f32.mrb[58].mxu1 }
0x1c3c   :  { %9898 = vst.msk [vmem:[#allocation29 + $0x8] sm:$0xff] %vm722_vm7, %v10701_v17  ;;  %v9902_v11 = vmul.f32 %v10701_v17, %v10049_v27  ;;  %v9910_v54 = vmul.f32 %v10701_v17, %v10051_v18  ;;  %v9803_v34 = vpop.f32.mrb[59].mxu1 }
0x1c3d   :  { %9897 = vst.msk [vmem:[#allocation29] sm:$0xff] %vm722_vm7, %v9803_v34  ;;  %v9901_v8 = vmul.f32 %v10048_v2, %v9803_v34  ;;  %v9909_v12 = vmul.f32 %v10050_v4, %v9803_v34 }
0x1c3e   :  { %v9906_v45 = vsel %vm722_vm7, %v9902_v11, 0.0  ;;  %v9914_v7 = vsel %vm722_vm7, %v9910_v54, 0.0 }
0x1c3f   :  { %9907 = vadd.xlane.f32.xlu0 %v9906_v45  ;;  %v9903_v43 = vsel %vm722_vm7, %v9901_v8, 0.0  ;;  %v9911_v13 = vsel %vm722_vm7, %v9909_v12, 0.0 }
0x1c40   :  { %9904 = vadd.xlane.f32.xlu1 %v9903_v43 }
0x1c43   :  { %9915 = vadd.xlane.f32.xlu0 %v9914_v7 }
0x1c44   :  { %9912 = vadd.xlane.f32.xlu1 %v9911_v13 }
0x1c52   :  { %v10708_v23 = vpop.f32.mrb[60].mxu0 }
0x1c53   :  { %9900 = vst.msk [vmem:[#allocation30 + $0x8] sm:$0xff] %vm722_vm7, %v10708_v23  ;;  %v9918_v58 = vmul.f32 %v10708_v23, %v10049_v27  ;;  %v9888_v20 = vpop.f32.mrb[61].mxu0 }
0x1c54   :  { %9899 = vst.msk [vmem:[#allocation30] sm:$0xff] %vm722_vm7, %v9888_v20  ;;  %v9917_v59 = vmul.f32 %v10048_v2, %v9888_v20 }
0x1c55   :  { %v9922_v14 = vsel %vm722_vm7, %v9918_v58, 0.0 }
0x1c56   :  { %9923 = vadd.xlane.f32.xlu0 %v9922_v14  ;;  %v9919_v29 = vsel %vm722_vm7, %v9917_v59, 0.0 }
0x1c57   :  { %9920 = vadd.xlane.f32.xlu1 %v9919_v29 }
0x1c58   :  { %11332 = shalt.err (!%p11329_p12)
}
0x1c59   :  { %s15241_s20 = sld [smem:[#allocation54_spill]] }
0x1c5f   :  { %s11333_s23 = scalar_lea.hbm %s15241_s20, 256 }
0x1c60   :  { %p11334_p13 = scmp.ne.s32.totalorder %s15241_s20, %s11333_s23  ;;  %p11337_p0 = scmp.lt.u32.totalorder %s11333_s23, %s15241_s20 }
0x1c62   :  { %p11339_p1 = pnand %p11337_p0, %p11334_p13 }
0x1c64   :  { %11342 = shalt.err (!%p11339_p1)
}
0x1c65   :  { %9946 = dma.vmem_to_hbm [thread:$0]  %s9941_s0, 256, %s15241_s20, [#allocation4], %s11463_s26, %s11463_s26, %s11464_s28   ;;  %646 = vst.msk [vmem:[#allocation27] sm:$0x1] %vm645_vm4, %v644_v44 }
0x1c66   :  { %s11343_s5 = scalar_lea.vmem %s14778_s18, 16  ;;  %s11347_s30 = scalar_lea.vmem %s14778_s18, 32 }
0x1c67   :  { %p11344_p2 = scmp.ne.s32.totalorder %s14778_s18, %s11343_s5  ;;  %p11348_p3 = scmp.lt.s32.totalorder %s14778_s18, %s14778_s18 }
0x1c68   :  { %p11349_p4 = scmp.lt.s32.totalorder %s11347_s30, %s11343_s5 }
0x1c6a   :  { %p11350_p5 = por %p11349_p4, %p11348_p3 }
0x1c6c   :  { %p11351_p6 = pnand %p11350_p5, %p11344_p2 }
0x1c6e   :  { %11354 = shalt.err (!%p11351_p6)
}
0x1c6f   :  { %s11355_s1 = scalar_lea.hbm %s11639_s21, 16 }
0x1c70   :  { %p11356_p7 = scmp.ne.s32.totalorder %s11639_s21, %s11355_s1  ;;  %p11359_p8 = scmp.lt.u32.totalorder %s11355_s1, %s11639_s21 }
0x1c72   :  { %p11361_p9 = pnand %p11359_p8, %p11356_p7 }
0x1c74   :  { %11364 = shalt.err (!%p11361_p9)
}
0x1c75   :  { %9958 = dma.vmem_to_hbm [thread:$0]  %s14778_s18, 16, %s11639_s21, [#allocation28]  }
0x1c76   :  { %s11494_s2 = smov [#allocation29]   ;;  %s11495_s17 = smov [#allocation30]  }
0x1c77   :  { %s9966_s19 = sshll.u32 %s11494_s2, 4  ;;  %s9978_s7 = sshll.u32 %s11495_s17, 4  ;;  %s9967_s19 = int_to_ptr.vmem [resolvable:$true] %s9966_s19  ;;  %s14798_s7 = int_to_ptr.vmem [resolvable:$true] %s9978_s7 }
0x1c78   :  { %s11365_s12 = scalar_lea.vmem %s9967_s19, 256  ;;  %p11370_p11 = scmp.lt.s32.totalorder %s9967_s19, %s9967_s19 }
0x1c79   :  { %p11366_p10 = scmp.ne.s32.totalorder %s9967_s19, %s11365_s12  ;;  %p11371_p12 = scmp.lt.s32.totalorder %s11365_s12, %s11365_s12 }
0x1c7b   :  { %p11372_p13 = por %p11371_p12, %p11370_p11 }
0x1c7d   :  { %p11373_p0 = pnand %p11372_p13, %p11366_p10 }
0x1c7f   :  { %11376 = shalt.err (!%p11373_p0)
}
0x1c80   :  { %s11377_s10 = scalar_lea.hbm %s11649_s4, 256 }
0x1c81   :  { %p11378_p1 = scmp.ne.s32.totalorder %s11649_s4, %s11377_s10  ;;  %p11381_p2 = scmp.lt.u32.totalorder %s11377_s10, %s11649_s4 }
0x1c83   :  { %p11383_p3 = pnand %p11381_p2, %p11378_p1 }
0x1c85   :  { %11386 = shalt.err (!%p11383_p3)
}
0x1c86   :  { %9972 = dma.vmem_to_hbm [thread:$0]  %s9967_s19, 256, %s11649_s4, [#allocation28], %s11463_s26, %s11463_s26, %s11464_s28  }
0x1c87   :  { %s11387_s21 = scalar_lea.vmem %s14798_s7, 256  ;;  %p11392_p5 = scmp.lt.s32.totalorder %s14798_s7, %s14798_s7 }
0x1c88   :  { %p11388_p4 = scmp.ne.s32.totalorder %s14798_s7, %s11387_s21  ;;  %p11393_p6 = scmp.lt.s32.totalorder %s11387_s21, %s11387_s21 }
0x1c8a   :  { %p11394_p7 = por %p11393_p6, %p11392_p5 }
0x1c8c   :  { %p11395_p8 = pnand %p11394_p7, %p11388_p4 }
0x1c8e   :  { %11398 = shalt.err (!%p11395_p8)
}
0x1c8f   :  { %s11399_s29 = scalar_lea.hbm %s11654_s14, 256 }
0x1c90   :  { %p11400_p9 = scmp.ne.s32.totalorder %s11654_s14, %s11399_s29  ;;  %p11403_p10 = scmp.lt.u32.totalorder %s11399_s29, %s11654_s14 }
0x1c92   :  { %p11405_p11 = pnand %p11403_p10, %p11400_p9 }
0x1c94   :  { %11408 = shalt.err (!%p11405_p11)
}
0x1c95   :  { %9984 = dma.vmem_to_hbm [thread:$0]  %s14798_s7, 256, %s11654_s14, [#allocation31], %s11463_s26, %s11463_s26, %s11464_s28   ;;  %vm9927_vm7 = vcmask 15360   ;;  %vm9930_vm11 = vcmask 23552  }
0x1ccc   :  { %v9908_v15 = vpop.xlane.xlu0 %9907 }
0x1ccd   :  { %v9905_v60 = vpop.xlane.xlu1 %9904 }
0x1cd0   :  { %v9916_v5 = vpop.xlane.xlu0 %9915 }
0x1cd1   :  { %v9913_v40 = vpop.xlane.xlu1 %9912  ;;  %v9926_v1 = vsel %vm576_vm15, %v9908_v15, %v9916_v5 }
0x1cd2   :  { %v9925_v39 = vsel %vm576_vm15, %v9905_v60, %v9913_v40 }
0x1ce3   :  { %v9924_v57 = vpop.xlane.xlu0 %9923 }
0x1ce4   :  { %v9929_v48 = vsel %vm9927_vm7, %v9926_v1, %v9924_v57  ;;  %v9921_v32 = vpop.xlane.xlu1 %9920 }
0x1ce5   :  { %9932 = vst.msk [vmem:[%s11644_s13 + $0x8] sm:$0xff] %vm9930_vm11, %v9929_v48  ;;  %v9928_v9 = vsel %vm9927_vm7, %v9925_v39, %v9921_v32 }
0x1ce6   :  { %9931 = vst.msk [vmem:[%s11644_s13] sm:$0xff] %vm9930_vm11, %v9928_v9 }
0x1ce7   :  { %11425 = dma.done.wait [#allocation4], 256  }
0x1ce8   :  { %11426 = vsyncadd [#allocation4], 4294967040 }
0x1ce9   :  { %11427 = dma.done.wait [#allocation28], 272  }
0x1cea   :  { %11428 = vsyncadd [#allocation28], 4294967024 }
0x1ceb   :  { %11429 = dma.done.wait [#allocation31], 256  }
0x1cec   :  { %11430 = vsyncadd [#allocation31], 4294967040 }
0x1ced   :  { %10003 = vsyncpa [#allocation3], 1 }
0x1cee   :  { %10004 = vsyncpa [#allocation6], 1 }
0x1cef   :  { %10005 = vsyncpa [#allocation9], 1 }
0x1cf0   :  { %10006 = vsyncpa [#allocation12], 1 }
0x1cf1   :  { %10007 = vsyncpa [#allocation15], 1 }
0x1cf2   :  { %10008 = vsyncpa [#allocation18], 1 }
0x1cf3   :  { %10009 = vsyncpa [#allocation21], 1 }
0x1cf4   :  { %10010 = vsyncpa [#allocation24], 1 }
0x1cf5   :  { %10011 = vsyncpa [#allocation4], 1 }
0x1cf6   :  { %10012 = vsyncpa [#allocation28], 1 }
0x1cf7   :  { %10013 = vsyncpa [#allocation31], 1 }

</bundles_post_ra>
